<compile_context>
chip_gen: v7x
topology: tpu7x:2x2x1
jax: 0.10.0
libtpu: 0.0.40
codegen_flags: <defaults>
</compile_context>

<pallas_src>
import functools

import jax
import jax.numpy as jnp
from jax import lax
from jax.experimental import pallas as pl
from jax.experimental.pallas import tpu as pltpu


# ----------------------------------------------------------------------------
# Wrapper-side im2col (layout plumbing only; applied to the network input)
# ----------------------------------------------------------------------------
def im2col_nhwc(x, KH, KW, stride, pad):
    """x: (N,H,W,C) -> (N, Ho*Wo, KH*KW*C) with (kh, kw, c) ordering."""
    N, H, W, C = x.shape
    xp = jnp.pad(x, ((0, 0), (pad, pad), (pad, pad), (0, 0)))
    Ho = (H + 2 * pad - KH) // stride + 1
    Wo = (W + 2 * pad - KW) // stride + 1
    cols = []
    for kh in range(KH):
        for kw in range(KW):
            cols.append(lax.slice(
                xp, (0, kh, kw, 0),
                (N, kh + (Ho - 1) * stride + 1, kw + (Wo - 1) * stride + 1, C),
                (1, stride, stride, 1)))
    cols = jnp.concatenate(cols, axis=-1)            # (N, Ho, Wo, KH*KW*C)
    return cols.reshape(N, Ho * Wo, KH * KW * C), Ho, Wo


# ----------------------------------------------------------------------------
# Fused trunk kernel: downsample conv + 6 BasicBlocks + conv_alone in one call
# ----------------------------------------------------------------------------
def _trunk_kernel(cols_ref, wd_ref, bd_ref, w3_ref, scale_ref, shift_ref,
                  o_ref, *, Ho, Wo, n_blocks):
    C = o_ref.shape[-1]

    # --- last 5x5 stride-2 downsample conv: one deep-K matmul, decimated ---
    y = jnp.dot(cols_ref[0], wd_ref[...], preferred_element_type=jnp.float32)
    x = (y + bd_ref[...]).reshape(Ho, Wo, C)          # f32 activation (NHWC)

    def pad1(v):                                      # in-kernel halo padding
        H, W, Cc = v.shape
        zr = jnp.zeros((1, W, Cc), v.dtype)
        v = jnp.concatenate([zr, v, zr], axis=0)
        zc = jnp.zeros((H + 2, 1, Cc), v.dtype)
        return jnp.concatenate([zc, v, zc], axis=1)

    def conv3x3(v, idx, leaky):
        vp = pad1(v)
        cols = jnp.concatenate(
            [vp[kh:kh + Ho, kw:kw + Wo, :]
             for kh in range(3) for kw in range(3)], axis=-1)   # (Ho,Wo,9C)
        cols = cols.reshape(Ho * Wo, 9 * C).astype(jnp.bfloat16)
        z = jnp.dot(cols, w3_ref[idx], preferred_element_type=jnp.float32)
        z = z * scale_ref[idx] + shift_ref[idx]       # folded BN / bias (f32)
        if leaky:
            z = jnp.where(z > 0, z, 0.2 * z)          # LeakyReLU(0.2)
        return z.reshape(Ho, Wo, C)

    for b in range(n_blocks):                         # 6 BasicBlocks, in VMEM
        t = conv3x3(x, 2 * b, leaky=True)
        t = conv3x3(t, 2 * b + 1, leaky=False)
        x = x + t                                     # residual skip
    x = conv3x3(x, 2 * n_blocks, leaky=False)         # conv_alone
    o_ref[0] = x.reshape(Ho * Wo, C).astype(o_ref.dtype)


def trunk_forward_pallas(cols, wd, bd, w3, scale, shift, Ho, Wo):
    N, P, Kd = cols.shape
    L, K3, C = w3.shape                               # (13, 288, 32)
    kernel = functools.partial(_trunk_kernel, Ho=Ho, Wo=Wo,
                               n_blocks=(L - 1) // 2)
    return pl.pallas_call(
        kernel,
        grid=(N,),
        in_specs=[
            pl.BlockSpec((1, P, Kd), lambda n: (n, 0, 0)),   # im2col'd input
            pl.BlockSpec((Kd, C), lambda n: (0, 0)),         # downsample weight
            pl.BlockSpec((1, C), lambda n: (0, 0)),          # downsample bias
            pl.BlockSpec((L, K3, C), lambda n: (0, 0, 0)),   # 13x 3x3 weights
            pl.BlockSpec((L, 1, C), lambda n: (0, 0, 0)),    # folded BN scale
            pl.BlockSpec((L, 1, C), lambda n: (0, 0, 0)),    # folded BN shift
        ],
        out_specs=pl.BlockSpec((1, P, C), lambda n: (n, 0, 0)),
        out_shape=jax.ShapeDtypeStruct((N, P, C), jnp.float32),
        compiler_params=pltpu.CompilerParams(
            dimension_semantics=("parallel",)),       # v7x: shard batch on 2 TCs
    )(cols, wd, bd, w3, scale, shift)


# ----------------------------------------------------------------------------
# Standalone downsample conv (only used for the first k-1 layers when k > 1)
# ----------------------------------------------------------------------------
def _downsample_kernel(cols_ref, w_ref, b_ref, o_ref):
    y = jnp.dot(cols_ref[0], w_ref[...], preferred_element_type=jnp.float32)
    o_ref[0] = (y + b_ref[...]).astype(o_ref.dtype)


def downsample_conv_pallas(x, w_hwio, b):
    """5x5 / stride-2 / pad-2 conv + bias as one deep-K matmul per image."""
    N = x.shape[0]
    cols, Ho, Wo = im2col_nhwc(x, 5, 5, stride=2, pad=2)
    cols = cols.astype(jnp.bfloat16)
    Kd = cols.shape[-1]
    Cout = w_hwio.shape[-1]
    wm = w_hwio.reshape(Kd, Cout).astype(jnp.bfloat16)
    out = pl.pallas_call(
        _downsample_kernel,
        grid=(N,),
        in_specs=[pl.BlockSpec((1, Ho * Wo, Kd), lambda n: (n, 0, 0)),
                  pl.BlockSpec((Kd, Cout), lambda n: (0, 0)),
                  pl.BlockSpec((1, Cout), lambda n: (0, 0))],
        out_specs=pl.BlockSpec((1, Ho * Wo, Cout), lambda n: (n, 0, 0)),
        out_shape=jax.ShapeDtypeStruct((N, Ho * Wo, Cout), jnp.float32),
        compiler_params=pltpu.CompilerParams(dimension_semantics=("parallel",)),
    )(cols, wm, b[None].astype(jnp.float32))
    return out.reshape(N, Ho, Wo, Cout)


# ----------------------------------------------------------------------------
# Parameters (shapes from the module __init__), eval-mode BN folded
# ----------------------------------------------------------------------------
def init_params(key, k):
    keys = iter(jax.random.split(key, 128))
    nk = lambda: next(keys)

    def conv_w(kh, kw, cin, cout):
        return 0.05 * jax.random.normal(nk(), (kh, kw, cin, cout), jnp.float32)

    def bias(cout):
        return 0.1 * jax.random.normal(nk(), (cout,), jnp.float32)

    def bn_fold(b, cout, eps=1e-5):
        gamma = 1.0 + 0.1 * jax.random.normal(nk(), (cout,), jnp.float32)
        beta = 0.1 * jax.random.normal(nk(), (cout,), jnp.float32)
        mean = 0.1 * jax.random.normal(nk(), (cout,), jnp.float32)
        var = 1.0 + 0.1 * jax.random.uniform(nk(), (cout,), jnp.float32)
        s = gamma * lax.rsqrt(var + eps)
        return s[None], (s * (b - mean) + beta)[None]

    down, cin = [], 3
    for _ in range(k):                                  # 5x5 stride-2 convs
        down.append((conv_w(5, 5, cin, 32), bias(32)))
        cin = 32

    blocks = []
    for _ in range(6):                                  # 6 BasicBlocks
        w1, b1 = conv_w(3, 3, 32, 32), bias(32)
        s1, sh1 = bn_fold(b1, 32)
        w2, b2 = conv_w(3, 3, 32, 32), bias(32)
        s2, sh2 = bn_fold(b2, 32)
        blocks.append(dict(w1=w1, scale1=s1, shift1=sh1,
                           w2=w2, scale2=s2, shift2=sh2))

    alone = (conv_w(3, 3, 32, 32), bias(32))            # conv_alone
    return dict(down=down, blocks=blocks, alone=alone)


def pack_trunk_params(params):
    """Stack the 13 3x3 convs (6 blocks x 2 + conv_alone) into kernel layout."""
    ws, scales, shifts = [], [], []
    for blk in params['blocks']:
        ws += [blk['w1'].reshape(9 * 32, 32), blk['w2'].reshape(9 * 32, 32)]
        scales += [blk['scale1'], blk['scale2']]
        shifts += [blk['shift1'], blk['shift2']]
    wa, ba = params['alone']
    ws.append(wa.reshape(9 * 32, 32))
    scales.append(jnp.ones((1, 32), jnp.float32))
    shifts.append(ba[None])
    w3 = jnp.stack(ws).astype(jnp.bfloat16)             # (13, 288, 32)
    return w3, jnp.stack(scales), jnp.stack(shifts)     # (13,1,32) f32 each


# ----------------------------------------------------------------------------
# Forward pass (Pallas) and pure-JAX reference (same bf16 MXU quantization)
# ----------------------------------------------------------------------------
def feature_extraction_forward(x_nchw, params, k):
    x = jnp.transpose(x_nchw, (0, 2, 3, 1)).astype(jnp.float32)      # NHWC
    for i in range(k - 1):                 # earlier downsamples (only if k > 1)
        w, b = params['down'][i]
        x = downsample_conv_pallas(x, w, b)

    w3, scale, shift = pack_trunk_params(params)
    wd, bd = params['down'][k - 1]
    cols, Ho, Wo = im2col_nhwc(x, 5, 5, stride=2, pad=2)  # decimated im2col
    cols = cols.astype(jnp.bfloat16)
    wd = wd.reshape(-1, 32).astype(jnp.bfloat16)

    out = trunk_forward_pallas(cols, wd, bd[None], w3, scale, shift, Ho, Wo)
    N = x.shape[0]
    out = out.reshape(N, Ho, Wo, 32)
    return jnp.transpose(out, (0, 3, 1, 2))                          # NCHW


def ref_forward(x_nchw, params, k):
    def conv(x, w, stride, pad):
        return lax.conv_general_dilated(
            x.astype(jnp.bfloat16), w.astype(jnp.bfloat16),
            (stride, stride), [(pad, pad), (pad, pad)],
            dimension_numbers=('NHWC', 'HWIO', 'NHWC'),
            preferred_element_type=jnp.float32)

    x = jnp.transpose(x_nchw, (0, 2, 3, 1)).astype(jnp.float32)
    for i in range(k):
        w, b = params['down'][i]
        x = conv(x, w, 2, 2) + b
    for blk in params['blocks']:
        y = conv(x, blk['w1'], 1, 1) * blk['scale1'][0] + blk['shift1'][0]
        y = jnp.where(y > 0, y, 0.2 * y)
        y = conv(y, blk['w2'], 1, 1) * blk['scale2'][0] + blk['shift2'][0]
        x = x + y
    w, b = params['alone']
    x = conv(x, w, 1, 1) + b
    return jnp.transpose(x, (0, 3, 1, 2))


# ----------------------------------------------------------------------------
if __name__ == "__main__":
    key = jax.random.PRNGKey(0)
    kx, kp = jax.random.split(key)

    k = 1                                   # number of 5x5 stride-2 downsamples
    x = jax.random.normal(kx, (2, 3, 16, 16), jnp.float32)   # NCHW like PyTorch
    params = init_params(kp, k)

    fwd = jax.jit(feature_extraction_forward, static_argnums=2)
    out = jax.block_until_ready(fwd(x, params, k))
    assert out.shape == (2, 32, 8, 8), out.shape

    ref = ref_forward(x, params, k)
    err = float(jnp.max(jnp.abs(out - ref)))
    # tolerance accounts for bf16 MXU operands (reference uses the same quantization)
    tol = 5e-3 * max(1.0, float(jnp.max(jnp.abs(ref))))
    assert err < tol, f"max abs err vs reference: {err} (tol {tol})"

    print("KERNEL_OK")
</pallas_src>

<mosaic_0001>
module attributes {stable_mosaic.version = 11 : i64} {
  func.func @_trunk_kernel(%arg0: i32, %arg1: memref<1x64x75xbf16, #tpu.memory_space<vmem>>, %arg2: memref<75x32xbf16, #tpu.memory_space<vmem>>, %arg3: memref<1x32xf32, #tpu.memory_space<vmem>>, %arg4: memref<13x288x32xbf16, #tpu.memory_space<vmem>>, %arg5: memref<13x1x32xf32, #tpu.memory_space<vmem>>, %arg6: memref<13x1x32xf32, #tpu.memory_space<vmem>>, %arg7: memref<1x64x32xf32, #tpu.memory_space<vmem>>) attributes {dimension_semantics = [#tpu.dimension_semantics<parallel>], iteration_bounds = array<i64: 2>, scalar_prefetch = 0 : i64, scratch_operands = 0 : i64, tpu.core_type = #tpu.core_type<tc>, window_params = [{transform_indices = @transform_0, window_bounds = array<i64: 1, 64, 75>}, {pipeline_mode = #tpu.pipeline_mode<synchronous>, transform_indices = @transform_1, window_bounds = array<i64: 75, 32>}, {pipeline_mode = #tpu.pipeline_mode<synchronous>, transform_indices = @transform_2, window_bounds = array<i64: 1, 32>}, {pipeline_mode = #tpu.pipeline_mode<synchronous>, transform_indices = @transform_3, window_bounds = array<i64: 13, 288, 32>}, {pipeline_mode = #tpu.pipeline_mode<synchronous>, transform_indices = @transform_4, window_bounds = array<i64: 13, 1, 32>}, {pipeline_mode = #tpu.pipeline_mode<synchronous>, transform_indices = @transform_5, window_bounds = array<i64: 13, 1, 32>}, {transform_indices = @transform_6, window_bounds = array<i64: 1, 64, 32>}]} {
    %c0 = arith.constant 0 : index
    %c0_0 = arith.constant 0 : index
    %c0_1 = arith.constant 0 : index
    %0 = vector.load %arg1[%c0, %c0_0, %c0_1] : memref<1x64x75xbf16, #tpu.memory_space<vmem>>, vector<1x64x75xbf16>
    %1 = vector.shape_cast %0 : vector<1x64x75xbf16> to vector<64x75xbf16>
    %c0_2 = arith.constant 0 : index
    %c0_3 = arith.constant 0 : index
    %2 = vector.load %arg2[%c0_2, %c0_3] : memref<75x32xbf16, #tpu.memory_space<vmem>>, vector<75x32xbf16>
    %cst = arith.constant dense<0.000000e+00> : vector<64x32xf32>
    %3 = tpu.matmul %1, %2, %cst {dimension_numbers = #tpu.dot_dimension_numbers<[1], [0], [0], [1], [0, 0, 1, 1], [], []>} : vector<64x75xbf16>, vector<75x32xbf16>, vector<64x32xf32> -> vector<64x32xf32>
    %c0_4 = arith.constant 0 : index
    %c0_5 = arith.constant 0 : index
    %4 = vector.load %arg3[%c0_4, %c0_5] : memref<1x32xf32, #tpu.memory_space<vmem>>, vector<1x32xf32>
    %5 = vector.broadcast %4 : vector<1x32xf32> to vector<64x32xf32>
    %6 = arith.addf %3, %5 : vector<64x32xf32>
    %7 = vector.shape_cast %6 : vector<64x32xf32> to vector<8x8x32xf32>
    %cst_6 = arith.constant 0.000000e+00 : f32
    %8 = vector.broadcast %cst_6 : f32 to vector<1x8x32xf32>
    %9 = tpu.concatenate %8, %7, %8 in 0 : vector<1x8x32xf32>, vector<8x8x32xf32>, vector<1x8x32xf32> -> vector<10x8x32xf32>
    %cst_7 = arith.constant 0.000000e+00 : f32
    %10 = vector.broadcast %cst_7 : f32 to vector<10x1x32xf32>
    %11 = tpu.concatenate %10, %9, %10 in 1 : vector<10x1x32xf32>, vector<10x8x32xf32>, vector<10x1x32xf32> -> vector<10x10x32xf32>
    %12 = vector.extract_strided_slice %11 {offsets = [0, 0, 0], sizes = [8, 8, 32], strides = [1, 1, 1]} : vector<10x10x32xf32> to vector<8x8x32xf32>
    %13 = vector.extract_strided_slice %11 {offsets = [0, 1, 0], sizes = [8, 8, 32], strides = [1, 1, 1]} : vector<10x10x32xf32> to vector<8x8x32xf32>
    %14 = vector.extract_strided_slice %11 {offsets = [0, 2, 0], sizes = [8, 8, 32], strides = [1, 1, 1]} : vector<10x10x32xf32> to vector<8x8x32xf32>
    %15 = vector.extract_strided_slice %11 {offsets = [1, 0, 0], sizes = [8, 8, 32], strides = [1, 1, 1]} : vector<10x10x32xf32> to vector<8x8x32xf32>
    %16 = vector.extract_strided_slice %11 {offsets = [1, 1, 0], sizes = [8, 8, 32], strides = [1, 1, 1]} : vector<10x10x32xf32> to vector<8x8x32xf32>
    %17 = vector.extract_strided_slice %11 {offsets = [1, 2, 0], sizes = [8, 8, 32], strides = [1, 1, 1]} : vector<10x10x32xf32> to vector<8x8x32xf32>
    %18 = vector.extract_strided_slice %11 {offsets = [2, 0, 0], sizes = [8, 8, 32], strides = [1, 1, 1]} : vector<10x10x32xf32> to vector<8x8x32xf32>
    %19 = vector.extract_strided_slice %11 {offsets = [2, 1, 0], sizes = [8, 8, 32], strides = [1, 1, 1]} : vector<10x10x32xf32> to vector<8x8x32xf32>
    %20 = vector.extract_strided_slice %11 {offsets = [2, 2, 0], sizes = [8, 8, 32], strides = [1, 1, 1]} : vector<10x10x32xf32> to vector<8x8x32xf32>
    %21 = tpu.concatenate %12, %13, %14, %15, %16, %17, %18, %19, %20 in 2 : vector<8x8x32xf32>, vector<8x8x32xf32>, vector<8x8x32xf32>, vector<8x8x32xf32>, vector<8x8x32xf32>, vector<8x8x32xf32>, vector<8x8x32xf32>, vector<8x8x32xf32>, vector<8x8x32xf32> -> vector<8x8x288xf32>
    %22 = vector.shape_cast %21 : vector<8x8x288xf32> to vector<64x288xf32>
    %23 = arith.truncf %22 : vector<64x288xf32> to vector<64x288xbf16>
    %c0_8 = arith.constant 0 : index
    %c0_9 = arith.constant 0 : index
    %c0_10 = arith.constant 0 : index
    %24 = vector.load %arg4[%c0_8, %c0_9, %c0_10] : memref<13x288x32xbf16, #tpu.memory_space<vmem>>, vector<1x288x32xbf16>
    %25 = vector.shape_cast %24 : vector<1x288x32xbf16> to vector<288x32xbf16>
    %cst_11 = arith.constant dense<0.000000e+00> : vector<64x32xf32>
    %26 = tpu.matmul %23, %25, %cst_11 {dimension_numbers = #tpu.dot_dimension_numbers<[1], [0], [0], [1], [0, 0, 1, 1], [], []>} : vector<64x288xbf16>, vector<288x32xbf16>, vector<64x32xf32> -> vector<64x32xf32>
    %c0_12 = arith.constant 0 : index
    %c0_13 = arith.constant 0 : index
    %c0_14 = arith.constant 0 : index
    %27 = vector.load %arg5[%c0_12, %c0_13, %c0_14] : memref<13x1x32xf32, #tpu.memory_space<vmem>>, vector<1x1x32xf32>
    %28 = vector.shape_cast %27 : vector<1x1x32xf32> to vector<1x32xf32>
    %29 = vector.broadcast %28 : vector<1x32xf32> to vector<64x32xf32>
    %30 = arith.mulf %26, %29 : vector<64x32xf32>
    %c0_15 = arith.constant 0 : index
    %c0_16 = arith.constant 0 : index
    %c0_17 = arith.constant 0 : index
    %31 = vector.load %arg6[%c0_15, %c0_16, %c0_17] : memref<13x1x32xf32, #tpu.memory_space<vmem>>, vector<1x1x32xf32>
    %32 = vector.shape_cast %31 : vector<1x1x32xf32> to vector<1x32xf32>
    %33 = vector.broadcast %32 : vector<1x32xf32> to vector<64x32xf32>
    %34 = arith.addf %30, %33 : vector<64x32xf32>
    %cst_18 = arith.constant 0.000000e+00 : f32
    %35 = vector.broadcast %cst_18 : f32 to vector<64x32xf32>
    %36 = arith.cmpf ogt, %34, %35 : vector<64x32xf32>
    %cst_19 = arith.constant 2.000000e-01 : f32
    %37 = vector.broadcast %cst_19 : f32 to vector<64x32xf32>
    %38 = arith.mulf %37, %34 : vector<64x32xf32>
    %39 = arith.select %36, %34, %38 : vector<64x32xi1>, vector<64x32xf32>
    %40 = vector.shape_cast %39 : vector<64x32xf32> to vector<8x8x32xf32>
    %cst_20 = arith.constant 0.000000e+00 : f32
    %41 = vector.broadcast %cst_20 : f32 to vector<1x8x32xf32>
    %42 = tpu.concatenate %41, %40, %41 in 0 : vector<1x8x32xf32>, vector<8x8x32xf32>, vector<1x8x32xf32> -> vector<10x8x32xf32>
    %cst_21 = arith.constant 0.000000e+00 : f32
    %43 = vector.broadcast %cst_21 : f32 to vector<10x1x32xf32>
    %44 = tpu.concatenate %43, %42, %43 in 1 : vector<10x1x32xf32>, vector<10x8x32xf32>, vector<10x1x32xf32> -> vector<10x10x32xf32>
    %45 = vector.extract_strided_slice %44 {offsets = [0, 0, 0], sizes = [8, 8, 32], strides = [1, 1, 1]} : vector<10x10x32xf32> to vector<8x8x32xf32>
    %46 = vector.extract_strided_slice %44 {offsets = [0, 1, 0], sizes = [8, 8, 32], strides = [1, 1, 1]} : vector<10x10x32xf32> to vector<8x8x32xf32>
    %47 = vector.extract_strided_slice %44 {offsets = [0, 2, 0], sizes = [8, 8, 32], strides = [1, 1, 1]} : vector<10x10x32xf32> to vector<8x8x32xf32>
    %48 = vector.extract_strided_slice %44 {offsets = [1, 0, 0], sizes = [8, 8, 32], strides = [1, 1, 1]} : vector<10x10x32xf32> to vector<8x8x32xf32>
    %49 = vector.extract_strided_slice %44 {offsets = [1, 1, 0], sizes = [8, 8, 32], strides = [1, 1, 1]} : vector<10x10x32xf32> to vector<8x8x32xf32>
    %50 = vector.extract_strided_slice %44 {offsets = [1, 2, 0], sizes = [8, 8, 32], strides = [1, 1, 1]} : vector<10x10x32xf32> to vector<8x8x32xf32>
    %51 = vector.extract_strided_slice %44 {offsets = [2, 0, 0], sizes = [8, 8, 32], strides = [1, 1, 1]} : vector<10x10x32xf32> to vector<8x8x32xf32>
    %52 = vector.extract_strided_slice %44 {offsets = [2, 1, 0], sizes = [8, 8, 32], strides = [1, 1, 1]} : vector<10x10x32xf32> to vector<8x8x32xf32>
    %53 = vector.extract_strided_slice %44 {offsets = [2, 2, 0], sizes = [8, 8, 32], strides = [1, 1, 1]} : vector<10x10x32xf32> to vector<8x8x32xf32>
    %54 = tpu.concatenate %45, %46, %47, %48, %49, %50, %51, %52, %53 in 2 : vector<8x8x32xf32>, vector<8x8x32xf32>, vector<8x8x32xf32>, vector<8x8x32xf32>, vector<8x8x32xf32>, vector<8x8x32xf32>, vector<8x8x32xf32>, vector<8x8x32xf32>, vector<8x8x32xf32> -> vector<8x8x288xf32>
    %55 = vector.shape_cast %54 : vector<8x8x288xf32> to vector<64x288xf32>
    %56 = arith.truncf %55 : vector<64x288xf32> to vector<64x288xbf16>
    %c1 = arith.constant 1 : index
    %c0_22 = arith.constant 0 : index
    %c0_23 = arith.constant 0 : index
    %57 = vector.load %arg4[%c1, %c0_22, %c0_23] : memref<13x288x32xbf16, #tpu.memory_space<vmem>>, vector<1x288x32xbf16>
    %58 = vector.shape_cast %57 : vector<1x288x32xbf16> to vector<288x32xbf16>
    %cst_24 = arith.constant dense<0.000000e+00> : vector<64x32xf32>
    %59 = tpu.matmul %56, %58, %cst_24 {dimension_numbers = #tpu.dot_dimension_numbers<[1], [0], [0], [1], [0, 0, 1, 1], [], []>} : vector<64x288xbf16>, vector<288x32xbf16>, vector<64x32xf32> -> vector<64x32xf32>
    %c1_25 = arith.constant 1 : index
    %c0_26 = arith.constant 0 : index
    %c0_27 = arith.constant 0 : index
    %60 = vector.load %arg5[%c1_25, %c0_26, %c0_27] : memref<13x1x32xf32, #tpu.memory_space<vmem>>, vector<1x1x32xf32>
    %61 = vector.shape_cast %60 : vector<1x1x32xf32> to vector<1x32xf32>
    %62 = vector.broadcast %61 : vector<1x32xf32> to vector<64x32xf32>
    %63 = arith.mulf %59, %62 : vector<64x32xf32>
    %c1_28 = arith.constant 1 : index
    %c0_29 = arith.constant 0 : index
    %c0_30 = arith.constant 0 : index
    %64 = vector.load %arg6[%c1_28, %c0_29, %c0_30] : memref<13x1x32xf32, #tpu.memory_space<vmem>>, vector<1x1x32xf32>
    %65 = vector.shape_cast %64 : vector<1x1x32xf32> to vector<1x32xf32>
    %66 = vector.broadcast %65 : vector<1x32xf32> to vector<64x32xf32>
    %67 = arith.addf %63, %66 : vector<64x32xf32>
    %68 = vector.shape_cast %67 : vector<64x32xf32> to vector<8x8x32xf32>
    %69 = arith.addf %7, %68 : vector<8x8x32xf32>
    %cst_31 = arith.constant 0.000000e+00 : f32
    %70 = vector.broadcast %cst_31 : f32 to vector<1x8x32xf32>
    %71 = tpu.concatenate %70, %69, %70 in 0 : vector<1x8x32xf32>, vector<8x8x32xf32>, vector<1x8x32xf32> -> vector<10x8x32xf32>
    %cst_32 = arith.constant 0.000000e+00 : f32
    %72 = vector.broadcast %cst_32 : f32 to vector<10x1x32xf32>
    %73 = tpu.concatenate %72, %71, %72 in 1 : vector<10x1x32xf32>, vector<10x8x32xf32>, vector<10x1x32xf32> -> vector<10x10x32xf32>
    %74 = vector.extract_strided_slice %73 {offsets = [0, 0, 0], sizes = [8, 8, 32], strides = [1, 1, 1]} : vector<10x10x32xf32> to vector<8x8x32xf32>
    %75 = vector.extract_strided_slice %73 {offsets = [0, 1, 0], sizes = [8, 8, 32], strides = [1, 1, 1]} : vector<10x10x32xf32> to vector<8x8x32xf32>
    %76 = vector.extract_strided_slice %73 {offsets = [0, 2, 0], sizes = [8, 8, 32], strides = [1, 1, 1]} : vector<10x10x32xf32> to vector<8x8x32xf32>
    %77 = vector.extract_strided_slice %73 {offsets = [1, 0, 0], sizes = [8, 8, 32], strides = [1, 1, 1]} : vector<10x10x32xf32> to vector<8x8x32xf32>
    %78 = vector.extract_strided_slice %73 {offsets = [1, 1, 0], sizes = [8, 8, 32], strides = [1, 1, 1]} : vector<10x10x32xf32> to vector<8x8x32xf32>
    %79 = vector.extract_strided_slice %73 {offsets = [1, 2, 0], sizes = [8, 8, 32], strides = [1, 1, 1]} : vector<10x10x32xf32> to vector<8x8x32xf32>
    %80 = vector.extract_strided_slice %73 {offsets = [2, 0, 0], sizes = [8, 8, 32], strides = [1, 1, 1]} : vector<10x10x32xf32> to vector<8x8x32xf32>
    %81 = vector.extract_strided_slice %73 {offsets = [2, 1, 0], sizes = [8, 8, 32], strides = [1, 1, 1]} : vector<10x10x32xf32> to vector<8x8x32xf32>
    %82 = vector.extract_strided_slice %73 {offsets = [2, 2, 0], sizes = [8, 8, 32], strides = [1, 1, 1]} : vector<10x10x32xf32> to vector<8x8x32xf32>
    %83 = tpu.concatenate %74, %75, %76, %77, %78, %79, %80, %81, %82 in 2 : vector<8x8x32xf32>, vector<8x8x32xf32>, vector<8x8x32xf32>, vector<8x8x32xf32>, vector<8x8x32xf32>, vector<8x8x32xf32>, vector<8x8x32xf32>, vector<8x8x32xf32>, vector<8x8x32xf32> -> vector<8x8x288xf32>
    %84 = vector.shape_cast %83 : vector<8x8x288xf32> to vector<64x288xf32>
    %85 = arith.truncf %84 : vector<64x288xf32> to vector<64x288xbf16>
    %c2 = arith.constant 2 : index
    %c0_33 = arith.constant 0 : index
    %c0_34 = arith.constant 0 : index
    %86 = vector.load %arg4[%c2, %c0_33, %c0_34] : memref<13x288x32xbf16, #tpu.memory_space<vmem>>, vector<1x288x32xbf16>
    %87 = vector.shape_cast %86 : vector<1x288x32xbf16> to vector<288x32xbf16>
    %cst_35 = arith.constant dense<0.000000e+00> : vector<64x32xf32>
    %88 = tpu.matmul %85, %87, %cst_35 {dimension_numbers = #tpu.dot_dimension_numbers<[1], [0], [0], [1], [0, 0, 1, 1], [], []>} : vector<64x288xbf16>, vector<288x32xbf16>, vector<64x32xf32> -> vector<64x32xf32>
    %c2_36 = arith.constant 2 : index
    %c0_37 = arith.constant 0 : index
    %c0_38 = arith.constant 0 : index
    %89 = vector.load %arg5[%c2_36, %c0_37, %c0_38] : memref<13x1x32xf32, #tpu.memory_space<vmem>>, vector<1x1x32xf32>
    %90 = vector.shape_cast %89 : vector<1x1x32xf32> to vector<1x32xf32>
    %91 = vector.broadcast %90 : vector<1x32xf32> to vector<64x32xf32>
    %92 = arith.mulf %88, %91 : vector<64x32xf32>
    %c2_39 = arith.constant 2 : index
    %c0_40 = arith.constant 0 : index
    %c0_41 = arith.constant 0 : index
    %93 = vector.load %arg6[%c2_39, %c0_40, %c0_41] : memref<13x1x32xf32, #tpu.memory_space<vmem>>, vector<1x1x32xf32>
    %94 = vector.shape_cast %93 : vector<1x1x32xf32> to vector<1x32xf32>
    %95 = vector.broadcast %94 : vector<1x32xf32> to vector<64x32xf32>
    %96 = arith.addf %92, %95 : vector<64x32xf32>
    %cst_42 = arith.constant 0.000000e+00 : f32
    %97 = vector.broadcast %cst_42 : f32 to vector<64x32xf32>
    %98 = arith.cmpf ogt, %96, %97 : vector<64x32xf32>
    %cst_43 = arith.constant 2.000000e-01 : f32
    %99 = vector.broadcast %cst_43 : f32 to vector<64x32xf32>
    %100 = arith.mulf %99, %96 : vector<64x32xf32>
    %101 = arith.select %98, %96, %100 : vector<64x32xi1>, vector<64x32xf32>
    %102 = vector.shape_cast %101 : vector<64x32xf32> to vector<8x8x32xf32>
    %cst_44 = arith.constant 0.000000e+00 : f32
    %103 = vector.broadcast %cst_44 : f32 to vector<1x8x32xf32>
    %104 = tpu.concatenate %103, %102, %103 in 0 : vector<1x8x32xf32>, vector<8x8x32xf32>, vector<1x8x32xf32> -> vector<10x8x32xf32>
    %cst_45 = arith.constant 0.000000e+00 : f32
    %105 = vector.broadcast %cst_45 : f32 to vector<10x1x32xf32>
    %106 = tpu.concatenate %105, %104, %105 in 1 : vector<10x1x32xf32>, vector<10x8x32xf32>, vector<10x1x32xf32> -> vector<10x10x32xf32>
    %107 = vector.extract_strided_slice %106 {offsets = [0, 0, 0], sizes = [8, 8, 32], strides = [1, 1, 1]} : vector<10x10x32xf32> to vector<8x8x32xf32>
    %108 = vector.extract_strided_slice %106 {offsets = [0, 1, 0], sizes = [8, 8, 32], strides = [1, 1, 1]} : vector<10x10x32xf32> to vector<8x8x32xf32>
    %109 = vector.extract_strided_slice %106 {offsets = [0, 2, 0], sizes = [8, 8, 32], strides = [1, 1, 1]} : vector<10x10x32xf32> to vector<8x8x32xf32>
    %110 = vector.extract_strided_slice %106 {offsets = [1, 0, 0], sizes = [8, 8, 32], strides = [1, 1, 1]} : vector<10x10x32xf32> to vector<8x8x32xf32>
    %111 = vector.extract_strided_slice %106 {offsets = [1, 1, 0], sizes = [8, 8, 32], strides = [1, 1, 1]} : vector<10x10x32xf32> to vector<8x8x32xf32>
    %112 = vector.extract_strided_slice %106 {offsets = [1, 2, 0], sizes = [8, 8, 32], strides = [1, 1, 1]} : vector<10x10x32xf32> to vector<8x8x32xf32>
    %113 = vector.extract_strided_slice %106 {offsets = [2, 0, 0], sizes = [8, 8, 32], strides = [1, 1, 1]} : vector<10x10x32xf32> to vector<8x8x32xf32>
    %114 = vector.extract_strided_slice %106 {offsets = [2, 1, 0], sizes = [8, 8, 32], strides = [1, 1, 1]} : vector<10x10x32xf32> to vector<8x8x32xf32>
    %115 = vector.extract_strided_slice %106 {offsets = [2, 2, 0], sizes = [8, 8, 32], strides = [1, 1, 1]} : vector<10x10x32xf32> to vector<8x8x32xf32>
    %116 = tpu.concatenate %107, %108, %109, %110, %111, %112, %113, %114, %115 in 2 : vector<8x8x32xf32>, vector<8x8x32xf32>, vector<8x8x32xf32>, vector<8x8x32xf32>, vector<8x8x32xf32>, vector<8x8x32xf32>, vector<8x8x32xf32>, vector<8x8x32xf32>, vector<8x8x32xf32> -> vector<8x8x288xf32>
    %117 = vector.shape_cast %116 : vector<8x8x288xf32> to vector<64x288xf32>
    %118 = arith.truncf %117 : vector<64x288xf32> to vector<64x288xbf16>
    %c3 = arith.constant 3 : index
    %c0_46 = arith.constant 0 : index
    %c0_47 = arith.constant 0 : index
    %119 = vector.load %arg4[%c3, %c0_46, %c0_47] : memref<13x288x32xbf16, #tpu.memory_space<vmem>>, vector<1x288x32xbf16>
    %120 = vector.shape_cast %119 : vector<1x288x32xbf16> to vector<288x32xbf16>
    %cst_48 = arith.constant dense<0.000000e+00> : vector<64x32xf32>
    %121 = tpu.matmul %118, %120, %cst_48 {dimension_numbers = #tpu.dot_dimension_numbers<[1], [0], [0], [1], [0, 0, 1, 1], [], []>} : vector<64x288xbf16>, vector<288x32xbf16>, vector<64x32xf32> -> vector<64x32xf32>
    %c3_49 = arith.constant 3 : index
    %c0_50 = arith.constant 0 : index
    %c0_51 = arith.constant 0 : index
    %122 = vector.load %arg5[%c3_49, %c0_50, %c0_51] : memref<13x1x32xf32, #tpu.memory_space<vmem>>, vector<1x1x32xf32>
    %123 = vector.shape_cast %122 : vector<1x1x32xf32> to vector<1x32xf32>
    %124 = vector.broadcast %123 : vector<1x32xf32> to vector<64x32xf32>
    %125 = arith.mulf %121, %124 : vector<64x32xf32>
    %c3_52 = arith.constant 3 : index
    %c0_53 = arith.constant 0 : index
    %c0_54 = arith.constant 0 : index
    %126 = vector.load %arg6[%c3_52, %c0_53, %c0_54] : memref<13x1x32xf32, #tpu.memory_space<vmem>>, vector<1x1x32xf32>
    %127 = vector.shape_cast %126 : vector<1x1x32xf32> to vector<1x32xf32>
    %128 = vector.broadcast %127 : vector<1x32xf32> to vector<64x32xf32>
    %129 = arith.addf %125, %128 : vector<64x32xf32>
    %130 = vector.shape_cast %129 : vector<64x32xf32> to vector<8x8x32xf32>
    %131 = arith.addf %69, %130 : vector<8x8x32xf32>
    %cst_55 = arith.constant 0.000000e+00 : f32
    %132 = vector.broadcast %cst_55 : f32 to vector<1x8x32xf32>
    %133 = tpu.concatenate %132, %131, %132 in 0 : vector<1x8x32xf32>, vector<8x8x32xf32>, vector<1x8x32xf32> -> vector<10x8x32xf32>
    %cst_56 = arith.constant 0.000000e+00 : f32
    %134 = vector.broadcast %cst_56 : f32 to vector<10x1x32xf32>
    %135 = tpu.concatenate %134, %133, %134 in 1 : vector<10x1x32xf32>, vector<10x8x32xf32>, vector<10x1x32xf32> -> vector<10x10x32xf32>
    %136 = vector.extract_strided_slice %135 {offsets = [0, 0, 0], sizes = [8, 8, 32], strides = [1, 1, 1]} : vector<10x10x32xf32> to vector<8x8x32xf32>
    %137 = vector.extract_strided_slice %135 {offsets = [0, 1, 0], sizes = [8, 8, 32], strides = [1, 1, 1]} : vector<10x10x32xf32> to vector<8x8x32xf32>
    %138 = vector.extract_strided_slice %135 {offsets = [0, 2, 0], sizes = [8, 8, 32], strides = [1, 1, 1]} : vector<10x10x32xf32> to vector<8x8x32xf32>
    %139 = vector.extract_strided_slice %135 {offsets = [1, 0, 0], sizes = [8, 8, 32], strides = [1, 1, 1]} : vector<10x10x32xf32> to vector<8x8x32xf32>
    %140 = vector.extract_strided_slice %135 {offsets = [1, 1, 0], sizes = [8, 8, 32], strides = [1, 1, 1]} : vector<10x10x32xf32> to vector<8x8x32xf32>
    %141 = vector.extract_strided_slice %135 {offsets = [1, 2, 0], sizes = [8, 8, 32], strides = [1, 1, 1]} : vector<10x10x32xf32> to vector<8x8x32xf32>
    %142 = vector.extract_strided_slice %135 {offsets = [2, 0, 0], sizes = [8, 8, 32], strides = [1, 1, 1]} : vector<10x10x32xf32> to vector<8x8x32xf32>
    %143 = vector.extract_strided_slice %135 {offsets = [2, 1, 0], sizes = [8, 8, 32], strides = [1, 1, 1]} : vector<10x10x32xf32> to vector<8x8x32xf32>
    %144 = vector.extract_strided_slice %135 {offsets = [2, 2, 0], sizes = [8, 8, 32], strides = [1, 1, 1]} : vector<10x10x32xf32> to vector<8x8x32xf32>
    %145 = tpu.concatenate %136, %137, %138, %139, %140, %141, %142, %143, %144 in 2 : vector<8x8x32xf32>, vector<8x8x32xf32>, vector<8x8x32xf32>, vector<8x8x32xf32>, vector<8x8x32xf32>, vector<8x8x32xf32>, vector<8x8x32xf32>, vector<8x8x32xf32>, vector<8x8x32xf32> -> vector<8x8x288xf32>
    %146 = vector.shape_cast %145 : vector<8x8x288xf32> to vector<64x288xf32>
    %147 = arith.truncf %146 : vector<64x288xf32> to vector<64x288xbf16>
    %c4 = arith.constant 4 : index
    %c0_57 = arith.constant 0 : index
    %c0_58 = arith.constant 0 : index
    %148 = vector.load %arg4[%c4, %c0_57, %c0_58] : memref<13x288x32xbf16, #tpu.memory_space<vmem>>, vector<1x288x32xbf16>
    %149 = vector.shape_cast %148 : vector<1x288x32xbf16> to vector<288x32xbf16>
    %cst_59 = arith.constant dense<0.000000e+00> : vector<64x32xf32>
    %150 = tpu.matmul %147, %149, %cst_59 {dimension_numbers = #tpu.dot_dimension_numbers<[1], [0], [0], [1], [0, 0, 1, 1], [], []>} : vector<64x288xbf16>, vector<288x32xbf16>, vector<64x32xf32> -> vector<64x32xf32>
    %c4_60 = arith.constant 4 : index
    %c0_61 = arith.constant 0 : index
    %c0_62 = arith.constant 0 : index
    %151 = vector.load %arg5[%c4_60, %c0_61, %c0_62] : memref<13x1x32xf32, #tpu.memory_space<vmem>>, vector<1x1x32xf32>
    %152 = vector.shape_cast %151 : vector<1x1x32xf32> to vector<1x32xf32>
    %153 = vector.broadcast %152 : vector<1x32xf32> to vector<64x32xf32>
    %154 = arith.mulf %150, %153 : vector<64x32xf32>
    %c4_63 = arith.constant 4 : index
    %c0_64 = arith.constant 0 : index
    %c0_65 = arith.constant 0 : index
    %155 = vector.load %arg6[%c4_63, %c0_64, %c0_65] : memref<13x1x32xf32, #tpu.memory_space<vmem>>, vector<1x1x32xf32>
    %156 = vector.shape_cast %155 : vector<1x1x32xf32> to vector<1x32xf32>
    %157 = vector.broadcast %156 : vector<1x32xf32> to vector<64x32xf32>
    %158 = arith.addf %154, %157 : vector<64x32xf32>
    %cst_66 = arith.constant 0.000000e+00 : f32
    %159 = vector.broadcast %cst_66 : f32 to vector<64x32xf32>
    %160 = arith.cmpf ogt, %158, %159 : vector<64x32xf32>
    %cst_67 = arith.constant 2.000000e-01 : f32
    %161 = vector.broadcast %cst_67 : f32 to vector<64x32xf32>
    %162 = arith.mulf %161, %158 : vector<64x32xf32>
    %163 = arith.select %160, %158, %162 : vector<64x32xi1>, vector<64x32xf32>
    %164 = vector.shape_cast %163 : vector<64x32xf32> to vector<8x8x32xf32>
    %cst_68 = arith.constant 0.000000e+00 : f32
    %165 = vector.broadcast %cst_68 : f32 to vector<1x8x32xf32>
    %166 = tpu.concatenate %165, %164, %165 in 0 : vector<1x8x32xf32>, vector<8x8x32xf32>, vector<1x8x32xf32> -> vector<10x8x32xf32>
    %cst_69 = arith.constant 0.000000e+00 : f32
    %167 = vector.broadcast %cst_69 : f32 to vector<10x1x32xf32>
    %168 = tpu.concatenate %167, %166, %167 in 1 : vector<10x1x32xf32>, vector<10x8x32xf32>, vector<10x1x32xf32> -> vector<10x10x32xf32>
    %169 = vector.extract_strided_slice %168 {offsets = [0, 0, 0], sizes = [8, 8, 32], strides = [1, 1, 1]} : vector<10x10x32xf32> to vector<8x8x32xf32>
    %170 = vector.extract_strided_slice %168 {offsets = [0, 1, 0], sizes = [8, 8, 32], strides = [1, 1, 1]} : vector<10x10x32xf32> to vector<8x8x32xf32>
    %171 = vector.extract_strided_slice %168 {offsets = [0, 2, 0], sizes = [8, 8, 32], strides = [1, 1, 1]} : vector<10x10x32xf32> to vector<8x8x32xf32>
    %172 = vector.extract_strided_slice %168 {offsets = [1, 0, 0], sizes = [8, 8, 32], strides = [1, 1, 1]} : vector<10x10x32xf32> to vector<8x8x32xf32>
    %173 = vector.extract_strided_slice %168 {offsets = [1, 1, 0], sizes = [8, 8, 32], strides = [1, 1, 1]} : vector<10x10x32xf32> to vector<8x8x32xf32>
    %174 = vector.extract_strided_slice %168 {offsets = [1, 2, 0], sizes = [8, 8, 32], strides = [1, 1, 1]} : vector<10x10x32xf32> to vector<8x8x32xf32>
    %175 = vector.extract_strided_slice %168 {offsets = [2, 0, 0], sizes = [8, 8, 32], strides = [1, 1, 1]} : vector<10x10x32xf32> to vector<8x8x32xf32>
    %176 = vector.extract_strided_slice %168 {offsets = [2, 1, 0], sizes = [8, 8, 32], strides = [1, 1, 1]} : vector<10x10x32xf32> to vector<8x8x32xf32>
    %177 = vector.extract_strided_slice %168 {offsets = [2, 2, 0], sizes = [8, 8, 32], strides = [1, 1, 1]} : vector<10x10x32xf32> to vector<8x8x32xf32>
    %178 = tpu.concatenate %169, %170, %171, %172, %173, %174, %175, %176, %177 in 2 : vector<8x8x32xf32>, vector<8x8x32xf32>, vector<8x8x32xf32>, vector<8x8x32xf32>, vector<8x8x32xf32>, vector<8x8x32xf32>, vector<8x8x32xf32>, vector<8x8x32xf32>, vector<8x8x32xf32> -> vector<8x8x288xf32>
    %179 = vector.shape_cast %178 : vector<8x8x288xf32> to vector<64x288xf32>
    %180 = arith.truncf %179 : vector<64x288xf32> to vector<64x288xbf16>
    %c5 = arith.constant 5 : index
    %c0_70 = arith.constant 0 : index
    %c0_71 = arith.constant 0 : index
    %181 = vector.load %arg4[%c5, %c0_70, %c0_71] : memref<13x288x32xbf16, #tpu.memory_space<vmem>>, vector<1x288x32xbf16>
    %182 = vector.shape_cast %181 : vector<1x288x32xbf16> to vector<288x32xbf16>
    %cst_72 = arith.constant dense<0.000000e+00> : vector<64x32xf32>
    %183 = tpu.matmul %180, %182, %cst_72 {dimension_numbers = #tpu.dot_dimension_numbers<[1], [0], [0], [1], [0, 0, 1, 1], [], []>} : vector<64x288xbf16>, vector<288x32xbf16>, vector<64x32xf32> -> vector<64x32xf32>
    %c5_73 = arith.constant 5 : index
    %c0_74 = arith.constant 0 : index
    %c0_75 = arith.constant 0 : index
    %184 = vector.load %arg5[%c5_73, %c0_74, %c0_75] : memref<13x1x32xf32, #tpu.memory_space<vmem>>, vector<1x1x32xf32>
    %185 = vector.shape_cast %184 : vector<1x1x32xf32> to vector<1x32xf32>
    %186 = vector.broadcast %185 : vector<1x32xf32> to vector<64x32xf32>
    %187 = arith.mulf %183, %186 : vector<64x32xf32>
    %c5_76 = arith.constant 5 : index
    %c0_77 = arith.constant 0 : index
    %c0_78 = arith.constant 0 : index
    %188 = vector.load %arg6[%c5_76, %c0_77, %c0_78] : memref<13x1x32xf32, #tpu.memory_space<vmem>>, vector<1x1x32xf32>
    %189 = vector.shape_cast %188 : vector<1x1x32xf32> to vector<1x32xf32>
    %190 = vector.broadcast %189 : vector<1x32xf32> to vector<64x32xf32>
    %191 = arith.addf %187, %190 : vector<64x32xf32>
    %192 = vector.shape_cast %191 : vector<64x32xf32> to vector<8x8x32xf32>
    %193 = arith.addf %131, %192 : vector<8x8x32xf32>
    %cst_79 = arith.constant 0.000000e+00 : f32
    %194 = vector.broadcast %cst_79 : f32 to vector<1x8x32xf32>
    %195 = tpu.concatenate %194, %193, %194 in 0 : vector<1x8x32xf32>, vector<8x8x32xf32>, vector<1x8x32xf32> -> vector<10x8x32xf32>
    %cst_80 = arith.constant 0.000000e+00 : f32
    %196 = vector.broadcast %cst_80 : f32 to vector<10x1x32xf32>
    %197 = tpu.concatenate %196, %195, %196 in 1 : vector<10x1x32xf32>, vector<10x8x32xf32>, vector<10x1x32xf32> -> vector<10x10x32xf32>
    %198 = vector.extract_strided_slice %197 {offsets = [0, 0, 0], sizes = [8, 8, 32], strides = [1, 1, 1]} : vector<10x10x32xf32> to vector<8x8x32xf32>
    %199 = vector.extract_strided_slice %197 {offsets = [0, 1, 0], sizes = [8, 8, 32], strides = [1, 1, 1]} : vector<10x10x32xf32> to vector<8x8x32xf32>
    %200 = vector.extract_strided_slice %197 {offsets = [0, 2, 0], sizes = [8, 8, 32], strides = [1, 1, 1]} : vector<10x10x32xf32> to vector<8x8x32xf32>
    %201 = vector.extract_strided_slice %197 {offsets = [1, 0, 0], sizes = [8, 8, 32], strides = [1, 1, 1]} : vector<10x10x32xf32> to vector<8x8x32xf32>
    %202 = vector.extract_strided_slice %197 {offsets = [1, 1, 0], sizes = [8, 8, 32], strides = [1, 1, 1]} : vector<10x10x32xf32> to vector<8x8x32xf32>
    %203 = vector.extract_strided_slice %197 {offsets = [1, 2, 0], sizes = [8, 8, 32], strides = [1, 1, 1]} : vector<10x10x32xf32> to vector<8x8x32xf32>
    %204 = vector.extract_strided_slice %197 {offsets = [2, 0, 0], sizes = [8, 8, 32], strides = [1, 1, 1]} : vector<10x10x32xf32> to vector<8x8x32xf32>
    %205 = vector.extract_strided_slice %197 {offsets = [2, 1, 0], sizes = [8, 8, 32], strides = [1, 1, 1]} : vector<10x10x32xf32> to vector<8x8x32xf32>
    %206 = vector.extract_strided_slice %197 {offsets = [2, 2, 0], sizes = [8, 8, 32], strides = [1, 1, 1]} : vector<10x10x32xf32> to vector<8x8x32xf32>
    %207 = tpu.concatenate %198, %199, %200, %201, %202, %203, %204, %205, %206 in 2 : vector<8x8x32xf32>, vector<8x8x32xf32>, vector<8x8x32xf32>, vector<8x8x32xf32>, vector<8x8x32xf32>, vector<8x8x32xf32>, vector<8x8x32xf32>, vector<8x8x32xf32>, vector<8x8x32xf32> -> vector<8x8x288xf32>
    %208 = vector.shape_cast %207 : vector<8x8x288xf32> to vector<64x288xf32>
    %209 = arith.truncf %208 : vector<64x288xf32> to vector<64x288xbf16>
    %c6 = arith.constant 6 : index
    %c0_81 = arith.constant 0 : index
    %c0_82 = arith.constant 0 : index
    %210 = vector.load %arg4[%c6, %c0_81, %c0_82] : memref<13x288x32xbf16, #tpu.memory_space<vmem>>, vector<1x288x32xbf16>
    %211 = vector.shape_cast %210 : vector<1x288x32xbf16> to vector<288x32xbf16>
    %cst_83 = arith.constant dense<0.000000e+00> : vector<64x32xf32>
    %212 = tpu.matmul %209, %211, %cst_83 {dimension_numbers = #tpu.dot_dimension_numbers<[1], [0], [0], [1], [0, 0, 1, 1], [], []>} : vector<64x288xbf16>, vector<288x32xbf16>, vector<64x32xf32> -> vector<64x32xf32>
    %c6_84 = arith.constant 6 : index
    %c0_85 = arith.constant 0 : index
    %c0_86 = arith.constant 0 : index
    %213 = vector.load %arg5[%c6_84, %c0_85, %c0_86] : memref<13x1x32xf32, #tpu.memory_space<vmem>>, vector<1x1x32xf32>
    %214 = vector.shape_cast %213 : vector<1x1x32xf32> to vector<1x32xf32>
    %215 = vector.broadcast %214 : vector<1x32xf32> to vector<64x32xf32>
    %216 = arith.mulf %212, %215 : vector<64x32xf32>
    %c6_87 = arith.constant 6 : index
    %c0_88 = arith.constant 0 : index
    %c0_89 = arith.constant 0 : index
    %217 = vector.load %arg6[%c6_87, %c0_88, %c0_89] : memref<13x1x32xf32, #tpu.memory_space<vmem>>, vector<1x1x32xf32>
    %218 = vector.shape_cast %217 : vector<1x1x32xf32> to vector<1x32xf32>
    %219 = vector.broadcast %218 : vector<1x32xf32> to vector<64x32xf32>
    %220 = arith.addf %216, %219 : vector<64x32xf32>
    %cst_90 = arith.constant 0.000000e+00 : f32
    %221 = vector.broadcast %cst_90 : f32 to vector<64x32xf32>
    %222 = arith.cmpf ogt, %220, %221 : vector<64x32xf32>
    %cst_91 = arith.constant 2.000000e-01 : f32
    %223 = vector.broadcast %cst_91 : f32 to vector<64x32xf32>
    %224 = arith.mulf %223, %220 : vector<64x32xf32>
    %225 = arith.select %222, %220, %224 : vector<64x32xi1>, vector<64x32xf32>
    %226 = vector.shape_cast %225 : vector<64x32xf32> to vector<8x8x32xf32>
    %cst_92 = arith.constant 0.000000e+00 : f32
    %227 = vector.broadcast %cst_92 : f32 to vector<1x8x32xf32>
    %228 = tpu.concatenate %227, %226, %227 in 0 : vector<1x8x32xf32>, vector<8x8x32xf32>, vector<1x8x32xf32> -> vector<10x8x32xf32>
    %cst_93 = arith.constant 0.000000e+00 : f32
    %229 = vector.broadcast %cst_93 : f32 to vector<10x1x32xf32>
    %230 = tpu.concatenate %229, %228, %229 in 1 : vector<10x1x32xf32>, vector<10x8x32xf32>, vector<10x1x32xf32> -> vector<10x10x32xf32>
    %231 = vector.extract_strided_slice %230 {offsets = [0, 0, 0], sizes = [8, 8, 32], strides = [1, 1, 1]} : vector<10x10x32xf32> to vector<8x8x32xf32>
    %232 = vector.extract_strided_slice %230 {offsets = [0, 1, 0], sizes = [8, 8, 32], strides = [1, 1, 1]} : vector<10x10x32xf32> to vector<8x8x32xf32>
    %233 = vector.extract_strided_slice %230 {offsets = [0, 2, 0], sizes = [8, 8, 32], strides = [1, 1, 1]} : vector<10x10x32xf32> to vector<8x8x32xf32>
    %234 = vector.extract_strided_slice %230 {offsets = [1, 0, 0], sizes = [8, 8, 32], strides = [1, 1, 1]} : vector<10x10x32xf32> to vector<8x8x32xf32>
    %235 = vector.extract_strided_slice %230 {offsets = [1, 1, 0], sizes = [8, 8, 32], strides = [1, 1, 1]} : vector<10x10x32xf32> to vector<8x8x32xf32>
    %236 = vector.extract_strided_slice %230 {offsets = [1, 2, 0], sizes = [8, 8, 32], strides = [1, 1, 1]} : vector<10x10x32xf32> to vector<8x8x32xf32>
    %237 = vector.extract_strided_slice %230 {offsets = [2, 0, 0], sizes = [8, 8, 32], strides = [1, 1, 1]} : vector<10x10x32xf32> to vector<8x8x32xf32>
    %238 = vector.extract_strided_slice %230 {offsets = [2, 1, 0], sizes = [8, 8, 32], strides = [1, 1, 1]} : vector<10x10x32xf32> to vector<8x8x32xf32>
    %239 = vector.extract_strided_slice %230 {offsets = [2, 2, 0], sizes = [8, 8, 32], strides = [1, 1, 1]} : vector<10x10x32xf32> to vector<8x8x32xf32>
    %240 = tpu.concatenate %231, %232, %233, %234, %235, %236, %237, %238, %239 in 2 : vector<8x8x32xf32>, vector<8x8x32xf32>, vector<8x8x32xf32>, vector<8x8x32xf32>, vector<8x8x32xf32>, vector<8x8x32xf32>, vector<8x8x32xf32>, vector<8x8x32xf32>, vector<8x8x32xf32> -> vector<8x8x288xf32>
    %241 = vector.shape_cast %240 : vector<8x8x288xf32> to vector<64x288xf32>
    %242 = arith.truncf %241 : vector<64x288xf32> to vector<64x288xbf16>
    %c7 = arith.constant 7 : index
    %c0_94 = arith.constant 0 : index
    %c0_95 = arith.constant 0 : index
    %243 = vector.load %arg4[%c7, %c0_94, %c0_95] : memref<13x288x32xbf16, #tpu.memory_space<vmem>>, vector<1x288x32xbf16>
    %244 = vector.shape_cast %243 : vector<1x288x32xbf16> to vector<288x32xbf16>
    %cst_96 = arith.constant dense<0.000000e+00> : vector<64x32xf32>
    %245 = tpu.matmul %242, %244, %cst_96 {dimension_numbers = #tpu.dot_dimension_numbers<[1], [0], [0], [1], [0, 0, 1, 1], [], []>} : vector<64x288xbf16>, vector<288x32xbf16>, vector<64x32xf32> -> vector<64x32xf32>
    %c7_97 = arith.constant 7 : index
    %c0_98 = arith.constant 0 : index
    %c0_99 = arith.constant 0 : index
    %246 = vector.load %arg5[%c7_97, %c0_98, %c0_99] : memref<13x1x32xf32, #tpu.memory_space<vmem>>, vector<1x1x32xf32>
    %247 = vector.shape_cast %246 : vector<1x1x32xf32> to vector<1x32xf32>
    %248 = vector.broadcast %247 : vector<1x32xf32> to vector<64x32xf32>
    %249 = arith.mulf %245, %248 : vector<64x32xf32>
    %c7_100 = arith.constant 7 : index
    %c0_101 = arith.constant 0 : index
    %c0_102 = arith.constant 0 : index
    %250 = vector.load %arg6[%c7_100, %c0_101, %c0_102] : memref<13x1x32xf32, #tpu.memory_space<vmem>>, vector<1x1x32xf32>
    %251 = vector.shape_cast %250 : vector<1x1x32xf32> to vector<1x32xf32>
    %252 = vector.broadcast %251 : vector<1x32xf32> to vector<64x32xf32>
    %253 = arith.addf %249, %252 : vector<64x32xf32>
    %254 = vector.shape_cast %253 : vector<64x32xf32> to vector<8x8x32xf32>
    %255 = arith.addf %193, %254 : vector<8x8x32xf32>
    %cst_103 = arith.constant 0.000000e+00 : f32
    %256 = vector.broadcast %cst_103 : f32 to vector<1x8x32xf32>
    %257 = tpu.concatenate %256, %255, %256 in 0 : vector<1x8x32xf32>, vector<8x8x32xf32>, vector<1x8x32xf32> -> vector<10x8x32xf32>
    %cst_104 = arith.constant 0.000000e+00 : f32
    %258 = vector.broadcast %cst_104 : f32 to vector<10x1x32xf32>
    %259 = tpu.concatenate %258, %257, %258 in 1 : vector<10x1x32xf32>, vector<10x8x32xf32>, vector<10x1x32xf32> -> vector<10x10x32xf32>
    %260 = vector.extract_strided_slice %259 {offsets = [0, 0, 0], sizes = [8, 8, 32], strides = [1, 1, 1]} : vector<10x10x32xf32> to vector<8x8x32xf32>
    %261 = vector.extract_strided_slice %259 {offsets = [0, 1, 0], sizes = [8, 8, 32], strides = [1, 1, 1]} : vector<10x10x32xf32> to vector<8x8x32xf32>
    %262 = vector.extract_strided_slice %259 {offsets = [0, 2, 0], sizes = [8, 8, 32], strides = [1, 1, 1]} : vector<10x10x32xf32> to vector<8x8x32xf32>
    %263 = vector.extract_strided_slice %259 {offsets = [1, 0, 0], sizes = [8, 8, 32], strides = [1, 1, 1]} : vector<10x10x32xf32> to vector<8x8x32xf32>
    %264 = vector.extract_strided_slice %259 {offsets = [1, 1, 0], sizes = [8, 8, 32], strides = [1, 1, 1]} : vector<10x10x32xf32> to vector<8x8x32xf32>
    %265 = vector.extract_strided_slice %259 {offsets = [1, 2, 0], sizes = [8, 8, 32], strides = [1, 1, 1]} : vector<10x10x32xf32> to vector<8x8x32xf32>
    %266 = vector.extract_strided_slice %259 {offsets = [2, 0, 0], sizes = [8, 8, 32], strides = [1, 1, 1]} : vector<10x10x32xf32> to vector<8x8x32xf32>
    %267 = vector.extract_strided_slice %259 {offsets = [2, 1, 0], sizes = [8, 8, 32], strides = [1, 1, 1]} : vector<10x10x32xf32> to vector<8x8x32xf32>
    %268 = vector.extract_strided_slice %259 {offsets = [2, 2, 0], sizes = [8, 8, 32], strides = [1, 1, 1]} : vector<10x10x32xf32> to vector<8x8x32xf32>
    %269 = tpu.concatenate %260, %261, %262, %263, %264, %265, %266, %267, %268 in 2 : vector<8x8x32xf32>, vector<8x8x32xf32>, vector<8x8x32xf32>, vector<8x8x32xf32>, vector<8x8x32xf32>, vector<8x8x32xf32>, vector<8x8x32xf32>, vector<8x8x32xf32>, vector<8x8x32xf32> -> vector<8x8x288xf32>
    %270 = vector.shape_cast %269 : vector<8x8x288xf32> to vector<64x288xf32>
    %271 = arith.truncf %270 : vector<64x288xf32> to vector<64x288xbf16>
    %c8 = arith.constant 8 : index
    %c0_105 = arith.constant 0 : index
    %c0_106 = arith.constant 0 : index
    %272 = vector.load %arg4[%c8, %c0_105, %c0_106] : memref<13x288x32xbf16, #tpu.memory_space<vmem>>, vector<1x288x32xbf16>
    %273 = vector.shape_cast %272 : vector<1x288x32xbf16> to vector<288x32xbf16>
    %cst_107 = arith.constant dense<0.000000e+00> : vector<64x32xf32>
    %274 = tpu.matmul %271, %273, %cst_107 {dimension_numbers = #tpu.dot_dimension_numbers<[1], [0], [0], [1], [0, 0, 1, 1], [], []>} : vector<64x288xbf16>, vector<288x32xbf16>, vector<64x32xf32> -> vector<64x32xf32>
    %c8_108 = arith.constant 8 : index
    %c0_109 = arith.constant 0 : index
    %c0_110 = arith.constant 0 : index
    %275 = vector.load %arg5[%c8_108, %c0_109, %c0_110] : memref<13x1x32xf32, #tpu.memory_space<vmem>>, vector<1x1x32xf32>
    %276 = vector.shape_cast %275 : vector<1x1x32xf32> to vector<1x32xf32>
    %277 = vector.broadcast %276 : vector<1x32xf32> to vector<64x32xf32>
    %278 = arith.mulf %274, %277 : vector<64x32xf32>
    %c8_111 = arith.constant 8 : index
    %c0_112 = arith.constant 0 : index
    %c0_113 = arith.constant 0 : index
    %279 = vector.load %arg6[%c8_111, %c0_112, %c0_113] : memref<13x1x32xf32, #tpu.memory_space<vmem>>, vector<1x1x32xf32>
    %280 = vector.shape_cast %279 : vector<1x1x32xf32> to vector<1x32xf32>
    %281 = vector.broadcast %280 : vector<1x32xf32> to vector<64x32xf32>
    %282 = arith.addf %278, %281 : vector<64x32xf32>
    %cst_114 = arith.constant 0.000000e+00 : f32
    %283 = vector.broadcast %cst_114 : f32 to vector<64x32xf32>
    %284 = arith.cmpf ogt, %282, %283 : vector<64x32xf32>
    %cst_115 = arith.constant 2.000000e-01 : f32
    %285 = vector.broadcast %cst_115 : f32 to vector<64x32xf32>
    %286 = arith.mulf %285, %282 : vector<64x32xf32>
    %287 = arith.select %284, %282, %286 : vector<64x32xi1>, vector<64x32xf32>
    %288 = vector.shape_cast %287 : vector<64x32xf32> to vector<8x8x32xf32>
    %cst_116 = arith.constant 0.000000e+00 : f32
    %289 = vector.broadcast %cst_116 : f32 to vector<1x8x32xf32>
    %290 = tpu.concatenate %289, %288, %289 in 0 : vector<1x8x32xf32>, vector<8x8x32xf32>, vector<1x8x32xf32> -> vector<10x8x32xf32>
    %cst_117 = arith.constant 0.000000e+00 : f32
    %291 = vector.broadcast %cst_117 : f32 to vector<10x1x32xf32>
    %292 = tpu.concatenate %291, %290, %291 in 1 : vector<10x1x32xf32>, vector<10x8x32xf32>, vector<10x1x32xf32> -> vector<10x10x32xf32>
    %293 = vector.extract_strided_slice %292 {offsets = [0, 0, 0], sizes = [8, 8, 32], strides = [1, 1, 1]} : vector<10x10x32xf32> to vector<8x8x32xf32>
    %294 = vector.extract_strided_slice %292 {offsets = [0, 1, 0], sizes = [8, 8, 32], strides = [1, 1, 1]} : vector<10x10x32xf32> to vector<8x8x32xf32>
    %295 = vector.extract_strided_slice %292 {offsets = [0, 2, 0], sizes = [8, 8, 32], strides = [1, 1, 1]} : vector<10x10x32xf32> to vector<8x8x32xf32>
    %296 = vector.extract_strided_slice %292 {offsets = [1, 0, 0], sizes = [8, 8, 32], strides = [1, 1, 1]} : vector<10x10x32xf32> to vector<8x8x32xf32>
    %297 = vector.extract_strided_slice %292 {offsets = [1, 1, 0], sizes = [8, 8, 32], strides = [1, 1, 1]} : vector<10x10x32xf32> to vector<8x8x32xf32>
    %298 = vector.extract_strided_slice %292 {offsets = [1, 2, 0], sizes = [8, 8, 32], strides = [1, 1, 1]} : vector<10x10x32xf32> to vector<8x8x32xf32>
    %299 = vector.extract_strided_slice %292 {offsets = [2, 0, 0], sizes = [8, 8, 32], strides = [1, 1, 1]} : vector<10x10x32xf32> to vector<8x8x32xf32>
    %300 = vector.extract_strided_slice %292 {offsets = [2, 1, 0], sizes = [8, 8, 32], strides = [1, 1, 1]} : vector<10x10x32xf32> to vector<8x8x32xf32>
    %301 = vector.extract_strided_slice %292 {offsets = [2, 2, 0], sizes = [8, 8, 32], strides = [1, 1, 1]} : vector<10x10x32xf32> to vector<8x8x32xf32>
    %302 = tpu.concatenate %293, %294, %295, %296, %297, %298, %299, %300, %301 in 2 : vector<8x8x32xf32>, vector<8x8x32xf32>, vector<8x8x32xf32>, vector<8x8x32xf32>, vector<8x8x32xf32>, vector<8x8x32xf32>, vector<8x8x32xf32>, vector<8x8x32xf32>, vector<8x8x32xf32> -> vector<8x8x288xf32>
    %303 = vector.shape_cast %302 : vector<8x8x288xf32> to vector<64x288xf32>
    %304 = arith.truncf %303 : vector<64x288xf32> to vector<64x288xbf16>
    %c9 = arith.constant 9 : index
    %c0_118 = arith.constant 0 : index
    %c0_119 = arith.constant 0 : index
    %305 = vector.load %arg4[%c9, %c0_118, %c0_119] : memref<13x288x32xbf16, #tpu.memory_space<vmem>>, vector<1x288x32xbf16>
    %306 = vector.shape_cast %305 : vector<1x288x32xbf16> to vector<288x32xbf16>
    %cst_120 = arith.constant dense<0.000000e+00> : vector<64x32xf32>
    %307 = tpu.matmul %304, %306, %cst_120 {dimension_numbers = #tpu.dot_dimension_numbers<[1], [0], [0], [1], [0, 0, 1, 1], [], []>} : vector<64x288xbf16>, vector<288x32xbf16>, vector<64x32xf32> -> vector<64x32xf32>
    %c9_121 = arith.constant 9 : index
    %c0_122 = arith.constant 0 : index
    %c0_123 = arith.constant 0 : index
    %308 = vector.load %arg5[%c9_121, %c0_122, %c0_123] : memref<13x1x32xf32, #tpu.memory_space<vmem>>, vector<1x1x32xf32>
    %309 = vector.shape_cast %308 : vector<1x1x32xf32> to vector<1x32xf32>
    %310 = vector.broadcast %309 : vector<1x32xf32> to vector<64x32xf32>
    %311 = arith.mulf %307, %310 : vector<64x32xf32>
    %c9_124 = arith.constant 9 : index
    %c0_125 = arith.constant 0 : index
    %c0_126 = arith.constant 0 : index
    %312 = vector.load %arg6[%c9_124, %c0_125, %c0_126] : memref<13x1x32xf32, #tpu.memory_space<vmem>>, vector<1x1x32xf32>
    %313 = vector.shape_cast %312 : vector<1x1x32xf32> to vector<1x32xf32>
    %314 = vector.broadcast %313 : vector<1x32xf32> to vector<64x32xf32>
    %315 = arith.addf %311, %314 : vector<64x32xf32>
    %316 = vector.shape_cast %315 : vector<64x32xf32> to vector<8x8x32xf32>
    %317 = arith.addf %255, %316 : vector<8x8x32xf32>
    %cst_127 = arith.constant 0.000000e+00 : f32
    %318 = vector.broadcast %cst_127 : f32 to vector<1x8x32xf32>
    %319 = tpu.concatenate %318, %317, %318 in 0 : vector<1x8x32xf32>, vector<8x8x32xf32>, vector<1x8x32xf32> -> vector<10x8x32xf32>
    %cst_128 = arith.constant 0.000000e+00 : f32
    %320 = vector.broadcast %cst_128 : f32 to vector<10x1x32xf32>
    %321 = tpu.concatenate %320, %319, %320 in 1 : vector<10x1x32xf32>, vector<10x8x32xf32>, vector<10x1x32xf32> -> vector<10x10x32xf32>
    %322 = vector.extract_strided_slice %321 {offsets = [0, 0, 0], sizes = [8, 8, 32], strides = [1, 1, 1]} : vector<10x10x32xf32> to vector<8x8x32xf32>
    %323 = vector.extract_strided_slice %321 {offsets = [0, 1, 0], sizes = [8, 8, 32], strides = [1, 1, 1]} : vector<10x10x32xf32> to vector<8x8x32xf32>
    %324 = vector.extract_strided_slice %321 {offsets = [0, 2, 0], sizes = [8, 8, 32], strides = [1, 1, 1]} : vector<10x10x32xf32> to vector<8x8x32xf32>
    %325 = vector.extract_strided_slice %321 {offsets = [1, 0, 0], sizes = [8, 8, 32], strides = [1, 1, 1]} : vector<10x10x32xf32> to vector<8x8x32xf32>
    %326 = vector.extract_strided_slice %321 {offsets = [1, 1, 0], sizes = [8, 8, 32], strides = [1, 1, 1]} : vector<10x10x32xf32> to vector<8x8x32xf32>
    %327 = vector.extract_strided_slice %321 {offsets = [1, 2, 0], sizes = [8, 8, 32], strides = [1, 1, 1]} : vector<10x10x32xf32> to vector<8x8x32xf32>
    %328 = vector.extract_strided_slice %321 {offsets = [2, 0, 0], sizes = [8, 8, 32], strides = [1, 1, 1]} : vector<10x10x32xf32> to vector<8x8x32xf32>
    %329 = vector.extract_strided_slice %321 {offsets = [2, 1, 0], sizes = [8, 8, 32], strides = [1, 1, 1]} : vector<10x10x32xf32> to vector<8x8x32xf32>
    %330 = vector.extract_strided_slice %321 {offsets = [2, 2, 0], sizes = [8, 8, 32], strides = [1, 1, 1]} : vector<10x10x32xf32> to vector<8x8x32xf32>
    %331 = tpu.concatenate %322, %323, %324, %325, %326, %327, %328, %329, %330 in 2 : vector<8x8x32xf32>, vector<8x8x32xf32>, vector<8x8x32xf32>, vector<8x8x32xf32>, vector<8x8x32xf32>, vector<8x8x32xf32>, vector<8x8x32xf32>, vector<8x8x32xf32>, vector<8x8x32xf32> -> vector<8x8x288xf32>
    %332 = vector.shape_cast %331 : vector<8x8x288xf32> to vector<64x288xf32>
    %333 = arith.truncf %332 : vector<64x288xf32> to vector<64x288xbf16>
    %c10 = arith.constant 10 : index
    %c0_129 = arith.constant 0 : index
    %c0_130 = arith.constant 0 : index
    %334 = vector.load %arg4[%c10, %c0_129, %c0_130] : memref<13x288x32xbf16, #tpu.memory_space<vmem>>, vector<1x288x32xbf16>
    %335 = vector.shape_cast %334 : vector<1x288x32xbf16> to vector<288x32xbf16>
    %cst_131 = arith.constant dense<0.000000e+00> : vector<64x32xf32>
    %336 = tpu.matmul %333, %335, %cst_131 {dimension_numbers = #tpu.dot_dimension_numbers<[1], [0], [0], [1], [0, 0, 1, 1], [], []>} : vector<64x288xbf16>, vector<288x32xbf16>, vector<64x32xf32> -> vector<64x32xf32>
    %c10_132 = arith.constant 10 : index
    %c0_133 = arith.constant 0 : index
    %c0_134 = arith.constant 0 : index
    %337 = vector.load %arg5[%c10_132, %c0_133, %c0_134] : memref<13x1x32xf32, #tpu.memory_space<vmem>>, vector<1x1x32xf32>
    %338 = vector.shape_cast %337 : vector<1x1x32xf32> to vector<1x32xf32>
    %339 = vector.broadcast %338 : vector<1x32xf32> to vector<64x32xf32>
    %340 = arith.mulf %336, %339 : vector<64x32xf32>
    %c10_135 = arith.constant 10 : index
    %c0_136 = arith.constant 0 : index
    %c0_137 = arith.constant 0 : index
    %341 = vector.load %arg6[%c10_135, %c0_136, %c0_137] : memref<13x1x32xf32, #tpu.memory_space<vmem>>, vector<1x1x32xf32>
    %342 = vector.shape_cast %341 : vector<1x1x32xf32> to vector<1x32xf32>
    %343 = vector.broadcast %342 : vector<1x32xf32> to vector<64x32xf32>
    %344 = arith.addf %340, %343 : vector<64x32xf32>
    %cst_138 = arith.constant 0.000000e+00 : f32
    %345 = vector.broadcast %cst_138 : f32 to vector<64x32xf32>
    %346 = arith.cmpf ogt, %344, %345 : vector<64x32xf32>
    %cst_139 = arith.constant 2.000000e-01 : f32
    %347 = vector.broadcast %cst_139 : f32 to vector<64x32xf32>
    %348 = arith.mulf %347, %344 : vector<64x32xf32>
    %349 = arith.select %346, %344, %348 : vector<64x32xi1>, vector<64x32xf32>
    %350 = vector.shape_cast %349 : vector<64x32xf32> to vector<8x8x32xf32>
    %cst_140 = arith.constant 0.000000e+00 : f32
    %351 = vector.broadcast %cst_140 : f32 to vector<1x8x32xf32>
    %352 = tpu.concatenate %351, %350, %351 in 0 : vector<1x8x32xf32>, vector<8x8x32xf32>, vector<1x8x32xf32> -> vector<10x8x32xf32>
    %cst_141 = arith.constant 0.000000e+00 : f32
    %353 = vector.broadcast %cst_141 : f32 to vector<10x1x32xf32>
    %354 = tpu.concatenate %353, %352, %353 in 1 : vector<10x1x32xf32>, vector<10x8x32xf32>, vector<10x1x32xf32> -> vector<10x10x32xf32>
    %355 = vector.extract_strided_slice %354 {offsets = [0, 0, 0], sizes = [8, 8, 32], strides = [1, 1, 1]} : vector<10x10x32xf32> to vector<8x8x32xf32>
    %356 = vector.extract_strided_slice %354 {offsets = [0, 1, 0], sizes = [8, 8, 32], strides = [1, 1, 1]} : vector<10x10x32xf32> to vector<8x8x32xf32>
    %357 = vector.extract_strided_slice %354 {offsets = [0, 2, 0], sizes = [8, 8, 32], strides = [1, 1, 1]} : vector<10x10x32xf32> to vector<8x8x32xf32>
    %358 = vector.extract_strided_slice %354 {offsets = [1, 0, 0], sizes = [8, 8, 32], strides = [1, 1, 1]} : vector<10x10x32xf32> to vector<8x8x32xf32>
    %359 = vector.extract_strided_slice %354 {offsets = [1, 1, 0], sizes = [8, 8, 32], strides = [1, 1, 1]} : vector<10x10x32xf32> to vector<8x8x32xf32>
    %360 = vector.extract_strided_slice %354 {offsets = [1, 2, 0], sizes = [8, 8, 32], strides = [1, 1, 1]} : vector<10x10x32xf32> to vector<8x8x32xf32>
    %361 = vector.extract_strided_slice %354 {offsets = [2, 0, 0], sizes = [8, 8, 32], strides = [1, 1, 1]} : vector<10x10x32xf32> to vector<8x8x32xf32>
    %362 = vector.extract_strided_slice %354 {offsets = [2, 1, 0], sizes = [8, 8, 32], strides = [1, 1, 1]} : vector<10x10x32xf32> to vector<8x8x32xf32>
    %363 = vector.extract_strided_slice %354 {offsets = [2, 2, 0], sizes = [8, 8, 32], strides = [1, 1, 1]} : vector<10x10x32xf32> to vector<8x8x32xf32>
    %364 = tpu.concatenate %355, %356, %357, %358, %359, %360, %361, %362, %363 in 2 : vector<8x8x32xf32>, vector<8x8x32xf32>, vector<8x8x32xf32>, vector<8x8x32xf32>, vector<8x8x32xf32>, vector<8x8x32xf32>, vector<8x8x32xf32>, vector<8x8x32xf32>, vector<8x8x32xf32> -> vector<8x8x288xf32>
    %365 = vector.shape_cast %364 : vector<8x8x288xf32> to vector<64x288xf32>
    %366 = arith.truncf %365 : vector<64x288xf32> to vector<64x288xbf16>
    %c11 = arith.constant 11 : index
    %c0_142 = arith.constant 0 : index
    %c0_143 = arith.constant 0 : index
    %367 = vector.load %arg4[%c11, %c0_142, %c0_143] : memref<13x288x32xbf16, #tpu.memory_space<vmem>>, vector<1x288x32xbf16>
    %368 = vector.shape_cast %367 : vector<1x288x32xbf16> to vector<288x32xbf16>
    %cst_144 = arith.constant dense<0.000000e+00> : vector<64x32xf32>
    %369 = tpu.matmul %366, %368, %cst_144 {dimension_numbers = #tpu.dot_dimension_numbers<[1], [0], [0], [1], [0, 0, 1, 1], [], []>} : vector<64x288xbf16>, vector<288x32xbf16>, vector<64x32xf32> -> vector<64x32xf32>
    %c11_145 = arith.constant 11 : index
    %c0_146 = arith.constant 0 : index
    %c0_147 = arith.constant 0 : index
    %370 = vector.load %arg5[%c11_145, %c0_146, %c0_147] : memref<13x1x32xf32, #tpu.memory_space<vmem>>, vector<1x1x32xf32>
    %371 = vector.shape_cast %370 : vector<1x1x32xf32> to vector<1x32xf32>
    %372 = vector.broadcast %371 : vector<1x32xf32> to vector<64x32xf32>
    %373 = arith.mulf %369, %372 : vector<64x32xf32>
    %c11_148 = arith.constant 11 : index
    %c0_149 = arith.constant 0 : index
    %c0_150 = arith.constant 0 : index
    %374 = vector.load %arg6[%c11_148, %c0_149, %c0_150] : memref<13x1x32xf32, #tpu.memory_space<vmem>>, vector<1x1x32xf32>
    %375 = vector.shape_cast %374 : vector<1x1x32xf32> to vector<1x32xf32>
    %376 = vector.broadcast %375 : vector<1x32xf32> to vector<64x32xf32>
    %377 = arith.addf %373, %376 : vector<64x32xf32>
    %378 = vector.shape_cast %377 : vector<64x32xf32> to vector<8x8x32xf32>
    %379 = arith.addf %317, %378 : vector<8x8x32xf32>
    %cst_151 = arith.constant 0.000000e+00 : f32
    %380 = vector.broadcast %cst_151 : f32 to vector<1x8x32xf32>
    %381 = tpu.concatenate %380, %379, %380 in 0 : vector<1x8x32xf32>, vector<8x8x32xf32>, vector<1x8x32xf32> -> vector<10x8x32xf32>
    %cst_152 = arith.constant 0.000000e+00 : f32
    %382 = vector.broadcast %cst_152 : f32 to vector<10x1x32xf32>
    %383 = tpu.concatenate %382, %381, %382 in 1 : vector<10x1x32xf32>, vector<10x8x32xf32>, vector<10x1x32xf32> -> vector<10x10x32xf32>
    %384 = vector.extract_strided_slice %383 {offsets = [0, 0, 0], sizes = [8, 8, 32], strides = [1, 1, 1]} : vector<10x10x32xf32> to vector<8x8x32xf32>
    %385 = vector.extract_strided_slice %383 {offsets = [0, 1, 0], sizes = [8, 8, 32], strides = [1, 1, 1]} : vector<10x10x32xf32> to vector<8x8x32xf32>
    %386 = vector.extract_strided_slice %383 {offsets = [0, 2, 0], sizes = [8, 8, 32], strides = [1, 1, 1]} : vector<10x10x32xf32> to vector<8x8x32xf32>
    %387 = vector.extract_strided_slice %383 {offsets = [1, 0, 0], sizes = [8, 8, 32], strides = [1, 1, 1]} : vector<10x10x32xf32> to vector<8x8x32xf32>
    %388 = vector.extract_strided_slice %383 {offsets = [1, 1, 0], sizes = [8, 8, 32], strides = [1, 1, 1]} : vector<10x10x32xf32> to vector<8x8x32xf32>
    %389 = vector.extract_strided_slice %383 {offsets = [1, 2, 0], sizes = [8, 8, 32], strides = [1, 1, 1]} : vector<10x10x32xf32> to vector<8x8x32xf32>
    %390 = vector.extract_strided_slice %383 {offsets = [2, 0, 0], sizes = [8, 8, 32], strides = [1, 1, 1]} : vector<10x10x32xf32> to vector<8x8x32xf32>
    %391 = vector.extract_strided_slice %383 {offsets = [2, 1, 0], sizes = [8, 8, 32], strides = [1, 1, 1]} : vector<10x10x32xf32> to vector<8x8x32xf32>
    %392 = vector.extract_strided_slice %383 {offsets = [2, 2, 0], sizes = [8, 8, 32], strides = [1, 1, 1]} : vector<10x10x32xf32> to vector<8x8x32xf32>
    %393 = tpu.concatenate %384, %385, %386, %387, %388, %389, %390, %391, %392 in 2 : vector<8x8x32xf32>, vector<8x8x32xf32>, vector<8x8x32xf32>, vector<8x8x32xf32>, vector<8x8x32xf32>, vector<8x8x32xf32>, vector<8x8x32xf32>, vector<8x8x32xf32>, vector<8x8x32xf32> -> vector<8x8x288xf32>
    %394 = vector.shape_cast %393 : vector<8x8x288xf32> to vector<64x288xf32>
    %395 = arith.truncf %394 : vector<64x288xf32> to vector<64x288xbf16>
    %c12 = arith.constant 12 : index
    %c0_153 = arith.constant 0 : index
    %c0_154 = arith.constant 0 : index
    %396 = vector.load %arg4[%c12, %c0_153, %c0_154] : memref<13x288x32xbf16, #tpu.memory_space<vmem>>, vector<1x288x32xbf16>
    %397 = vector.shape_cast %396 : vector<1x288x32xbf16> to vector<288x32xbf16>
    %cst_155 = arith.constant dense<0.000000e+00> : vector<64x32xf32>
    %398 = tpu.matmul %395, %397, %cst_155 {dimension_numbers = #tpu.dot_dimension_numbers<[1], [0], [0], [1], [0, 0, 1, 1], [], []>} : vector<64x288xbf16>, vector<288x32xbf16>, vector<64x32xf32> -> vector<64x32xf32>
    %c12_156 = arith.constant 12 : index
    %c0_157 = arith.constant 0 : index
    %c0_158 = arith.constant 0 : index
    %399 = vector.load %arg5[%c12_156, %c0_157, %c0_158] : memref<13x1x32xf32, #tpu.memory_space<vmem>>, vector<1x1x32xf32>
    %400 = vector.shape_cast %399 : vector<1x1x32xf32> to vector<1x32xf32>
    %401 = vector.broadcast %400 : vector<1x32xf32> to vector<64x32xf32>
    %402 = arith.mulf %398, %401 : vector<64x32xf32>
    %c12_159 = arith.constant 12 : index
    %c0_160 = arith.constant 0 : index
    %c0_161 = arith.constant 0 : index
    %403 = vector.load %arg6[%c12_159, %c0_160, %c0_161] : memref<13x1x32xf32, #tpu.memory_space<vmem>>, vector<1x1x32xf32>
    %404 = vector.shape_cast %403 : vector<1x1x32xf32> to vector<1x32xf32>
    %405 = vector.broadcast %404 : vector<1x32xf32> to vector<64x32xf32>
    %406 = arith.addf %402, %405 : vector<64x32xf32>
    %407 = vector.shape_cast %406 : vector<64x32xf32> to vector<8x8x32xf32>
    %408 = vector.shape_cast %407 : vector<8x8x32xf32> to vector<64x32xf32>
    %c0_162 = arith.constant 0 : index
    %c0_163 = arith.constant 0 : index
    %c0_164 = arith.constant 0 : index
    %409 = vector.load %arg7[%c0_162, %c0_163, %c0_164] : memref<1x64x32xf32, #tpu.memory_space<vmem>>, vector<1x64x32xf32>
    %410 = vector.shape_cast %409 : vector<1x64x32xf32> to vector<64x32xf32>
    %411 = vector.shape_cast %408 : vector<64x32xf32> to vector<1x64x32xf32>
    tpu.vector_store %arg7[%c0_162, %c0_163, %c0_164], %411 {strides = array<i32>} : memref<1x64x32xf32, #tpu.memory_space<vmem>>, vector<1x64x32xf32>,
    return
  }
  func.func @transform_0(%arg0: i32) -> (i32, i32, i32) {
    %c0_i32 = arith.constant 0 : i32
    %c0_i32_0 = arith.constant 0 : i32
    %c0_i32_1 = arith.constant 0 : i32
    return %arg0, %c0_i32, %c0_i32_0 : i32, i32, i32
  }
  func.func @transform_1(%arg0: i32) -> (i32, i32) {
    %c0_i32 = arith.constant 0 : i32
    %c0_i32_0 = arith.constant 0 : i32
    %c0_i32_1 = arith.constant 0 : i32
    return %c0_i32, %c0_i32_0 : i32, i32
  }
  func.func @transform_2(%arg0: i32) -> (i32, i32) {
    %c0_i32 = arith.constant 0 : i32
    %c0_i32_0 = arith.constant 0 : i32
    %c0_i32_1 = arith.constant 0 : i32
    return %c0_i32, %c0_i32_0 : i32, i32
  }
  func.func @transform_3(%arg0: i32) -> (i32, i32, i32) {
    %c0_i32 = arith.constant 0 : i32
    %c0_i32_0 = arith.constant 0 : i32
    %c0_i32_1 = arith.constant 0 : i32
    %c0_i32_2 = arith.constant 0 : i32
    return %c0_i32, %c0_i32_0, %c0_i32_1 : i32, i32, i32
  }
  func.func @transform_4(%arg0: i32) -> (i32, i32, i32) {
    %c0_i32 = arith.constant 0 : i32
    %c0_i32_0 = arith.constant 0 : i32
    %c0_i32_1 = arith.constant 0 : i32
    %c0_i32_2 = arith.constant 0 : i32
    return %c0_i32, %c0_i32_0, %c0_i32_1 : i32, i32, i32
  }
  func.func @transform_5(%arg0: i32) -> (i32, i32, i32) {
    %c0_i32 = arith.constant 0 : i32
    %c0_i32_0 = arith.constant 0 : i32
    %c0_i32_1 = arith.constant 0 : i32
    %c0_i32_2 = arith.constant 0 : i32
    return %c0_i32, %c0_i32_0, %c0_i32_1 : i32, i32, i32
  }
  func.func @transform_6(%arg0: i32) -> (i32, i32, i32) {
    %c0_i32 = arith.constant 0 : i32
    %c0_i32_0 = arith.constant 0 : i32
    %c0_i32_1 = arith.constant 0 : i32
    return %arg0, %c0_i32, %c0_i32_0 : i32, i32, i32
  }
}

</mosaic_0001>

<bundles_post_ra>
// kernel: feature_extraction_forward.1
= control target key start
LH: loop header
LB: loop body
LE: loop exit
PB: predicated region body
PF: predicated region fallthrough
CT: control target
= control target key end

     0   :  { %11 = vsyncpa [#allocation3], 0  ;;  %s16639_s0 = inlined_call_operand.vmem [shape: bf16[2,64,75], index: 0, kind: input, shape index: {}]   ;;  %s16640_s1 = inlined_call_operand.vmem [shape: bf16[75,32], index: 1, kind: input, shape index: {}]   ;;  %s16641_s2 = inlined_call_operand.vmem [shape: f32[1,32], index: 2, kind: input, shape index: {}]   ;;  %s16642_s3 = inlined_call_operand.vmem [shape: bf16[13,288,32], index: 3, kind: input, shape index: {}]   ;;  %s16643_s4 = inlined_call_operand.vmem [shape: f32[13,1,32], index: 4, kind: input, shape index: {}]   ;;  %s16644_s5 = inlined_call_operand.vmem [shape: f32[13,1,32], index: 5, kind: input, shape index: {}]   ;;  %s16645_s6 = inlined_call_operand.hbm [shape: f32[2,64,32], index: 6, kind: output, shape index: {}]  }
   0x1   :  { %13 = vsyncpa [#allocation3 + $0x1], 0  ;;  %s12233_s21 = smov 0   ;;  %s12235_s22 = smov 0  }
   0x2   :  { %s12237_s23 = smov 0   ;;  %s12239_s24 = smov 0  }
   0x3 LB: > { %s12254_s25 = sadd.s32 4294967295, %s12188_s24   ;;  %s8880_s26 = sadd.s32 4294967294, %s12188_s24   ;;  %s12188_s24 = sphi %s12239_s24, %s16651_s24   ;;  %s12184_s23 = sphi %s12237_s23, %s16650_s23   ;;  %s12180_s22 = sphi %s12235_s22, %s16649_s22   ;;  %s12176_s21 = sphi %s12233_s21, %s16648_s21  }
   0x4   : > { %s12258_s27 = sadd.s32 1, %s12188_s24   ;;  %s157_s28 = sadd.s32 1, %s12184_s23 }
   0x5   : > { %s154_s29 = ssub.s32 %s12188_s24, %s12258_s27  ;;  %p167_p0 = scmp.ne.s32.totalorder %s12184_s23, %s12180_s22 }
   0x6   : > { %p155_p1 = scmp.eq.s32.totalorder %s154_s29, 0  ;;  %p168_p2 = scmp.eq.s32.totalorder %s12254_s25, 1 }
   0x7   : > { %p173_p3 = scmp.ne.s32.totalorder %s12180_s22, %s12176_s21  ;;  %p174_p4 = scmp.eq.s32.totalorder %s8880_s26, 1 }
   0x8   : > { %s12269_s30 = scalar_select %p155_p1, %s12184_s23, %s157_s28  }
   0x9   : > { %p12271_p5 = por %p168_p2, %p167_p0  ;;  %p12275_p6 = por %p174_p4, %p173_p3 }
   0xa   : > { %p8883_p7 = scmp.ge.s32.totalorder %s12188_s24, 1  ;;  %p215_p8 = scmp.lt.s32.totalorder %s12188_s24, 3 }
   0xc   : > { %p216_p9 = pnand %p8883_p7, %p215_p8 }
   0xd   : > { %v11883_v0 = vld [vmem:[%s16640_s1] sm:$0xff] (!%p216_p9)   ;;  %v11884_v1 = vld [vmem:[%s16640_s1 + $0x8] sm:$0xff] (!%p216_p9)   ;;  %vm338_vm0 = vcmask (!%p216_p9), 1044480   ;;  %vm339_vm1 = vcmask (!%p216_p9), 1045504   ;;  %v11885_v2 = vld [vmem:[%s16640_s1 + $0x10] sm:$0xff] (!%p216_p9)   ;;  %v12190_v3 = vmov (!%p216_p9), 65535  }
   0xe   : > { %219 = sbr.rel (%p216_p9) target bundleno = 5094 (0x13e6), region = 44  ;;  %10283 = vmatprep.subr.bf16.mxu0 (!%p216_p9), %v11883_v0  ;;  %v340_v4 = vsel (!%p216_p9), %vm338_vm0, 4294967295, %v12190_v3  ;;  %p245_p10 = scmp.lt.s32.totalorder (!%p216_p9), %s12254_s25, 1  ;;  %v11886_v5 = vld [vmem:[%s16640_s1 + $0x18] sm:$0xff] (!%p216_p9)   ;;  %v11887_v6 = vld [vmem:[%s16640_s1 + $0x20] sm:$0x3f] (!%p216_p9)  }
   0xf   : > { %10284 = vmatpush3.bf16.msra.mxu0 (!%p216_p9), %v11883_v0  ;;  %v341_v7 = vsel (!%p216_p9), %vm339_vm1, %v340_v4, 0  ;;  %vm325_vm2 = vcmask (!%p216_p9), 613376   ;;  %v11892_v13 = vld [vmem:[%s16642_s3 + $0x80] sm:$0xff] (!%p216_p9)   ;;  %v11893_v14 = vld [vmem:[%s16642_s3 + $0x88] sm:$0xff] (!%p216_p9)   ;;  %v11898_v19 = vld [vmem:[%s16642_s3 + $0x50] sm:$0xff] (!%p216_p9)   ;;  %v12191_v21 = vmov (!%p216_p9), 0.0  }
  0x10   : > { %10285 = vmatprep.subr.bf16.mxu0 (!%p216_p9), %v11884_v1  ;;  %v343_v9 = vand.u32 (!%p216_p9), %v11887_v6, %v341_v7  ;;  %v11894_v15 = vld [vmem:[%s16642_s3 + $0x40] sm:$0xff] (!%p216_p9)   ;;  %v11896_v17 = vld [vmem:[%s16642_s3 + $0x48] sm:$0xff] (!%p216_p9)   ;;  %v11899_v20 = vld [vmem:[%s16642_s3 + $0x10] sm:$0xff] (!%p216_p9)   ;;  %v419_v22 = vrot.slane (!%p216_p9), %v12191_v21, 7  ;;  %vm437_vm3 = vcmask (!%p216_p9), 1040384   ;;  %vm472_vm4 = vcmask (!%p216_p9), 1046528  }
  0x11   : > { %v11895_v16 = vld [vmem:[%s16642_s3] sm:$0xff] (!%p216_p9)   ;;  %v11897_v18 = vld [vmem:[%s16642_s3 + $0x8] sm:$0xff] (!%p216_p9)   ;;  %9685 = vmatprep.subr.bf16.mxu1 (!%p216_p9), %v11894_v15  ;;  %v11900_v24 = vld [vmem:[%s16642_s3 + $0x58] sm:$0xff] (!%p216_p9)   ;;  %vm689_vm5 = vcmask (!%p216_p9), 261120   ;;  %s12192_s9 = smov (!%p216_p9), 96   ;;  %s12193_s14 = smov (!%p216_p9), 32  }
  0x12   : > { %9686 = vmatpush3.bf16.msra.mxu1 (!%p216_p9), %v11895_v16  ;;  %v12329_v23 = vld [vmem:[%s16641_s2] ss:$0 sm:$0xff] (!%p216_p9)  ;;  %v11901_v25 = vld [vmem:[%s16642_s3 + $0x18] sm:$0xff] (!%p216_p9)   ;;  %v12338_v26 = vsel (!%p216_p9), %vm437_vm3, 0.0, %v419_v22  ;;  %v447_v27 = vsel (!%p216_p9), %vm437_vm3, %v419_v22, 0.0  ;;  %v11904_v62 = vld [vmem:[%s16642_s3 + $0x68] sm:$0xff] (!%p216_p9)  }
  0x13   : > { %10286 = vmatpush3.bf16.msra.mxu0 (!%p216_p9), %v11884_v1  ;;  %9687 = vmatprep.subr.bf16.mxu1 (!%p216_p9), %v11896_v17  ;;  %v473_v33 = vrot.slane (!%p216_p9), %v12338_v26, 1  ;;  %v474_v34 = vrot.slane (!%p216_p9), %v447_v27, 1  ;;  %v521_v38 = vrot.slane (!%p216_p9), %v12338_v26, 2  ;;  %v522_v39 = vrot.slane (!%p216_p9), %v447_v27, 2  ;;  %v11902_v41 = vld [vmem:[%s16642_s3 + $0x60] sm:$0xff] (!%p216_p9)   ;;  %v11905_v63 = vld [vmem:[%s16642_s3 + $0x28] sm:$0xff] (!%p216_p9)  }
  0x14   : > { %10287 = vmatprep.subr.bf16.mxu0 (!%p216_p9), %v11885_v2  ;;  %v11903_v42 = vld [vmem:[%s16642_s3 + $0x20] sm:$0xff] (!%p216_p9)   ;;  %s12194_s15 = smov (!%p216_p9), 64   ;;  %vm698_vm6 = vcmask (!%p216_p9), 523264   ;;  %vm707_vm7 = vcmask (!%p216_p9), 785408   ;;  %s9675_s10 = sshll.u32 (!%p216_p9), %s12254_s25, 10 }
  0x15   : > { %s246_s19 = scalar_select %p245_p10, %s12254_s25, 1  ;;  %v12378_v50 = vsel %vm472_vm4, %v473_v33, %v474_v34  ;;  %v12381_v51 = vsel %vm339_vm1, %v521_v38, %v522_v39 }
  0x16   : > { %9688 = vmatpush3.bf16.msra.mxu1 %v11897_v18  ;;  %s16588_s16 = scalar_lea.hbm %s16645_s6, %s9675_s10  ;;  %s12195_s18 = smov [#allocation2]  }
  0x17   : > { %s9674_s20 = sshll.u32 %s246_s19, 5  ;;  %10288 = vmatpush3.bf16.msra.mxu0 %v11885_v2  ;;  %9689 = vmatprep.subr.bf16.mxu1 %v11898_v19  ;;  %s12130_s19 = sshll.u32 %s12195_s18, 4  ;;  %s12131_s19 = int_to_ptr.vmem [resolvable:$false] %s12130_s19 }
  0x18   : > { %s249_s29 = scalar_lea.vmem %s16639_s0, %s9674_s20  ;;  %10289 = vmatprep.subr.bf16.mxu0 %v11886_v5 }
  0x19   : > { %v11888_v8 = vld [vmem:[%s249_s29] sm:$0xff]   ;;  %v11889_v10 = vld [vmem:[%s249_s29 + $0x8] sm:$0xff]   ;;  %v11890_v11 = vld [vmem:[%s249_s29 + $0x10] sm:$0xff]  }
  0x1a   : > { %10293 = vmatprep.mubr.msk.bf16.mxu0 %vm325_vm2, %v11888_v8  ;;  %v11891_v12 = vld [vmem:[%s249_s29 + $0x18] sm:$0xff]   ;;  %9690 = vmatpush3.bf16.msra.mxu1 %v11899_v20 }
  0x1b   : > { %10290 = vmatpush3.bf16.msra.mxu0 %v11886_v5  ;;  %9691 = vmatprep.subr.bf16.mxu1 %v11900_v24 }
  0x1c   : > { %10291 = vmatprep.subr.bf16.mxu0 %v343_v9 }
  0x1e   : > { %9692 = vmatpush3.bf16.msra.mxu1 %v11901_v25 }
  0x1f   : > { %10292 = vmatpush3.bf16.msra.mxu0 %v343_v9  ;;  %9693 = vmatprep.subr.bf16.mxu1 %v11902_v41 }
  0x20   : > { %10301 = vmatprep.subr.bf16.mxu0 %v11892_v13 }
  0x22   : > { %10294 = vmatmul.mubr.msk.bf16.vlgmr.msra.gmra.mrb[0].mxu0 %vm325_vm2, %v11889_v10  ;;  %9694 = vmatpush3.bf16.msra.mxu1 %v11903_v42 }
  0x23   : > { %10297 = vmatprep.mubr.msk.bf16.mxu0 %vm325_vm2, %v11890_v11  ;;  %10302 = vmatpush3.bf16.msra.mxu0 %v11892_v13  ;;  %v11906_v13 = vld [vmem:[%s16642_s3 + $0x70] sm:$0xff]  }
  0x24   : > { %10303 = vmatprep.subr.bf16.mxu0 %v11893_v14  ;;  %9695 = vmatprep.subr.bf16.mxu1 %v11904_v62 }
  0x26   : > { %9696 = vmatpush3.bf16.msra.mxu1 %v11905_v63 }
  0x27   : > { %10304 = vmatpush3.bf16.msra.mxu0 %v11893_v14  ;;  %v11907_v14 = vld [vmem:[%s16642_s3 + $0x30] sm:$0xff]   ;;  %9697 = vmatprep.subr.bf16.mxu1 %v11906_v13 }
  0x2a   : > { %10298 = vmatmul.mubr.msk.bf16.gmra.mrb[4].mxu0 %vm325_vm2, %v11891_v12  ;;  %9698 = vmatpush3.bf16.msra.mxu1 %v11907_v14 }
  0xf5   : > { %v10295_v28 = vpop.f32.mrb[0].mxu0 }
  0xf6   : > { %v12342_v29 = vadd.f32 %v10295_v28, %v12329_v23  ;;  %v379_v30 = vpop.f32.mrb[1].mxu0 }
  0xf7   : > { %v12345_v31 = vadd.f32 %v12329_v23, %v379_v30  ;;  %v10296_v32 = vpop.f32.mrb[2].mxu0 }
  0xf8   : > { %v422_v35 = vrot.slane %v12342_v29, 7  ;;  %v12350_v36 = vadd.f32 %v10296_v32, %v12329_v23  ;;  %v382_v37 = vpop.f32.mrb[3].mxu0 }
  0xf9   : > { %v420_v40 = vrot.slane %v12345_v31, 7  ;;  %v12368_v46 = vadd.f32 %v12329_v23, %v382_v37  ;;  %v11909_v37 = vld [vmem:[%s16642_s3 + $0x38] sm:$0xff]  }
  0xfa   : > { %v12361_v43 = vsel %vm437_vm3, 0.0, %v422_v35  ;;  %v12364_v44 = vsel %vm437_vm3, %v422_v35, 0.0  ;;  %v423_v45 = vrot.slane %v12350_v36, 7  ;;  %v11908_v35 = vld [vmem:[%s16642_s3 + $0x78] sm:$0xff]  }
  0xfb   : > { %v12371_v47 = vsel %vm437_vm3, 0.0, %v420_v40  ;;  %v448_v48 = vsel %vm437_vm3, %v420_v40, 0.0  ;;  %v530_v52 = vrot.slane %v12361_v43, 2  ;;  %v531_v53 = vrot.slane %v12364_v44, 2  ;;  %9699 = vmatprep.subr.bf16.mxu1 %v11908_v35 }
  0xfc   : > { %v12375_v49 = vsel %vm437_vm3, 0.0, %v423_v45  ;;  %v477_v54 = vrot.slane %v448_v48, 1  ;;  %v12386_v55 = vsel %vm437_vm3, %v423_v45, 0.0  ;;  %v421_v57 = vrot.slane %v12368_v46, 7  ;;  %9700 = vmatpush3.bf16.msra.mxu1 %v11909_v37 }
  0xfd   : > { %v10299_v56 = vpop.f32.mrb[4].mxu0  ;;  %v10503_v60 = vpack.i.bf16 %v12375_v49, %v12361_v43  ;;  %v476_v61 = vrot.slane %v12371_v47, 1  ;;  %v524_v0 = vrot.slane %v12371_v47, 2  ;;  %v525_v1 = vrot.slane %v448_v48, 2 }
  0xfe   : > { %v12390_v58 = vadd.f32 %v10299_v56, %v12329_v23  ;;  %v395_v59 = vpop.f32.mrb[5].mxu0  ;;  %v12406_v4 = vsel %vm437_vm3, 0.0, %v421_v57  ;;  %v12409_v5 = vsel %vm437_vm3, %v421_v57, 0.0  ;;  %v534_v9 = vrot.slane %v12386_v55, 2 }
  0xff   : > { %v12403_v2 = vadd.f32 %v12329_v23, %v395_v59  ;;  %v10300_v3 = vpop.f32.mrb[6].mxu0  ;;  %10504 = vrot.lane.b32.xlu1 %v10503_v60, %s12192_s9  ;;  %v12414_v7 = vsel %vm472_vm4, %v476_v61, %v477_v54  ;;  %v527_v10 = vrot.slane %v12406_v4, 2  ;;  %v528_v11 = vrot.slane %v12409_v5, 2 }
 0x100   : > { %v426_v6 = vrot.slane %v12390_v58, 7  ;;  %v398_v8 = vpop.f32.mrb[7].mxu0  ;;  %v10518_v15 = vpack.i.bf16 %v12414_v7, %v12378_v50  ;;  %v10508_v16 = vpack.i.bf16 %v12361_v43, %v12406_v4  ;;  %v12431_v17 = vsel %vm339_vm1, %v530_v52, %v531_v53 }
 0x101   : > { %v424_v12 = vrot.slane %v12403_v2, 7  ;;  %v533_v18 = vrot.slane %v12375_v49, 2  ;;  %v526_v22 = vsel %vm339_vm1, %v524_v0, %v525_v1  ;;  %v529_v27 = vsel %vm339_vm1, %v527_v10, %v528_v11 }
 0x102   : > { %v12435_v19 = vsel %vm437_vm3, 0.0, %v426_v6  ;;  %v12438_v20 = vsel %vm437_vm3, %v426_v6, 0.0  ;;  %10519 = vrot.lane.b32.xlu0 %v10518_v15, %s12193_s14  ;;  %v12452_v28 = vadd.f32 %v10300_v3, %v12329_v23  ;;  %v480_v30 = vrot.slane %v12409_v5, 1 }
 0x103   : > { %v12441_v21 = vsel %vm437_vm3, 0.0, %v424_v12  ;;  %v12445_v24 = vsel %vm437_vm3, %v424_v12, 0.0  ;;  %10509 = vrot.lane.b32.xlu1 %v10508_v16, %s12194_s15  ;;  %v742_v33 = vpack.c.bf16 %v12431_v17, %v529_v27  ;;  %v12458_v34 = vadd.f32 %v12329_v23, %v398_v8 }
 0x104   : > { %v536_v25 = vrot.slane %v12441_v21, 2  ;;  %v537_v32 = vrot.slane %v12445_v24, 2  ;;  %v542_v38 = vrot.slane %v12435_v19, 2  ;;  %v427_v39 = vrot.slane %v12452_v28, 7 }
 0x105   : > { %v12469_v40 = vsel %vm339_vm1, %v533_v18, %v534_v9  ;;  %v10513_v23 = vpack.i.bf16 %v12406_v4, %v12371_v47  ;;  %v543_v41 = vrot.slane %v12438_v20, 2  ;;  %10305 = vmatprep.mubr.msk.bf16.mxu0 %vm689_vm5, %v742_v33  ;;  %v425_v45 = vrot.slane %v12458_v34, 7 }
 0x106   : > { %v12475_v42 = vsel %vm339_vm1, %v536_v25, %v537_v32  ;;  %v10528_v48 = vpack.i.bf16 %v12469_v40, %v12431_v17  ;;  %v12482_v52 = vsel %vm437_vm3, 0.0, %v427_v39  ;;  %v12485_v53 = vsel %vm437_vm3, %v427_v39, 0.0 }
 0x107   : > { %v745_v54 = vpack.c.bf16 %v12475_v42, %v12469_v40  ;;  %10514 = vrot.lane.b32.xlu1 %v10513_v23, %s12192_s9  ;;  %v479_v56 = vrot.slane %v12406_v4, 1  ;;  %v483_v57 = vrot.slane %v12364_v44, 1  ;;  %v606_v59 = vrot.slane %v12482_v52, 2 }
 0x108   : > { %v607_v60 = vrot.slane %v12485_v53, 2  ;;  %10529 = vrot.lane.b32.xlu0 %v10528_v48, %s12193_s14  ;;  %v10533_v61 = vpack.i.bf16 %v529_v27, %v526_v22  ;;  %v12496_v62 = vsel %vm437_vm3, 0.0, %v425_v45  ;;  %v453_v63 = vsel %vm437_vm3, %v425_v45, 0.0 }
 0x109   : > { %10306 = vmatmul.mubr.msk.bf16.vlgmr.msra.gmra.mrb[8].mxu0 %vm689_vm5, %v745_v54  ;;  %v10523_v0 = vpack.i.bf16 %v526_v22, %v12381_v51  ;;  %v482_v1 = vrot.slane %v12361_v43, 1  ;;  %v539_v44 = vrot.slane %v12496_v62, 2  ;;  %v540_v3 = vrot.slane %v453_v63, 2 }
 0x10a   : > { %v12504_v5 = vsel %vm472_vm4, %v479_v56, %v480_v30  ;;  %v544_v6 = vsel %vm339_vm1, %v542_v38, %v543_v41  ;;  %v608_v8 = vsel %vm339_vm1, %v606_v59, %v607_v60  ;;  %v10548_v14 = vpack.i.bf16 %v12431_v17, %v529_v27 }
 0x10b   : > { %10524 = vrot.lane.b32.xlu1 %v10523_v0, %s12194_s15  ;;  %v12511_v9 = vsel %vm472_vm4, %v482_v1, %v483_v57  ;;  %v541_v10 = vsel %vm339_vm1, %v539_v44, %v540_v3  ;;  %v751_v13 = vpack.c.bf16 %v12381_v51, %v608_v8  ;;  %v489_v15 = vrot.slane %v12445_v24, 1 }
 0x10c   : > { %10534 = vrot.lane.b32.xlu0 %v10533_v61, %s12193_s14  ;;  %v10543_v11 = vpack.i.bf16 %v12511_v9, %v12504_v5  ;;  %v748_v12 = vpack.c.bf16 %v544_v6, %v541_v10  ;;  %v10553_v16 = vpack.i.bf16 %v12441_v21, %v12375_v49  ;;  %v488_v18 = vrot.slane %v12441_v21, 1 }
 0x10d   : > { %v486_v22 = vrot.slane %v12386_v55, 1  ;;  %v485_v25 = vrot.slane %v12375_v49, 1  ;;  %v10563_v30 = vpack.i.bf16 %v12496_v62, %v12441_v21  ;;  %v10558_v17 = vpack.i.bf16 %v12435_v19, %v12496_v62 }
 0x10e   : > { %10309 = vmatprep.mubr.msk.bf16.mxu0 %vm689_vm5, %v748_v12  ;;  %v12535_v24 = vsel %vm472_vm4, %v488_v18, %v489_v15  ;;  %v495_v55 = vrot.slane %v12438_v20, 1  ;;  %v492_v33 = vrot.slane %v453_v63, 1  ;;  %v491_v35 = vrot.slane %v12496_v62, 1 }
 0x10f   : > { %10544 = vrot.lane.b32.xlu1 %v10543_v11, %s12193_s14  ;;  %v12540_v27 = vsel %vm472_vm4, %v485_v25, %v486_v22  ;;  %v494_v37 = vrot.slane %v12435_v19, 1  ;;  %v10578_v38 = vpack.i.bf16 %v12475_v42, %v12469_v40  ;;  %v10583_v39 = vpack.i.bf16 %v608_v8, %v544_v6 }
 0x110   : > { %10539 = vrot.lane.b32.xlu0 %v10543_v11, %s12192_s9  ;;  %v10573_v32 = vpack.i.bf16 %v12535_v24, %v12540_v27  ;;  %v12552_v23 = vsel %vm472_vm4, %v491_v35, %v492_v33  ;;  %v10588_v45 = vpack.i.bf16 %v541_v10, %v12475_v42  ;;  %v10613_v40 = vpack.i.bf16 %v544_v6, %v541_v10 }
 0x111   : > { %10310 = vmatmul.mubr.msk.bf16.gmra.mrb[12].mxu0 %vm689_vm5, %v751_v13  ;;  %v12555_v20 = vsel %vm472_vm4, %v494_v37, %v495_v55  ;;  %v595_v48 = vrot.slane %v12482_v52, 1  ;;  %v596_v54 = vrot.slane %v12485_v53, 1  ;;  %v10618_v56 = vpack.i.bf16 %v12482_v52, %v12435_v19 }
 0x112   : > { %v10608_v41 = vpack.i.bf16 %v12555_v20, %v12552_v23  ;;  %v10598_v57 = vpack.i.bf16 %v12338_v26, %v12482_v52 }
 0x113   : > { %10549 = vrot.lane.b32.xlu1 %v10548_v14, %s12194_s15  ;;  %v12574_v42 = vsel %vm472_vm4, %v595_v48, %v596_v54 }
 0x114   : > { %10554 = vrot.lane.b32.xlu0 %v10553_v16, %s12194_s15  ;;  %v10603_v53 = vpack.i.bf16 %v12378_v50, %v12574_v42 }
 0x117   : > { %10564 = vrot.lane.b32.xlu1 %v10563_v30, %s12192_s9 }
 0x118   : > { %10559 = vrot.lane.b32.xlu0 %v10558_v17, %s12194_s15 }
 0x11b   : > { %10574 = vrot.lane.b32.xlu1 %v10573_v32, %s12193_s14 }
 0x11c   : > { %10569 = vrot.lane.b32.xlu0 %v10573_v32, %s12192_s9 }
 0x11f   : > { %10579 = vrot.lane.b32.xlu1 %v10578_v38, %s12194_s15 }
 0x120   : > { %10584 = vrot.lane.b32.xlu0 %v10583_v39, %s12193_s14 }
 0x123   : > { %10609 = vrot.lane.b32.xlu1 %v10608_v41, %s12193_s14 }
 0x124   : > { %10589 = vrot.lane.b32.xlu0 %v10588_v45, %s12193_s14 }
 0x127   : > { %10614 = vrot.lane.b32.xlu1 %v10613_v40, %s12194_s15 }
 0x128   : > { %10594 = vrot.lane.b32.xlu0 %v10608_v41, %s12192_s9 }
 0x12b   : > { %10619 = vrot.lane.b32.xlu1 %v10618_v56, %s12192_s9 }
 0x12c   : > { %10599 = vrot.lane.b32.xlu0 %v10598_v57, %s12194_s15 }
 0x130   : > { %10604 = vrot.lane.b32.xlu0 %v10603_v53, %s12192_s9 }
 0x171   : > { %v12580_v59 = vpop.permute.xlu1 %10504 }
 0x174   : > { %v10520_v60 = vpop.permute.xlu0 %10519 }
 0x175   : > { %v10510_v61 = vpop.permute.xlu1 %10509  ;;  %v10522_v1 = vunpack.i.h.bf16 %v10520_v60  ;;  %v10521_v52 = vunpack.i.l.bf16 %v10520_v60 }
 0x176   : > { %v10512_v22 = vunpack.i.h.bf16 %v10510_v61  ;;  %v10511_v25 = vunpack.i.l.bf16 %v10510_v61 }
 0x177   : > { %v691_v50 = vsel %vm689_vm5, %v12371_v47, %v10522_v1  ;;  %v690_v12 = vsel %vm689_vm5, %v12338_v26, %v10521_v52 }
 0x179   : > { %v10515_v63 = vpop.permute.xlu1 %10514 }
 0x17a   : > { %v10530_v0 = vpop.permute.xlu0 %10529  ;;  %v10517_v30 = vunpack.i.h.bf16 %v10515_v63  ;;  %v10516_v47 = vunpack.i.l.bf16 %v10515_v63 }
 0x17b   : > { %v10532_v60 = vunpack.i.h.bf16 %v10530_v0  ;;  %v10531_v61 = vunpack.i.l.bf16 %v10530_v0 }
 0x17d   : > { %v10525_v44 = vpop.permute.xlu1 %10524  ;;  %v719_v0 = vsel %vm689_vm5, %v12540_v27, %v10532_v60 }
 0x17e   : > { %v10535_v3 = vpop.permute.xlu0 %10534  ;;  %v10527_v6 = vunpack.i.h.bf16 %v10525_v44  ;;  %v10526_v8 = vunpack.i.l.bf16 %v10525_v44 }
 0x17f   : > { %v10537_v10 = vunpack.i.h.bf16 %v10535_v3  ;;  %v10536_v11 = vunpack.i.l.bf16 %v10535_v3 }
 0x180   : > { %v12587_v13 = vsel %vm698_vm6, %v690_v12, %v10526_v8  ;;  %v700_v18 = vsel %vm698_vm6, %v691_v50, %v10527_v6 }
 0x181   : > { %v10545_v14 = vpop.permute.xlu1 %10544  ;;  %v716_v15 = vsel %vm689_vm5, %v12414_v7, %v10536_v11  ;;  %v717_v16 = vsel %vm689_vm5, %v12504_v5, %v10537_v10  ;;  %v708_v35 = vsel %vm707_vm7, %v12587_v13, %v10516_v47  ;;  %v709_v7 = vsel %vm707_vm7, %v700_v18, %v10517_v30 }
 0x182   : > { %v10540_v17 = vpop.permute.xlu0 %10539  ;;  %v724_v32 = vsel %vm698_vm6, %v716_v15, %v10511_v25  ;;  %v725_v33 = vsel %vm698_vm6, %v717_v16, %v10512_v22  ;;  %v740_v45 = vpack.c.bf16 %v709_v7, %v708_v35  ;;  %v10547_v40 = vunpack.i.h.bf16 %v10545_v14 }
 0x183   : > { %v10542_v55 = vunpack.i.h.bf16 %v10540_v17  ;;  %v10541_v26 = vunpack.i.l.bf16 %v10540_v17  ;;  %v10546_v48 = vunpack.i.l.bf16 %v10545_v14  ;;  %v10507_v10 = vunpack.i.h.bf16 %v12580_v59 }
 0x184   : > { %v693_v63 = vsel %vm689_vm5, %v12361_v43, %v10547_v40  ;;  %v10506_v11 = vunpack.i.l.bf16 %v12580_v59  ;;  %v718_v43 = vsel %vm689_vm5, %v12511_v9, %v10531_v61 }
 0x185   : > { %v10550_v37 = vpop.permute.xlu1 %10549  ;;  %v732_v5 = vsel %vm707_vm7, %v724_v32, %v10541_v26  ;;  %v733_v38 = vsel %vm707_vm7, %v725_v33, %v10542_v55  ;;  %v692_v1 = vsel %vm689_vm5, %v12406_v4, %v10546_v48 }
 0x186   : > { %v10555_v39 = vpop.permute.xlu0 %10554  ;;  %v741_v41 = vpack.c.bf16 %v733_v38, %v732_v5  ;;  %v10552_v54 = vunpack.i.h.bf16 %v10550_v37  ;;  %v10551_v56 = vunpack.i.l.bf16 %v10550_v37 }
 0x187   : > { %v10557_v52 = vunpack.i.h.bf16 %v10555_v39  ;;  %v10556_v44 = vunpack.i.l.bf16 %v10555_v39 }
 0x188   : > { %940 = vmatprep.mubr.bf16.mxu1 %v741_v41  ;;  %v701_v6 = vsel %vm698_vm6, %v692_v1, %v10551_v56  ;;  %v702_v8 = vsel %vm698_vm6, %v693_v63, %v10552_v54 }
 0x189   : > { %941 = vmatmul.mubr.bf16.vlgmr.msra.gmra.mrb[0].mxu1 %v740_v45  ;;  %v10565_v57 = vpop.permute.xlu1 %10564  ;;  %v726_v14 = vsel %vm698_vm6, %v718_v43, %v10556_v44  ;;  %v727_v15 = vsel %vm698_vm6, %v719_v0, %v10557_v52  ;;  %v710_v16 = vsel %vm707_vm7, %v701_v6, %v10506_v11  ;;  %v711_v18 = vsel %vm707_vm7, %v702_v8, %v10507_v10 }
 0x18a   : > { %v10560_v53 = vpop.permute.xlu0 %10559  ;;  %v743_v47 = vpack.c.bf16 %v711_v18, %v710_v16  ;;  %v10567_v56 = vunpack.i.h.bf16 %v10565_v57  ;;  %v10566_v60 = vunpack.i.l.bf16 %v10565_v57 }
 0x18b   : > { %v10562_v48 = vunpack.i.h.bf16 %v10560_v53  ;;  %v10561_v54 = vunpack.i.l.bf16 %v10560_v53 }
 0x18d   : > { %v10575_v3 = vpop.permute.xlu1 %10574 }
 0x18e   : > { %v10570_v50 = vpop.permute.xlu0 %10569  ;;  %v10577_v17 = vunpack.i.h.bf16 %v10575_v3  ;;  %v10576_v9 = vunpack.i.l.bf16 %v10575_v3 }
 0x18f   : > { %v10572_v12 = vunpack.i.h.bf16 %v10570_v50  ;;  %v10571_v4 = vunpack.i.l.bf16 %v10570_v50 }
 0x190   : > { %v695_v37 = vsel %vm689_vm5, %v12441_v21, %v10577_v17  ;;  %v694_v5 = vsel %vm689_vm5, %v12375_v49, %v10576_v9 }
 0x191   : > { %v10580_v22 = vpop.permute.xlu1 %10579  ;;  %v734_v59 = vsel %vm707_vm7, %v726_v14, %v10571_v4  ;;  %v735_v25 = vsel %vm707_vm7, %v727_v15, %v10572_v12 }
 0x192   : > { %v10585_v30 = vpop.permute.xlu0 %10584  ;;  %v744_v27 = vpack.c.bf16 %v735_v25, %v734_v59  ;;  %v10582_v55 = vunpack.i.h.bf16 %v10580_v22  ;;  %v10581_v26 = vunpack.i.l.bf16 %v10580_v22 }
 0x193   : > { %v10587_v52 = vunpack.i.h.bf16 %v10585_v30  ;;  %v10586_v53 = vunpack.i.l.bf16 %v10585_v30 }
 0x194   : > { %948 = vmatprep.mubr.bf16.mxu1 %v744_v27  ;;  %v703_v45 = vsel %vm698_vm6, %v694_v5, %v10581_v26  ;;  %v704_v40 = vsel %vm698_vm6, %v695_v37, %v10582_v55 }
 0x195   : > { %949 = vmatmul.mubr.bf16.gmra.mrb[4].mxu1 %v743_v47  ;;  %v10610_v32 = vpop.permute.xlu1 %10609  ;;  %v723_v16 = vsel %vm689_vm5, %v12574_v42, %v10587_v52  ;;  %v722_v18 = vsel %vm689_vm5, %v12555_v20, %v10586_v53 }
 0x196   : > { %v10590_v33 = vpop.permute.xlu0 %10589  ;;  %v10612_v8 = vunpack.i.h.bf16 %v10610_v32  ;;  %v10611_v57 = vunpack.i.l.bf16 %v10610_v32 }
 0x197   : > { %v10592_v35 = vunpack.i.h.bf16 %v10590_v33  ;;  %v10591_v7 = vunpack.i.l.bf16 %v10590_v33 }
 0x198   : > { %v697_v22 = vsel %vm689_vm5, %v12435_v19, %v10612_v8  ;;  %v696_v59 = vsel %vm689_vm5, %v12496_v62, %v10611_v57  ;;  %v11916_v57 = vld [vmem:[%s16642_s3 + $0xe0] sm:$0xff]  }
 0x199   : > { %v721_v38 = vsel %vm689_vm5, %v12552_v23, %v10592_v35  ;;  %v720_v39 = vsel %vm689_vm5, %v12535_v24, %v10591_v7  ;;  %v10615_v41 = vpop.permute.xlu1 %10614  ;;  %v712_v23 = vsel %vm707_vm7, %v703_v45, %v10566_v60  ;;  %v713_v24 = vsel %vm707_vm7, %v704_v40, %v10567_v56  ;;  %v11910_v45 = vld [vmem:[%s16642_s3 + $0x110] sm:$0xff]   ;;  %v11911_v40 = vld [vmem:[%s16642_s3 + $0x118] sm:$0xff]  }
 0x19a   : > { %v10595_v61 = vpop.permute.xlu0 %10594  ;;  %v728_v49 = vsel %vm698_vm6, %v720_v39, %v10561_v54  ;;  %v729_v1 = vsel %vm698_vm6, %v721_v38, %v10562_v48  ;;  %v10617_v50 = vunpack.i.h.bf16 %v10615_v41  ;;  %v10616_v0 = vunpack.i.l.bf16 %v10615_v41  ;;  %10313 = vmatprep.subr.bf16.mxu0 %v11910_v45  ;;  %v11912_v48 = vld [vmem:[%s16642_s3 + $0xd0] sm:$0xff]   ;;  %v11914_v56 = vld [vmem:[%s16642_s3 + $0xd8] sm:$0xff]  }
 0x19b   : > { %v10597_v21 = vunpack.i.h.bf16 %v10595_v61  ;;  %v10596_v63 = vunpack.i.l.bf16 %v10595_v61  ;;  %v746_v43 = vpack.c.bf16 %v713_v24, %v712_v23  ;;  %10314 = vmatpush3.bf16.msra.mxu0 %v11910_v45  ;;  %v11913_v54 = vld [vmem:[%s16642_s3 + $0x90] sm:$0xff]   ;;  %9731 = vmatprep.subr.bf16.mxu1 %v11912_v48  ;;  %v11915_v60 = vld [vmem:[%s16642_s3 + $0x98] sm:$0xff]  }
 0x19c   : > { %v705_v47 = vsel %vm698_vm6, %v696_v59, %v10616_v0  ;;  %v706_v17 = vsel %vm698_vm6, %v697_v22, %v10617_v50  ;;  %10315 = vmatprep.subr.bf16.mxu0 %v11911_v40  ;;  %9732 = vmatpush3.bf16.msra.mxu1 %v11913_v54  ;;  %v11921_v48 = vld [vmem:[%s16642_s3 + $0xb0] sm:$0xff]  }
 0x19d   : > { %v10620_v44 = vpop.permute.xlu1 %10619  ;;  %v736_v3 = vsel %vm707_vm7, %v728_v49, %v10596_v63  ;;  %v737_v6 = vsel %vm707_vm7, %v729_v1, %v10597_v21  ;;  %9733 = vmatprep.subr.bf16.mxu1 %v11914_v56  ;;  %v12688_v1 = vld [vmem:[%s16643_s4] ss:$0 sm:$0xff] }
 0x19e   : > { %v10600_v10 = vpop.permute.xlu0 %10599  ;;  %v747_v11 = vpack.c.bf16 %v737_v6, %v736_v3  ;;  %v10622_v14 = vunpack.i.h.bf16 %v10620_v44  ;;  %v10621_v15 = vunpack.i.l.bf16 %v10620_v44  ;;  %v12693_v44 = vld [vmem:[%s16644_s5] ss:$0 sm:$0xff] }
 0x19f   : > { %v12635_v12 = vunpack.i.h.bf16 %v10600_v10  ;;  %v10601_v4 = vunpack.i.l.bf16 %v10600_v10  ;;  %10316 = vmatpush3.bf16.msra.mxu0 %v11911_v40 }
 0x1a0   : > { %956 = vmatprep.mubr.bf16.mxu1 %v747_v11  ;;  %v714_v20 = vsel %vm707_vm7, %v705_v47, %v10621_v15  ;;  %v715_v19 = vsel %vm707_vm7, %v706_v17, %v10622_v14  ;;  %9734 = vmatpush3.bf16.msra.mxu1 %v11915_v60  ;;  %v11917_v15 = vld [vmem:[%s16642_s3 + $0xa0] sm:$0xff]  }
 0x1a1   : > { %957 = vmatmul.mubr.bf16.gmra.mrb[8].mxu1 %v746_v43  ;;  %v730_v9 = vsel %vm698_vm6, %v722_v18, %v10601_v4  ;;  %v731_v42 = vsel %vm698_vm6, %v723_v16, %v12635_v12  ;;  %v749_v32 = vpack.c.bf16 %v715_v19, %v714_v20  ;;  %9735 = vmatprep.subr.bf16.mxu1 %v11916_v57  ;;  %v11918_v16 = vld [vmem:[%s16642_s3 + $0xe8] sm:$0xff]  }
 0x1a2   : > { %v10605_v25 = vpop.permute.xlu0 %10604 }
 0x1a3   : > { %v12645_v30 = vunpack.i.h.bf16 %v10605_v25  ;;  %v10606_v27 = vunpack.i.l.bf16 %v10605_v25 }
 0x1a4   : > { %9736 = vmatpush3.bf16.msra.mxu1 %v11917_v15 }
 0x1a5   : > { %v738_v55 = vsel %vm707_vm7, %v730_v9, %v10606_v27  ;;  %v739_v62 = vsel %vm707_vm7, %v731_v42, %v12645_v30  ;;  %v11919_v9 = vld [vmem:[%s16642_s3 + $0xa8] sm:$0xff]   ;;  %9737 = vmatprep.subr.bf16.mxu1 %v11918_v16 }
 0x1a6   : > { %v750_v26 = vpack.c.bf16 %v739_v62, %v738_v55 }
 0x1a8   : > { %964 = vmatprep.mubr.bf16.mxu1 %v750_v26  ;;  %9738 = vmatpush3.bf16.msra.mxu1 %v11919_v9 }
 0x1a9   : > { %965 = vmatmul.mubr.bf16.gmra.mrb[12].mxu1 %v749_v32  ;;  %v11920_v32 = vld [vmem:[%s16642_s3 + $0xf0] sm:$0xff]  }
 0x1aa   : > { %9739 = vmatprep.subr.bf16.mxu1 %v11920_v32 }
 0x1ac   : > { %9740 = vmatpush3.bf16.msra.mxu1 %v11921_v48 }
 0x1dc   : > { %v10307_v33 = vpop.f32.mrb[8].mxu0 }
 0x1dd   : > { %v1007_v35 = vpop.f32.mrb[9].mxu0 }
 0x1de   : > { %v12657_v7 = vpop.f32.mrb[10].mxu0 }
 0x1df   : > { %v1010_v37 = vpop.f32.mrb[11].mxu0 }
 0x1e4   : > { %v12659_v5 = vpop.f32.mrb[12].mxu0 }
 0x1e5   : > { %v12661_v38 = vpop.f32.mrb[13].mxu0 }
 0x1e6   : > { %v12663_v39 = vpop.f32.mrb[14].mxu0 }
 0x1e7   : > { %v12665_v41 = vpop.f32.mrb[15].mxu0 }
 0x25c   : > { %v9701_v61 = vpop.f32.mrb[0].mxu1 }
 0x25d   : > { %v9702_v21 = vpop.f32.mrb[1].mxu1 }
 0x25e   : > { %v9703_v63 = vadd.f32 %v9702_v21, %v9701_v61  ;;  %v9704_v49 = vpop.f32.mrb[2].mxu1  ;;  %v11922_v61 = vld [vmem:[%s16642_s3 + $0xf8] sm:$0xff]  }
 0x25f   : > { %v9705_v23 = vpop.f32.mrb[3].mxu1  ;;  %9741 = vmatprep.subr.bf16.mxu1 %v11922_v61 }
 0x260   : > { %v1008_v24 = vadd.f32 %v9703_v63, %v1007_v35  ;;  %v9706_v52 = vadd.f32 %v9705_v23, %v9704_v49  ;;  %v11923_v23 = vld [vmem:[%s16642_s3 + $0xb8] sm:$0xff]  }
 0x261   : > { %9742 = vmatpush3.bf16.msra.mxu1 %v11923_v23 }
 0x262   : > { %v1045_v3 = vmul.f32 %v12688_v1, %v1008_v24  ;;  %v1011_v6 = vadd.f32 %v9706_v52, %v1010_v37 }
 0x264   : > { %v1060_v53 = vadd.f32 %v12693_v44, %v1045_v3  ;;  %v1046_v8 = vmul.f32 %v12688_v1, %v1011_v6 }
 0x266   : > { %vm1068_vm8 = vcmp.gt.f32.partialorder %v1060_v53, 0.0  ;;  %v1076_v10 = vmul.f32 0.2, %v1060_v53  ;;  %v1061_v11 = vadd.f32 %v12693_v44, %v1046_v8 }
 0x268   : > { %vm1069_vm9 = vcmp.gt.f32.partialorder %v1061_v11, 0.0  ;;  %v1077_v50 = vmul.f32 0.2, %v1061_v11  ;;  %v9707_v0 = vpop.f32.mrb[4].mxu1  ;;  %v1084_v43 = vsel %vm1068_vm8, %v1060_v53, %v1076_v10 }
 0x269   : > { %v9708_v4 = vpop.f32.mrb[5].mxu1  ;;  %v1100_v14 = vrot.slane %v1084_v43, 7 }
 0x26a   : > { %v1085_v18 = vsel %vm1069_vm9, %v1061_v11, %v1077_v50  ;;  %v9709_v22 = vadd.f32 %v9708_v4, %v9707_v0  ;;  %v9710_v59 = vpop.f32.mrb[6].mxu1 }
 0x26b   : > { %v1101_v25 = vrot.slane %v1085_v18, 7  ;;  %v9711_v27 = vpop.f32.mrb[7].mxu1  ;;  %v12709_v47 = vsel %vm437_vm3, 0.0, %v1100_v14  ;;  %v12712_v17 = vsel %vm437_vm3, %v1100_v14, 0.0 }
 0x26c   : > { %v1016_v42 = vadd.f32 %v10307_v33, %v9709_v22  ;;  %v9712_v20 = vadd.f32 %v9711_v27, %v9710_v59  ;;  %v1188_v62 = vrot.slane %v12709_v47, 2  ;;  %v1189_v26 = vrot.slane %v12712_v17, 2  ;;  %v11924_v27 = vld [vmem:[%s16642_s3 + $0x100] sm:$0xff]  }
 0x26d   : > { %v12718_v19 = vsel %vm437_vm3, 0.0, %v1101_v25  ;;  %v1125_v55 = vsel %vm437_vm3, %v1101_v25, 0.0  ;;  %v1146_v8 = vrot.slane %v12709_v47, 1  ;;  %v1147_v16 = vrot.slane %v12712_v17, 1  ;;  %9743 = vmatprep.subr.bf16.mxu1 %v11924_v27 }
 0x26e   : > { %v1047_v35 = vmul.f32 %v12688_v1, %v1016_v42  ;;  %v1019_v37 = vadd.f32 %v12657_v7, %v9712_v20  ;;  %v10623_v33 = vpack.i.bf16 %v12718_v19, %v12709_v47  ;;  %v1191_v45 = vrot.slane %v12718_v19, 2 }
 0x26f   : > { %v1192_v40 = vrot.slane %v1125_v55, 2  ;;  %v1190_v7 = vsel %vm339_vm1, %v1188_v62, %v1189_v26  ;;  %v1149_v50 = vrot.slane %v12718_v19, 1  ;;  %v1150_v0 = vrot.slane %v1125_v55, 1 }
 0x270   : > { %v1062_v54 = vadd.f32 %v12693_v44, %v1047_v35  ;;  %v1048_v56 = vmul.f32 %v12688_v1, %v1019_v37  ;;  %10624 = vrot.lane.b32.xlu1 %v10623_v33, %s12192_s9 }
 0x271   : > { %v12739_v60 = vsel %vm339_vm1, %v1191_v45, %v1192_v40  ;;  %v12776_v32 = vsel %vm472_vm4, %v1149_v50, %v1150_v0 }
 0x272   : > { %vm1070_vm10 = vcmp.gt.f32.partialorder %v1062_v54, 0.0  ;;  %v1078_v21 = vmul.f32 0.2, %v1062_v54  ;;  %v1063_v63 = vadd.f32 %v12693_v44, %v1048_v56  ;;  %v10628_v49 = vpack.i.bf16 %v12739_v60, %v1190_v7 }
 0x274   : > { %v1086_v24 = vsel %vm1070_vm10, %v1062_v54, %v1078_v21  ;;  %vm1071_vm11 = vcmp.gt.f32.partialorder %v1063_v63, 0.0  ;;  %v1079_v52 = vmul.f32 0.2, %v1063_v63  ;;  %10629 = vrot.lane.b32.xlu0 %v10628_v49, %s12193_s14  ;;  %v9713_v3 = vpop.f32.mrb[8].mxu1  ;;  %v11927_v49 = vld [vmem:[%s16642_s3 + $0xc8] sm:$0xff]  }
 0x275   : > { %v1102_v6 = vrot.slane %v1086_v24, 7  ;;  %v9714_v53 = vpop.f32.mrb[9].mxu1 }
 0x276   : > { %v1087_v57 = vsel %vm1071_vm11, %v1063_v63, %v1079_v52  ;;  %v9715_v10 = vadd.f32 %v9714_v53, %v9713_v3  ;;  %v9716_v11 = vpop.f32.mrb[10].mxu1 }
 0x277   : > { %v1126_v43 = vsel %vm437_vm3, %v1102_v6, 0.0  ;;  %v1103_v4 = vrot.slane %v1087_v57, 7  ;;  %v9717_v14 = vpop.f32.mrb[11].mxu1  ;;  %v12754_v15 = vsel %vm437_vm3, 0.0, %v1102_v6  ;;  %v12811_v57 = vsel %vm472_vm4, %v1146_v8, %v1147_v16 }
 0x278   : > { %v1024_v18 = vadd.f32 %v9715_v10, %v12661_v38  ;;  %v9718_v22 = vadd.f32 %v9717_v14, %v9716_v11  ;;  %v10633_v59 = vpack.i.bf16 %v12754_v15, %v12718_v19  ;;  %v1194_v25 = vrot.slane %v12754_v15, 2  ;;  %v11925_v38 = vld [vmem:[%s16642_s3 + $0xc0] sm:$0xff]  }
 0x279   : > { %v12765_v9 = vsel %vm437_vm3, 0.0, %v1103_v4  ;;  %v1195_v42 = vrot.slane %v1126_v43, 2  ;;  %v1152_v20 = vrot.slane %v12754_v15, 1  ;;  %v1153_v17 = vrot.slane %v1126_v43, 1  ;;  %9744 = vmatpush3.bf16.msra.mxu1 %v11925_v38 }
 0x27a   : > { %v1049_v55 = vmul.f32 %v12688_v1, %v1024_v18  ;;  %v1027_v62 = vadd.f32 %v9718_v22, %v12665_v41  ;;  %10634 = vrot.lane.b32.xlu0 %v10633_v59, %s12194_s15  ;;  %v10638_v26 = vpack.i.bf16 %v12765_v9, %v1190_v7  ;;  %v12785_v33 = vsel %vm437_vm3, %v1103_v4, 0.0  ;;  %v11926_v41 = vld [vmem:[%s16642_s3 + $0x108] sm:$0xff]  }
 0x27b   : > { %v12779_v35 = vsel %vm339_vm1, %v1194_v25, %v1195_v42  ;;  %v12782_v37 = vsel %vm472_vm4, %v1152_v20, %v1153_v17  ;;  %v1197_v45 = vrot.slane %v12765_v9, 2  ;;  %v10643_v21 = vpack.i.bf16 %v12765_v9, %v12754_v15  ;;  %9745 = vmatprep.subr.bf16.mxu1 %v11926_v41 }
 0x27c   : > { %v1064_v40 = vadd.f32 %v12693_v44, %v1049_v55  ;;  %v1050_v48 = vmul.f32 %v12688_v1, %v1027_v62  ;;  %v9719_v54 = vpop.f32.mrb[12].mxu1  ;;  %10639 = vrot.lane.b32.xlu1 %v10638_v26, %s12194_s15  ;;  %v1391_v56 = vpack.c.bf16 %v12779_v35, %v12739_v60  ;;  %v10653_v7 = vpack.i.bf16 %v12782_v37, %v12776_v32 }
 0x27d   : > { %v9720_v61 = vpop.f32.mrb[13].mxu1  ;;  %v1198_v63 = vrot.slane %v12785_v33, 2  ;;  %v10648_v14 = vpack.i.bf16 %v12779_v35, %v12811_v57  ;;  %9746 = vmatpush3.bf16.msra.mxu1 %v11927_v49  ;;  %v1155_v16 = vrot.slane %v12765_v9, 1  ;;  %v1156_v22 = vrot.slane %v12785_v33, 1 }
 0x27e   : > { %vm1072_vm12 = vcmp.gt.f32.partialorder %v1064_v40, 0.0  ;;  %v1080_v23 = vmul.f32 0.2, %v1064_v40  ;;  %v1065_v24 = vadd.f32 %v12693_v44, %v1050_v48  ;;  %v9721_v52 = vadd.f32 %v9720_v61, %v9719_v54  ;;  %10317 = vmatprep.mubr.msk.bf16.mxu0 %vm689_vm5, %v1391_v56  ;;  %v9722_v3 = vpop.f32.mrb[14].mxu1  ;;  %10654 = vrot.lane.b32.xlu0 %v10653_v7, %s12192_s9 }
 0x27f   : > { %v9723_v6 = vpop.f32.mrb[15].mxu1  ;;  %v12808_v53 = vsel %vm339_vm1, %v1197_v45, %v1198_v63 }
 0x280   : > { %v1088_v10 = vsel %vm1072_vm12, %v1064_v40, %v1080_v23  ;;  %vm1073_vm13 = vcmp.gt.f32.partialorder %v1065_v24, 0.0  ;;  %v1081_v11 = vmul.f32 0.2, %v1065_v24  ;;  %v1032_v50 = vadd.f32 %v12659_v5, %v9721_v52  ;;  %10644 = vrot.lane.b32.xlu1 %v10643_v21, %s12192_s9 }
 0x281   : > { %v1104_v0 = vrot.slane %v1088_v10, 7  ;;  %v9724_v43 = vadd.f32 %v9723_v6, %v9722_v3  ;;  %v10658_v4 = vpack.i.bf16 %v12776_v32, %v12808_v53 }
 0x282   : > { %v1089_v18 = vsel %vm1073_vm13, %v1065_v24, %v1081_v11  ;;  %v1051_v8 = vmul.f32 %v12688_v1, %v1032_v50 }
 0x283   : > { %v12823_v5 = vsel %vm437_vm3, 0.0, %v1104_v0  ;;  %v1128_v59 = vsel %vm437_vm3, %v1104_v0, 0.0  ;;  %v1105_v25 = vrot.slane %v1089_v18, 7  ;;  %v1035_v27 = vadd.f32 %v12663_v39, %v9724_v43  ;;  %10659 = vrot.lane.b32.xlu0 %v10658_v4, %s12193_s14 }
 0x284   : > { %v1201_v42 = vrot.slane %v1128_v59, 2  ;;  %v1066_v20 = vadd.f32 %v12693_v44, %v1051_v8  ;;  %v1200_v17 = vrot.slane %v12823_v5, 2  ;;  %10649 = vrot.lane.b32.xlu1 %v10648_v14, %s12193_s14  ;;  %v10663_v38 = vpack.i.bf16 %v12739_v60, %v12823_v5 }
 0x285   : > { %v1052_v55 = vmul.f32 %v12688_v1, %v1035_v27  ;;  %v12835_v62 = vsel %vm437_vm3, 0.0, %v1105_v25  ;;  %v1158_v26 = vrot.slane %v12823_v5, 1  ;;  %v1159_v39 = vrot.slane %v1128_v59, 1 }
 0x286   : > { %vm1074_vm14 = vcmp.gt.f32.partialorder %v1066_v20, 0.0  ;;  %v1082_v33 = vmul.f32 0.2, %v1066_v20  ;;  %v1202_v45 = vsel %vm339_vm1, %v1200_v17, %v1201_v42  ;;  %v10668_v41 = vpack.i.bf16 %v12835_v62, %v12779_v35 }
 0x287   : > { %v1067_v40 = vadd.f32 %v12693_v44, %v1052_v55  ;;  %v1394_v48 = vpack.c.bf16 %v1202_v45, %v12808_v53  ;;  %10664 = vrot.lane.b32.xlu0 %v10663_v38, %s12194_s15  ;;  %v12845_v1 = vsel %vm472_vm4, %v1155_v16, %v1156_v22  ;;  %v12848_v60 = vsel %vm472_vm4, %v1158_v26, %v1159_v39 }
 0x288   : > { %v1090_v54 = vsel %vm1074_vm14, %v1066_v20, %v1082_v33  ;;  %10669 = vrot.lane.b32.xlu1 %v10668_v41, %s12194_s15  ;;  %v10678_v56 = vpack.i.bf16 %v12848_v60, %v12845_v1  ;;  %v1129_v35 = vsel %vm437_vm3, %v1105_v25, 0.0  ;;  %v1203_v44 = vrot.slane %v12835_v62, 2 }
 0x289   : > { %v1106_v7 = vrot.slane %v1090_v54, 7  ;;  %vm1075_vm15 = vcmp.gt.f32.partialorder %v1067_v40, 0.0  ;;  %v1083_v61 = vmul.f32 0.2, %v1067_v40  ;;  %10318 = vmatmul.mubr.msk.bf16.vlgmr.msra.gmra.mrb[16].mxu0 %vm689_vm5, %v1394_v48  ;;  %v1204_v21 = vrot.slane %v1129_v35, 2 }
 0x28a   : > { %v10673_v63 = vpack.i.bf16 %v1202_v45, %v12782_v37  ;;  %v1161_v59 = vrot.slane %v12835_v62, 1  ;;  %v1162_v25 = vrot.slane %v1129_v35, 1  ;;  %v10703_v39 = vpack.i.bf16 %v12835_v62, %v12823_v5 }
 0x28b   : > { %v12858_v49 = vsel %vm437_vm3, 0.0, %v1106_v7  ;;  %v1130_v23 = vsel %vm437_vm3, %v1106_v7, 0.0  ;;  %10679 = vrot.lane.b32.xlu0 %v10678_v56, %s12192_s9  ;;  %v1205_v24 = vsel %vm339_vm1, %v1203_v44, %v1204_v21  ;;  %v1091_v52 = vsel %vm1075_vm15, %v1067_v40, %v1083_v61 }
 0x28c   : > { %10674 = vrot.lane.b32.xlu1 %v10673_v63, %s12193_s14  ;;  %v1107_v3 = vrot.slane %v1091_v52, 7  ;;  %v1206_v6 = vrot.slane %v12858_v49, 2  ;;  %v1207_v10 = vrot.slane %v1130_v23, 2  ;;  %v10683_v11 = vpack.i.bf16 %v12845_v1, %v1205_v24 }
 0x28d   : > { %v1164_v50 = vrot.slane %v12858_v49, 1  ;;  %v1165_v14 = vrot.slane %v1130_v23, 1  ;;  %v10688_v42 = vpack.i.bf16 %v12808_v53, %v12858_v49  ;;  %v12885_v26 = vsel %vm472_vm4, %v1161_v59, %v1162_v25 }
 0x28e   : > { %v1123_v0 = vsel %vm437_vm3, 0.0, %v1107_v3  ;;  %v1131_v43 = vsel %vm437_vm3, %v1107_v3, 0.0  ;;  %v1208_v4 = vsel %vm339_vm1, %v1206_v6, %v1207_v10 }
 0x28f   : > { %10684 = vrot.lane.b32.xlu0 %v10683_v11, %s12193_s14  ;;  %v1267_v18 = vrot.slane %v1123_v0, 2  ;;  %v10693_v8 = vpack.i.bf16 %v1123_v0, %v1202_v45  ;;  %v1397_v16 = vpack.c.bf16 %v1208_v4, %v1205_v24  ;;  %v1268_v22 = vrot.slane %v1131_v43, 2 }
 0x290   : > { %v10713_v27 = vpack.i.bf16 %v1208_v4, %v1205_v24  ;;  %v12879_v38 = vsel %vm472_vm4, %v1164_v50, %v1165_v14  ;;  %v10698_v55 = vpack.i.bf16 %v1208_v4, %v12848_v60  ;;  %v1256_v33 = vrot.slane %v1123_v0, 1 }
 0x291   : > { %10694 = vrot.lane.b32.xlu1 %v10693_v8, %s12194_s15  ;;  %10321 = vmatprep.mubr.msk.bf16.mxu0 %vm689_vm5, %v1397_v16  ;;  %v1269_v20 = vsel %vm339_vm1, %v1267_v18, %v1268_v22  ;;  %v10708_v53 = vpack.i.bf16 %v12879_v38, %v12885_v26  ;;  %v1257_v45 = vrot.slane %v1131_v43, 1 }
 0x292   : > { %v1400_v17 = vpack.c.bf16 %v12381_v51, %v1269_v20  ;;  %v10718_v40 = vpack.i.bf16 %v12885_v26, %v1269_v20 }
 0x293   : > { %10689 = vrot.lane.b32.xlu0 %v10688_v42, %s12194_s15  ;;  %v12896_v41 = vsel %vm472_vm4, %v1256_v33, %v1257_v45 }
 0x294   : > { %10322 = vmatmul.mubr.msk.bf16.gmra.mrb[20].mxu0 %vm689_vm5, %v1400_v17  ;;  %v10723_v48 = vpack.i.bf16 %v12858_v49, %v12896_v41 }
 0x295   : > { %10699 = vrot.lane.b32.xlu1 %v10698_v55, %s12193_s14 }
 0x297   : > { %10709 = vrot.lane.b32.xlu0 %v10708_v53, %s12192_s9 }
 0x299   : > { %10704 = vrot.lane.b32.xlu1 %v10703_v39, %s12192_s9 }
 0x29b   : > { %10714 = vrot.lane.b32.xlu0 %v10713_v27, %s12194_s15 }
 0x29d   : > { %1179 = vrot.lane.b32.xlu1 %v12879_v38, %s12193_s14 }
 0x29f   : > { %10719 = vrot.lane.b32.xlu0 %v10718_v40, %s12193_s14 }
 0x2a1   : > { %10724 = vrot.lane.b32.xlu1 %v10723_v48, %s12192_s9 }
 0x2a3   : > { %1245 = vrot.lane.b32.xlu0 %v1123_v0, %s12192_s9 }
 0x2e2   : > { %v10625_v56 = vpop.permute.xlu1 %10624 }
 0x2e3   : > { %v10626_v8 = vunpack.i.l.bf16 %v10625_v56 }
 0x2e5   : > { %v1357_v17 = vsel %vm707_vm7, %v12587_v13, %v10626_v8 }
 0x2e6   : > { %v10630_v54 = vpop.permute.xlu0 %10629 }
 0x2e7   : > { %v10632_v44 = vunpack.i.h.bf16 %v10630_v54  ;;  %v10631_v7 = vunpack.i.l.bf16 %v10630_v54 }
 0x2e9   : > { %v1366_v24 = vsel %vm689_vm5, %v12776_v32, %v10632_v44  ;;  %v1365_v52 = vsel %vm689_vm5, %v12811_v57, %v10631_v7  ;;  %v10627_v57 = vunpack.i.h.bf16 %v10625_v56 }
 0x2ec   : > { %v10635_v35 = vpop.permute.xlu0 %10634 }
 0x2ed   : > { %v10637_v61 = vunpack.i.h.bf16 %v10635_v35  ;;  %v10636_v21 = vunpack.i.l.bf16 %v10635_v35 }
 0x2ee   : > { %v10640_v63 = vpop.permute.xlu1 %10639 }
 0x2ef   : > { %v1373_v11 = vsel %vm698_vm6, %v1365_v52, %v10636_v21  ;;  %v1374_v50 = vsel %vm698_vm6, %v1366_v24, %v10637_v61  ;;  %v10641_v16 = vunpack.i.l.bf16 %v10640_v63  ;;  %v10642_v40 = vunpack.i.h.bf16 %v10640_v63 }
 0x2f0   : > { %v10655_v23 = vpop.permute.xlu0 %10654 }
 0x2f1   : > { %v10657_v3 = vunpack.i.h.bf16 %v10655_v23  ;;  %v10656_v6 = vunpack.i.l.bf16 %v10655_v23 }
 0x2f2   : > { %v10645_v10 = vpop.permute.xlu1 %10644 }
 0x2f3   : > { %v1381_v0 = vsel %vm707_vm7, %v1373_v11, %v10656_v6  ;;  %v1382_v43 = vsel %vm707_vm7, %v1374_v50, %v10657_v3  ;;  %v10647_v52 = vunpack.i.h.bf16 %v10645_v10  ;;  %v10646_v50 = vunpack.i.l.bf16 %v10645_v10 }
 0x2f4   : > { %v1390_v4 = vpack.c.bf16 %v1382_v43, %v1381_v0 }
 0x2f5   : > { %v10660_v14 = vpop.permute.xlu0 %10659 }
 0x2f6   : > { %v10650_v18 = vpop.permute.xlu1 %10649  ;;  %1590 = vmatprep.mubr.bf16.mxu1 %v1390_v4  ;;  %v10661_v27 = vunpack.i.l.bf16 %v10660_v14  ;;  %v10662_v39 = vunpack.i.h.bf16 %v10660_v14 }
 0x2f7   : > { %v10651_v32 = vunpack.i.l.bf16 %v10650_v18  ;;  %v10652_v22 = vunpack.i.h.bf16 %v10650_v18 }
 0x2f8   : > { %v1344_v23 = vsel %vm689_vm5, %v12718_v19, %v10662_v39 }
 0x2f9   : > { %v1343_v59 = vsel %vm689_vm5, %v12709_v47, %v10651_v32  ;;  %v10665_v25 = vpop.permute.xlu0 %10664  ;;  %v1367_v33 = vsel %vm689_vm5, %v12782_v37, %v10652_v22  ;;  %v1368_v47 = vsel %vm689_vm5, %v12845_v1, %v10661_v27 }
 0x2fa   : > { %v1350_v42 = vsel %vm698_vm6, %v1343_v59, %v10641_v16  ;;  %v10670_v20 = vpop.permute.xlu1 %10669  ;;  %v10666_v53 = vunpack.i.l.bf16 %v10665_v25  ;;  %v10667_v48 = vunpack.i.h.bf16 %v10665_v25  ;;  %v1375_v61 = vsel %vm698_vm6, %v1367_v33, %v10642_v40 }
 0x2fb   : > { %v1358_v55 = vsel %vm707_vm7, %v1350_v42, %v10627_v57  ;;  %v10671_v37 = vunpack.i.l.bf16 %v10670_v20  ;;  %v10672_v59 = vunpack.i.h.bf16 %v10670_v20 }
 0x2fc   : > { %v1389_v45 = vpack.c.bf16 %v1358_v55, %v1357_v17  ;;  %v1376_v21 = vsel %vm698_vm6, %v1368_v47, %v10666_v53  ;;  %v1351_v11 = vsel %vm698_vm6, %v1344_v23, %v10667_v48 }
 0x2fd   : > { %v10680_v54 = vpop.permute.xlu0 %10679  ;;  %v1359_v14 = vsel %vm707_vm7, %v1351_v11, %v10646_v50 }
 0x2fe   : > { %v10682_v56 = vunpack.i.h.bf16 %v10680_v54  ;;  %v10681_v35 = vunpack.i.l.bf16 %v10680_v54  ;;  %v10675_v44 = vpop.permute.xlu1 %10674  ;;  %1591 = vmatmul.mubr.bf16.vlgmr.msra.gmra.mrb[16].mxu1 %v1389_v45 }
 0x2ff   : > { %v10676_v7 = vunpack.i.l.bf16 %v10675_v44  ;;  %v10677_v4 = vunpack.i.h.bf16 %v10675_v44 }
 0x300   : > { %v1383_v63 = vsel %vm707_vm7, %v1375_v61, %v10681_v35  ;;  %v1384_v24 = vsel %vm707_vm7, %v1376_v21, %v10682_v56 }
 0x301   : > { %v1345_v1 = vsel %vm689_vm5, %v12754_v15, %v10676_v7  ;;  %v10685_v3 = vpop.permute.xlu0 %10684  ;;  %v1393_v6 = vpack.c.bf16 %v1384_v24, %v1383_v63  ;;  %v1369_v57 = vsel %vm689_vm5, %v12848_v60, %v10677_v4 }
 0x302   : > { %v1352_v0 = vsel %vm698_vm6, %v1345_v1, %v10671_v37  ;;  %v10686_v32 = vunpack.i.l.bf16 %v10685_v3  ;;  %v10687_v16 = vunpack.i.h.bf16 %v10685_v3  ;;  %v1377_v40 = vsel %vm698_vm6, %v1369_v57, %v10672_v59 }
 0x303   : > { %v10695_v43 = vpop.permute.xlu1 %10694  ;;  %1598 = vmatprep.mubr.bf16.mxu1 %v1393_v6  ;;  %v1360_v19 = vsel %vm707_vm7, %v1352_v0, %v10647_v52 }
 0x304   : > { %v1392_v8 = vpack.c.bf16 %v1360_v19, %v1359_v14  ;;  %v1370_v42 = vsel %vm689_vm5, %v12885_v26, %v10686_v32  ;;  %v1346_v39 = vsel %vm689_vm5, %v12765_v9, %v10687_v16  ;;  %v10696_v33 = vunpack.i.l.bf16 %v10695_v43 }
 0x305   : > { %v10690_v18 = vpop.permute.xlu0 %10689  ;;  %v10697_v3 = vunpack.i.h.bf16 %v10695_v43 }
 0x306   : > { %v10691_v22 = vunpack.i.l.bf16 %v10690_v18  ;;  %1599 = vmatmul.mubr.bf16.gmra.mrb[20].mxu1 %v1392_v8  ;;  %v10692_v25 = vunpack.i.h.bf16 %v10690_v18 }
 0x307   : > { %v10700_v15 = vpop.permute.xlu1 %10699 }
 0x308   : > { %v10701_v10 = vunpack.i.l.bf16 %v10700_v15  ;;  %v1378_v60 = vsel %vm698_vm6, %v1370_v42, %v10691_v22  ;;  %v10702_v44 = vunpack.i.h.bf16 %v10700_v15 }
 0x309   : > { %v10710_v27 = vpop.permute.xlu0 %10709 }
 0x30a   : > { %v1347_v17 = vsel %vm689_vm5, %v12823_v5, %v10701_v10  ;;  %v10712_v55 = vunpack.i.h.bf16 %v10710_v27  ;;  %v10711_v53 = vunpack.i.l.bf16 %v10710_v27  ;;  %v1353_v5 = vsel %vm698_vm6, %v1346_v39, %v10692_v25  ;;  %v11930_v39 = vld [vmem:[%s16642_s3 + $0x160] sm:$0xff]  }
 0x30b   : > { %v10705_v45 = vpop.permute.xlu1 %10704  ;;  %v1354_v35 = vsel %vm698_vm6, %v1347_v17, %v10696_v33  ;;  %v1371_v63 = vsel %vm689_vm5, %v12879_v38, %v10702_v44  ;;  %v11931_v33 = vld [vmem:[%s16642_s3 + $0x120] sm:$0xff]   ;;  %9777 = vmatprep.subr.bf16.mxu0 %v11930_v39 }
 0x30c   : > { %v10707_v20 = vunpack.i.h.bf16 %v10705_v45  ;;  %v10706_v48 = vunpack.i.l.bf16 %v10705_v45  ;;  %v1385_v54 = vsel %vm707_vm7, %v1377_v40, %v10711_v53  ;;  %v1386_v26 = vsel %vm707_vm7, %v1378_v60, %v10712_v55  ;;  %v11928_v55 = vld [vmem:[%s16642_s3 + $0x1a0] sm:$0xff]   ;;  %v11929_v53 = vld [vmem:[%s16642_s3 + $0x1a8] sm:$0xff]   ;;  %9778 = vmatpush3.bf16.msra.mxu0 %v11931_v33  ;;  %v11934_v60 = vld [vmem:[%s16642_s3 + $0x170] sm:$0xff]  }
 0x30d   : > { %v10715_v47 = vpop.permute.xlu0 %10714  ;;  %v1396_v56 = vpack.c.bf16 %v1386_v26, %v1385_v54  ;;  %10325 = vmatprep.subr.bf16.mxu1 %v11928_v55  ;;  %v11932_v45 = vld [vmem:[%s16642_s3 + $0x168] sm:$0xff]   ;;  %v13007_v44 = vld [vmem:[%s16644_s5 + $0x1] ss:$0 sm:$0xff] }
 0x30e   : > { %v1361_v9 = vsel %vm707_vm7, %v1353_v5, %v10706_v48  ;;  %v1362_v7 = vsel %vm707_vm7, %v1354_v35, %v10707_v20  ;;  %v10717_v23 = vunpack.i.h.bf16 %v10715_v47  ;;  %v10716_v6 = vunpack.i.l.bf16 %v10715_v47  ;;  %10326 = vmatpush3.bf16.msra.mxu1 %v11928_v55  ;;  %v11933_v40 = vld [vmem:[%s16642_s3 + $0x128] sm:$0xff]   ;;  %9779 = vmatprep.subr.bf16.mxu0 %v11932_v45  ;;  %v13002_v47 = vld [vmem:[%s16643_s4 + $0x1] ss:$0 sm:$0xff] }
 0x30f   : > { %v1180_v61 = vpop.permute.xlu1 %1179  ;;  %1606 = vmatprep.mubr.bf16.mxu1 %v1396_v56  ;;  %v1395_v21 = vpack.c.bf16 %v1362_v7, %v1361_v9  ;;  %10327 = vmatprep.subr.bf16.mxu1 %v11929_v53  ;;  %v11940_v55 = vld [vmem:[%s16642_s3 + $0x188] sm:$0xff]  }
 0x310   : > { %v1349_v24 = vsel %vm689_vm5, %v12858_v49, %v1180_v61  ;;  %v1379_v49 = vsel %vm698_vm6, %v1371_v63, %v10697_v3  ;;  %9780 = vmatpush3.bf16.msra.mxu0 %v11933_v40  ;;  %v11941_v45 = vld [vmem:[%s16642_s3 + $0x148] sm:$0xff]  }
 0x311   : > { %v10720_v37 = vpop.permute.xlu0 %10719  ;;  %1607 = vmatmul.mubr.bf16.gmra.mrb[24].mxu1 %v1395_v21  ;;  %v1356_v38 = vsel %vm698_vm6, %v1349_v24, %v10717_v23  ;;  %9781 = vmatprep.subr.bf16.mxu0 %v11934_v60  ;;  %v11935_v23 = vld [vmem:[%s16642_s3 + $0x130] sm:$0xff]  }
 0x312   : > { %v10722_v52 = vunpack.i.h.bf16 %v10720_v37  ;;  %v10721_v1 = vunpack.i.l.bf16 %v10720_v37  ;;  %10328 = vmatpush3.bf16.msra.mxu1 %v11929_v53 }
 0x313   : > { %v10725_v11 = vpop.permute.xlu1 %10724 }
 0x314   : > { %v1348_v50 = vsel %vm689_vm5, %v12835_v62, %v10722_v52  ;;  %v1372_v0 = vsel %vm689_vm5, %v12896_v41, %v10721_v1  ;;  %v10727_v19 = vunpack.i.h.bf16 %v10725_v11  ;;  %v10726_v4 = vunpack.i.l.bf16 %v10725_v11  ;;  %9782 = vmatpush3.bf16.msra.mxu0 %v11935_v23 }
 0x315   : > { %v1246_v14 = vpop.permute.xlu0 %1245  ;;  %v1355_v18 = vsel %vm698_vm6, %v1348_v50, %v10716_v6  ;;  %v1380_v43 = vsel %vm698_vm6, %v1372_v0, %v12635_v12  ;;  %v11936_v0 = vld [vmem:[%s16642_s3 + $0x178] sm:$0xff]  }
 0x316   : > { %v1363_v8 = vsel %vm707_vm7, %v1355_v18, %v10727_v19  ;;  %v1364_v32 = vsel %vm707_vm7, %v1356_v38, %v1246_v14  ;;  %v1387_v62 = vsel %vm707_vm7, %v1379_v49, %v10726_v4  ;;  %v1388_v41 = vsel %vm707_vm7, %v1380_v43, %v12645_v30  ;;  %9783 = vmatprep.subr.bf16.mxu0 %v11936_v0  ;;  %v11938_v38 = vld [vmem:[%s16642_s3 + $0x180] sm:$0xff]  }
 0x317   : > { %v1398_v16 = vpack.c.bf16 %v1364_v32, %v1363_v8  ;;  %v1399_v22 = vpack.c.bf16 %v1388_v41, %v1387_v62  ;;  %v11939_v8 = vld [vmem:[%s16642_s3 + $0x140] sm:$0xff]  }
 0x319   : > { %1614 = vmatprep.mubr.bf16.mxu1 %v1399_v22 }
 0x31a   : > { %1615 = vmatmul.mubr.bf16.gmra.mrb[28].mxu1 %v1398_v16 }
 0x35c   : > { %v10319_v15 = vpop.f32.mrb[16].mxu0 }
 0x35d   : > { %v1657_v57 = vpop.f32.mrb[17].mxu0 }
 0x35e   : > { %v10320_v10 = vpop.f32.mrb[18].mxu0 }
 0x35f   : > { %v1660_v59 = vpop.f32.mrb[19].mxu0 }
 0x367   : > { %v12970_v25 = vpop.f32.mrb[20].mxu0 }
 0x368   : > { %v12972_v27 = vpop.f32.mrb[21].mxu0 }
 0x369   : > { %v12974_v42 = vpop.f32.mrb[22].mxu0 }
 0x36a   : > { %v12976_v17 = vpop.f32.mrb[23].mxu0 }
 0x3d1   : > { %v9747_v20 = vpop.f32.mrb[16].mxu1 }
 0x3d2   : > { %v9748_v48 = vpop.f32.mrb[17].mxu1 }
 0x3d3   : > { %v9749_v54 = vadd.f32 %v9748_v48, %v9747_v20  ;;  %v9750_v26 = vpop.f32.mrb[18].mxu1 }
 0x3d4   : > { %v9751_v56 = vpop.f32.mrb[19].mxu1 }
 0x3d5   : > { %v1658_v5 = vadd.f32 %v9749_v54, %v1657_v57  ;;  %v9752_v35 = vadd.f32 %v9751_v56, %v9750_v26 }
 0x3d7   : > { %v1696_v9 = vmul.f32 %v13002_v47, %v1658_v5  ;;  %v1661_v7 = vadd.f32 %v9752_v35, %v1660_v59 }
 0x3d9   : > { %v1712_v61 = vadd.f32 %v13007_v44, %v1696_v9  ;;  %v1697_v21 = vmul.f32 %v13002_v47, %v1661_v7  ;;  %v9753_v37 = vpop.f32.mrb[20].mxu1 }
 0x3da   : > { %v9754_v52 = vpop.f32.mrb[21].mxu1 }
 0x3db   : > { %v13016_v63 = vadd.f32 %v1712_v61, %v12345_v31  ;;  %v1713_v24 = vadd.f32 %v13007_v44, %v1697_v21  ;;  %v9755_v1 = vadd.f32 %v9754_v52, %v9753_v37  ;;  %v9756_v3 = vpop.f32.mrb[22].mxu1  ;;  %v11937_v31 = vld [vmem:[%s16642_s3 + $0x138] sm:$0xff]  }
 0x3dc   : > { %v9757_v11 = vpop.f32.mrb[23].mxu1  ;;  %9784 = vmatpush3.bf16.msra.mxu0 %v11937_v31 }
 0x3dd   : > { %v13020_v6 = vadd.f32 %v1713_v24, %v12368_v46  ;;  %v1736_v50 = vrot.slane %v13016_v63, 7  ;;  %v1666_v19 = vadd.f32 %v10319_v15, %v9755_v1  ;;  %v9758_v4 = vadd.f32 %v9757_v11, %v9756_v3  ;;  %9785 = vmatprep.subr.bf16.mxu0 %v11938_v38  ;;  %v11942_v1 = vld [vmem:[%s16642_s3 + $0x190] sm:$0xff]  }
 0x3df   : > { %v1737_v14 = vrot.slane %v13020_v6, 7  ;;  %v13031_v18 = vsel %vm437_vm3, 0.0, %v1736_v50  ;;  %v13034_v46 = vsel %vm437_vm3, %v1736_v50, 0.0  ;;  %v1698_v49 = vmul.f32 %v13002_v47, %v1666_v19 }
 0x3e0   : > { %v1669_v43 = vadd.f32 %v10320_v10, %v9758_v4  ;;  %v1824_v41 = vrot.slane %v13031_v18, 2  ;;  %v1825_v16 = vrot.slane %v13034_v46, 2  ;;  %9786 = vmatpush3.bf16.msra.mxu0 %v11939_v8  ;;  %v1782_v9 = vrot.slane %v13031_v18, 1 }
 0x3e1   : > { %v13044_v32 = vsel %vm437_vm3, 0.0, %v1737_v14  ;;  %v1761_v62 = vsel %vm437_vm3, %v1737_v14, 0.0  ;;  %v1714_v22 = vadd.f32 %v13007_v44, %v1698_v49  ;;  %9787 = vmatprep.subr.bf16.mxu0 %v11940_v55  ;;  %v1783_v4 = vrot.slane %v13034_v46, 1  ;;  %v11944_v46 = vld [vmem:[%s16642_s3 + $0x198] sm:$0xff]  }
 0x3e2   : > { %v1699_v15 = vmul.f32 %v13002_v47, %v1669_v43  ;;  %v10728_v57 = vpack.i.bf16 %v13044_v32, %v13031_v18  ;;  %v1827_v10 = vrot.slane %v13044_v32, 2  ;;  %v1828_v59 = vrot.slane %v1761_v62, 2  ;;  %v11943_v43 = vld [vmem:[%s16642_s3 + $0x150] sm:$0xff]  }
 0x3e3   : > { %v13058_v53 = vadd.f32 %v1714_v22, %v12342_v29  ;;  %v1826_v60 = vsel %vm339_vm1, %v1824_v41, %v1825_v16  ;;  %v1785_v35 = vrot.slane %v13044_v32, 1  ;;  %v1786_v24 = vrot.slane %v1761_v62, 1 }
 0x3e4   : > { %v1715_v39 = vadd.f32 %v13007_v44, %v1699_v15  ;;  %v9759_v33 = vpop.f32.mrb[24].mxu1  ;;  %10729 = vrot.lane.b32.xlu0 %v10728_v57, %s12192_s9  ;;  %v13067_v20 = vsel %vm339_vm1, %v1827_v10, %v1828_v59  ;;  %9788 = vmatpush3.bf16.msra.mxu0 %v11941_v45 }
 0x3e5   : > { %v9760_v40 = vpop.f32.mrb[25].mxu1  ;;  %v1738_v29 = vrot.slane %v13058_v53, 7  ;;  %v10733_v56 = vpack.i.bf16 %v13067_v20, %v1826_v60  ;;  %9789 = vmatprep.subr.bf16.mxu0 %v11942_v1  ;;  %v13113_v41 = vsel %vm472_vm4, %v1785_v35, %v1786_v24 }
 0x3e6   : > { %v13071_v48 = vadd.f32 %v1715_v39, %v12350_v36  ;;  %v9761_v54 = vadd.f32 %v9760_v40, %v9759_v33  ;;  %v9762_v26 = vpop.f32.mrb[26].mxu1  ;;  %v11945_v39 = vld [vmem:[%s16642_s3 + $0x158] sm:$0xff]  }
 0x3e7   : > { %v9763_v5 = vpop.f32.mrb[27].mxu1  ;;  %v1762_v7 = vsel %vm437_vm3, %v1738_v29, 0.0  ;;  %10734 = vrot.lane.b32.xlu1 %v10733_v56, %s12193_s14  ;;  %v13081_v37 = vsel %vm437_vm3, 0.0, %v1738_v29 }
 0x3e8   : > { %v1739_v61 = vrot.slane %v13071_v48, 7  ;;  %v1674_v21 = vadd.f32 %v9761_v54, %v12972_v27  ;;  %v9764_v23 = vadd.f32 %v9763_v5, %v9762_v26  ;;  %v1831_v36 = vrot.slane %v1762_v7, 2  ;;  %9790 = vmatpush3.bf16.msra.mxu0 %v11943_v43 }
 0x3e9   : > { %v1789_v52 = vrot.slane %v1762_v7, 1  ;;  %v10738_v27 = vpack.i.bf16 %v13081_v37, %v13044_v32  ;;  %v1830_v31 = vrot.slane %v13081_v37, 2  ;;  %v1788_v19 = vrot.slane %v13081_v37, 1  ;;  %9791 = vmatprep.subr.bf16.mxu0 %v11944_v46 }
 0x3ea   : > { %v1700_v3 = vmul.f32 %v13002_v47, %v1674_v21  ;;  %v1677_v11 = vadd.f32 %v9764_v23, %v12976_v17  ;;  %v13091_v50 = vsel %vm437_vm3, 0.0, %v1739_v61  ;;  %v13101_v17 = vsel %vm437_vm3, %v1739_v61, 0.0 }
 0x3eb   : > { %v10743_v0 = vpack.i.bf16 %v13091_v50, %v1826_v60  ;;  %10739 = vrot.lane.b32.xlu1 %v10738_v27, %s12194_s15  ;;  %v1833_v49 = vrot.slane %v13091_v50, 2  ;;  %v1832_v62 = vsel %vm339_vm1, %v1830_v31, %v1831_v36  ;;  %v13116_v16 = vsel %vm472_vm4, %v1788_v19, %v1789_v52 }
 0x3ec   : > { %v1716_v14 = vadd.f32 %v13007_v44, %v1700_v3  ;;  %v1701_v38 = vmul.f32 %v13002_v47, %v1677_v11  ;;  %v1834_v22 = vrot.slane %v13101_v17, 2  ;;  %v2027_v59 = vpack.c.bf16 %v1832_v62, %v13067_v20  ;;  %9792 = vmatpush3.bf16.msra.mxu0 %v11945_v39 }
 0x3ed   : > { %v9765_v8 = vpop.f32.mrb[28].mxu1  ;;  %10744 = vrot.lane.b32.xlu0 %v10743_v0, %s12194_s15  ;;  %v10758_v55 = vpack.i.bf16 %v13116_v16, %v13113_v41  ;;  %v10748_v40 = vpack.i.bf16 %v13091_v50, %v13081_v37  ;;  %v13141_v26 = vsel %vm472_vm4, %v1782_v9, %v1783_v4  ;;  %v1791_v52 = vrot.slane %v13091_v50, 1 }
 0x3ee   : > { %v13120_v15 = vadd.f32 %v1716_v14, %v12403_v2  ;;  %v1717_v57 = vadd.f32 %v13007_v44, %v1701_v38  ;;  %v9766_v10 = vpop.f32.mrb[29].mxu1  ;;  %v13132_v2 = vsel %vm339_vm1, %v1833_v49, %v1834_v22  ;;  %10329 = vmatprep.mubr.msk.bf16.mxu1 %vm689_vm5, %v2027_v59  ;;  %v10753_v35 = vpack.i.bf16 %v1832_v62, %v13141_v26 }
 0x3ef   : > { %v9767_v33 = vadd.f32 %v9766_v10, %v9765_v8  ;;  %v9768_v45 = vpop.f32.mrb[30].mxu1  ;;  %10759 = vrot.lane.b32.xlu1 %v10758_v55, %s12192_s9  ;;  %v10763_v21 = vpack.i.bf16 %v13113_v41, %v13132_v2 }
 0x3f0   : > { %v1740_v60 = vrot.slane %v13120_v15, 7  ;;  %v13136_v29 = vadd.f32 %v1717_v57, %v12458_v34  ;;  %v9769_v54 = vpop.f32.mrb[31].mxu1 }
 0x3f1   : > { %v1682_v56 = vadd.f32 %v12970_v25, %v9767_v33  ;;  %v9770_v5 = vadd.f32 %v9769_v54, %v9768_v45  ;;  %10749 = vrot.lane.b32.xlu0 %v10748_v40, %s12192_s9 }
 0x3f2   : > { %v13147_v7 = vsel %vm437_vm3, 0.0, %v1740_v60  ;;  %v1764_v34 = vsel %vm437_vm3, %v1740_v60, 0.0  ;;  %v1741_v61 = vrot.slane %v13136_v29, 7 }
 0x3f3   : > { %v1837_v9 = vrot.slane %v1764_v34, 2  ;;  %v1702_v23 = vmul.f32 %v13002_v47, %v1682_v56  ;;  %v1685_v25 = vadd.f32 %v12974_v42, %v9770_v5  ;;  %v1836_v36 = vrot.slane %v13147_v7, 2  ;;  %10764 = vrot.lane.b32.xlu1 %v10763_v21, %s12193_s14 }
 0x3f4   : > { %v13158_v24 = vsel %vm437_vm3, 0.0, %v1741_v61  ;;  %v1794_v1 = vrot.slane %v13147_v7, 1  ;;  %v1795_v3 = vrot.slane %v1764_v34, 1  ;;  %v1792_v42 = vrot.slane %v13101_v17, 1 }
 0x3f5   : > { %v1718_v11 = vadd.f32 %v13007_v44, %v1702_v23  ;;  %v1703_v27 = vmul.f32 %v13002_v47, %v1685_v25  ;;  %v1838_v0 = vsel %vm339_vm1, %v1836_v36, %v1837_v9  ;;  %10754 = vrot.lane.b32.xlu0 %v10753_v35, %s12193_s14  ;;  %v10768_v19 = vpack.i.bf16 %v13067_v20, %v13147_v7 }
 0x3f6   : > { %v2030_v31 = vpack.c.bf16 %v1838_v0, %v13132_v2  ;;  %v10773_v4 = vpack.i.bf16 %v13158_v24, %v1832_v62  ;;  %v1765_v14 = vsel %vm437_vm3, %v1741_v61, 0.0  ;;  %v13177_v49 = vsel %vm472_vm4, %v1794_v1, %v1795_v3 }
 0x3f7   : > { %v13173_v38 = vadd.f32 %v1718_v11, %v12390_v58  ;;  %v1719_v47 = vadd.f32 %v13007_v44, %v1703_v27  ;;  %v1839_v43 = vrot.slane %v13158_v24, 2  ;;  %10769 = vrot.lane.b32.xlu1 %v10768_v19, %s12194_s15  ;;  %v1840_v17 = vrot.slane %v1765_v14, 2 }
 0x3f8   : > { %10330 = vmatmul.mubr.msk.bf16.vlgmr.msra.gmra.mrb[32].mxu1 %vm689_vm5, %v2030_v31  ;;  %v13188_v58 = vsel %vm472_vm4, %v1791_v52, %v1792_v42  ;;  %v10778_v57 = vpack.i.bf16 %v1838_v0, %v13116_v16  ;;  %v1797_v21 = vrot.slane %v13158_v24, 1  ;;  %v1798_v9 = vrot.slane %v1765_v14, 1 }
 0x3f9   : > { %v1742_v20 = vrot.slane %v13173_v38, 7  ;;  %v13184_v46 = vadd.f32 %v1719_v47, %v12452_v28  ;;  %10774 = vrot.lane.b32.xlu0 %v10773_v4, %s12194_s15  ;;  %v10783_v44 = vpack.i.bf16 %v13177_v49, %v13188_v58  ;;  %v1841_v8 = vsel %vm339_vm1, %v1839_v43, %v1840_v17 }
 0x3fa   : > { %v10788_v55 = vpack.i.bf16 %v13188_v58, %v1841_v8  ;;  %v13223_v52 = vsel %vm472_vm4, %v1797_v21, %v1798_v9 }
 0x3fb   : > { %v13194_v62 = vsel %vm437_vm3, 0.0, %v1742_v20  ;;  %v1766_v22 = vsel %vm437_vm3, %v1742_v20, 0.0  ;;  %v1743_v28 = vrot.slane %v13184_v46, 7  ;;  %10784 = vrot.lane.b32.xlu1 %v10783_v44, %s12192_s9 }
 0x3fc   : > { %v1843_v10 = vrot.slane %v1766_v22, 2  ;;  %v1842_v59 = vrot.slane %v13194_v62, 2  ;;  %v1800_v5 = vrot.slane %v13194_v62, 1  ;;  %v1801_v35 = vrot.slane %v1766_v22, 1 }
 0x3fd   : > { %10779 = vrot.lane.b32.xlu0 %v10778_v57, %s12193_s14  ;;  %v1759_v39 = vsel %vm437_vm3, 0.0, %v1743_v28  ;;  %v1767_v33 = vsel %vm437_vm3, %v1743_v28, 0.0  ;;  %v10793_v23 = vpack.i.bf16 %v13132_v2, %v13194_v62  ;;  %v10808_v2 = vpack.i.bf16 %v13158_v24, %v13147_v7 }
 0x3fe   : > { %v1844_v45 = vsel %vm339_vm1, %v1842_v59, %v1843_v10  ;;  %v1903_v40 = vrot.slane %v1759_v39, 2  ;;  %v10798_v60 = vpack.i.bf16 %v1759_v39, %v1838_v0  ;;  %v1904_v54 = vrot.slane %v1767_v33, 2 }
 0x3ff   : > { %v2033_v56 = vpack.c.bf16 %v1844_v45, %v1841_v8  ;;  %10789 = vrot.lane.b32.xlu1 %v10788_v55, %s12193_s14  ;;  %v10803_v25 = vpack.i.bf16 %v1844_v45, %v13177_v49  ;;  %v13218_v36 = vsel %vm472_vm4, %v1800_v5, %v1801_v35  ;;  %v1892_v3 = vrot.slane %v1759_v39, 1 }
 0x400   : > { %v1905_v34 = vsel %vm339_vm1, %v1903_v40, %v1904_v54  ;;  %v10813_v1 = vpack.i.bf16 %v13218_v36, %v13223_v52  ;;  %v1893_v11 = vrot.slane %v1767_v33, 1  ;;  %v10818_v27 = vpack.i.bf16 %v1844_v45, %v1841_v8 }
 0x401   : > { %10333 = vmatprep.mubr.msk.bf16.mxu1 %vm689_vm5, %v2033_v56  ;;  %10799 = vrot.lane.b32.xlu0 %v10798_v60, %s12194_s15  ;;  %v2036_v61 = vpack.c.bf16 %v12381_v51, %v1905_v34  ;;  %v10823_v42 = vpack.i.bf16 %v13223_v52, %v1905_v34 }
 0x402   : > { %v13233_v0 = vsel %vm472_vm4, %v1892_v3, %v1893_v11 }
 0x403   : > { %10334 = vmatmul.mubr.msk.bf16.gmra.mrb[36].mxu1 %vm689_vm5, %v2036_v61  ;;  %10794 = vrot.lane.b32.xlu1 %v10793_v23, %s12194_s15  ;;  %v10828_v31 = vpack.i.bf16 %v13194_v62, %v13233_v0 }
 0x405   : > { %10804 = vrot.lane.b32.xlu0 %v10803_v25, %s12193_s14 }
 0x407   : > { %10814 = vrot.lane.b32.xlu1 %v10813_v1, %s12192_s9 }
 0x409   : > { %10809 = vrot.lane.b32.xlu0 %v10808_v2, %s12192_s9 }
 0x40b   : > { %10819 = vrot.lane.b32.xlu1 %v10818_v27, %s12194_s15 }
 0x40d   : > { %1815 = vrot.lane.b32.xlu0 %v13218_v36, %s12193_s14 }
 0x40f   : > { %10824 = vrot.lane.b32.xlu1 %v10823_v42, %s12193_s14 }
 0x411   : > { %10829 = vrot.lane.b32.xlu0 %v10828_v31, %s12192_s9 }
 0x413   : > { %1881 = vrot.lane.b32.xlu1 %v1759_v39, %s12192_s9 }
 0x456   : > { %v10730_v4 = vpop.permute.xlu0 %10729 }
 0x457   : > { %v10731_v56 = vunpack.i.l.bf16 %v10730_v4 }
 0x459   : > { %v10735_v19 = vpop.permute.xlu1 %10734  ;;  %v1993_v25 = vsel %vm707_vm7, %v12587_v13, %v10731_v56 }
 0x45a   : > { %v10737_v47 = vunpack.i.h.bf16 %v10735_v19  ;;  %v10736_v43 = vunpack.i.l.bf16 %v10735_v19 }
 0x45c   : > { %v2002_v22 = vsel %vm689_vm5, %v13113_v41, %v10737_v47  ;;  %v2001_v57 = vsel %vm689_vm5, %v13141_v26, %v10736_v43  ;;  %v10732_v26 = vunpack.i.h.bf16 %v10730_v4 }
 0x45d   : > { %v10740_v14 = vpop.permute.xlu1 %10739 }
 0x45e   : > { %v10742_v20 = vunpack.i.h.bf16 %v10740_v14  ;;  %v10741_v44 = vunpack.i.l.bf16 %v10740_v14 }
 0x45f   : > { %v10745_v17 = vpop.permute.xlu0 %10744 }
 0x460   : > { %v2009_v55 = vsel %vm698_vm6, %v2001_v57, %v10741_v44  ;;  %v2010_v39 = vsel %vm698_vm6, %v2002_v22, %v10742_v20  ;;  %v10746_v41 = vunpack.i.l.bf16 %v10745_v17  ;;  %v10747_v31 = vunpack.i.h.bf16 %v10745_v17 }
 0x461   : > { %v10760_v8 = vpop.permute.xlu1 %10759 }
 0x462   : > { %v10762_v28 = vunpack.i.h.bf16 %v10760_v8  ;;  %v10761_v10 = vunpack.i.l.bf16 %v10760_v8 }
 0x463   : > { %v10750_v59 = vpop.permute.xlu0 %10749 }
 0x464   : > { %v2017_v33 = vsel %vm707_vm7, %v2009_v55, %v10761_v10  ;;  %v2018_v45 = vsel %vm707_vm7, %v2010_v39, %v10762_v28  ;;  %v10751_v28 = vunpack.i.l.bf16 %v10750_v59 }
 0x465   : > { %v10765_v40 = vpop.permute.xlu1 %10764  ;;  %v2026_v60 = vpack.c.bf16 %v2018_v45, %v2017_v33 }
 0x466   : > { %v10766_v21 = vunpack.i.l.bf16 %v10765_v40  ;;  %v10767_v1 = vunpack.i.h.bf16 %v10765_v40 }
 0x467   : > { %v10755_v54 = vpop.permute.xlu0 %10754  ;;  %2226 = vmatprep.mubr.bf16.mxu0 %v2026_v60 }
 0x468   : > { %v10756_v5 = vunpack.i.l.bf16 %v10755_v54  ;;  %v10757_v35 = vunpack.i.h.bf16 %v10755_v54  ;;  %v1980_v43 = vsel %vm689_vm5, %v13044_v32, %v10767_v1 }
 0x469   : > { %v10770_v61 = vpop.permute.xlu1 %10769 }
 0x46a   : > { %v1979_v34 = vsel %vm689_vm5, %v13031_v18, %v10756_v5  ;;  %v10771_v3 = vunpack.i.l.bf16 %v10770_v61  ;;  %v2003_v11 = vsel %vm689_vm5, %v13116_v16, %v10757_v35  ;;  %v10772_v27 = vunpack.i.h.bf16 %v10770_v61 }
 0x46b   : > { %v1986_v9 = vsel %vm698_vm6, %v1979_v34, %v10746_v41  ;;  %v10775_v23 = vpop.permute.xlu0 %10774  ;;  %v2004_v18 = vsel %vm689_vm5, %v13188_v58, %v10766_v21  ;;  %v2011_v44 = vsel %vm698_vm6, %v2003_v11, %v10747_v31  ;;  %v10752_v58 = vunpack.i.h.bf16 %v10750_v59 }
 0x46c   : > { %v1994_v2 = vsel %vm707_vm7, %v1986_v9, %v10732_v26  ;;  %v2012_v8 = vsel %vm698_vm6, %v2004_v18, %v10771_v3  ;;  %v10776_v16 = vunpack.i.l.bf16 %v10775_v23  ;;  %v1987_v57 = vsel %vm698_vm6, %v1980_v43, %v10772_v27 }
 0x46d   : > { %v2025_v42 = vpack.c.bf16 %v1994_v2, %v1993_v25  ;;  %v10785_v19 = vpop.permute.xlu1 %10784  ;;  %v1995_v40 = vsel %vm707_vm7, %v1987_v57, %v10751_v28 }
 0x46e   : > { %v10787_v4 = vunpack.i.h.bf16 %v10785_v19  ;;  %v10786_v14 = vunpack.i.l.bf16 %v10785_v19 }
 0x46f   : > { %v10780_v47 = vpop.permute.xlu0 %10779  ;;  %2227 = vmatmul.mubr.bf16.vlgmr.msra.gmra.mrb[24].mxu0 %v2025_v42 }
 0x470   : > { %v10781_v20 = vunpack.i.l.bf16 %v10780_v47  ;;  %v2019_v22 = vsel %vm707_vm7, %v2011_v44, %v10786_v14  ;;  %v2020_v17 = vsel %vm707_vm7, %v2012_v8, %v10787_v4  ;;  %v10782_v32 = vunpack.i.h.bf16 %v10780_v47 }
 0x471   : > { %v10790_v55 = vpop.permute.xlu1 %10789  ;;  %v2029_v39 = vpack.c.bf16 %v2020_v17, %v2019_v22 }
 0x472   : > { %v1981_v10 = vsel %vm689_vm5, %v13081_v37, %v10781_v20  ;;  %v2005_v5 = vsel %vm689_vm5, %v13177_v49, %v10782_v32  ;;  %v10791_v59 = vunpack.i.l.bf16 %v10790_v55  ;;  %v10777_v37 = vunpack.i.h.bf16 %v10775_v23 }
 0x473   : > { %v10800_v33 = vpop.permute.xlu0 %10799  ;;  %v1988_v45 = vsel %vm698_vm6, %v1981_v10, %v10776_v16  ;;  %2234 = vmatprep.mubr.bf16.mxu0 %v2029_v39  ;;  %v10792_v35 = vunpack.i.h.bf16 %v10790_v55 }
 0x474   : > { %v1996_v60 = vsel %vm707_vm7, %v1988_v45, %v10752_v58  ;;  %v2013_v25 = vsel %vm698_vm6, %v2005_v5, %v10777_v37  ;;  %v2006_v1 = vsel %vm689_vm5, %v13223_v52, %v10791_v59  ;;  %v10801_v2 = vunpack.i.l.bf16 %v10800_v33 }
 0x475   : > { %v2028_v54 = vpack.c.bf16 %v1996_v60, %v1995_v40  ;;  %v10795_v56 = vpop.permute.xlu1 %10794  ;;  %v1982_v23 = vsel %vm689_vm5, %v13091_v50, %v10792_v35  ;;  %v10802_v17 = vunpack.i.h.bf16 %v10800_v33 }
 0x476   : > { %v10796_v26 = vunpack.i.l.bf16 %v10795_v56  ;;  %v10797_v61 = vunpack.i.h.bf16 %v10795_v56 }
 0x477   : > { %v10805_v41 = vpop.permute.xlu0 %10804  ;;  %2235 = vmatmul.mubr.bf16.gmra.mrb[28].mxu0 %v2028_v54 }
 0x478   : > { %v10806_v34 = vunpack.i.l.bf16 %v10805_v41  ;;  %v2014_v31 = vsel %vm698_vm6, %v2006_v1, %v10796_v26  ;;  %v1989_v18 = vsel %vm698_vm6, %v1982_v23, %v10797_v61  ;;  %v10807_v52 = vunpack.i.h.bf16 %v10805_v41  ;;  %v11946_v1 = vld [vmem:[%s16642_s3 + $0x230] sm:$0xff]   ;;  %v11951_v23 = vld [vmem:[%s16642_s3 + $0x1b8] sm:$0xff]  }
 0x479   : > { %v10815_v9 = vpop.permute.xlu1 %10814  ;;  %10337 = vmatprep.subr.bf16.mxu1 %v11946_v1 }
 0x47a   : > { %v1983_v21 = vsel %vm689_vm5, %v13147_v7, %v10806_v34  ;;  %v10817_v3 = vunpack.i.h.bf16 %v10815_v9  ;;  %v10816_v49 = vunpack.i.l.bf16 %v10815_v9  ;;  %v2007_v8 = vsel %vm689_vm5, %v13218_v36, %v10807_v52  ;;  %10338 = vmatpush3.bf16.msra.mxu1 %v11946_v1 }
 0x47b   : > { %v10810_v11 = vpop.permute.xlu0 %10809  ;;  %v1990_v4 = vsel %vm698_vm6, %v1983_v21, %v10801_v2  ;;  %v2015_v36 = vsel %vm698_vm6, %v2007_v8, %v10802_v17  ;;  %v11947_v2 = vld [vmem:[%s16642_s3 + $0x238] sm:$0xff]   ;;  %v11954_v17 = vld [vmem:[%s16642_s3 + $0x208] sm:$0xff]  }
 0x47c   : > { %v10812_v27 = vunpack.i.h.bf16 %v10810_v11  ;;  %v10811_v42 = vunpack.i.l.bf16 %v10810_v11  ;;  %v2021_v19 = vsel %vm707_vm7, %v2013_v25, %v10816_v49  ;;  %v2022_v7 = vsel %vm707_vm7, %v2014_v31, %v10817_v3  ;;  %10339 = vmatprep.subr.bf16.mxu1 %v11947_v2  ;;  %v11948_v3 = vld [vmem:[%s16642_s3 + $0x1f0] sm:$0xff]   ;;  %v11950_v11 = vld [vmem:[%s16642_s3 + $0x1f8] sm:$0xff]  }
 0x47d   : > { %v10820_v14 = vpop.permute.xlu1 %10819  ;;  %v2032_v47 = vpack.c.bf16 %v2022_v7, %v2021_v19  ;;  %v11949_v49 = vld [vmem:[%s16642_s3 + $0x1b0] sm:$0xff]   ;;  %9823 = vmatprep.subr.bf16.mxu0 %v11948_v3 }
 0x47e   : > { %v1997_v43 = vsel %vm707_vm7, %v1989_v18, %v10811_v42  ;;  %v1998_v20 = vsel %vm707_vm7, %v1990_v4, %v10812_v27  ;;  %v10822_v16 = vunpack.i.h.bf16 %v10820_v14  ;;  %v10821_v55 = vunpack.i.l.bf16 %v10820_v14  ;;  %10340 = vmatpush3.bf16.msra.mxu1 %v11947_v2  ;;  %9824 = vmatpush3.bf16.msra.mxu0 %v11949_v49  ;;  %v11952_v27 = vld [vmem:[%s16642_s3 + $0x200] sm:$0xff]  }
 0x47f   : > { %v1816_v50 = vpop.permute.xlu0 %1815  ;;  %v2031_v44 = vpack.c.bf16 %v1998_v20, %v1997_v43  ;;  %2242 = vmatprep.mubr.bf16.mxu0 %v2032_v47  ;;  %9825 = vmatprep.subr.bf16.mxu0 %v11950_v11  ;;  %v11953_v42 = vld [vmem:[%s16642_s3 + $0x1c0] sm:$0xff]  }
 0x480   : > { %v1985_v57 = vsel %vm689_vm5, %v13194_v62, %v1816_v50  ;;  %v13342_v4 = vld [vmem:[%s16643_s4 + $0x2] ss:$0 sm:$0xff] }
 0x481   : > { %2243 = vmatmul.mubr.bf16.gmra.mrb[32].mxu0 %v2031_v44  ;;  %v10825_v22 = vpop.permute.xlu1 %10824  ;;  %v1992_v54 = vsel %vm698_vm6, %v1985_v57, %v10822_v16  ;;  %v13347_v43 = vld [vmem:[%s16644_s5 + $0x2] ss:$0 sm:$0xff] }
 0x482   : > { %v10827_v58 = vunpack.i.h.bf16 %v10825_v22  ;;  %v10826_v28 = vunpack.i.l.bf16 %v10825_v22  ;;  %9826 = vmatpush3.bf16.msra.mxu0 %v11951_v23 }
 0x483   : > { %v10830_v10 = vpop.permute.xlu0 %10829  ;;  %9827 = vmatprep.subr.bf16.mxu0 %v11952_v27 }
 0x484   : > { %v10832_v39 = vunpack.i.h.bf16 %v10830_v10  ;;  %v10831_v32 = vunpack.i.l.bf16 %v10830_v10  ;;  %v1984_v45 = vsel %vm689_vm5, %v13158_v24, %v10827_v58  ;;  %v2008_v40 = vsel %vm689_vm5, %v13233_v0, %v10826_v28 }
 0x485   : > { %v1882_v60 = vpop.permute.xlu1 %1881  ;;  %v1991_v33 = vsel %vm698_vm6, %v1984_v45, %v10821_v55  ;;  %v2016_v62 = vsel %vm698_vm6, %v2008_v40, %v12635_v12 }
 0x486   : > { %v2023_v56 = vsel %vm707_vm7, %v2015_v36, %v10831_v32  ;;  %v1999_v5 = vsel %vm707_vm7, %v1991_v33, %v10832_v39  ;;  %v2000_v59 = vsel %vm707_vm7, %v1992_v54, %v1882_v60  ;;  %v2024_v24 = vsel %vm707_vm7, %v2016_v62, %v12645_v30  ;;  %9828 = vmatpush3.bf16.msra.mxu0 %v11953_v42  ;;  %v11955_v36 = vld [vmem:[%s16642_s3 + $0x1c8] sm:$0xff]   ;;  %v11956_v60 = vld [vmem:[%s16642_s3 + $0x210] sm:$0xff]  }
 0x487   : > { %v2034_v0 = vpack.c.bf16 %v2000_v59, %v1999_v5  ;;  %v2035_v41 = vpack.c.bf16 %v2024_v24, %v2023_v56  ;;  %9829 = vmatprep.subr.bf16.mxu0 %v11954_v17  ;;  %v11957_v59 = vld [vmem:[%s16642_s3 + $0x1d0] sm:$0xff]  }
 0x489   : > { %2250 = vmatprep.mubr.bf16.mxu0 %v2035_v41 }
 0x48a   : > { %2251 = vmatmul.mubr.bf16.gmra.mrb[36].mxu0 %v2034_v0 }
 0x48b   : > { %9830 = vmatpush3.bf16.msra.mxu0 %v11955_v36 }
 0x48c   : > { %9831 = vmatprep.subr.bf16.mxu0 %v11956_v60 }
 0x48f   : > { %9832 = vmatpush3.bf16.msra.mxu0 %v11957_v59 }
 0x4cb   : > { %v10331_v37 = vpop.f32.mrb[32].mxu1 }
 0x4cc   : > { %v2293_v35 = vpop.f32.mrb[33].mxu1 }
 0x4cd   : > { %v10332_v26 = vpop.f32.mrb[34].mxu1 }
 0x4ce   : > { %v2296_v34 = vpop.f32.mrb[35].mxu1 }
 0x4d6   : > { %v13307_v61 = vpop.f32.mrb[36].mxu1 }
 0x4d7   : > { %v13309_v21 = vpop.f32.mrb[37].mxu1 }
 0x4d8   : > { %v13311_v9 = vpop.f32.mrb[38].mxu1 }
 0x4d9   : > { %v13313_v25 = vpop.f32.mrb[39].mxu1 }
 0x542   : > { %v9793_v31 = vpop.f32.mrb[24].mxu0 }
 0x543   : > { %v9794_v19 = vpop.f32.mrb[25].mxu0 }
 0x544   : > { %v9795_v7 = vadd.f32 %v9794_v19, %v9793_v31  ;;  %v9796_v18 = vpop.f32.mrb[26].mxu0 }
 0x545   : > { %v9797_v52 = vpop.f32.mrb[27].mxu0 }
 0x546   : > { %v2294_v14 = vadd.f32 %v9795_v7, %v2293_v35  ;;  %v9798_v47 = vadd.f32 %v9797_v52, %v9796_v18  ;;  %v11958_v35 = vld [vmem:[%s16642_s3 + $0x218] sm:$0xff]  }
 0x547   : > { %v11959_v7 = vld [vmem:[%s16642_s3 + $0x1d8] sm:$0xff]   ;;  %9833 = vmatprep.subr.bf16.mxu0 %v11958_v35 }
 0x548   : > { %v2332_v20 = vmul.f32 %v13342_v4, %v2294_v14  ;;  %v2297_v50 = vadd.f32 %v9798_v47, %v2296_v34  ;;  %9834 = vmatpush3.bf16.msra.mxu0 %v11959_v7 }
 0x54a   : > { %v2348_v44 = vadd.f32 %v13347_v43, %v2332_v20  ;;  %v2333_v8 = vmul.f32 %v13342_v4, %v2297_v50  ;;  %v9799_v16 = vpop.f32.mrb[28].mxu0  ;;  %v11960_v20 = vld [vmem:[%s16642_s3 + $0x220] sm:$0xff]  }
 0x54b   : > { %v9800_v22 = vpop.f32.mrb[29].mxu0  ;;  %9835 = vmatprep.subr.bf16.mxu0 %v11960_v20 }
 0x54c   : > { %vm2356_vm0 = vcmp.gt.f32.partialorder %v2348_v44, 0.0  ;;  %v2364_v57 = vmul.f32 0.2, %v2348_v44  ;;  %v2349_v58 = vadd.f32 %v13347_v43, %v2333_v8  ;;  %v9801_v28 = vadd.f32 %v9800_v22, %v9799_v16  ;;  %v9802_v10 = vpop.f32.mrb[30].mxu0 }
 0x54d   : > { %v9803_v55 = vpop.f32.mrb[31].mxu0 }
 0x54e   : > { %vm2357_vm2 = vcmp.gt.f32.partialorder %v2349_v58, 0.0  ;;  %v2365_v39 = vmul.f32 0.2, %v2349_v58  ;;  %v2302_v32 = vadd.f32 %v10331_v37, %v9801_v28  ;;  %v9804_v45 = vadd.f32 %v9803_v55, %v9802_v10 }
 0x54f   : > { %v2372_v40 = vsel %vm2356_vm0, %v2348_v44, %v2364_v57 }
 0x550   : > { %v2373_v33 = vsel %vm2357_vm2, %v2349_v58, %v2365_v39  ;;  %v2334_v54 = vmul.f32 %v13342_v4, %v2302_v32  ;;  %v2305_v62 = vadd.f32 %v10332_v26, %v9804_v45  ;;  %v2388_v56 = vrot.slane %v2372_v40, 7 }
 0x551   : > { %v2389_v5 = vrot.slane %v2373_v33, 7 }
 0x552   : > { %v2350_v24 = vadd.f32 %v13347_v43, %v2334_v54  ;;  %v2335_v0 = vmul.f32 %v13342_v4, %v2305_v62  ;;  %v13369_v41 = vsel %vm437_vm3, 0.0, %v2388_v56  ;;  %v13372_v37 = vsel %vm437_vm3, %v2388_v56, 0.0  ;;  %v11961_v56 = vld [vmem:[%s16642_s3 + $0x1e0] sm:$0xff]  }
 0x553   : > { %v13378_v26 = vsel %vm437_vm3, 0.0, %v2389_v5  ;;  %v2413_v34 = vsel %vm437_vm3, %v2389_v5, 0.0  ;;  %v2476_v1 = vrot.slane %v13369_v41, 2  ;;  %v2477_v2 = vrot.slane %v13372_v37, 2  ;;  %9836 = vmatpush3.bf16.msra.mxu0 %v11961_v56 }
 0x554   : > { %vm2358_vm8 = vcmp.gt.f32.partialorder %v2350_v24, 0.0  ;;  %v2366_v3 = vmul.f32 0.2, %v2350_v24  ;;  %v2351_v49 = vadd.f32 %v13347_v43, %v2335_v0  ;;  %v9805_v11 = vpop.f32.mrb[32].mxu0  ;;  %v10833_v23 = vpack.i.bf16 %v13378_v26, %v13369_v41 }
 0x555   : > { %v9806_v27 = vpop.f32.mrb[33].mxu0  ;;  %v2478_v42 = vsel %vm339_vm1, %v2476_v1, %v2477_v2  ;;  %v2479_v31 = vrot.slane %v13378_v26, 2  ;;  %v2480_v19 = vrot.slane %v2413_v34, 2  ;;  %v2437_v16 = vrot.slane %v13378_v26, 1 }
 0x556   : > { %v2374_v18 = vsel %vm2358_vm8, %v2350_v24, %v2366_v3  ;;  %vm2359_vm9 = vcmp.gt.f32.partialorder %v2351_v49, 0.0  ;;  %v2367_v52 = vmul.f32 0.2, %v2351_v49  ;;  %v9807_v14 = vadd.f32 %v9806_v27, %v9805_v11  ;;  %v9808_v47 = vpop.f32.mrb[34].mxu0  ;;  %10834 = vrot.lane.b32.xlu1 %v10833_v23, %s12192_s9  ;;  %v11962_v23 = vld [vmem:[%s16642_s3 + $0x228] sm:$0xff]  }
 0x557   : > { %v2390_v50 = vrot.slane %v2374_v18, 7  ;;  %v9809_v44 = vpop.f32.mrb[35].mxu0  ;;  %v13396_v8 = vsel %vm339_vm1, %v2479_v31, %v2480_v19  ;;  %v2438_v22 = vrot.slane %v2413_v34, 1  ;;  %v2434_v32 = vrot.slane %v13369_v41, 1  ;;  %v11963_v27 = vld [vmem:[%s16642_s3 + $0x1e8] sm:$0xff]   ;;  %9837 = vmatprep.subr.bf16.mxu0 %v11962_v23 }
 0x558   : > { %v2375_v17 = vsel %vm2359_vm9, %v2351_v49, %v2367_v52  ;;  %v2310_v57 = vadd.f32 %v9807_v14, %v13309_v21  ;;  %v9810_v58 = vadd.f32 %v9809_v44, %v9808_v47  ;;  %v10838_v28 = vpack.i.bf16 %v13396_v8, %v2478_v42  ;;  %9838 = vmatpush3.bf16.msra.mxu0 %v11963_v27 }
 0x559   : > { %v2414_v10 = vsel %vm437_vm3, %v2390_v50, 0.0  ;;  %v2391_v55 = vrot.slane %v2375_v17, 7  ;;  %v13403_v39 = vsel %vm437_vm3, 0.0, %v2390_v50  ;;  %v13423_v24 = vsel %vm472_vm4, %v2437_v16, %v2438_v22 }
 0x55a   : > { %v2336_v45 = vmul.f32 %v13342_v4, %v2310_v57  ;;  %v2313_v40 = vadd.f32 %v9810_v58, %v13313_v25  ;;  %10839 = vrot.lane.b32.xlu0 %v10838_v28, %s12193_s14  ;;  %v10843_v21 = vpack.i.bf16 %v13403_v39, %v13378_v26  ;;  %v2482_v36 = vrot.slane %v13403_v39, 2 }
 0x55b   : > { %v13413_v60 = vsel %vm437_vm3, 0.0, %v2391_v55  ;;  %v2483_v33 = vrot.slane %v2414_v10, 2  ;;  %v2440_v54 = vrot.slane %v13403_v39, 1  ;;  %v2441_v62 = vrot.slane %v2414_v10, 1 }
 0x55c   : > { %v2352_v25 = vadd.f32 %v13347_v43, %v2336_v45  ;;  %v2337_v5 = vmul.f32 %v13342_v4, %v2313_v40  ;;  %v10848_v59 = vpack.i.bf16 %v13413_v60, %v2478_v42  ;;  %v13432_v34 = vsel %vm437_vm3, %v2391_v55, 0.0 }
 0x55d   : > { %v13426_v0 = vsel %vm339_vm1, %v2482_v36, %v2483_v33  ;;  %v13429_v35 = vsel %vm472_vm4, %v2440_v54, %v2441_v62  ;;  %v2485_v1 = vrot.slane %v13413_v60, 2  ;;  %v9811_v49 = vpop.f32.mrb[36].mxu0  ;;  %v10853_v19 = vpack.i.bf16 %v13413_v60, %v13403_v39 }
 0x55e   : > { %vm2360_vm10 = vcmp.gt.f32.partialorder %v2352_v25, 0.0  ;;  %v2368_v2 = vmul.f32 0.2, %v2352_v25  ;;  %v2353_v3 = vadd.f32 %v13347_v43, %v2337_v5  ;;  %10844 = vrot.lane.b32.xlu0 %v10843_v21, %s12194_s15  ;;  %10849 = vrot.lane.b32.xlu1 %v10848_v59, %s12194_s15  ;;  %v2679_v11 = vpack.c.bf16 %v13426_v0, %v13396_v8  ;;  %v9812_v42 = vpop.f32.mrb[37].mxu0 }
 0x55f   : > { %v10863_v31 = vpack.i.bf16 %v13429_v35, %v13423_v24  ;;  %v2486_v7 = vrot.slane %v13432_v34, 2  ;;  %v2435_v18 = vrot.slane %v13372_v37, 1  ;;  %v9813_v47 = vadd.f32 %v9812_v42, %v9811_v49  ;;  %v9814_v20 = vpop.f32.mrb[38].mxu0 }
 0x560   : > { %v2376_v52 = vsel %vm2360_vm10, %v2352_v25, %v2368_v2  ;;  %vm2361_vm11 = vcmp.gt.f32.partialorder %v2353_v3, 0.0  ;;  %v2369_v14 = vmul.f32 0.2, %v2353_v3  ;;  %10341 = vmatprep.mubr.msk.bf16.mxu1 %vm689_vm5, %v2679_v11  ;;  %v9815_v44 = vpop.f32.mrb[39].mxu0  ;;  %v2443_v36 = vrot.slane %v13413_v60, 1 }
 0x561   : > { %v2392_v50 = vrot.slane %v2376_v52, 7  ;;  %v13454_v16 = vsel %vm339_vm1, %v2485_v1, %v2486_v7  ;;  %v13457_v22 = vsel %vm472_vm4, %v2434_v32, %v2435_v18  ;;  %v2318_v37 = vadd.f32 %v13307_v61, %v9813_v47 }
 0x562   : > { %v2377_v17 = vsel %vm2361_vm11, %v2353_v3, %v2369_v14  ;;  %v9816_v57 = vadd.f32 %v9815_v44, %v9814_v20  ;;  %10864 = vrot.lane.b32.xlu0 %v10863_v31, %s12192_s9  ;;  %10854 = vrot.lane.b32.xlu1 %v10853_v19, %s12192_s9  ;;  %v10868_v55 = vpack.i.bf16 %v13423_v24, %v13454_v16  ;;  %v2444_v33 = vrot.slane %v13432_v34, 1 }
 0x563   : > { %v13463_v58 = vsel %vm437_vm3, 0.0, %v2392_v50  ;;  %v2416_v28 = vsel %vm437_vm3, %v2392_v50, 0.0  ;;  %v2393_v10 = vrot.slane %v2377_v17, 7  ;;  %v2338_v45 = vmul.f32 %v13342_v4, %v2318_v37 }
 0x564   : > { %v2489_v32 = vrot.slane %v2416_v28, 2  ;;  %v2321_v40 = vadd.f32 %v13311_v9, %v9816_v57  ;;  %v2488_v61 = vrot.slane %v13463_v58, 2  ;;  %v10858_v21 = vpack.i.bf16 %v13426_v0, %v13457_v22 }
 0x565   : > { %v2354_v54 = vadd.f32 %v13347_v43, %v2338_v45  ;;  %v13480_v25 = vsel %vm437_vm3, 0.0, %v2393_v10  ;;  %v10873_v5 = vpack.i.bf16 %v13396_v8, %v13463_v58  ;;  %v2446_v59 = vrot.slane %v13463_v58, 1 }
 0x566   : > { %v2339_v62 = vmul.f32 %v13342_v4, %v2321_v40  ;;  %v2490_v56 = vsel %vm339_vm1, %v2488_v61, %v2489_v32  ;;  %10869 = vrot.lane.b32.xlu0 %v10868_v55, %s12193_s14  ;;  %10859 = vrot.lane.b32.xlu1 %v10858_v21, %s12193_s14  ;;  %v2447_v34 = vrot.slane %v2416_v28, 1  ;;  %v2417_v2 = vsel %vm437_vm3, %v2393_v10, 0.0 }
 0x567   : > { %v2682_v9 = vpack.c.bf16 %v2490_v56, %v13454_v16  ;;  %vm2362_vm12 = vcmp.gt.f32.partialorder %v2354_v54, 0.0  ;;  %v2370_v1 = vmul.f32 0.2, %v2354_v54  ;;  %v10878_v3 = vpack.i.bf16 %v13480_v25, %v13426_v0 }
 0x568   : > { %v2355_v4 = vadd.f32 %v13347_v43, %v2339_v62  ;;  %v13493_v49 = vsel %vm472_vm4, %v2446_v59, %v2447_v34  ;;  %v2491_v11 = vrot.slane %v13480_v25, 2  ;;  %v2492_v8 = vrot.slane %v2417_v2, 2 }
 0x569   : > { %10342 = vmatmul.mubr.msk.bf16.vlgmr.msra.gmra.mrb[40].mxu1 %vm689_vm5, %v2682_v9  ;;  %v2378_v23 = vsel %vm2362_vm12, %v2354_v54, %v2370_v1  ;;  %v13499_v43 = vsel %vm472_vm4, %v2443_v36, %v2444_v33  ;;  %v10883_v52 = vpack.i.bf16 %v2490_v56, %v13429_v35  ;;  %v2449_v36 = vrot.slane %v13480_v25, 1 }
 0x56a   : > { %vm2363_vm13 = vcmp.gt.f32.partialorder %v2355_v4, 0.0  ;;  %v2371_v27 = vmul.f32 0.2, %v2355_v4  ;;  %10874 = vrot.lane.b32.xlu0 %v10873_v5, %s12194_s15  ;;  %v2394_v42 = vrot.slane %v2378_v23, 7  ;;  %10879 = vrot.lane.b32.xlu1 %v10878_v3, %s12194_s15  ;;  %v10888_v0 = vpack.i.bf16 %v13493_v49, %v13499_v43 }
 0x56b   : > { %v2493_v31 = vsel %vm339_vm1, %v2491_v11, %v2492_v8  ;;  %v2450_v33 = vrot.slane %v2417_v2, 1 }
 0x56c   : > { %v2379_v19 = vsel %vm2363_vm13, %v2355_v4, %v2371_v27  ;;  %v13505_v7 = vsel %vm437_vm3, 0.0, %v2394_v42  ;;  %v2418_v18 = vsel %vm437_vm3, %v2394_v42, 0.0  ;;  %v10893_v50 = vpack.i.bf16 %v13499_v43, %v2493_v31 }
 0x56d   : > { %v2395_v14 = vrot.slane %v2379_v19, 7  ;;  %v2494_v47 = vrot.slane %v13505_v7, 2  ;;  %v2495_v20 = vrot.slane %v2418_v18, 2  ;;  %v2452_v32 = vrot.slane %v13505_v7, 1 }
 0x56e   : > { %10889 = vrot.lane.b32.xlu0 %v10888_v0, %s12192_s9  ;;  %10884 = vrot.lane.b32.xlu1 %v10883_v52, %s12193_s14  ;;  %v2453_v45 = vrot.slane %v2418_v18, 1  ;;  %v10898_v54 = vpack.i.bf16 %v13454_v16, %v13505_v7  ;;  %v13533_v9 = vsel %vm472_vm4, %v2449_v36, %v2450_v33  ;;  %v10913_v16 = vpack.i.bf16 %v13480_v25, %v13463_v58 }
 0x56f   : > { %v2411_v44 = vsel %vm437_vm3, 0.0, %v2395_v14  ;;  %v2419_v17 = vsel %vm437_vm3, %v2395_v14, 0.0  ;;  %v2496_v28 = vsel %vm339_vm1, %v2494_v47, %v2495_v20 }
 0x570   : > { %v2555_v37 = vrot.slane %v2411_v44, 2  ;;  %v10903_v57 = vpack.i.bf16 %v2411_v44, %v2490_v56  ;;  %v2556_v10 = vrot.slane %v2419_v17, 2  ;;  %v2685_v55 = vpack.c.bf16 %v2496_v28, %v2493_v31 }
 0x571   : > { %v10923_v40 = vpack.i.bf16 %v2496_v28, %v2493_v31  ;;  %v10908_v62 = vpack.i.bf16 %v2496_v28, %v13493_v49  ;;  %v13528_v56 = vsel %vm472_vm4, %v2452_v32, %v2453_v45  ;;  %v2544_v59 = vrot.slane %v2411_v44, 1 }
 0x572   : > { %10894 = vrot.lane.b32.xlu0 %v10893_v50, %s12193_s14  ;;  %v2557_v61 = vsel %vm339_vm1, %v2555_v37, %v2556_v10  ;;  %10904 = vrot.lane.b32.xlu1 %v10903_v57, %s12194_s15  ;;  %v10918_v5 = vpack.i.bf16 %v13528_v56, %v13533_v9  ;;  %v2545_v34 = vrot.slane %v2419_v17, 1 }
 0x573   : > { %10345 = vmatprep.mubr.msk.bf16.mxu1 %vm689_vm5, %v2685_v55  ;;  %v2688_v21 = vpack.c.bf16 %v12381_v51, %v2557_v61  ;;  %v10928_v4 = vpack.i.bf16 %v13533_v9, %v2557_v61 }
 0x574   : > { %v13543_v1 = vsel %vm472_vm4, %v2544_v59, %v2545_v34 }
 0x575   : > { %10346 = vmatmul.mubr.msk.bf16.gmra.mrb[44].mxu1 %vm689_vm5, %v2688_v21  ;;  %v10933_v2 = vpack.i.bf16 %v13505_v7, %v13543_v1 }
 0x576   : > { %10899 = vrot.lane.b32.xlu0 %v10898_v54, %s12194_s15  ;;  %10909 = vrot.lane.b32.xlu1 %v10908_v62, %s12193_s14 }
 0x57a   : > { %10919 = vrot.lane.b32.xlu0 %v10918_v5, %s12192_s9  ;;  %10914 = vrot.lane.b32.xlu1 %v10913_v16, %s12192_s9 }
 0x57e   : > { %10924 = vrot.lane.b32.xlu0 %v10923_v40, %s12194_s15  ;;  %2467 = vrot.lane.b32.xlu1 %v13528_v56, %s12193_s14 }
 0x582   : > { %10929 = vrot.lane.b32.xlu0 %v10928_v4, %s12193_s14  ;;  %10934 = vrot.lane.b32.xlu1 %v10933_v2, %s12192_s9 }
 0x586   : > { %2533 = vrot.lane.b32.xlu0 %v2411_v44, %s12192_s9 }
 0x5c8   : > { %v10835_v3 = vpop.permute.xlu1 %10834 }
 0x5c9   : > { %v10836_v55 = vunpack.i.l.bf16 %v10835_v3  ;;  %v10837_v40 = vunpack.i.h.bf16 %v10835_v3 }
 0x5cb   : > { %v2645_v54 = vsel %vm707_vm7, %v12587_v13, %v10836_v55 }
 0x5cc   : > { %v10840_v11 = vpop.permute.xlu0 %10839 }
 0x5cd   : > { %v10842_v27 = vunpack.i.h.bf16 %v10840_v11  ;;  %v10841_v42 = vunpack.i.l.bf16 %v10840_v11 }
 0x5cf   : > { %v2654_v52 = vsel %vm689_vm5, %v13423_v24, %v10842_v27  ;;  %v2653_v14 = vsel %vm689_vm5, %v13457_v22, %v10841_v42 }
 0x5d0   : > { %v10845_v8 = vpop.permute.xlu0 %10844  ;;  %v10850_v23 = vpop.permute.xlu1 %10849 }
 0x5d1   : > { %v10847_v0 = vunpack.i.h.bf16 %v10845_v8  ;;  %v10846_v31 = vunpack.i.l.bf16 %v10845_v8  ;;  %v10851_v24 = vunpack.i.l.bf16 %v10850_v23  ;;  %v10852_v2 = vunpack.i.h.bf16 %v10850_v23 }
 0x5d3   : > { %v2661_v50 = vsel %vm698_vm6, %v2653_v14, %v10846_v31  ;;  %v2662_v44 = vsel %vm698_vm6, %v2654_v52, %v10847_v0 }
 0x5d4   : > { %v10865_v19 = vpop.permute.xlu0 %10864  ;;  %v10855_v18 = vpop.permute.xlu1 %10854 }
 0x5d5   : > { %v10867_v47 = vunpack.i.h.bf16 %v10865_v19  ;;  %v10866_v20 = vunpack.i.l.bf16 %v10865_v19 }
 0x5d7   : > { %v2669_v17 = vsel %vm707_vm7, %v2661_v50, %v10866_v20  ;;  %v2670_v37 = vsel %vm707_vm7, %v2662_v44, %v10867_v47  ;;  %v10856_v47 = vunpack.i.l.bf16 %v10855_v18 }
 0x5d8   : > { %v10870_v57 = vpop.permute.xlu0 %10869  ;;  %v2678_v28 = vpack.c.bf16 %v2670_v37, %v2669_v17  ;;  %v10860_v10 = vpop.permute.xlu1 %10859 }
 0x5d9   : > { %v10861_v32 = vunpack.i.l.bf16 %v10860_v10  ;;  %v10862_v45 = vunpack.i.h.bf16 %v10860_v10  ;;  %v10871_v21 = vunpack.i.l.bf16 %v10870_v57  ;;  %v10872_v62 = vunpack.i.h.bf16 %v10870_v57 }
 0x5da   : > { %2878 = vmatprep.mubr.bf16.mxu0 %v2678_v28 }
 0x5db   : > { %v2631_v22 = vsel %vm689_vm5, %v13369_v41, %v10861_v32  ;;  %v2655_v59 = vsel %vm689_vm5, %v13429_v35, %v10862_v45  ;;  %v2656_v41 = vsel %vm689_vm5, %v13499_v43, %v10871_v21  ;;  %v2632_v42 = vsel %vm689_vm5, %v13378_v26, %v10872_v62 }
 0x5dc   : > { %v10875_v61 = vpop.permute.xlu0 %10874  ;;  %v2638_v36 = vsel %vm698_vm6, %v2631_v22, %v10851_v24  ;;  %v10880_v33 = vpop.permute.xlu1 %10879  ;;  %v2663_v31 = vsel %vm698_vm6, %v2655_v59, %v10852_v2  ;;  %v10857_v43 = vunpack.i.h.bf16 %v10855_v18 }
 0x5dd   : > { %v2646_v5 = vsel %vm707_vm7, %v2638_v36, %v10837_v40  ;;  %v10876_v16 = vunpack.i.l.bf16 %v10875_v61  ;;  %v10877_v34 = vunpack.i.h.bf16 %v10875_v61  ;;  %v10881_v35 = vunpack.i.l.bf16 %v10880_v33 }
 0x5de   : > { %v2677_v4 = vpack.c.bf16 %v2646_v5, %v2645_v54 }
 0x5df   : > { %v2664_v19 = vsel %vm698_vm6, %v2656_v41, %v10876_v16  ;;  %v2639_v14 = vsel %vm698_vm6, %v2632_v42, %v10877_v34 }
 0x5e0   : > { %v10890_v3 = vpop.permute.xlu0 %10889  ;;  %v10885_v27 = vpop.permute.xlu1 %10884  ;;  %2879 = vmatmul.mubr.bf16.vlgmr.msra.gmra.mrb[40].mxu0 %v2677_v4  ;;  %v2647_v57 = vsel %vm707_vm7, %v2639_v14, %v10856_v47 }
 0x5e1   : > { %v10892_v11 = vunpack.i.h.bf16 %v10890_v3  ;;  %v10891_v8 = vunpack.i.l.bf16 %v10890_v3  ;;  %v10886_v0 = vunpack.i.l.bf16 %v10885_v27  ;;  %v10887_v26 = vunpack.i.h.bf16 %v10885_v27 }
 0x5e3   : > { %v2671_v52 = vsel %vm707_vm7, %v2663_v31, %v10891_v8  ;;  %v2672_v23 = vsel %vm707_vm7, %v2664_v19, %v10892_v11  ;;  %v2633_v20 = vsel %vm689_vm5, %v13403_v39, %v10886_v0  ;;  %v2657_v32 = vsel %vm689_vm5, %v13493_v49, %v10887_v26 }
 0x5e4   : > { %v10895_v50 = vpop.permute.xlu0 %10894  ;;  %v2681_v44 = vpack.c.bf16 %v2672_v23, %v2671_v52  ;;  %v10905_v17 = vpop.permute.xlu1 %10904  ;;  %v2640_v37 = vsel %vm698_vm6, %v2633_v20, %v10881_v35  ;;  %v10882_v39 = vunpack.i.h.bf16 %v10880_v33 }
 0x5e5   : > { %v2648_v28 = vsel %vm707_vm7, %v2640_v37, %v10857_v43  ;;  %v10896_v18 = vunpack.i.l.bf16 %v10895_v50  ;;  %v10897_v45 = vunpack.i.h.bf16 %v10895_v50  ;;  %v10906_v5 = vunpack.i.l.bf16 %v10905_v17 }
 0x5e6   : > { %2886 = vmatprep.mubr.bf16.mxu0 %v2681_v44  ;;  %v2680_v10 = vpack.c.bf16 %v2648_v28, %v2647_v57  ;;  %v2665_v54 = vsel %vm698_vm6, %v2657_v32, %v10882_v39  ;;  %v10907_v23 = vunpack.i.h.bf16 %v10905_v17 }
 0x5e7   : > { %v2658_v62 = vsel %vm689_vm5, %v13533_v9, %v10896_v18  ;;  %v2634_v33 = vsel %vm689_vm5, %v13413_v60, %v10897_v45 }
 0x5e8   : > { %v10900_v55 = vpop.permute.xlu0 %10899  ;;  %v10910_v24 = vpop.permute.xlu1 %10909  ;;  %2887 = vmatmul.mubr.bf16.gmra.mrb[44].mxu0 %v2680_v10 }
 0x5e9   : > { %v10901_v40 = vunpack.i.l.bf16 %v10900_v55  ;;  %v10911_v22 = vunpack.i.l.bf16 %v10910_v24  ;;  %v10902_v61 = vunpack.i.h.bf16 %v10900_v55  ;;  %v10912_v9 = vunpack.i.h.bf16 %v10910_v24 }
 0x5eb   : > { %v2635_v21 = vsel %vm689_vm5, %v13463_v58, %v10911_v22  ;;  %v2666_v2 = vsel %vm698_vm6, %v2658_v62, %v10901_v40  ;;  %v2641_v41 = vsel %vm698_vm6, %v2634_v33, %v10902_v61  ;;  %v2659_v19 = vsel %vm689_vm5, %v13528_v56, %v10912_v9  ;;  %v11964_v62 = vld [vmem:[%s16642_s3 + $0x2c0] sm:$0xff]   ;;  %v11969_v33 = vld [vmem:[%s16642_s3 + $0x248] sm:$0xff]  }
 0x5ec   : > { %v10920_v36 = vpop.permute.xlu0 %10919  ;;  %v10915_v59 = vpop.permute.xlu1 %10914  ;;  %v2642_v11 = vsel %vm698_vm6, %v2635_v21, %v10906_v5  ;;  %v2667_v56 = vsel %vm698_vm6, %v2659_v19, %v10907_v23  ;;  %10349 = vmatprep.subr.bf16.mxu0 %v11964_v62  ;;  %v11965_v5 = vld [vmem:[%s16642_s3 + $0x2c8] sm:$0xff]  }
 0x5ed   : > { %v10922_v16 = vunpack.i.h.bf16 %v10920_v36  ;;  %v10921_v49 = vunpack.i.l.bf16 %v10920_v36  ;;  %v10917_v34 = vunpack.i.h.bf16 %v10915_v59  ;;  %v10916_v4 = vunpack.i.l.bf16 %v10915_v59  ;;  %10350 = vmatpush3.bf16.msra.mxu0 %v11964_v62  ;;  %v11968_v59 = vld [vmem:[%s16642_s3 + $0x288] sm:$0xff]  }
 0x5ee   : > { %10351 = vmatprep.subr.bf16.mxu0 %v11965_v5 }
 0x5ef   : > { %v2673_v3 = vsel %vm707_vm7, %v2665_v54, %v10921_v49  ;;  %v2674_v58 = vsel %vm707_vm7, %v2666_v2, %v10922_v16  ;;  %v2649_v42 = vsel %vm707_vm7, %v2641_v41, %v10916_v4  ;;  %v2650_v0 = vsel %vm707_vm7, %v2642_v11, %v10917_v34  ;;  %v11966_v16 = vld [vmem:[%s16642_s3 + $0x280] sm:$0xff]   ;;  %v11970_v34 = vld [vmem:[%s16642_s3 + $0x290] sm:$0xff]  }
 0x5f0   : > { %v10925_v8 = vpop.permute.xlu0 %10924  ;;  %v2684_v27 = vpack.c.bf16 %v2674_v58, %v2673_v3  ;;  %v2468_v60 = vpop.permute.xlu1 %2467  ;;  %v2683_v31 = vpack.c.bf16 %v2650_v0, %v2649_v42  ;;  %v11967_v49 = vld [vmem:[%s16642_s3 + $0x240] sm:$0xff]   ;;  %9869 = vmatprep.subr.bf16.mxu1 %v11966_v16 }
 0x5f1   : > { %v10927_v35 = vunpack.i.h.bf16 %v10925_v8  ;;  %v2637_v14 = vsel %vm689_vm5, %v13505_v7, %v2468_v60  ;;  %v10926_v50 = vunpack.i.l.bf16 %v10925_v8  ;;  %10352 = vmatpush3.bf16.msra.mxu0 %v11965_v5  ;;  %9870 = vmatpush3.bf16.msra.mxu1 %v11967_v49  ;;  %v13649_v41 = vld [vmem:[%s16643_s4 + $0x3] ss:$0 sm:$0xff]  ;;  %v11976_v49 = vld [vmem:[%s16642_s3 + $0x2a8] sm:$0xff]  }
 0x5f2   : > { %2894 = vmatprep.mubr.bf16.mxu0 %v2684_v27  ;;  %9871 = vmatprep.subr.bf16.mxu1 %v11968_v59  ;;  %v13654_v27 = vld [vmem:[%s16644_s5 + $0x3] ss:$0 sm:$0xff] }
 0x5f3   : > { %2895 = vmatmul.mubr.bf16.gmra.mrb[48].mxu0 %v2683_v31  ;;  %v2644_v10 = vsel %vm698_vm6, %v2637_v14, %v10927_v35  ;;  %v11971_v35 = vld [vmem:[%s16642_s3 + $0x250] sm:$0xff]  }
 0x5f4   : > { %v10930_v52 = vpop.permute.xlu0 %10929  ;;  %v10935_v20 = vpop.permute.xlu1 %10934 }
 0x5f5   : > { %v10932_v43 = vunpack.i.h.bf16 %v10930_v52  ;;  %v10931_v47 = vunpack.i.l.bf16 %v10930_v52  ;;  %v10937_v44 = vunpack.i.h.bf16 %v10935_v20  ;;  %v10936_v26 = vunpack.i.l.bf16 %v10935_v20  ;;  %9872 = vmatpush3.bf16.msra.mxu1 %v11969_v33 }
 0x5f6   : > { %9873 = vmatprep.subr.bf16.mxu1 %v11970_v34  ;;  %v11977_v34 = vld [vmem:[%s16642_s3 + $0x268] sm:$0xff]  }
 0x5f7   : > { %v2636_v37 = vsel %vm689_vm5, %v13480_v25, %v10932_v43  ;;  %v2660_v57 = vsel %vm689_vm5, %v13543_v1, %v10931_v47  ;;  %v2675_v55 = vsel %vm707_vm7, %v2667_v56, %v10936_v26 }
 0x5f8   : > { %v2534_v28 = vpop.permute.xlu0 %2533  ;;  %v2643_v17 = vsel %vm698_vm6, %v2636_v37, %v10926_v50  ;;  %v2668_v7 = vsel %vm698_vm6, %v2660_v57, %v12635_v12  ;;  %v11972_v57 = vld [vmem:[%s16642_s3 + $0x298] sm:$0xff]  }
 0x5f9   : > { %v2651_v32 = vsel %vm707_vm7, %v2643_v17, %v10937_v44  ;;  %v2652_v18 = vsel %vm707_vm7, %v2644_v10, %v2534_v28  ;;  %v2676_v25 = vsel %vm707_vm7, %v2668_v7, %v12645_v30  ;;  %9874 = vmatpush3.bf16.msra.mxu1 %v11971_v35  ;;  %v11974_v10 = vld [vmem:[%s16642_s3 + $0x2a0] sm:$0xff]  }
 0x5fa   : > { %v2686_v1 = vpack.c.bf16 %v2652_v18, %v2651_v32  ;;  %v2687_v24 = vpack.c.bf16 %v2676_v25, %v2675_v55  ;;  %9875 = vmatprep.subr.bf16.mxu1 %v11972_v57  ;;  %v11975_v32 = vld [vmem:[%s16642_s3 + $0x260] sm:$0xff]  }
 0x5fc   : > { %2902 = vmatprep.mubr.bf16.mxu0 %v2687_v24 }
 0x5fd   : > { %2903 = vmatmul.mubr.bf16.gmra.mrb[52].mxu0 %v2686_v1 }
 0x63c   : > { %v10343_v39 = vpop.f32.mrb[40].mxu1 }
 0x63d   : > { %v2945_v45 = vpop.f32.mrb[41].mxu1 }
 0x63e   : > { %v10344_v40 = vpop.f32.mrb[42].mxu1 }
 0x63f   : > { %v2948_v22 = vpop.f32.mrb[43].mxu1 }
 0x648   : > { %v13617_v61 = vpop.f32.mrb[44].mxu1 }
 0x649   : > { %v13619_v21 = vpop.f32.mrb[45].mxu1 }
 0x64a   : > { %v13621_v36 = vpop.f32.mrb[46].mxu1 }
 0x64b   : > { %v13623_v54 = vpop.f32.mrb[47].mxu1 }
 0x6b3   : > { %v9839_v4 = vpop.f32.mrb[40].mxu0 }
 0x6b4   : > { %v9840_v2 = vpop.f32.mrb[41].mxu0 }
 0x6b5   : > { %v9841_v3 = vadd.f32 %v9840_v2, %v9839_v4  ;;  %v9842_v58 = vpop.f32.mrb[42].mxu0 }
 0x6b6   : > { %v9843_v11 = vpop.f32.mrb[43].mxu0 }
 0x6b7   : > { %v2946_v9 = vadd.f32 %v9841_v3, %v2945_v45  ;;  %v9844_v8 = vadd.f32 %v9843_v11, %v9842_v58 }
 0x6b9   : > { %v2984_v42 = vmul.f32 %v13649_v41, %v2946_v9  ;;  %v2949_v0 = vadd.f32 %v9844_v8, %v2948_v22 }
 0x6bb   : > { %v3000_v60 = vadd.f32 %v13654_v27, %v2984_v42  ;;  %v2985_v31 = vmul.f32 %v13649_v41, %v2949_v0  ;;  %v9845_v19 = vpop.f32.mrb[44].mxu0 }
 0x6bc   : > { %v9846_v52 = vpop.f32.mrb[45].mxu0 }
 0x6bd   : > { %v13663_v23 = vadd.f32 %v3000_v60, %v13016_v63  ;;  %v3001_v14 = vadd.f32 %v13654_v27, %v2985_v31  ;;  %v9847_v43 = vadd.f32 %v9846_v52, %v9845_v19  ;;  %v9848_v47 = vpop.f32.mrb[46].mxu0  ;;  %v11973_v63 = vld [vmem:[%s16642_s3 + $0x258] sm:$0xff]  }
 0x6be   : > { %v9849_v20 = vpop.f32.mrb[47].mxu0  ;;  %9876 = vmatpush3.bf16.msra.mxu1 %v11973_v63 }
 0x6bf   : > { %v13667_v50 = vadd.f32 %v3001_v14, %v13020_v6  ;;  %v2954_v44 = vadd.f32 %v10343_v39, %v9847_v43  ;;  %v9850_v26 = vadd.f32 %v9849_v20, %v9848_v47  ;;  %v3024_v37 = vrot.slane %v13663_v23, 7  ;;  %9877 = vmatprep.subr.bf16.mxu1 %v11974_v10 }
 0x6c1   : > { %v3025_v56 = vrot.slane %v13667_v50, 7  ;;  %v2986_v28 = vmul.f32 %v13649_v41, %v2954_v44  ;;  %v2957_v17 = vadd.f32 %v10344_v40, %v9850_v26  ;;  %v13679_v6 = vsel %vm437_vm3, 0.0, %v3024_v37  ;;  %v11978_v44 = vld [vmem:[%s16642_s3 + $0x2b0] sm:$0xff]  }
 0x6c2   : > { %v13685_v7 = vsel %vm437_vm3, %v3024_v37, 0.0  ;;  %v3112_v55 = vrot.slane %v13679_v6, 2  ;;  %9878 = vmatpush3.bf16.msra.mxu1 %v11975_v32  ;;  %v3070_v11 = vrot.slane %v13679_v6, 1  ;;  %v11979_v32 = vld [vmem:[%s16642_s3 + $0x270] sm:$0xff]  }
 0x6c3   : > { %v3002_v18 = vadd.f32 %v13654_v27, %v2986_v28  ;;  %v2987_v25 = vmul.f32 %v13649_v41, %v2957_v17  ;;  %v13694_v1 = vsel %vm437_vm3, 0.0, %v3025_v56  ;;  %v3049_v24 = vsel %vm437_vm3, %v3025_v56, 0.0  ;;  %9879 = vmatprep.subr.bf16.mxu1 %v11976_v49  ;;  %v11981_v49 = vld [vmem:[%s16642_s3 + $0x278] sm:$0xff]  }
 0x6c4   : > { %v10938_v39 = vpack.i.bf16 %v13694_v1, %v13679_v6  ;;  %v3113_v45 = vrot.slane %v13685_v7, 2  ;;  %v3115_v40 = vrot.slane %v13694_v1, 2  ;;  %v3116_v16 = vrot.slane %v3049_v24, 2 }
 0x6c5   : > { %v13702_v22 = vadd.f32 %v3002_v18, %v13058_v53  ;;  %v3003_v62 = vadd.f32 %v13654_v27, %v2987_v25  ;;  %v3073_v42 = vrot.slane %v13694_v1, 1  ;;  %v3074_v52 = vrot.slane %v3049_v24, 1  ;;  %v11980_v18 = vld [vmem:[%s16642_s3 + $0x2b8] sm:$0xff]  }
 0x6c6   : > { %v9851_v5 = vpop.f32.mrb[48].mxu0  ;;  %10939 = vrot.lane.b32.xlu0 %v10938_v39, %s12192_s9  ;;  %v3114_v33 = vsel %vm339_vm1, %v3112_v55, %v3113_v45  ;;  %v13718_v58 = vsel %vm339_vm1, %v3115_v40, %v3116_v16  ;;  %9880 = vmatpush3.bf16.msra.mxu1 %v11977_v34  ;;  %v3071_v37 = vrot.slane %v13685_v7, 1 }
 0x6c7   : > { %v9852_v59 = vpop.f32.mrb[49].mxu0  ;;  %v3026_v53 = vrot.slane %v13702_v22, 7  ;;  %v13715_v4 = vadd.f32 %v3003_v62, %v13071_v48  ;;  %v10943_v8 = vpack.i.bf16 %v13718_v58, %v3114_v33  ;;  %9881 = vmatprep.subr.bf16.mxu1 %v11978_v44  ;;  %v13753_v7 = vsel %vm472_vm4, %v3073_v42, %v3074_v52 }
 0x6c8   : > { %v9853_v2 = vadd.f32 %v9852_v59, %v9851_v5  ;;  %v9854_v3 = vpop.f32.mrb[50].mxu0 }
 0x6c9   : > { %v9855_v9 = vpop.f32.mrb[51].mxu0  ;;  %v3050_v0 = vsel %vm437_vm3, %v3026_v53, 0.0  ;;  %v3027_v60 = vrot.slane %v13715_v4, 7  ;;  %10944 = vrot.lane.b32.xlu1 %v10943_v8, %s12193_s14  ;;  %v13728_v35 = vsel %vm437_vm3, 0.0, %v3026_v53 }
 0x6ca   : > { %v2962_v48 = vadd.f32 %v9853_v2, %v13619_v21  ;;  %v9856_v31 = vadd.f32 %v9855_v9, %v9854_v3  ;;  %v3119_v19 = vrot.slane %v3050_v0, 2  ;;  %v3077_v14 = vrot.slane %v3050_v0, 1  ;;  %9882 = vmatpush3.bf16.msra.mxu1 %v11979_v32 }
 0x6cb   : > { %v13731_v43 = vsel %vm437_vm3, %v3027_v60, 0.0  ;;  %v10948_v21 = vpack.i.bf16 %v13728_v35, %v13694_v1  ;;  %v13743_v57 = vsel %vm437_vm3, 0.0, %v3027_v60  ;;  %v3118_v63 = vrot.slane %v13728_v35, 2  ;;  %9883 = vmatprep.subr.bf16.mxu1 %v11980_v18 }
 0x6cc   : > { %v2988_v47 = vmul.f32 %v13649_v41, %v2962_v48  ;;  %v2965_v20 = vadd.f32 %v9856_v31, %v13623_v54  ;;  %v3122_v26 = vrot.slane %v13731_v43, 2  ;;  %v10953_v28 = vpack.i.bf16 %v13743_v57, %v3114_v33 }
 0x6cd   : > { %v3076_v17 = vrot.slane %v13728_v35, 1  ;;  %10949 = vrot.lane.b32.xlu1 %v10948_v21, %s12194_s15  ;;  %v3120_v10 = vsel %vm339_vm1, %v3118_v63, %v3119_v19  ;;  %v3121_v55 = vrot.slane %v13743_v57, 2  ;;  %v10958_v16 = vpack.i.bf16 %v13743_v57, %v13728_v35 }
 0x6ce   : > { %v3004_v56 = vadd.f32 %v13654_v27, %v2988_v47  ;;  %v2989_v54 = vmul.f32 %v13649_v41, %v2965_v20  ;;  %10954 = vrot.lane.b32.xlu0 %v10953_v28, %s12194_s15  ;;  %v3315_v45 = vpack.c.bf16 %v3120_v10, %v13718_v58  ;;  %9884 = vmatpush3.bf16.msra.mxu1 %v11981_v49 }
 0x6cf   : > { %v13769_v40 = vsel %vm472_vm4, %v3076_v17, %v3077_v14  ;;  %v13787_v2 = vsel %vm339_vm1, %v3121_v55, %v3122_v26 }
 0x6d0   : > { %v13763_v25 = vadd.f32 %v3004_v56, %v13120_v15  ;;  %v3005_v24 = vadd.f32 %v13654_v27, %v2989_v54  ;;  %v9857_v39 = vpop.f32.mrb[52].mxu0  ;;  %v10968_v5 = vpack.i.bf16 %v13769_v40, %v13753_v7  ;;  %v13776_v15 = vsel %vm472_vm4, %v3070_v11, %v3071_v37  ;;  %10353 = vmatprep.mubr.msk.bf16.mxu0 %vm689_vm5, %v3315_v45 }
 0x6d1   : > { %v9858_v62 = vpop.f32.mrb[53].mxu0  ;;  %v10963_v11 = vpack.i.bf16 %v3120_v10, %v13776_v15  ;;  %v10973_v31 = vpack.i.bf16 %v13753_v7, %v13787_v2  ;;  %v3079_v37 = vrot.slane %v13743_v57, 1 }
 0x6d2   : > { %v3028_v59 = vrot.slane %v13763_v25, 7  ;;  %v13783_v33 = vadd.f32 %v3005_v24, %v13136_v29  ;;  %v9859_v34 = vadd.f32 %v9858_v62, %v9857_v39  ;;  %v9860_v53 = vpop.f32.mrb[54].mxu0  ;;  %10969 = vrot.lane.b32.xlu1 %v10968_v5, %s12192_s9  ;;  %10959 = vrot.lane.b32.xlu0 %v10958_v16, %s12192_s9 }
 0x6d3   : > { %v9861_v3 = vpop.f32.mrb[55].mxu0 }
 0x6d4   : > { %v13792_v9 = vsel %vm437_vm3, 0.0, %v3028_v59  ;;  %v3052_v8 = vsel %vm437_vm3, %v3028_v59, 0.0  ;;  %v3029_v29 = vrot.slane %v13783_v33, 7  ;;  %v2970_v42 = vadd.f32 %v13617_v61, %v9859_v34 }
 0x6d5   : > { %v3125_v0 = vrot.slane %v3052_v8, 2  ;;  %v9862_v60 = vadd.f32 %v9861_v3, %v9860_v53  ;;  %v3124_v48 = vrot.slane %v13792_v9, 2  ;;  %v3083_v19 = vrot.slane %v3052_v8, 1 }
 0x6d6   : > { %v13802_v52 = vsel %vm437_vm3, 0.0, %v3029_v29  ;;  %v3053_v14 = vsel %vm437_vm3, %v3029_v29, 0.0  ;;  %v2990_v47 = vmul.f32 %v13649_v41, %v2970_v42  ;;  %v3080_v61 = vrot.slane %v13731_v43, 1  ;;  %10974 = vrot.lane.b32.xlu1 %v10973_v31, %s12193_s14  ;;  %10964 = vrot.lane.b32.xlu0 %v10963_v11, %s12193_s14 }
 0x6d7   : > { %v2973_v20 = vadd.f32 %v13621_v36, %v9862_v60  ;;  %v3126_v21 = vsel %vm339_vm1, %v3124_v48, %v3125_v0  ;;  %v3082_v63 = vrot.slane %v13792_v9, 1  ;;  %v3128_v56 = vrot.slane %v3053_v14, 2 }
 0x6d8   : > { %v3006_v44 = vadd.f32 %v13654_v27, %v2990_v47  ;;  %v3318_v26 = vpack.c.bf16 %v3126_v21, %v13787_v2  ;;  %v10978_v36 = vpack.i.bf16 %v13718_v58, %v13792_v9  ;;  %v3127_v43 = vrot.slane %v13802_v52, 2 }
 0x6d9   : > { %v2991_v54 = vmul.f32 %v13649_v41, %v2973_v20  ;;  %v10983_v17 = vpack.i.bf16 %v13802_v52, %v3120_v10  ;;  %v13825_v55 = vsel %vm472_vm4, %v3082_v63, %v3083_v19  ;;  %v13832_v58 = vsel %vm472_vm4, %v3079_v37, %v3080_v61 }
 0x6da   : > { %v13820_v28 = vadd.f32 %v3006_v44, %v13173_v38  ;;  %10354 = vmatmul.mubr.msk.bf16.vlgmr.msra.gmra.mrb[56].mxu0 %vm689_vm5, %v3318_v26  ;;  %10979 = vrot.lane.b32.xlu1 %v10978_v36, %s12194_s15  ;;  %v10993_v10 = vpack.i.bf16 %v13825_v55, %v13832_v58  ;;  %v3129_v18 = vsel %vm339_vm1, %v3127_v43, %v3128_v56  ;;  %v3086_v42 = vrot.slane %v3053_v14, 1 }
 0x6db   : > { %v3007_v32 = vadd.f32 %v13654_v27, %v2991_v54  ;;  %10984 = vrot.lane.b32.xlu0 %v10983_v17, %s12194_s15  ;;  %v10988_v39 = vpack.i.bf16 %v3126_v21, %v13769_v40  ;;  %v10998_v16 = vpack.i.bf16 %v13832_v58, %v3129_v18  ;;  %v3085_v60 = vrot.slane %v13802_v52, 1 }
 0x6dc   : > { %v3030_v41 = vrot.slane %v13820_v28, 7 }
 0x6dd   : > { %v13835_v38 = vadd.f32 %v3007_v32, %v13184_v46  ;;  %v13870_v14 = vsel %vm472_vm4, %v3085_v60, %v3086_v42 }
 0x6de   : > { %v13841_v24 = vsel %vm437_vm3, 0.0, %v3030_v41  ;;  %v3054_v27 = vsel %vm437_vm3, %v3030_v41, 0.0  ;;  %10994 = vrot.lane.b32.xlu1 %v10993_v10, %s12192_s9 }
 0x6df   : > { %v3131_v45 = vrot.slane %v3054_v27, 2  ;;  %v3031_v62 = vrot.slane %v13835_v38, 7  ;;  %v3130_v46 = vrot.slane %v13841_v24, 2  ;;  %v3089_v5 = vrot.slane %v3054_v27, 1  ;;  %10989 = vrot.lane.b32.xlu0 %v10988_v39, %s12193_s14 }
 0x6e0   : > { %v3088_v53 = vrot.slane %v13841_v24, 1  ;;  %v11003_v31 = vpack.i.bf16 %v13787_v2, %v13841_v24  ;;  %v11018_v2 = vpack.i.bf16 %v13802_v52, %v13792_v9 }
 0x6e1   : > { %v3055_v49 = vsel %vm437_vm3, %v3031_v62, 0.0  ;;  %v3047_v59 = vsel %vm437_vm3, 0.0, %v3031_v62  ;;  %v3132_v34 = vsel %vm339_vm1, %v3130_v46, %v3131_v45 }
 0x6e2   : > { %v11008_v3 = vpack.i.bf16 %v3047_v59, %v3126_v21  ;;  %v3321_v11 = vpack.c.bf16 %v3132_v34, %v3129_v18  ;;  %v3191_v8 = vrot.slane %v3047_v59, 2  ;;  %v3192_v29 = vrot.slane %v3055_v49, 2  ;;  %10999 = vrot.lane.b32.xlu1 %v10998_v16, %s12193_s14 }
 0x6e3   : > { %v11013_v19 = vpack.i.bf16 %v3132_v34, %v13825_v55  ;;  %v13864_v47 = vsel %vm472_vm4, %v3088_v53, %v3089_v5  ;;  %v3180_v20 = vrot.slane %v3047_v59, 1  ;;  %v3181_v21 = vrot.slane %v3055_v49, 1 }
 0x6e4   : > { %11009 = vrot.lane.b32.xlu0 %v11008_v3, %s12194_s15  ;;  %10357 = vmatprep.mubr.msk.bf16.mxu0 %vm689_vm5, %v3321_v11  ;;  %v3193_v0 = vsel %vm339_vm1, %v3191_v8, %v3192_v29  ;;  %v11023_v61 = vpack.i.bf16 %v13864_v47, %v13870_v14  ;;  %v11028_v44 = vpack.i.bf16 %v3132_v34, %v3129_v18 }
 0x6e5   : > { %v3324_v48 = vpack.c.bf16 %v12381_v51, %v3193_v0  ;;  %v13880_v26 = vsel %vm472_vm4, %v3180_v20, %v3181_v21  ;;  %v11033_v37 = vpack.i.bf16 %v13870_v14, %v3193_v0 }
 0x6e6   : > { %11004 = vrot.lane.b32.xlu1 %v11003_v31, %s12194_s15  ;;  %v11038_v63 = vpack.i.bf16 %v13841_v24, %v13880_v26 }
 0x6e7   : > { %10358 = vmatmul.mubr.msk.bf16.gmra.mrb[60].mxu0 %vm689_vm5, %v3324_v48 }
 0x6e8   : > { %11014 = vrot.lane.b32.xlu0 %v11013_v19, %s12193_s14 }
 0x6ea   : > { %11024 = vrot.lane.b32.xlu1 %v11023_v61, %s12192_s9 }
 0x6ec   : > { %11019 = vrot.lane.b32.xlu0 %v11018_v2, %s12192_s9 }
 0x6ee   : > { %11029 = vrot.lane.b32.xlu1 %v11028_v44, %s12194_s15 }
 0x6f0   : > { %3103 = vrot.lane.b32.xlu0 %v13864_v47, %s12193_s14 }
 0x6f2   : > { %11034 = vrot.lane.b32.xlu1 %v11033_v37, %s12193_s14 }
 0x6f4   : > { %11039 = vrot.lane.b32.xlu0 %v11038_v63, %s12192_s9 }
 0x6f6   : > { %3169 = vrot.lane.b32.xlu1 %v3047_v59, %s12192_s9 }
 0x738   : > { %v10940_v54 = vpop.permute.xlu0 %10939 }
 0x739   : > { %v10941_v11 = vunpack.i.l.bf16 %v10940_v54 }
 0x73b   : > { %v10945_v56 = vpop.permute.xlu1 %10944  ;;  %v3281_v19 = vsel %vm707_vm7, %v12587_v13, %v10941_v11 }
 0x73c   : > { %v10947_v43 = vunpack.i.h.bf16 %v10945_v56  ;;  %v10946_v17 = vunpack.i.l.bf16 %v10945_v56 }
 0x73e   : > { %v3290_v27 = vsel %vm689_vm5, %v13753_v7, %v10947_v43  ;;  %v3289_v39 = vsel %vm689_vm5, %v13776_v15, %v10946_v17  ;;  %v10942_v15 = vunpack.i.h.bf16 %v10940_v54 }
 0x73f   : > { %v10950_v36 = vpop.permute.xlu1 %10949 }
 0x740   : > { %v10955_v32 = vpop.permute.xlu0 %10954  ;;  %v10952_v41 = vunpack.i.h.bf16 %v10950_v36  ;;  %v10951_v10 = vunpack.i.l.bf16 %v10950_v36 }
 0x741   : > { %v10956_v7 = vunpack.i.l.bf16 %v10955_v32  ;;  %v10957_v63 = vunpack.i.h.bf16 %v10955_v32 }
 0x742   : > { %v3297_v5 = vsel %vm698_vm6, %v3289_v39, %v10951_v10  ;;  %v3298_v16 = vsel %vm698_vm6, %v3290_v27, %v10952_v41 }
 0x744   : > { %v10970_v18 = vpop.permute.xlu1 %10969  ;;  %v10960_v46 = vpop.permute.xlu0 %10959 }
 0x745   : > { %v10972_v45 = vunpack.i.h.bf16 %v10970_v18  ;;  %v10971_v62 = vunpack.i.l.bf16 %v10970_v18 }
 0x747   : > { %v3305_v49 = vsel %vm707_vm7, %v3297_v5, %v10971_v62  ;;  %v3306_v59 = vsel %vm707_vm7, %v3298_v16, %v10972_v45  ;;  %v10961_v45 = vunpack.i.l.bf16 %v10960_v46 }
 0x748   : > { %v10975_v34 = vpop.permute.xlu1 %10974  ;;  %v3314_v53 = vpack.c.bf16 %v3306_v59, %v3305_v49  ;;  %v10965_v3 = vpop.permute.xlu0 %10964 }
 0x749   : > { %v10966_v8 = vunpack.i.l.bf16 %v10965_v3  ;;  %v10967_v29 = vunpack.i.h.bf16 %v10965_v3  ;;  %v10976_v60 = vunpack.i.l.bf16 %v10975_v34  ;;  %v10977_v61 = vunpack.i.h.bf16 %v10975_v34 }
 0x74a   : > { %3514 = vmatprep.mubr.bf16.mxu1 %v3314_v53 }
 0x74b   : > { %v3267_v42 = vsel %vm689_vm5, %v13679_v6, %v10966_v8  ;;  %v3291_v21 = vsel %vm689_vm5, %v13769_v40, %v10967_v29  ;;  %v3292_v6 = vsel %vm689_vm5, %v13832_v58, %v10976_v60  ;;  %v3268_v17 = vsel %vm689_vm5, %v13694_v1, %v10977_v61 }
 0x74c   : > { %v10980_v0 = vpop.permute.xlu1 %10979  ;;  %v3274_v48 = vsel %vm698_vm6, %v3267_v42, %v10956_v7  ;;  %v3299_v10 = vsel %vm698_vm6, %v3291_v21, %v10957_v63  ;;  %v10962_v58 = vunpack.i.h.bf16 %v10960_v46 }
 0x74d   : > { %v10985_v31 = vpop.permute.xlu0 %10984  ;;  %v3282_v2 = vsel %vm707_vm7, %v3274_v48, %v10942_v15  ;;  %v10981_v20 = vunpack.i.l.bf16 %v10980_v0  ;;  %v10982_v44 = vunpack.i.h.bf16 %v10980_v0 }
 0x74e   : > { %v3313_v37 = vpack.c.bf16 %v3282_v2, %v3281_v19  ;;  %v10986_v40 = vunpack.i.l.bf16 %v10985_v31 }
 0x74f   : > { %v3300_v18 = vsel %vm698_vm6, %v3292_v6, %v10981_v20  ;;  %v3275_v39 = vsel %vm698_vm6, %v3268_v17, %v10982_v44 }
 0x750   : > { %v10995_v56 = vpop.permute.xlu1 %10994  ;;  %3515 = vmatmul.mubr.bf16.vlgmr.msra.gmra.mrb[48].mxu1 %v3313_v37  ;;  %v3283_v34 = vsel %vm707_vm7, %v3275_v39, %v10961_v45 }
 0x751   : > { %v10997_v54 = vunpack.i.h.bf16 %v10995_v56  ;;  %v10996_v36 = vunpack.i.l.bf16 %v10995_v56  ;;  %v10990_v43 = vpop.permute.xlu0 %10989 }
 0x752   : > { %v10991_v41 = vunpack.i.l.bf16 %v10990_v43  ;;  %v10992_v1 = vunpack.i.h.bf16 %v10990_v43 }
 0x753   : > { %v3307_v27 = vsel %vm707_vm7, %v3299_v10, %v10996_v36  ;;  %v3308_v32 = vsel %vm707_vm7, %v3300_v18, %v10997_v54 }
 0x754   : > { %v3269_v62 = vsel %vm689_vm5, %v13728_v35, %v10991_v41  ;;  %v11000_v5 = vpop.permute.xlu1 %10999  ;;  %v3317_v16 = vpack.c.bf16 %v3308_v32, %v3307_v27  ;;  %v3293_v8 = vsel %vm689_vm5, %v13825_v55, %v10992_v1  ;;  %v10987_v35 = vunpack.i.h.bf16 %v10985_v31 }
 0x755   : > { %v3276_v59 = vsel %vm698_vm6, %v3269_v62, %v10986_v40  ;;  %v11001_v46 = vunpack.i.l.bf16 %v11000_v5  ;;  %v11002_v29 = vunpack.i.h.bf16 %v11000_v5 }
 0x756   : > { %v11010_v49 = vpop.permute.xlu0 %11009  ;;  %3522 = vmatprep.mubr.bf16.mxu1 %v3317_v16  ;;  %v3284_v53 = vsel %vm707_vm7, %v3276_v59, %v10962_v58  ;;  %v3301_v19 = vsel %vm698_vm6, %v3293_v8, %v10987_v35 }
 0x757   : > { %v3316_v3 = vpack.c.bf16 %v3284_v53, %v3283_v34  ;;  %v3294_v61 = vsel %vm689_vm5, %v13870_v14, %v11001_v46  ;;  %v11011_v2 = vunpack.i.l.bf16 %v11010_v49  ;;  %v3270_v31 = vsel %vm689_vm5, %v13743_v57, %v11002_v29 }
 0x758   : > { %v11005_v11 = vpop.permute.xlu1 %11004  ;;  %v11012_v32 = vunpack.i.h.bf16 %v11010_v49 }
 0x759   : > { %3523 = vmatmul.mubr.bf16.gmra.mrb[52].mxu1 %v3316_v3  ;;  %v11006_v15 = vunpack.i.l.bf16 %v11005_v11  ;;  %v11007_v0 = vunpack.i.h.bf16 %v11005_v11 }
 0x75a   : > { %v11015_v7 = vpop.permute.xlu0 %11014 }
 0x75b   : > { %v11016_v42 = vunpack.i.l.bf16 %v11015_v7  ;;  %v3302_v63 = vsel %vm698_vm6, %v3294_v61, %v11006_v15  ;;  %v3277_v6 = vsel %vm698_vm6, %v3270_v31, %v11007_v0  ;;  %v11017_v14 = vunpack.i.h.bf16 %v11015_v7  ;;  %v11982_v61 = vld [vmem:[%s16642_s3 + $0x350] sm:$0xff]   ;;  %v11987_v31 = vld [vmem:[%s16642_s3 + $0x2d8] sm:$0xff]  }
 0x75c   : > { %v11025_v48 = vpop.permute.xlu1 %11024  ;;  %10361 = vmatprep.subr.bf16.mxu0 %v11982_v61 }
 0x75d   : > { %v3271_v60 = vsel %vm689_vm5, %v13792_v9, %v11016_v42  ;;  %v11027_v20 = vunpack.i.h.bf16 %v11025_v48  ;;  %v11026_v55 = vunpack.i.l.bf16 %v11025_v48  ;;  %v3295_v18 = vsel %vm689_vm5, %v13864_v47, %v11017_v14  ;;  %10362 = vmatpush3.bf16.msra.mxu0 %v11982_v61 }
 0x75e   : > { %v11020_v21 = vpop.permute.xlu0 %11019  ;;  %v3278_v54 = vsel %vm698_vm6, %v3271_v60, %v11011_v2  ;;  %v3303_v47 = vsel %vm698_vm6, %v3295_v18, %v11012_v32  ;;  %v11983_v2 = vld [vmem:[%s16642_s3 + $0x358] sm:$0xff]   ;;  %v11990_v32 = vld [vmem:[%s16642_s3 + $0x328] sm:$0xff]  }
 0x75f   : > { %v11022_v44 = vunpack.i.h.bf16 %v11020_v21  ;;  %v11021_v37 = vunpack.i.l.bf16 %v11020_v21  ;;  %v3309_v56 = vsel %vm707_vm7, %v3301_v19, %v11026_v55  ;;  %v3310_v9 = vsel %vm707_vm7, %v3302_v63, %v11027_v20  ;;  %10363 = vmatprep.subr.bf16.mxu0 %v11983_v2  ;;  %v11984_v20 = vld [vmem:[%s16642_s3 + $0x310] sm:$0xff]   ;;  %v11986_v21 = vld [vmem:[%s16642_s3 + $0x318] sm:$0xff]  }
 0x760   : > { %v11030_v36 = vpop.permute.xlu1 %11029  ;;  %v3320_v43 = vpack.c.bf16 %v3310_v9, %v3309_v56  ;;  %v11985_v55 = vld [vmem:[%s16642_s3 + $0x2d0] sm:$0xff]   ;;  %9915 = vmatprep.subr.bf16.mxu1 %v11984_v20 }
 0x761   : > { %v3285_v17 = vsel %vm707_vm7, %v3277_v6, %v11021_v37  ;;  %v3286_v41 = vsel %vm707_vm7, %v3278_v54, %v11022_v44  ;;  %v11032_v40 = vunpack.i.h.bf16 %v11030_v36  ;;  %v11031_v5 = vunpack.i.l.bf16 %v11030_v36  ;;  %10364 = vmatpush3.bf16.msra.mxu0 %v11983_v2  ;;  %9916 = vmatpush3.bf16.msra.mxu1 %v11985_v55  ;;  %v11988_v44 = vld [vmem:[%s16642_s3 + $0x320] sm:$0xff]  }
 0x762   : > { %v3104_v57 = vpop.permute.xlu0 %3103  ;;  %v3319_v10 = vpack.c.bf16 %v3286_v41, %v3285_v17  ;;  %3530 = vmatprep.mubr.bf16.mxu1 %v3320_v43  ;;  %9917 = vmatprep.subr.bf16.mxu1 %v11986_v21  ;;  %v11989_v37 = vld [vmem:[%s16642_s3 + $0x2e0] sm:$0xff]  }
 0x763   : > { %v3273_v39 = vsel %vm689_vm5, %v13841_v24, %v3104_v57  ;;  %v13989_v54 = vld [vmem:[%s16643_s4 + $0x4] ss:$0 sm:$0xff] }
 0x764   : > { %3531 = vmatmul.mubr.bf16.gmra.mrb[56].mxu1 %v3319_v10  ;;  %v11035_v27 = vpop.permute.xlu1 %11034  ;;  %v3280_v3 = vsel %vm698_vm6, %v3273_v39, %v11032_v40  ;;  %v13994_v17 = vld [vmem:[%s16644_s5 + $0x4] ss:$0 sm:$0xff] }
 0x765   : > { %v11037_v58 = vunpack.i.h.bf16 %v11035_v27  ;;  %v11036_v45 = vunpack.i.l.bf16 %v11035_v27  ;;  %9918 = vmatpush3.bf16.msra.mxu1 %v11987_v31 }
 0x766   : > { %v11040_v62 = vpop.permute.xlu0 %11039  ;;  %9919 = vmatprep.subr.bf16.mxu1 %v11988_v44 }
 0x767   : > { %v11042_v16 = vunpack.i.h.bf16 %v11040_v62  ;;  %v11041_v1 = vunpack.i.l.bf16 %v11040_v62  ;;  %v3272_v59 = vsel %vm689_vm5, %v13802_v52, %v11037_v58  ;;  %v3296_v34 = vsel %vm689_vm5, %v13880_v26, %v11036_v45 }
 0x768   : > { %v3170_v53 = vpop.permute.xlu1 %3169  ;;  %v3279_v49 = vsel %vm698_vm6, %v3272_v59, %v11031_v5  ;;  %v3304_v24 = vsel %vm698_vm6, %v3296_v34, %v12635_v12 }
 0x769   : > { %v3311_v11 = vsel %vm707_vm7, %v3303_v47, %v11041_v1  ;;  %v3287_v8 = vsel %vm707_vm7, %v3279_v49, %v11042_v16  ;;  %v3288_v46 = vsel %vm707_vm7, %v3280_v3, %v3170_v53  ;;  %v3312_v52 = vsel %vm707_vm7, %v3304_v24, %v12645_v30  ;;  %9920 = vmatpush3.bf16.msra.mxu1 %v11989_v37  ;;  %v11991_v53 = vld [vmem:[%s16642_s3 + $0x2e8] sm:$0xff]   ;;  %v11992_v49 = vld [vmem:[%s16642_s3 + $0x330] sm:$0xff]  }
 0x76a   : > { %v3322_v26 = vpack.c.bf16 %v3288_v46, %v3287_v8  ;;  %v3323_v7 = vpack.c.bf16 %v3312_v52, %v3311_v11  ;;  %9921 = vmatprep.subr.bf16.mxu1 %v11990_v32 }
 0x76c   : > { %3538 = vmatprep.mubr.bf16.mxu1 %v3323_v7 }
 0x76d   : > { %3539 = vmatmul.mubr.bf16.gmra.mrb[60].mxu1 %v3322_v26  ;;  %v11993_v26 = vld [vmem:[%s16642_s3 + $0x2f0] sm:$0xff]  }
 0x76e   : > { %9922 = vmatpush3.bf16.msra.mxu1 %v11991_v53 }
 0x76f   : > { %9923 = vmatprep.subr.bf16.mxu1 %v11992_v49 }
 0x772   : > { %9924 = vmatpush3.bf16.msra.mxu1 %v11993_v26 }
 0x7ad   : > { %v10355_v35 = vpop.f32.mrb[56].mxu0 }
 0x7ae   : > { %v3581_v29 = vpop.f32.mrb[57].mxu0 }
 0x7af   : > { %v10356_v15 = vpop.f32.mrb[58].mxu0 }
 0x7b0   : > { %v3584_v42 = vpop.f32.mrb[59].mxu0 }
 0x7ba   : > { %v13954_v0 = vpop.f32.mrb[60].mxu0 }
 0x7bb   : > { %v13956_v60 = vpop.f32.mrb[61].mxu0 }
 0x7bc   : > { %v13958_v48 = vpop.f32.mrb[62].mxu0 }
 0x7bd   : > { %v13960_v19 = vpop.f32.mrb[63].mxu0 }
 0x823   : > { %v9885_v63 = vpop.f32.mrb[48].mxu1 }
 0x824   : > { %v9886_v56 = vpop.f32.mrb[49].mxu1 }
 0x825   : > { %v9887_v9 = vadd.f32 %v9886_v56, %v9885_v63  ;;  %v9888_v6 = vpop.f32.mrb[50].mxu1 }
 0x826   : > { %v9889_v14 = vpop.f32.mrb[51].mxu1 }
 0x827   : > { %v3582_v36 = vadd.f32 %v9887_v9, %v3581_v29  ;;  %v9890_v43 = vadd.f32 %v9889_v14, %v9888_v6  ;;  %v11995_v9 = vld [vmem:[%s16642_s3 + $0x2f8] sm:$0xff]  }
 0x829   : > { %v3620_v41 = vmul.f32 %v13989_v54, %v3582_v36  ;;  %v3585_v57 = vadd.f32 %v9890_v43, %v3584_v42  ;;  %v11994_v42 = vld [vmem:[%s16642_s3 + $0x338] sm:$0xff]  }
 0x82a   : > { %9925 = vmatprep.subr.bf16.mxu1 %v11994_v42 }
 0x82b   : > { %v3636_v10 = vadd.f32 %v13994_v17, %v3620_v41  ;;  %v3621_v18 = vmul.f32 %v13989_v54, %v3585_v57  ;;  %v11996_v57 = vld [vmem:[%s16642_s3 + $0x340] sm:$0xff]   ;;  %9926 = vmatpush3.bf16.msra.mxu1 %v11995_v9 }
 0x82c   : > { %v9891_v40 = vpop.f32.mrb[52].mxu1  ;;  %9927 = vmatprep.subr.bf16.mxu1 %v11996_v57 }
 0x82d   : > { %v9892_v27 = vpop.f32.mrb[53].mxu1  ;;  %vm3644_vm14 = vcmp.gt.f32.partialorder %v3636_v10, 0.0  ;;  %v3652_v39 = vmul.f32 0.2, %v3636_v10  ;;  %v3637_v58 = vadd.f32 %v13994_v17, %v3621_v18 }
 0x82e   : > { %v9893_v45 = vadd.f32 %v9892_v27, %v9891_v40  ;;  %v9894_v62 = vpop.f32.mrb[54].mxu1 }
 0x82f   : > { %v9895_v5 = vpop.f32.mrb[55].mxu1  ;;  %v3660_v16 = vsel %vm3644_vm14, %v3636_v10, %v3652_v39  ;;  %vm3645_vm15 = vcmp.gt.f32.partialorder %v3637_v58, 0.0  ;;  %v3653_v1 = vmul.f32 0.2, %v3637_v58 }
 0x830   : > { %v3590_v59 = vadd.f32 %v10355_v35, %v9893_v45  ;;  %v3676_v34 = vrot.slane %v3660_v16, 7  ;;  %v9896_v47 = vadd.f32 %v9895_v5, %v9894_v62 }
 0x831   : > { %v3661_v3 = vsel %vm3645_vm15, %v3637_v58, %v3653_v1 }
 0x832   : > { %v3622_v24 = vmul.f32 %v13989_v54, %v3590_v59  ;;  %v14011_v11 = vsel %vm437_vm3, %v3676_v34, 0.0  ;;  %v3677_v8 = vrot.slane %v3661_v3, 7  ;;  %v3593_v46 = vadd.f32 %v10356_v15, %v9896_v47 }
 0x833   : > { %v14014_v52 = vsel %vm437_vm3, 0.0, %v3676_v34  ;;  %v3765_v29 = vrot.slane %v14011_v11, 2  ;;  %v3723_v41 = vrot.slane %v14011_v11, 1  ;;  %v11997_v11 = vld [vmem:[%s16642_s3 + $0x300] sm:$0xff]  }
 0x834   : > { %v3638_v7 = vadd.f32 %v13994_v17, %v3622_v24  ;;  %v3764_v35 = vrot.slane %v14014_v52, 2  ;;  %v14026_v15 = vsel %vm437_vm3, 0.0, %v3677_v8  ;;  %v3701_v61 = vsel %vm437_vm3, %v3677_v8, 0.0  ;;  %9928 = vmatpush3.bf16.msra.mxu1 %v11997_v11 }
 0x835   : > { %v3623_v2 = vmul.f32 %v13989_v54, %v3593_v46  ;;  %v11043_v21 = vpack.i.bf16 %v14026_v15, %v14014_v52  ;;  %v3767_v37 = vrot.slane %v14026_v15, 2  ;;  %v3768_v63 = vrot.slane %v3701_v61, 2 }
 0x836   : > { %vm3646_vm0 = vcmp.gt.f32.partialorder %v3638_v7, 0.0  ;;  %v3654_v20 = vmul.f32 0.2, %v3638_v7  ;;  %v3722_v56 = vrot.slane %v14014_v52, 1  ;;  %v3766_v43 = vsel %vm339_vm1, %v3764_v35, %v3765_v29 }
 0x837   : > { %v9897_v55 = vpop.f32.mrb[56].mxu1  ;;  %v3639_v31 = vadd.f32 %v13994_v17, %v3623_v2  ;;  %11044 = vrot.lane.b32.xlu1 %v11043_v21, %s12192_s9  ;;  %v14045_v27 = vsel %vm339_vm1, %v3767_v37, %v3768_v63  ;;  %v3725_v45 = vrot.slane %v14026_v15, 1  ;;  %v3726_v1 = vrot.slane %v3701_v61, 1  ;;  %v11998_v21 = vld [vmem:[%s16642_s3 + $0x348] sm:$0xff]  }
 0x838   : > { %v9898_v44 = vpop.f32.mrb[57].mxu1  ;;  %v3662_v6 = vsel %vm3646_vm0, %v3638_v7, %v3654_v20  ;;  %v11048_v58 = vpack.i.bf16 %v14045_v27, %v3766_v43  ;;  %9929 = vmatprep.subr.bf16.mxu1 %v11998_v21 }
 0x839   : > { %v9899_v14 = vadd.f32 %v9898_v44, %v9897_v55  ;;  %v9900_v36 = vpop.f32.mrb[58].mxu1  ;;  %v3678_v10 = vrot.slane %v3662_v6, 7  ;;  %vm3647_vm2 = vcmp.gt.f32.partialorder %v3639_v31, 0.0  ;;  %v3655_v18 = vmul.f32 0.2, %v3639_v31 }
 0x83a   : > { %v9901_v40 = vpop.f32.mrb[59].mxu1  ;;  %11049 = vrot.lane.b32.xlu0 %v11048_v58, %s12193_s14  ;;  %v14077_v29 = vsel %vm472_vm4, %v3725_v45, %v3726_v1 }
 0x83b   : > { %v3598_v32 = vadd.f32 %v9899_v14, %v13956_v60  ;;  %v9902_v39 = vadd.f32 %v9901_v40, %v9900_v36  ;;  %v14051_v62 = vsel %vm437_vm3, 0.0, %v3678_v10  ;;  %v3702_v5 = vsel %vm437_vm3, %v3678_v10, 0.0 }
 0x83c   : > { %v3663_v16 = vsel %vm3647_vm2, %v3639_v31, %v3655_v18  ;;  %v11053_v60 = vpack.i.bf16 %v14051_v62, %v14026_v15  ;;  %v3770_v53 = vrot.slane %v14051_v62, 2  ;;  %v3771_v49 = vrot.slane %v3702_v5, 2  ;;  %v11999_v31 = vld [vmem:[%s16642_s3 + $0x308] sm:$0xff]  }
 0x83d   : > { %v3679_v59 = vrot.slane %v3663_v16, 7  ;;  %v3624_v34 = vmul.f32 %v13989_v54, %v3598_v32  ;;  %v3601_v47 = vadd.f32 %v9902_v39, %v13960_v19  ;;  %v3728_v3 = vrot.slane %v14051_v62, 1  ;;  %9930 = vmatpush3.bf16.msra.mxu1 %v11999_v31 }
 0x83e   : > { %v3729_v24 = vrot.slane %v3702_v5, 1  ;;  %v14074_v35 = vsel %vm339_vm1, %v3770_v53, %v3771_v49  ;;  %11054 = vrot.lane.b32.xlu0 %v11053_v60, %s12194_s15  ;;  %v14106_v32 = vsel %vm472_vm4, %v3722_v56, %v3723_v41 }
 0x83f   : > { %v14065_v8 = vsel %vm437_vm3, 0.0, %v3679_v59  ;;  %v14068_v19 = vsel %vm437_vm3, %v3679_v59, 0.0  ;;  %v3640_v46 = vadd.f32 %v13994_v17, %v3624_v34  ;;  %v3625_v26 = vmul.f32 %v13989_v54, %v3601_v47 }
 0x840   : > { %v11058_v7 = vpack.i.bf16 %v14065_v8, %v3766_v43  ;;  %v14080_v42 = vsel %vm472_vm4, %v3728_v3, %v3729_v24  ;;  %v9903_v20 = vpop.f32.mrb[60].mxu1  ;;  %v3967_v55 = vpack.c.bf16 %v14074_v35, %v14045_v27  ;;  %v3773_v63 = vrot.slane %v14065_v8, 2 }
 0x841   : > { %vm3648_vm8 = vcmp.gt.f32.partialorder %v3640_v46, 0.0  ;;  %v3656_v61 = vmul.f32 0.2, %v3640_v46  ;;  %v3641_v2 = vadd.f32 %v13994_v17, %v3625_v26  ;;  %v9904_v44 = vpop.f32.mrb[61].mxu1  ;;  %v11073_v37 = vpack.i.bf16 %v14080_v42, %v14077_v29 }
 0x842   : > { %11059 = vrot.lane.b32.xlu1 %v11058_v7, %s12194_s15  ;;  %v3774_v9 = vrot.slane %v14068_v19, 2  ;;  %v9905_v36 = vadd.f32 %v9904_v44, %v9903_v20  ;;  %10365 = vmatprep.mubr.msk.bf16.mxu0 %vm689_vm5, %v3967_v55  ;;  %v9906_v43 = vpop.f32.mrb[62].mxu1  ;;  %v11063_v18 = vpack.i.bf16 %v14065_v8, %v14051_v62  ;;  %v11068_v5 = vpack.i.bf16 %v14074_v35, %v14106_v32 }
 0x843   : > { %v3664_v6 = vsel %vm3648_vm8, %v3640_v46, %v3656_v61  ;;  %vm3649_vm9 = vcmp.gt.f32.partialorder %v3641_v2, 0.0  ;;  %v3657_v14 = vmul.f32 0.2, %v3641_v2  ;;  %v9907_v10 = vpop.f32.mrb[63].mxu1  ;;  %11074 = vrot.lane.b32.xlu0 %v11073_v37, %s12192_s9  ;;  %v3731_v49 = vrot.slane %v14065_v8, 1 }
 0x844   : > { %v3680_v57 = vrot.slane %v3664_v6, 7  ;;  %v14101_v40 = vsel %vm339_vm1, %v3773_v63, %v3774_v9  ;;  %v3606_v58 = vadd.f32 %v13954_v0, %v9905_v36  ;;  %v9908_v45 = vadd.f32 %v9907_v10, %v9906_v43 }
 0x845   : > { %v3665_v39 = vsel %vm3649_vm9, %v3641_v2, %v3657_v14  ;;  %v11078_v56 = vpack.i.bf16 %v14077_v29, %v14101_v40 }
 0x846   : > { %v14113_v16 = vsel %vm437_vm3, 0.0, %v3680_v57  ;;  %v3704_v1 = vsel %vm437_vm3, %v3680_v57, 0.0  ;;  %v3681_v59 = vrot.slane %v3665_v39, 7  ;;  %11064 = vrot.lane.b32.xlu1 %v11063_v18, %s12192_s9  ;;  %v3626_v0 = vmul.f32 %v13989_v54, %v3606_v58 }
 0x847   : > { %v3777_v41 = vrot.slane %v3704_v1, 2  ;;  %v3609_v34 = vadd.f32 %v13958_v48, %v9908_v45  ;;  %v3776_v47 = vrot.slane %v14113_v16, 2  ;;  %v3734_v3 = vrot.slane %v14113_v16, 1  ;;  %11079 = vrot.lane.b32.xlu0 %v11078_v56, %s12193_s14 }
 0x848   : > { %v14123_v60 = vsel %vm437_vm3, 0.0, %v3681_v59  ;;  %v14126_v53 = vsel %vm437_vm3, %v3681_v59, 0.0  ;;  %v3642_v24 = vadd.f32 %v13994_v17, %v3626_v0  ;;  %v3732_v48 = vrot.slane %v14068_v19, 1 }
 0x849   : > { %v3627_v11 = vmul.f32 %v13989_v54, %v3609_v34  ;;  %v3778_v46 = vsel %vm339_vm1, %v3776_v47, %v3777_v41  ;;  %v11083_v7 = vpack.i.bf16 %v14045_v27, %v14113_v16  ;;  %v3735_v61 = vrot.slane %v3704_v1, 1 }
 0x84a   : > { %v3970_v26 = vpack.c.bf16 %v3778_v46, %v14101_v40  ;;  %11069 = vrot.lane.b32.xlu1 %v11068_v5, %s12193_s14  ;;  %v3779_v2 = vrot.slane %v14123_v60, 2  ;;  %vm3650_vm10 = vcmp.gt.f32.partialorder %v3642_v24, 0.0  ;;  %v3658_v20 = vmul.f32 0.2, %v3642_v24 }
 0x84b   : > { %v3643_v54 = vadd.f32 %v13994_v17, %v3627_v11  ;;  %v3780_v55 = vrot.slane %v14126_v53, 2  ;;  %v11088_v19 = vpack.i.bf16 %v14123_v60, %v14074_v35  ;;  %v14146_v21 = vsel %vm472_vm4, %v3734_v3, %v3735_v61  ;;  %11084 = vrot.lane.b32.xlu0 %v11083_v7, %s12194_s15 }
 0x84c   : > { %10366 = vmatmul.mubr.msk.bf16.vlgmr.msra.gmra.mrb[64].mxu0 %vm689_vm5, %v3970_v26  ;;  %v3666_v31 = vsel %vm3650_vm10, %v3642_v24, %v3658_v20  ;;  %v14151_v17 = vsel %vm472_vm4, %v3731_v49, %v3732_v48  ;;  %v11093_v36 = vpack.i.bf16 %v3778_v46, %v14080_v42  ;;  %v3737_v49 = vrot.slane %v14123_v60, 1 }
 0x84d   : > { %vm3651_vm11 = vcmp.gt.f32.partialorder %v3643_v54, 0.0  ;;  %v3659_v27 = vmul.f32 0.2, %v3643_v54  ;;  %v3682_v44 = vrot.slane %v3666_v31, 7  ;;  %v11098_v63 = vpack.i.bf16 %v14146_v21, %v14151_v17 }
 0x84e   : > { %11089 = vrot.lane.b32.xlu1 %v11088_v19, %s12194_s15  ;;  %v3781_v35 = vsel %vm339_vm1, %v3779_v2, %v3780_v55  ;;  %v3738_v3 = vrot.slane %v14126_v53, 1 }
 0x84f   : > { %v3667_v37 = vsel %vm3651_vm11, %v3643_v54, %v3659_v27  ;;  %v14157_v9 = vsel %vm437_vm3, 0.0, %v3682_v44  ;;  %v3706_v6 = vsel %vm437_vm3, %v3682_v44, 0.0  ;;  %11099 = vrot.lane.b32.xlu0 %v11098_v63, %s12192_s9  ;;  %v11103_v18 = vpack.i.bf16 %v14151_v17, %v3781_v35 }
 0x850   : > { %v3683_v14 = vrot.slane %v3667_v37, 7  ;;  %v3782_v43 = vrot.slane %v14157_v9, 2  ;;  %v3783_v57 = vrot.slane %v3706_v6, 2  ;;  %v3740_v56 = vrot.slane %v14157_v9, 1 }
 0x851   : > { %v3741_v41 = vrot.slane %v3706_v6, 1  ;;  %v11108_v24 = vpack.i.bf16 %v14101_v40, %v14157_v9  ;;  %v14186_v48 = vsel %vm472_vm4, %v3737_v49, %v3738_v3  ;;  %v11123_v40 = vpack.i.bf16 %v14123_v60, %v14113_v16 }
 0x852   : > { %v3707_v10 = vsel %vm437_vm3, %v3683_v14, 0.0  ;;  %11094 = vrot.lane.b32.xlu1 %v11093_v36, %s12193_s14  ;;  %v3699_v39 = vsel %vm437_vm3, 0.0, %v3683_v14  ;;  %v3784_v45 = vsel %vm339_vm1, %v3782_v43, %v3783_v57 }
 0x853   : > { %v11113_v58 = vpack.i.bf16 %v3699_v39, %v3778_v46  ;;  %v3843_v5 = vrot.slane %v3699_v39, 2  ;;  %v3844_v1 = vrot.slane %v3707_v10, 2  ;;  %v3973_v59 = vpack.c.bf16 %v3784_v45, %v3781_v35  ;;  %11104 = vrot.lane.b32.xlu0 %v11103_v18, %s12193_s14 }
 0x854   : > { %v11133_v0 = vpack.i.bf16 %v3784_v45, %v3781_v35  ;;  %v11118_v11 = vpack.i.bf16 %v3784_v45, %v14146_v21  ;;  %v14181_v46 = vsel %vm472_vm4, %v3740_v56, %v3741_v41  ;;  %v3832_v26 = vrot.slane %v3699_v39, 1 }
 0x855   : > { %v3845_v34 = vsel %vm339_vm1, %v3843_v5, %v3844_v1  ;;  %10369 = vmatprep.mubr.msk.bf16.mxu0 %vm689_vm5, %v3973_v59  ;;  %v11128_v53 = vpack.i.bf16 %v14181_v46, %v14186_v48  ;;  %v3833_v7 = vrot.slane %v3707_v10, 1 }
 0x856   : > { %11114 = vrot.lane.b32.xlu1 %v11113_v58, %s12194_s15  ;;  %v3976_v47 = vpack.c.bf16 %v12381_v51, %v3845_v34  ;;  %v11138_v2 = vpack.i.bf16 %v14186_v48, %v3845_v34 }
 0x857   : > { %11109 = vrot.lane.b32.xlu0 %v11108_v24, %s12194_s15  ;;  %v14196_v61 = vsel %vm472_vm4, %v3832_v26, %v3833_v7 }
 0x858   : > { %10370 = vmatmul.mubr.msk.bf16.gmra.mrb[68].mxu0 %vm689_vm5, %v3976_v47  ;;  %v11143_v20 = vpack.i.bf16 %v14157_v9, %v14196_v61 }
 0x85a   : > { %11119 = vrot.lane.b32.xlu1 %v11118_v11, %s12193_s14 }
 0x85b   : > { %11129 = vrot.lane.b32.xlu0 %v11128_v53, %s12192_s9 }
 0x85e   : > { %11124 = vrot.lane.b32.xlu1 %v11123_v40, %s12192_s9 }
 0x85f   : > { %11134 = vrot.lane.b32.xlu0 %v11133_v0, %s12194_s15 }
 0x862   : > { %3755 = vrot.lane.b32.xlu1 %v14181_v46, %s12193_s14 }
 0x863   : > { %11139 = vrot.lane.b32.xlu0 %v11138_v2, %s12193_s14 }
 0x866   : > { %11144 = vrot.lane.b32.xlu1 %v11143_v20, %s12192_s9 }
 0x867   : > { %3821 = vrot.lane.b32.xlu0 %v3699_v39, %s12192_s9 }
 0x8a9   : > { %v11045_v55 = vpop.permute.xlu1 %11044 }
 0x8aa   : > { %v11046_v59 = vunpack.i.l.bf16 %v11045_v55 }
 0x8ac   : > { %v11050_v54 = vpop.permute.xlu0 %11049  ;;  %v3933_v24 = vsel %vm707_vm7, %v12587_v13, %v11046_v59 }
 0x8ad   : > { %v11052_v31 = vunpack.i.h.bf16 %v11050_v54  ;;  %v11051_v27 = vunpack.i.l.bf16 %v11050_v54 }
 0x8af   : > { %v3942_v6 = vsel %vm689_vm5, %v14077_v29, %v11052_v31  ;;  %v3941_v14 = vsel %vm689_vm5, %v14106_v32, %v11051_v27  ;;  %v11047_v32 = vunpack.i.h.bf16 %v11045_v55 }
 0x8b0   : > { %v11055_v19 = vpop.permute.xlu0 %11054 }
 0x8b1   : > { %v11057_v37 = vunpack.i.h.bf16 %v11055_v19  ;;  %v11056_v63 = vunpack.i.l.bf16 %v11055_v19 }
 0x8b3   : > { %v3949_v10 = vsel %vm698_vm6, %v3941_v14, %v11056_v63  ;;  %v3950_v18 = vsel %vm698_vm6, %v3942_v6, %v11057_v37 }
 0x8b4   : > { %v11060_v44 = vpop.permute.xlu1 %11059 }
 0x8b5   : > { %v11075_v35 = vpop.permute.xlu0 %11074  ;;  %v11061_v29 = vunpack.i.l.bf16 %v11060_v44  ;;  %v11062_v20 = vunpack.i.h.bf16 %v11060_v44 }
 0x8b6   : > { %v11077_v36 = vunpack.i.h.bf16 %v11075_v35  ;;  %v11076_v43 = vunpack.i.l.bf16 %v11075_v35 }
 0x8b8   : > { %v11065_v57 = vpop.permute.xlu1 %11064  ;;  %v3957_v39 = vsel %vm707_vm7, %v3949_v10, %v11076_v43  ;;  %v3958_v58 = vsel %vm707_vm7, %v3950_v18, %v11077_v36 }
 0x8b9   : > { %v11080_v45 = vpop.permute.xlu0 %11079  ;;  %v3966_v5 = vpack.c.bf16 %v3958_v58, %v3957_v39  ;;  %v11066_v36 = vunpack.i.l.bf16 %v11065_v57 }
 0x8ba   : > { %v11081_v47 = vunpack.i.l.bf16 %v11080_v45  ;;  %v11082_v11 = vunpack.i.h.bf16 %v11080_v45 }
 0x8bb   : > { %4166 = vmatprep.mubr.bf16.mxu1 %v3966_v5 }
 0x8bc   : > { %v11070_v1 = vpop.permute.xlu1 %11069  ;;  %v3920_v27 = vsel %vm689_vm5, %v14026_v15, %v11082_v11 }
 0x8bd   : > { %v11071_v56 = vunpack.i.l.bf16 %v11070_v1  ;;  %v11072_v41 = vunpack.i.h.bf16 %v11070_v1  ;;  %v11085_v34 = vpop.permute.xlu0 %11084 }
 0x8be   : > { %v11086_v40 = vunpack.i.l.bf16 %v11085_v34  ;;  %v11087_v7 = vunpack.i.h.bf16 %v11085_v34 }
 0x8bf   : > { %v3919_v0 = vsel %vm689_vm5, %v14014_v52, %v11071_v56  ;;  %v3943_v26 = vsel %vm689_vm5, %v14080_v42, %v11072_v41  ;;  %v3944_v52 = vsel %vm689_vm5, %v14151_v17, %v11081_v47  ;;  %v11067_v17 = vunpack.i.h.bf16 %v11065_v57 }
 0x8c0   : > { %v3926_v49 = vsel %vm698_vm6, %v3919_v0, %v11061_v29  ;;  %v11090_v3 = vpop.permute.xlu1 %11089  ;;  %v3951_v63 = vsel %vm698_vm6, %v3943_v26, %v11062_v20  ;;  %v3952_v35 = vsel %vm698_vm6, %v3944_v52, %v11086_v40  ;;  %v3927_v14 = vsel %vm698_vm6, %v3920_v27, %v11087_v7 }
 0x8c1   : > { %v3934_v53 = vsel %vm707_vm7, %v3926_v49, %v11047_v32  ;;  %v11100_v54 = vpop.permute.xlu0 %11099  ;;  %v11091_v42 = vunpack.i.l.bf16 %v11090_v3  ;;  %v3935_v45 = vsel %vm707_vm7, %v3927_v14, %v11066_v36 }
 0x8c2   : > { %v3965_v2 = vpack.c.bf16 %v3934_v53, %v3933_v24  ;;  %v11102_v55 = vunpack.i.h.bf16 %v11100_v54  ;;  %v11101_v19 = vunpack.i.l.bf16 %v11100_v54 }
 0x8c4   : > { %v11095_v31 = vpop.permute.xlu1 %11094  ;;  %4167 = vmatmul.mubr.bf16.vlgmr.msra.gmra.mrb[64].mxu1 %v3965_v2  ;;  %v3959_v6 = vsel %vm707_vm7, %v3951_v63, %v11101_v19  ;;  %v3960_v44 = vsel %vm707_vm7, %v3952_v35, %v11102_v55 }
 0x8c5   : > { %v11096_v37 = vunpack.i.l.bf16 %v11095_v31  ;;  %v11105_v10 = vpop.permute.xlu0 %11104  ;;  %v3969_v18 = vpack.c.bf16 %v3960_v44, %v3959_v6  ;;  %v11097_v15 = vunpack.i.h.bf16 %v11095_v31 }
 0x8c6   : > { %v11106_v57 = vunpack.i.l.bf16 %v11105_v10  ;;  %v11107_v41 = vunpack.i.h.bf16 %v11105_v10 }
 0x8c7   : > { %v3921_v43 = vsel %vm689_vm5, %v14051_v62, %v11096_v37  ;;  %4174 = vmatprep.mubr.bf16.mxu1 %v3969_v18  ;;  %v3945_v56 = vsel %vm689_vm5, %v14146_v21, %v11097_v15  ;;  %v11092_v62 = vunpack.i.h.bf16 %v11090_v3 }
 0x8c8   : > { %v11115_v39 = vpop.permute.xlu1 %11114  ;;  %v3928_v58 = vsel %vm698_vm6, %v3921_v43, %v11091_v42  ;;  %v3946_v11 = vsel %vm689_vm5, %v14186_v48, %v11106_v57  ;;  %v3922_v3 = vsel %vm689_vm5, %v14065_v8, %v11107_v41 }
 0x8c9   : > { %v3936_v5 = vsel %vm707_vm7, %v3928_v58, %v11067_v17  ;;  %v11110_v59 = vpop.permute.xlu0 %11109  ;;  %v3953_v24 = vsel %vm698_vm6, %v3945_v56, %v11092_v62  ;;  %v11116_v53 = vunpack.i.l.bf16 %v11115_v39  ;;  %v11117_v44 = vunpack.i.h.bf16 %v11115_v39 }
 0x8ca   : > { %v3968_v1 = vpack.c.bf16 %v3936_v5, %v3935_v45  ;;  %v11111_v32 = vunpack.i.l.bf16 %v11110_v59  ;;  %v11112_v34 = vunpack.i.h.bf16 %v11110_v59 }
 0x8cc   : > { %v11120_v29 = vpop.permute.xlu1 %11119  ;;  %4175 = vmatmul.mubr.bf16.gmra.mrb[68].mxu1 %v3968_v1  ;;  %v3954_v20 = vsel %vm698_vm6, %v3946_v11, %v11111_v32  ;;  %v3929_v52 = vsel %vm698_vm6, %v3922_v3, %v11112_v34  ;;  %v12000_v11 = vld [vmem:[%s16642_s3 + $0x3e0] sm:$0xff]   ;;  %v12005_v3 = vld [vmem:[%s16642_s3 + $0x368] sm:$0xff]  }
 0x8cd   : > { %v11121_v0 = vunpack.i.l.bf16 %v11120_v29  ;;  %v11130_v49 = vpop.permute.xlu0 %11129  ;;  %v11122_v48 = vunpack.i.h.bf16 %v11120_v29  ;;  %10373 = vmatprep.subr.bf16.mxu1 %v12000_v11 }
 0x8ce   : > { %v11132_v40 = vunpack.i.h.bf16 %v11130_v49  ;;  %v11131_v21 = vunpack.i.l.bf16 %v11130_v49  ;;  %10374 = vmatpush3.bf16.msra.mxu1 %v12000_v11 }
 0x8cf   : > { %v3923_v47 = vsel %vm689_vm5, %v14113_v16, %v11121_v0  ;;  %v3947_v35 = vsel %vm689_vm5, %v14181_v46, %v11122_v48 }
 0x8d0   : > { %v11125_v26 = vpop.permute.xlu1 %11124  ;;  %v3961_v54 = vsel %vm707_vm7, %v3953_v24, %v11131_v21  ;;  %v3962_v16 = vsel %vm707_vm7, %v3954_v20, %v11132_v40  ;;  %v3930_v55 = vsel %vm698_vm6, %v3923_v47, %v11116_v53  ;;  %v3955_v46 = vsel %vm698_vm6, %v3947_v35, %v11117_v44  ;;  %v12001_v53 = vld [vmem:[%s16642_s3 + $0x3e8] sm:$0xff]   ;;  %v12002_v40 = vld [vmem:[%s16642_s3 + $0x3a0] sm:$0xff]  }
 0x8d1   : > { %v11127_v7 = vunpack.i.h.bf16 %v11125_v26  ;;  %v11126_v2 = vunpack.i.l.bf16 %v11125_v26  ;;  %v11135_v19 = vpop.permute.xlu0 %11134  ;;  %v3972_v31 = vpack.c.bf16 %v3962_v16, %v3961_v54  ;;  %10375 = vmatprep.subr.bf16.mxu1 %v12001_v53  ;;  %v12003_v21 = vld [vmem:[%s16642_s3 + $0x360] sm:$0xff]   ;;  %v12004_v26 = vld [vmem:[%s16642_s3 + $0x3a8] sm:$0xff]   ;;  %9961 = vmatprep.subr.bf16.mxu0 %v12002_v40 }
 0x8d2   : > { %v11137_v42 = vunpack.i.h.bf16 %v11135_v19  ;;  %v11136_v10 = vunpack.i.l.bf16 %v11135_v19  ;;  %10376 = vmatpush3.bf16.msra.mxu1 %v12001_v53  ;;  %9962 = vmatpush3.bf16.msra.mxu0 %v12003_v21  ;;  %v12012_v21 = vld [vmem:[%s16642_s3 + $0x3c8] sm:$0xff]  }
 0x8d3   : > { %v3937_v27 = vsel %vm707_vm7, %v3929_v52, %v11126_v2  ;;  %v3938_v37 = vsel %vm707_vm7, %v3930_v55, %v11127_v7  ;;  %4182 = vmatprep.mubr.bf16.mxu1 %v3972_v31  ;;  %9963 = vmatprep.subr.bf16.mxu0 %v12004_v26  ;;  %v12006_v7 = vld [vmem:[%s16642_s3 + $0x3b0] sm:$0xff]   ;;  %v14302_v52 = vld [vmem:[%s16643_s4 + $0x5] ss:$0 sm:$0xff] }
 0x8d4   : > { %v3756_v8 = vpop.permute.xlu1 %3755  ;;  %v3971_v63 = vpack.c.bf16 %v3938_v37, %v3937_v27  ;;  %v14307_v31 = vld [vmem:[%s16644_s5 + $0x5] ss:$0 sm:$0xff] }
 0x8d5   : > { %v11140_v6 = vpop.permute.xlu0 %11139  ;;  %v3925_v14 = vsel %vm689_vm5, %v14157_v9, %v3756_v8 }
 0x8d6   : > { %4183 = vmatmul.mubr.bf16.gmra.mrb[72].mxu1 %v3971_v63  ;;  %v11142_v17 = vunpack.i.h.bf16 %v11140_v6  ;;  %v11141_v36 = vunpack.i.l.bf16 %v11140_v6  ;;  %v3932_v1 = vsel %vm698_vm6, %v3925_v14, %v11137_v42  ;;  %9964 = vmatpush3.bf16.msra.mxu0 %v12005_v3  ;;  %v12007_v42 = vld [vmem:[%s16642_s3 + $0x370] sm:$0xff]  }
 0x8d7   : > { %9965 = vmatprep.subr.bf16.mxu0 %v12006_v7 }
 0x8d8   : > { %v11145_v43 = vpop.permute.xlu1 %11144  ;;  %v3924_v58 = vsel %vm689_vm5, %v14123_v60, %v11142_v17  ;;  %v3948_v45 = vsel %vm689_vm5, %v14196_v61, %v11141_v36 }
 0x8d9   : > { %v11147_v18 = vunpack.i.h.bf16 %v11145_v43  ;;  %v11146_v15 = vunpack.i.l.bf16 %v11145_v43  ;;  %v3822_v5 = vpop.permute.xlu0 %3821  ;;  %v3931_v39 = vsel %vm698_vm6, %v3924_v58, %v11136_v10  ;;  %v3956_v9 = vsel %vm698_vm6, %v3948_v45, %v12635_v12  ;;  %v12008_v45 = vld [vmem:[%s16642_s3 + $0x3b8] sm:$0xff]  }
 0x8da   : > { %v3940_v57 = vsel %vm707_vm7, %v3932_v1, %v3822_v5  ;;  %v3964_v60 = vsel %vm707_vm7, %v3956_v9, %v12645_v30  ;;  %9966 = vmatpush3.bf16.msra.mxu0 %v12007_v42 }
 0x8db   : > { %v3963_v59 = vsel %vm707_vm7, %v3955_v46, %v11146_v15  ;;  %v3939_v56 = vsel %vm707_vm7, %v3931_v39, %v11147_v18  ;;  %9967 = vmatprep.subr.bf16.mxu0 %v12008_v45 }
 0x8dc   : > { %v3974_v61 = vpack.c.bf16 %v3940_v57, %v3939_v56  ;;  %v3975_v29 = vpack.c.bf16 %v3964_v60, %v3963_v59  ;;  %v12011_v56 = vld [vmem:[%s16642_s3 + $0x380] sm:$0xff]  }
 0x8de   : > { %4190 = vmatprep.mubr.bf16.mxu1 %v3975_v29 }
 0x8df   : > { %4191 = vmatmul.mubr.bf16.gmra.mrb[76].mxu1 %v3974_v61 }
 0x91f   : > { %v10367_v62 = vpop.f32.mrb[64].mxu0 }
 0x920   : > { %v4233_v41 = vpop.f32.mrb[65].mxu0 }
 0x921   : > { %v10368_v32 = vpop.f32.mrb[66].mxu0 }
 0x922   : > { %v4236_v0 = vpop.f32.mrb[67].mxu0 }
 0x92b   : > { %v14270_v34 = vpop.f32.mrb[68].mxu0 }
 0x92c   : > { %v14272_v47 = vpop.f32.mrb[69].mxu0 }
 0x92d   : > { %v14274_v49 = vpop.f32.mrb[70].mxu0 }
 0x92e   : > { %v14276_v24 = vpop.f32.mrb[71].mxu0 }
 0x997   : > { %v9931_v2 = vpop.f32.mrb[64].mxu1 }
 0x998   : > { %v9932_v20 = vpop.f32.mrb[65].mxu1 }
 0x999   : > { %v9933_v54 = vadd.f32 %v9932_v20, %v9931_v2  ;;  %v9934_v16 = vpop.f32.mrb[66].mxu1 }
 0x99a   : > { %v9935_v55 = vpop.f32.mrb[67].mxu1 }
 0x99b   : > { %v4234_v48 = vadd.f32 %v9933_v54, %v4233_v41  ;;  %v9936_v19 = vadd.f32 %v9935_v55, %v9934_v16 }
 0x99d   : > { %v4272_v27 = vmul.f32 %v14302_v52, %v4234_v48  ;;  %v4237_v37 = vadd.f32 %v9936_v19, %v4236_v0 }
 0x99f   : > { %v4288_v8 = vadd.f32 %v14307_v31, %v4272_v27  ;;  %v4273_v63 = vmul.f32 %v14302_v52, %v4237_v37  ;;  %v9937_v35 = vpop.f32.mrb[68].mxu1 }
 0x9a0   : > { %v9938_v6 = vpop.f32.mrb[69].mxu1 }
 0x9a1   : > { %v14316_v44 = vadd.f32 %v4288_v8, %v13663_v23  ;;  %v4289_v14 = vadd.f32 %v14307_v31, %v4273_v63  ;;  %v9939_v17 = vadd.f32 %v9938_v6, %v9937_v35  ;;  %v9940_v36 = vpop.f32.mrb[70].mxu1  ;;  %v12009_v23 = vld [vmem:[%s16642_s3 + $0x378] sm:$0xff]  }
 0x9a2   : > { %v9941_v43 = vpop.f32.mrb[71].mxu1  ;;  %9968 = vmatpush3.bf16.msra.mxu0 %v12009_v23 }
 0x9a3   : > { %v4312_v10 = vrot.slane %v14316_v44, 7  ;;  %v14321_v18 = vadd.f32 %v4289_v14, %v13667_v50  ;;  %v4242_v15 = vadd.f32 %v10367_v62, %v9939_v17  ;;  %v9942_v58 = vadd.f32 %v9941_v43, %v9940_v36  ;;  %v12010_v50 = vld [vmem:[%s16642_s3 + $0x3c0] sm:$0xff]  }
 0x9a4   : > { %9969 = vmatprep.subr.bf16.mxu0 %v12010_v50 }
 0x9a5   : > { %v14330_v46 = vsel %vm437_vm3, %v4312_v10, 0.0  ;;  %v4313_v5 = vrot.slane %v14321_v18, 7  ;;  %v4274_v39 = vmul.f32 %v14302_v52, %v4242_v15  ;;  %v4245_v1 = vadd.f32 %v10368_v32, %v9942_v58 }
 0x9a6   : > { %v14338_v9 = vsel %vm437_vm3, 0.0, %v4312_v10  ;;  %v4401_v59 = vrot.slane %v14330_v46, 2  ;;  %9970 = vmatpush3.bf16.msra.mxu0 %v12011_v56  ;;  %v4359_v23 = vrot.slane %v14330_v46, 1 }
 0x9a7   : > { %v14345_v57 = vsel %vm437_vm3, 0.0, %v4313_v5  ;;  %v4337_v60 = vsel %vm437_vm3, %v4313_v5, 0.0  ;;  %v4290_v61 = vadd.f32 %v14307_v31, %v4274_v39  ;;  %v4275_v29 = vmul.f32 %v14302_v52, %v4245_v1  ;;  %9971 = vmatprep.subr.bf16.mxu0 %v12012_v21 }
 0x9a8   : > { %v4404_v62 = vrot.slane %v4337_v60, 2  ;;  %v11148_v41 = vpack.i.bf16 %v14345_v57, %v14338_v9  ;;  %v4400_v32 = vrot.slane %v14338_v9, 2  ;;  %v4403_v40 = vrot.slane %v14345_v57, 2 }
 0x9a9   : > { %v14354_v0 = vadd.f32 %v4290_v61, %v13702_v22  ;;  %v4291_v11 = vadd.f32 %v14307_v31, %v4275_v29  ;;  %v9943_v53 = vpop.f32.mrb[72].mxu1  ;;  %v12013_v22 = vld [vmem:[%s16642_s3 + $0x388] sm:$0xff]   ;;  %v4362_v55 = vrot.slane %v4337_v60, 1  ;;  %v4361_v27 = vrot.slane %v14345_v57, 1 }
 0x9aa   : > { %v9944_v26 = vpop.f32.mrb[73].mxu1  ;;  %11149 = vrot.lane.b32.xlu0 %v11148_v41, %s12192_s9  ;;  %v4402_v3 = vsel %vm339_vm1, %v4400_v32, %v4401_v59  ;;  %v14371_v16 = vsel %vm339_vm1, %v4403_v40, %v4404_v62  ;;  %9972 = vmatpush3.bf16.msra.mxu0 %v12013_v22  ;;  %v4358_v45 = vrot.slane %v14338_v9, 1  ;;  %v12016_v59 = vld [vmem:[%s16642_s3 + $0x3d8] sm:$0xff]  }
 0x9ab   : > { %v4314_v7 = vrot.slane %v14354_v0, 7  ;;  %v14368_v2 = vadd.f32 %v4291_v11, %v13715_v4  ;;  %v9945_v20 = vadd.f32 %v9944_v26, %v9943_v53  ;;  %v9946_v54 = vpop.f32.mrb[74].mxu1  ;;  %v11153_v19 = vpack.i.bf16 %v14371_v16, %v4402_v3  ;;  %v12017_v32 = vld [vmem:[%s16642_s3 + $0x398] sm:$0xff]  }
 0x9ac   : > { %v9947_v48 = vpop.f32.mrb[75].mxu1  ;;  %v14421_v62 = vsel %vm472_vm4, %v4361_v27, %v4362_v55 }
 0x9ad   : > { %v14376_v37 = vsel %vm437_vm3, 0.0, %v4314_v7  ;;  %v4338_v8 = vsel %vm437_vm3, %v4314_v7, 0.0  ;;  %v4315_v4 = vrot.slane %v14368_v2, 7  ;;  %v4250_v63 = vadd.f32 %v9945_v20, %v14272_v47  ;;  %11154 = vrot.lane.b32.xlu1 %v11153_v19, %s12193_s14  ;;  %v12014_v47 = vld [vmem:[%s16642_s3 + $0x3d0] sm:$0xff]  }
 0x9ae   : > { %v4365_v35 = vrot.slane %v4338_v8, 1  ;;  %v4407_v42 = vrot.slane %v4338_v8, 2  ;;  %v9948_v6 = vadd.f32 %v9947_v48, %v9946_v54  ;;  %v11158_v14 = vpack.i.bf16 %v14376_v37, %v14345_v57  ;;  %9973 = vmatprep.subr.bf16.mxu0 %v12014_v47 }
 0x9af   : > { %v14385_v17 = vsel %vm437_vm3, 0.0, %v4315_v4  ;;  %v14388_v36 = vsel %vm437_vm3, %v4315_v4, 0.0  ;;  %v4276_v43 = vmul.f32 %v14302_v52, %v4250_v63  ;;  %v4406_v10 = vrot.slane %v14376_v37, 2 }
 0x9b0   : > { %v4253_v15 = vadd.f32 %v9948_v6, %v14276_v24  ;;  %v11163_v58 = vpack.i.bf16 %v14385_v17, %v4402_v3  ;;  %v4410_v5 = vrot.slane %v14388_v36, 2  ;;  %v4364_v50 = vrot.slane %v14376_v37, 1  ;;  %v12015_v24 = vld [vmem:[%s16642_s3 + $0x390] sm:$0xff]  }
 0x9b1   : > { %v4292_v39 = vadd.f32 %v14307_v31, %v4276_v43  ;;  %v14402_v1 = vsel %vm339_vm1, %v4406_v10, %v4407_v42  ;;  %11159 = vrot.lane.b32.xlu1 %v11158_v14, %s12194_s15  ;;  %v4409_v60 = vrot.slane %v14385_v17, 2  ;;  %9974 = vmatpush3.bf16.msra.mxu0 %v12015_v24  ;;  %v11168_v40 = vpack.i.bf16 %v14385_v17, %v14376_v37 }
 0x9b2   : > { %v4277_v46 = vmul.f32 %v14302_v52, %v4253_v15  ;;  %11164 = vrot.lane.b32.xlu0 %v11163_v58, %s12194_s15  ;;  %v4603_v56 = vpack.c.bf16 %v14402_v1, %v14371_v16  ;;  %v9949_v29 = vpop.f32.mrb[76].mxu1  ;;  %v14424_v41 = vsel %vm472_vm4, %v4364_v50, %v4365_v35  ;;  %9975 = vmatprep.subr.bf16.mxu0 %v12016_v59  ;;  %v4368_v15 = vrot.slane %v14388_v36, 1 }
 0x9b3   : > { %v14418_v61 = vadd.f32 %v4292_v39, %v13763_v25  ;;  %v9950_v53 = vpop.f32.mrb[77].mxu1  ;;  %v11178_v25 = vpack.i.bf16 %v14424_v41, %v14421_v62  ;;  %v14437_v22 = vsel %vm339_vm1, %v4409_v60, %v4410_v5  ;;  %v14440_v7 = vsel %vm472_vm4, %v4358_v45, %v4359_v23 }
 0x9b4   : > { %v4293_v11 = vadd.f32 %v14307_v31, %v4277_v46  ;;  %10377 = vmatprep.mubr.msk.bf16.mxu1 %vm689_vm5, %v4603_v56  ;;  %v9951_v26 = vadd.f32 %v9950_v53, %v9949_v29  ;;  %v9952_v3 = vpop.f32.mrb[78].mxu1  ;;  %v11173_v55 = vpack.i.bf16 %v14402_v1, %v14440_v7  ;;  %v11183_v35 = vpack.i.bf16 %v14421_v62, %v14437_v22 }
 0x9b5   : > { %v4316_v21 = vrot.slane %v14418_v61, 7  ;;  %11179 = vrot.lane.b32.xlu1 %v11178_v25, %s12192_s9  ;;  %v9953_v54 = vpop.f32.mrb[79].mxu1  ;;  %9976 = vmatpush3.bf16.msra.mxu0 %v12017_v32 }
 0x9b6   : > { %v14443_v20 = vadd.f32 %v4293_v11, %v13783_v33  ;;  %11169 = vrot.lane.b32.xlu0 %v11168_v40, %s12192_s9  ;;  %v4258_v27 = vadd.f32 %v14270_v34, %v9951_v26  ;;  %v9954_v8 = vadd.f32 %v9953_v54, %v9952_v3 }
 0x9b7   : > { %v14450_v48 = vsel %vm437_vm3, 0.0, %v4316_v21  ;;  %v4340_v19 = vsel %vm437_vm3, %v4316_v21, 0.0 }
 0x9b8   : > { %v4413_v4 = vrot.slane %v4340_v19, 2  ;;  %v4317_v33 = vrot.slane %v14443_v20, 7  ;;  %v4412_v63 = vrot.slane %v14450_v48, 2  ;;  %v4371_v42 = vrot.slane %v4340_v19, 1 }
 0x9b9   : > { %v4278_v6 = vmul.f32 %v14302_v52, %v4258_v27  ;;  %v4261_v14 = vadd.f32 %v14274_v49, %v9954_v8  ;;  %v4370_v43 = vrot.slane %v14450_v48, 1  ;;  %11184 = vrot.lane.b32.xlu1 %v11183_v35, %s12193_s14  ;;  %v4367_v49 = vrot.slane %v14385_v17, 1 }
 0x9ba   : > { %v14462_v10 = vsel %vm437_vm3, 0.0, %v4317_v33  ;;  %v4341_v34 = vsel %vm437_vm3, %v4317_v33, 0.0  ;;  %v4414_v47 = vsel %vm339_vm1, %v4412_v63, %v4413_v4  ;;  %11174 = vrot.lane.b32.xlu0 %v11173_v55, %s12193_s14  ;;  %v11188_v39 = vpack.i.bf16 %v14371_v16, %v14450_v48 }
 0x9bb   : > { %v4294_v58 = vadd.f32 %v14307_v31, %v4278_v6  ;;  %v4279_v45 = vmul.f32 %v14302_v52, %v4261_v14  ;;  %v4416_v23 = vrot.slane %v4341_v34, 2  ;;  %v4606_v5 = vpack.c.bf16 %v4414_v47, %v14437_v22 }
 0x9bc   : > { %v11193_v50 = vpack.i.bf16 %v14462_v10, %v14402_v1  ;;  %v14482_v59 = vsel %vm472_vm4, %v4370_v43, %v4371_v42  ;;  %v4415_v52 = vrot.slane %v14462_v10, 2  ;;  %v4374_v4 = vrot.slane %v4341_v34, 1 }
 0x9bd   : > { %v14478_v24 = vadd.f32 %v4294_v58, %v13820_v28  ;;  %v4295_v36 = vadd.f32 %v14307_v31, %v4279_v45  ;;  %10378 = vmatmul.mubr.msk.bf16.vlgmr.msra.gmra.mrb[80].mxu1 %vm689_vm5, %v4606_v5  ;;  %11189 = vrot.lane.b32.xlu1 %v11188_v39, %s12194_s15  ;;  %v14493_v28 = vsel %vm472_vm4, %v4367_v49, %v4368_v15  ;;  %v4373_v63 = vrot.slane %v14462_v10, 1 }
 0x9be   : > { %11194 = vrot.lane.b32.xlu0 %v11193_v50, %s12194_s15  ;;  %v11203_v31 = vpack.i.bf16 %v14482_v59, %v14493_v28  ;;  %v4417_v1 = vsel %vm339_vm1, %v4415_v52, %v4416_v23 }
 0x9bf   : > { %v4318_v46 = vrot.slane %v14478_v24, 7  ;;  %v14489_v16 = vadd.f32 %v4295_v36, %v13835_v38  ;;  %v11198_v38 = vpack.i.bf16 %v4414_v47, %v14424_v41  ;;  %v11208_v25 = vpack.i.bf16 %v14493_v28, %v4417_v1 }
 0x9c0   : > { %v14528_v14 = vsel %vm472_vm4, %v4373_v63, %v4374_v4 }
 0x9c1   : > { %v14499_v56 = vsel %vm437_vm3, 0.0, %v4318_v46  ;;  %v4342_v60 = vsel %vm437_vm3, %v4318_v46, 0.0  ;;  %v4319_v29 = vrot.slane %v14489_v16, 7  ;;  %11204 = vrot.lane.b32.xlu1 %v11203_v31, %s12192_s9 }
 0x9c2   : > { %v4419_v32 = vrot.slane %v4342_v60, 2  ;;  %v4418_v11 = vrot.slane %v14499_v56, 2  ;;  %11199 = vrot.lane.b32.xlu0 %v11198_v38, %s12193_s14  ;;  %v4377_v55 = vrot.slane %v4342_v60, 1  ;;  %v4376_v27 = vrot.slane %v14499_v56, 1 }
 0x9c3   : > { %v4343_v53 = vsel %vm437_vm3, %v4319_v29, 0.0  ;;  %v4335_v40 = vsel %vm437_vm3, 0.0, %v4319_v29  ;;  %v11213_v35 = vpack.i.bf16 %v14437_v22, %v14499_v56  ;;  %v11228_v22 = vpack.i.bf16 %v14462_v10, %v14450_v48 }
 0x9c4   : > { %v11218_v21 = vpack.i.bf16 %v4335_v40, %v4414_v47  ;;  %v4420_v26 = vsel %vm339_vm1, %v4418_v11, %v4419_v32  ;;  %v4479_v3 = vrot.slane %v4335_v40, 2  ;;  %v4480_v54 = vrot.slane %v4343_v53, 2 }
 0x9c5   : > { %v4609_v19 = vpack.c.bf16 %v4420_v26, %v4417_v1  ;;  %11209 = vrot.lane.b32.xlu1 %v11208_v25, %s12193_s14  ;;  %v11223_v42 = vpack.i.bf16 %v4420_v26, %v14482_v59  ;;  %v14523_v6 = vsel %vm472_vm4, %v4376_v27, %v4377_v55  ;;  %v4468_v34 = vrot.slane %v4335_v40, 1 }
 0x9c6   : > { %v4481_v8 = vsel %vm339_vm1, %v4479_v3, %v4480_v54  ;;  %11219 = vrot.lane.b32.xlu0 %v11218_v21, %s12194_s15  ;;  %v11233_v43 = vpack.i.bf16 %v14523_v6, %v14528_v14  ;;  %v4469_v47 = vrot.slane %v4343_v53, 1  ;;  %v11238_v15 = vpack.i.bf16 %v4420_v26, %v4417_v1 }
 0x9c7   : > { %10381 = vmatprep.mubr.msk.bf16.mxu1 %vm689_vm5, %v4609_v19  ;;  %v4612_v33 = vpack.c.bf16 %v12381_v51, %v4481_v8  ;;  %v11243_v45 = vpack.i.bf16 %v14528_v14, %v4481_v8 }
 0x9c8   : > { %v14538_v58 = vsel %vm472_vm4, %v4468_v34, %v4469_v47 }
 0x9c9   : > { %10382 = vmatmul.mubr.msk.bf16.gmra.mrb[84].mxu1 %vm689_vm5, %v4612_v33  ;;  %11214 = vrot.lane.b32.xlu1 %v11213_v35, %s12194_s15  ;;  %v11248_v49 = vpack.i.bf16 %v14499_v56, %v14538_v58 }
 0x9ca   : > { %11224 = vrot.lane.b32.xlu0 %v11223_v42, %s12193_s14 }
 0x9cd   : > { %11234 = vrot.lane.b32.xlu1 %v11233_v43, %s12192_s9 }
 0x9ce   : > { %11229 = vrot.lane.b32.xlu0 %v11228_v22, %s12192_s9 }
 0x9d1   : > { %11239 = vrot.lane.b32.xlu1 %v11238_v15, %s12194_s15 }
 0x9d2   : > { %4391 = vrot.lane.b32.xlu0 %v14523_v6, %s12193_s14 }
 0x9d5   : > { %11244 = vrot.lane.b32.xlu1 %v11243_v45, %s12193_s14 }
 0x9d6   : > { %11249 = vrot.lane.b32.xlu0 %v11248_v49, %s12192_s9 }
 0x9d9   : > { %4457 = vrot.lane.b32.xlu1 %v4335_v40, %s12192_s9 }
 0xa1c   : > { %v11150_v23 = vpop.permute.xlu0 %11149 }
 0xa1d   : > { %v11151_v55 = vunpack.i.l.bf16 %v11150_v23 }
 0xa1f   : > { %v11155_v5 = vpop.permute.xlu1 %11154  ;;  %v4569_v63 = vsel %vm707_vm7, %v12587_v13, %v11151_v55 }
 0xa20   : > { %v11157_v36 = vunpack.i.h.bf16 %v11155_v5  ;;  %v11156_v52 = vunpack.i.l.bf16 %v11155_v5 }
 0xa22   : > { %v4578_v29 = vsel %vm689_vm5, %v14421_v62, %v11157_v36  ;;  %v4577_v38 = vsel %vm689_vm5, %v14440_v7, %v11156_v52  ;;  %v11152_v62 = vunpack.i.h.bf16 %v11150_v23 }
 0xa23   : > { %v11160_v39 = vpop.permute.xlu1 %11159 }
 0xa24   : > { %v11165_v50 = vpop.permute.xlu0 %11164  ;;  %v11162_v46 = vunpack.i.h.bf16 %v11160_v39  ;;  %v11161_v31 = vunpack.i.l.bf16 %v11160_v39 }
 0xa25   : > { %v11166_v27 = vunpack.i.l.bf16 %v11165_v50  ;;  %v11167_v49 = vunpack.i.h.bf16 %v11165_v50 }
 0xa26   : > { %v4585_v53 = vsel %vm698_vm6, %v4577_v38, %v11161_v31  ;;  %v4586_v25 = vsel %vm698_vm6, %v4578_v29, %v11162_v46 }
 0xa27   : > { %v11180_v1 = vpop.permute.xlu1 %11179 }
 0xa28   : > { %v11170_v60 = vpop.permute.xlu0 %11169  ;;  %v11182_v32 = vunpack.i.h.bf16 %v11180_v1  ;;  %v11181_v11 = vunpack.i.l.bf16 %v11180_v1 }
 0xa2a   : > { %v4593_v40 = vsel %vm707_vm7, %v4585_v53, %v11181_v11  ;;  %v4594_v21 = vsel %vm707_vm7, %v4586_v25, %v11182_v32  ;;  %v11172_v32 = vunpack.i.h.bf16 %v11170_v60 }
 0xa2b   : > { %v11185_v26 = vpop.permute.xlu1 %11184  ;;  %v4602_v54 = vpack.c.bf16 %v4594_v21, %v4593_v40 }
 0xa2c   : > { %v11175_v3 = vpop.permute.xlu0 %11174  ;;  %v11186_v35 = vunpack.i.l.bf16 %v11185_v26  ;;  %v11187_v22 = vunpack.i.h.bf16 %v11185_v26 }
 0xa2d   : > { %v11176_v19 = vunpack.i.l.bf16 %v11175_v3  ;;  %4802 = vmatprep.mubr.bf16.mxu0 %v4602_v54  ;;  %v11177_v8 = vunpack.i.h.bf16 %v11175_v3 }
 0xa2e   : > { %v4556_v52 = vsel %vm689_vm5, %v14345_v57, %v11187_v22 }
 0xa2f   : > { %v4555_v7 = vsel %vm689_vm5, %v14338_v9, %v11176_v19  ;;  %v11190_v33 = vpop.permute.xlu1 %11189  ;;  %v4579_v15 = vsel %vm689_vm5, %v14424_v41, %v11177_v8  ;;  %v4580_v9 = vsel %vm689_vm5, %v14493_v28, %v11186_v35  ;;  %v11171_v28 = vunpack.i.l.bf16 %v11170_v60 }
 0xa30   : > { %v4562_v4 = vsel %vm698_vm6, %v4555_v7, %v11166_v27  ;;  %v11195_v43 = vpop.permute.xlu0 %11194  ;;  %v11191_v34 = vunpack.i.l.bf16 %v11190_v33  ;;  %v11192_v45 = vunpack.i.h.bf16 %v11190_v33  ;;  %v4587_v31 = vsel %vm698_vm6, %v4579_v15, %v11167_v49 }
 0xa31   : > { %v4570_v42 = vsel %vm707_vm7, %v4562_v4, %v11152_v62  ;;  %v11196_v29 = vunpack.i.l.bf16 %v11195_v43 }
 0xa32   : > { %v4601_v47 = vpack.c.bf16 %v4570_v42, %v4569_v63  ;;  %v4588_v1 = vsel %vm698_vm6, %v4580_v9, %v11191_v34  ;;  %v4563_v38 = vsel %vm698_vm6, %v4556_v52, %v11192_v45 }
 0xa33   : > { %v11205_v23 = vpop.permute.xlu1 %11204  ;;  %v4571_v26 = vsel %vm707_vm7, %v4563_v38, %v11171_v28 }
 0xa34   : > { %4803 = vmatmul.mubr.bf16.vlgmr.msra.gmra.mrb[72].mxu0 %v4601_v47  ;;  %v11207_v5 = vunpack.i.h.bf16 %v11205_v23  ;;  %v11206_v39 = vunpack.i.l.bf16 %v11205_v23  ;;  %v11200_v36 = vpop.permute.xlu0 %11199 }
 0xa35   : > { %v11201_v46 = vunpack.i.l.bf16 %v11200_v36  ;;  %v11202_v57 = vunpack.i.h.bf16 %v11200_v36 }
 0xa36   : > { %v4595_v41 = vsel %vm707_vm7, %v4587_v31, %v11206_v39  ;;  %v4596_v50 = vsel %vm707_vm7, %v4588_v1, %v11207_v5 }
 0xa37   : > { %v4557_v11 = vsel %vm689_vm5, %v14376_v37, %v11201_v46  ;;  %v11210_v53 = vpop.permute.xlu1 %11209  ;;  %v4605_v25 = vpack.c.bf16 %v4596_v50, %v4595_v41  ;;  %v4581_v19 = vsel %vm689_vm5, %v14482_v59, %v11202_v57  ;;  %v11197_v37 = vunpack.i.h.bf16 %v11195_v43 }
 0xa38   : > { %v11220_v40 = vpop.permute.xlu0 %11219  ;;  %v4564_v21 = vsel %vm698_vm6, %v4557_v11, %v11196_v29  ;;  %v11211_v60 = vunpack.i.l.bf16 %v11210_v53  ;;  %v11212_v62 = vunpack.i.h.bf16 %v11210_v53 }
 0xa39   : > { %4810 = vmatprep.mubr.bf16.mxu0 %v4605_v25  ;;  %v4572_v3 = vsel %vm707_vm7, %v4564_v21, %v11172_v32  ;;  %v4589_v35 = vsel %vm698_vm6, %v4581_v19, %v11197_v37  ;;  %v11221_v22 = vunpack.i.l.bf16 %v11220_v40  ;;  %v11222_v50 = vunpack.i.h.bf16 %v11220_v40 }
 0xa3a   : > { %v4604_v54 = vpack.c.bf16 %v4572_v3, %v4571_v26  ;;  %v4582_v42 = vsel %vm689_vm5, %v14528_v14, %v11211_v60  ;;  %v4558_v43 = vsel %vm689_vm5, %v14385_v17, %v11212_v62 }
 0xa3b   : > { %v11215_v55 = vpop.permute.xlu1 %11214 }
 0xa3c   : > { %v11225_v27 = vpop.permute.xlu0 %11224  ;;  %4811 = vmatmul.mubr.bf16.gmra.mrb[76].mxu0 %v4604_v54  ;;  %v11216_v8 = vunpack.i.l.bf16 %v11215_v55  ;;  %v11217_v4 = vunpack.i.h.bf16 %v11215_v55 }
 0xa3d   : > { %v11226_v7 = vunpack.i.l.bf16 %v11225_v27  ;;  %v11227_v14 = vunpack.i.h.bf16 %v11225_v27 }
 0xa3e   : > { %v4590_v49 = vsel %vm698_vm6, %v4582_v42, %v11216_v8  ;;  %v4565_v9 = vsel %vm698_vm6, %v4558_v43, %v11217_v4  ;;  %v12018_v42 = vld [vmem:[%s16642_s3 + $0x470] sm:$0xff]   ;;  %v12023_v43 = vld [vmem:[%s16642_s3 + $0x3f8] sm:$0xff]  }
 0xa3f   : > { %v4559_v33 = vsel %vm689_vm5, %v14450_v48, %v11226_v7  ;;  %v11235_v63 = vpop.permute.xlu1 %11234  ;;  %v4583_v1 = vsel %vm689_vm5, %v14523_v6, %v11227_v14  ;;  %10385 = vmatprep.subr.bf16.mxu1 %v12018_v42 }
 0xa40   : > { %v11237_v34 = vunpack.i.h.bf16 %v11235_v63  ;;  %v11236_v59 = vunpack.i.l.bf16 %v11235_v63  ;;  %v11230_v47 = vpop.permute.xlu0 %11229  ;;  %v4566_v5 = vsel %vm698_vm6, %v4559_v33, %v11221_v22  ;;  %v4591_v6 = vsel %vm698_vm6, %v4583_v1, %v11222_v50  ;;  %10386 = vmatpush3.bf16.msra.mxu1 %v12018_v42  ;;  %v12019_v22 = vld [vmem:[%s16642_s3 + $0x478] sm:$0xff]  }
 0xa41   : > { %v11232_v15 = vunpack.i.h.bf16 %v11230_v47  ;;  %v11231_v45 = vunpack.i.l.bf16 %v11230_v47  ;;  %10387 = vmatprep.subr.bf16.mxu1 %v12019_v22  ;;  %v12022_v47 = vld [vmem:[%s16642_s3 + $0x438] sm:$0xff]  }
 0xa42   : > { %v4597_v23 = vsel %vm707_vm7, %v4589_v35, %v11236_v59  ;;  %v4598_v48 = vsel %vm707_vm7, %v4590_v49, %v11237_v34  ;;  %v12020_v34 = vld [vmem:[%s16642_s3 + $0x430] sm:$0xff]  }
 0xa43   : > { %v11240_v39 = vpop.permute.xlu1 %11239  ;;  %v4608_v36 = vpack.c.bf16 %v4598_v48, %v4597_v23  ;;  %v4573_v52 = vsel %vm707_vm7, %v4565_v9, %v11231_v45  ;;  %v4574_v46 = vsel %vm707_vm7, %v4566_v5, %v11232_v15  ;;  %v12021_v59 = vld [vmem:[%s16642_s3 + $0x3f0] sm:$0xff]   ;;  %10007 = vmatprep.subr.bf16.mxu0 %v12020_v34  ;;  %v12024_v15 = vld [vmem:[%s16642_s3 + $0x440] sm:$0xff]  }
 0xa44   : > { %v4392_v17 = vpop.permute.xlu0 %4391  ;;  %v4607_v31 = vpack.c.bf16 %v4574_v46, %v4573_v52  ;;  %v11242_v29 = vunpack.i.h.bf16 %v11240_v39  ;;  %v11241_v53 = vunpack.i.l.bf16 %v11240_v39  ;;  %10388 = vmatpush3.bf16.msra.mxu1 %v12019_v22  ;;  %10008 = vmatpush3.bf16.msra.mxu0 %v12021_v59  ;;  %v12025_v45 = vld [vmem:[%s16642_s3 + $0x400] sm:$0xff]  }
 0xa45   : > { %4818 = vmatprep.mubr.bf16.mxu0 %v4608_v36  ;;  %v4561_v38 = vsel %vm689_vm5, %v14499_v56, %v4392_v17  ;;  %10009 = vmatprep.subr.bf16.mxu0 %v12022_v47  ;;  %v14647_v5 = vld [vmem:[%s16643_s4 + $0x6] ss:$0 sm:$0xff] }
 0xa46   : > { %4819 = vmatmul.mubr.bf16.gmra.mrb[80].mxu0 %v4607_v31  ;;  %v4568_v54 = vsel %vm698_vm6, %v4561_v38, %v11242_v29  ;;  %v14652_v52 = vld [vmem:[%s16644_s5 + $0x6] ss:$0 sm:$0xff] }
 0xa47   : > { %v11245_v41 = vpop.permute.xlu1 %11244 }
 0xa48   : > { %v11247_v32 = vunpack.i.h.bf16 %v11245_v41  ;;  %v11246_v28 = vunpack.i.l.bf16 %v11245_v41  ;;  %v11250_v11 = vpop.permute.xlu0 %11249  ;;  %10010 = vmatpush3.bf16.msra.mxu0 %v12023_v43  ;;  %v12026_v41 = vld [vmem:[%s16642_s3 + $0x448] sm:$0xff]  }
 0xa49   : > { %v11252_v25 = vunpack.i.h.bf16 %v11250_v11  ;;  %v11251_v57 = vunpack.i.l.bf16 %v11250_v11  ;;  %10011 = vmatprep.subr.bf16.mxu0 %v12024_v15 }
 0xa4a   : > { %v4560_v21 = vsel %vm689_vm5, %v14462_v10, %v11247_v32  ;;  %v4584_v26 = vsel %vm689_vm5, %v14538_v58, %v11246_v28 }
 0xa4b   : > { %v4458_v3 = vpop.permute.xlu1 %4457  ;;  %v4567_v40 = vsel %vm698_vm6, %v4560_v21, %v11241_v53  ;;  %v4592_v56 = vsel %vm698_vm6, %v4584_v26, %v12635_v12  ;;  %v4599_v55 = vsel %vm707_vm7, %v4591_v6, %v11251_v57 }
 0xa4c   : > { %v4575_v19 = vsel %vm707_vm7, %v4567_v40, %v11252_v25  ;;  %v4576_v60 = vsel %vm707_vm7, %v4568_v54, %v4458_v3  ;;  %v4600_v10 = vsel %vm707_vm7, %v4592_v56, %v12645_v30  ;;  %10012 = vmatpush3.bf16.msra.mxu0 %v12025_v45  ;;  %v12027_v3 = vld [vmem:[%s16642_s3 + $0x408] sm:$0xff]   ;;  %v12028_v40 = vld [vmem:[%s16642_s3 + $0x450] sm:$0xff]  }
 0xa4d   : > { %v4610_v58 = vpack.c.bf16 %v4576_v60, %v4575_v19  ;;  %v4611_v27 = vpack.c.bf16 %v4600_v10, %v4599_v55  ;;  %10013 = vmatprep.subr.bf16.mxu0 %v12026_v41  ;;  %v12029_v10 = vld [vmem:[%s16642_s3 + $0x410] sm:$0xff]  }
 0xa4f   : > { %4826 = vmatprep.mubr.bf16.mxu0 %v4611_v27 }
 0xa50   : > { %4827 = vmatmul.mubr.bf16.gmra.mrb[84].mxu0 %v4610_v58 }
 0xa51   : > { %10014 = vmatpush3.bf16.msra.mxu0 %v12027_v3 }
 0xa52   : > { %10015 = vmatprep.subr.bf16.mxu0 %v12028_v40 }
 0xa55   : > { %10016 = vmatpush3.bf16.msra.mxu0 %v12029_v10  ;;  %v12033_v10 = vld [vmem:[%s16642_s3 + $0x420] sm:$0xff]  }
 0xa90   : > { %v10379_v37 = vpop.f32.mrb[80].mxu1 }
 0xa91   : > { %v4869_v62 = vpop.f32.mrb[81].mxu1 }
 0xa92   : > { %v10380_v8 = vpop.f32.mrb[82].mxu1 }
 0xa93   : > { %v4872_v7 = vpop.f32.mrb[83].mxu1 }
 0xa9c   : > { %v14612_v4 = vpop.f32.mrb[84].mxu1 }
 0xa9d   : > { %v14614_v33 = vpop.f32.mrb[85].mxu1 }
 0xa9e   : > { %v14616_v63 = vpop.f32.mrb[86].mxu1 }
 0xa9f   : > { %v14618_v35 = vpop.f32.mrb[87].mxu1 }
 0xb07   : > { %v9977_v49 = vpop.f32.mrb[72].mxu0 }
 0xb08   : > { %v9978_v23 = vpop.f32.mrb[73].mxu0 }
 0xb09   : > { %v9979_v48 = vadd.f32 %v9978_v23, %v9977_v49  ;;  %v9980_v9 = vpop.f32.mrb[74].mxu0 }
 0xb0a   : > { %v9981_v14 = vpop.f32.mrb[75].mxu0 }
 0xb0b   : > { %v4870_v39 = vadd.f32 %v9979_v48, %v4869_v62  ;;  %v9982_v36 = vadd.f32 %v9981_v14, %v9980_v9 }
 0xb0d   : > { %v4908_v46 = vmul.f32 %v14647_v5, %v4870_v39  ;;  %v4873_v17 = vadd.f32 %v9982_v36, %v4872_v7 }
 0xb0f   : > { %v4924_v31 = vadd.f32 %v14652_v52, %v4908_v46  ;;  %v4909_v1 = vmul.f32 %v14647_v5, %v4873_v17  ;;  %v9983_v29 = vpop.f32.mrb[76].mxu0  ;;  %v12031_v46 = vld [vmem:[%s16642_s3 + $0x418] sm:$0xff]   ;;  %v12032_v17 = vld [vmem:[%s16642_s3 + $0x460] sm:$0xff]  }
 0xb10   : > { %v9984_v32 = vpop.f32.mrb[77].mxu0 }
 0xb11   : > { %vm4932_vm12 = vcmp.gt.f32.partialorder %v4924_v31, 0.0  ;;  %v4940_v50 = vmul.f32 0.2, %v4924_v31  ;;  %v4925_v38 = vadd.f32 %v14652_v52, %v4909_v1  ;;  %v9985_v28 = vadd.f32 %v9984_v32, %v9983_v29  ;;  %v9986_v11 = vpop.f32.mrb[78].mxu0 }
 0xb12   : > { %v9987_v57 = vpop.f32.mrb[79].mxu0 }
 0xb13   : > { %v4948_v53 = vsel %vm4932_vm12, %v4924_v31, %v4940_v50  ;;  %vm4933_vm13 = vcmp.gt.f32.partialorder %v4925_v38, 0.0  ;;  %v4941_v25 = vmul.f32 0.2, %v4925_v38  ;;  %v4878_v26 = vadd.f32 %v10379_v37, %v9985_v28  ;;  %v12030_v37 = vld [vmem:[%s16642_s3 + $0x458] sm:$0xff]  }
 0xb14   : > { %v4964_v21 = vrot.slane %v4948_v53, 7  ;;  %v9988_v6 = vadd.f32 %v9987_v57, %v9986_v11  ;;  %10017 = vmatprep.subr.bf16.mxu0 %v12030_v37 }
 0xb15   : > { %v4949_v54 = vsel %vm4933_vm13, %v4925_v38, %v4941_v25  ;;  %v4910_v19 = vmul.f32 %v14647_v5, %v4878_v26  ;;  %10018 = vmatpush3.bf16.msra.mxu0 %v12031_v46 }
 0xb16   : > { %v14668_v56 = vsel %vm437_vm3, %v4964_v21, 0.0  ;;  %v4965_v55 = vrot.slane %v4949_v54, 7  ;;  %v4881_v60 = vadd.f32 %v10380_v8, %v9988_v6  ;;  %v14675_v58 = vsel %vm437_vm3, 0.0, %v4964_v21  ;;  %10019 = vmatprep.subr.bf16.mxu0 %v12032_v17 }
 0xb17   : > { %v5053_v27 = vrot.slane %v14668_v56, 2  ;;  %v4926_v7 = vadd.f32 %v14652_v52, %v4910_v19  ;;  %v5052_v34 = vrot.slane %v14675_v58, 2  ;;  %v5011_v41 = vrot.slane %v14668_v56, 1 }
 0xb18   : > { %v14682_v62 = vsel %vm437_vm3, 0.0, %v4965_v55  ;;  %v14685_v8 = vsel %vm437_vm3, %v4965_v55, 0.0  ;;  %v4911_v42 = vmul.f32 %v14647_v5, %v4881_v60 }
 0xb19   : > { %v11253_v22 = vpack.i.bf16 %v14682_v62, %v14675_v58  ;;  %v5055_v59 = vrot.slane %v14682_v62, 2  ;;  %v5056_v47 = vrot.slane %v14685_v8, 2  ;;  %vm4934_vm14 = vcmp.gt.f32.partialorder %v4926_v7, 0.0  ;;  %v9989_v45 = vpop.f32.mrb[80].mxu0  ;;  %10020 = vmatpush3.bf16.msra.mxu0 %v12033_v10 }
 0xb1a   : > { %v4942_v43 = vmul.f32 0.2, %v4926_v7  ;;  %v4927_v15 = vadd.f32 %v14652_v52, %v4911_v42  ;;  %v9990_v49 = vpop.f32.mrb[81].mxu0  ;;  %v5054_v23 = vsel %vm339_vm1, %v5052_v34, %v5053_v27  ;;  %v5013_v28 = vrot.slane %v14682_v62, 1  ;;  %v12034_v42 = vld [vmem:[%s16642_s3 + $0x468] sm:$0xff]  }
 0xb1b   : > { %11254 = vrot.lane.b32.xlu1 %v11253_v22, %s12192_s9  ;;  %v14698_v48 = vsel %vm339_vm1, %v5055_v59, %v5056_v47  ;;  %v9991_v39 = vadd.f32 %v9990_v49, %v9989_v45  ;;  %v9992_v36 = vpop.f32.mrb[82].mxu0  ;;  %v5014_v57 = vrot.slane %v14685_v8, 1  ;;  %10021 = vmatprep.subr.bf16.mxu0 %v12034_v42 }
 0xb1c   : > { %v4950_v9 = vsel %vm4934_vm14, %v4926_v7, %v4942_v43  ;;  %vm4935_vm15 = vcmp.gt.f32.partialorder %v4927_v15, 0.0  ;;  %v4943_v14 = vmul.f32 0.2, %v4927_v15  ;;  %v9993_v1 = vpop.f32.mrb[83].mxu0  ;;  %v11258_v29 = vpack.i.bf16 %v14698_v48, %v5054_v23  ;;  %v12035_v43 = vld [vmem:[%s16642_s3 + $0x428] sm:$0xff]  }
 0xb1d   : > { %v4966_v31 = vrot.slane %v4950_v9, 7  ;;  %v4886_v38 = vadd.f32 %v9991_v39, %v14614_v33  ;;  %v9994_v32 = vadd.f32 %v9993_v1, %v9992_v36  ;;  %v5010_v7 = vrot.slane %v14675_v58, 1  ;;  %10022 = vmatpush3.bf16.msra.mxu0 %v12035_v43 }
 0xb1e   : > { %v4951_v50 = vsel %vm4935_vm15, %v4927_v15, %v4943_v14  ;;  %11259 = vrot.lane.b32.xlu0 %v11258_v29, %s12193_s14  ;;  %v14752_v45 = vsel %vm472_vm4, %v5013_v28, %v5014_v57 }
 0xb1f   : > { %v14711_v11 = vsel %vm437_vm3, 0.0, %v4966_v31  ;;  %v4990_v53 = vsel %vm437_vm3, %v4966_v31, 0.0  ;;  %v4967_v25 = vrot.slane %v4951_v50, 7  ;;  %v4912_v21 = vmul.f32 %v14647_v5, %v4886_v38 }
 0xb20   : > { %v4889_v26 = vadd.f32 %v9994_v32, %v14618_v35  ;;  %v11263_v33 = vpack.i.bf16 %v14711_v11, %v14682_v62  ;;  %v5058_v6 = vrot.slane %v14711_v11, 2  ;;  %v5059_v54 = vrot.slane %v4990_v53, 2 }
 0xb21   : > { %v14722_v3 = vsel %vm437_vm3, 0.0, %v4967_v25  ;;  %v14725_v40 = vsel %vm437_vm3, %v4967_v25, 0.0  ;;  %v5016_v56 = vrot.slane %v14711_v11, 1  ;;  %v4928_v55 = vadd.f32 %v14652_v52, %v4912_v21 }
 0xb22   : > { %v4913_v19 = vmul.f32 %v14647_v5, %v4889_v26  ;;  %v11268_v35 = vpack.i.bf16 %v14722_v3, %v5054_v23  ;;  %v5017_v60 = vrot.slane %v4990_v53, 1  ;;  %11264 = vrot.lane.b32.xlu0 %v11263_v33, %s12194_s15  ;;  %v14736_v27 = vsel %vm339_vm1, %v5058_v6, %v5059_v54 }
 0xb23   : > { %v5061_v37 = vrot.slane %v14722_v3, 2  ;;  %v5062_v8 = vrot.slane %v14725_v40, 2  ;;  %vm4936_vm0 = vcmp.gt.f32.partialorder %v4928_v55, 0.0  ;;  %v4944_v22 = vmul.f32 0.2, %v4928_v55  ;;  %v9995_v59 = vpop.f32.mrb[84].mxu0 }
 0xb24   : > { %v4929_v34 = vadd.f32 %v14652_v52, %v4913_v19  ;;  %11269 = vrot.lane.b32.xlu1 %v11268_v35, %s12194_s15  ;;  %v5255_v47 = vpack.c.bf16 %v14736_v27, %v14698_v48  ;;  %v9996_v15 = vpop.f32.mrb[85].mxu0  ;;  %v14755_v49 = vsel %vm472_vm4, %v5016_v56, %v5017_v60  ;;  %v11273_v23 = vpack.i.bf16 %v14722_v3, %v14711_v11 }
 0xb25   : > { %v4952_v9 = vsel %vm4936_vm0, %v4928_v55, %v4944_v22  ;;  %v9997_v39 = vadd.f32 %v9996_v15, %v9995_v59  ;;  %v9998_v36 = vpop.f32.mrb[86].mxu0  ;;  %v11283_v31 = vpack.i.bf16 %v14755_v49, %v14752_v45  ;;  %v14763_v1 = vsel %vm339_vm1, %v5061_v37, %v5062_v8 }
 0xb26   : > { %vm4937_vm2 = vcmp.gt.f32.partialorder %v4929_v34, 0.0  ;;  %v4945_v14 = vmul.f32 0.2, %v4929_v34  ;;  %10389 = vmatprep.mubr.msk.bf16.mxu1 %vm689_vm5, %v5255_v47  ;;  %v4968_v46 = vrot.slane %v4952_v9, 7  ;;  %v9999_v17 = vpop.f32.mrb[87].mxu0  ;;  %v14766_v29 = vsel %vm472_vm4, %v5010_v7, %v5011_v41 }
 0xb27   : > { %v4894_v38 = vadd.f32 %v14612_v4, %v9997_v39  ;;  %v10000_v32 = vadd.f32 %v9999_v17, %v9998_v36  ;;  %11284 = vrot.lane.b32.xlu0 %v11283_v31, %s12192_s9  ;;  %v11278_v57 = vpack.i.bf16 %v14736_v27, %v14766_v29  ;;  %v11288_v54 = vpack.i.bf16 %v14752_v45, %v14763_v1 }
 0xb28   : > { %v4953_v50 = vsel %vm4937_vm2, %v4929_v34, %v4945_v14  ;;  %11274 = vrot.lane.b32.xlu1 %v11273_v23, %s12192_s9  ;;  %v14771_v28 = vsel %vm437_vm3, 0.0, %v4968_v46  ;;  %v4992_v53 = vsel %vm437_vm3, %v4968_v46, 0.0  ;;  %v5019_v60 = vrot.slane %v14722_v3, 1 }
 0xb29   : > { %v4969_v25 = vrot.slane %v4953_v50, 7  ;;  %v5065_v41 = vrot.slane %v4992_v53, 2  ;;  %v4914_v21 = vmul.f32 %v14647_v5, %v4894_v38  ;;  %v4897_v4 = vadd.f32 %v14616_v63, %v10000_v32 }
 0xb2a   : > { %v5064_v26 = vrot.slane %v14771_v28, 2  ;;  %v5022_v63 = vrot.slane %v14771_v28, 1  ;;  %v5020_v10 = vrot.slane %v14725_v40, 1  ;;  %v5023_v37 = vrot.slane %v4992_v53, 1 }
 0xb2b   : > { %v14781_v33 = vsel %vm437_vm3, 0.0, %v4969_v25  ;;  %v14784_v6 = vsel %vm437_vm3, %v4969_v25, 0.0  ;;  %v4930_v56 = vadd.f32 %v14652_v52, %v4914_v21  ;;  %v4915_v55 = vmul.f32 %v14647_v5, %v4897_v4  ;;  %11289 = vrot.lane.b32.xlu0 %v11288_v54, %s12193_s14 }
 0xb2c   : > { %v5066_v19 = vsel %vm339_vm1, %v5064_v26, %v5065_v41  ;;  %11279 = vrot.lane.b32.xlu1 %v11278_v57, %s12193_s14  ;;  %v11298_v5 = vpack.i.bf16 %v14781_v33, %v14736_v27  ;;  %v11293_v42 = vpack.i.bf16 %v14698_v48, %v14771_v28  ;;  %v5067_v22 = vrot.slane %v14781_v33, 2 }
 0xb2d   : > { %v5258_v35 = vpack.c.bf16 %v5066_v19, %v14763_v1  ;;  %vm4938_vm8 = vcmp.gt.f32.partialorder %v4930_v56, 0.0  ;;  %v4946_v8 = vmul.f32 0.2, %v4930_v56  ;;  %v4931_v7 = vadd.f32 %v14652_v52, %v4915_v55 }
 0xb2e   : > { %v5068_v34 = vrot.slane %v14784_v6, 2  ;;  %v14807_v47 = vsel %vm472_vm4, %v5022_v63, %v5023_v37  ;;  %v14811_v43 = vsel %vm472_vm4, %v5019_v60, %v5020_v10  ;;  %v11303_v48 = vpack.i.bf16 %v5066_v19, %v14755_v49 }
 0xb2f   : > { %10390 = vmatmul.mubr.msk.bf16.vlgmr.msra.gmra.mrb[88].mxu1 %vm689_vm5, %v5258_v35  ;;  %v4954_v59 = vsel %vm4938_vm8, %v4930_v56, %v4946_v8  ;;  %vm4939_vm9 = vcmp.gt.f32.partialorder %v4931_v7, 0.0  ;;  %v4947_v40 = vmul.f32 0.2, %v4931_v7  ;;  %11294 = vrot.lane.b32.xlu0 %v11293_v42, %s12194_s15  ;;  %v11308_v14 = vpack.i.bf16 %v14807_v47, %v14811_v43 }
 0xb30   : > { %11299 = vrot.lane.b32.xlu1 %v11298_v5, %s12194_s15  ;;  %v4970_v52 = vrot.slane %v4954_v59, 7  ;;  %v5069_v39 = vsel %vm339_vm1, %v5067_v22, %v5068_v34  ;;  %v5025_v55 = vrot.slane %v14781_v33, 1  ;;  %v11333_v10 = vpack.i.bf16 %v14781_v33, %v14771_v28 }
 0xb31   : > { %v4955_v27 = vsel %vm4939_vm9, %v4931_v7, %v4947_v40  ;;  %v11313_v25 = vpack.i.bf16 %v14811_v43, %v5069_v39 }
 0xb32   : > { %v14815_v15 = vsel %vm437_vm3, 0.0, %v4970_v52  ;;  %v4994_v23 = vsel %vm437_vm3, %v4970_v52, 0.0  ;;  %v4971_v9 = vrot.slane %v4955_v27, 7 }
 0xb33   : > { %v5070_v36 = vrot.slane %v14815_v15, 2  ;;  %v5071_v46 = vrot.slane %v4994_v23, 2  ;;  %11309 = vrot.lane.b32.xlu0 %v11308_v14, %s12192_s9  ;;  %v5028_v4 = vrot.slane %v14815_v15, 1  ;;  %v5029_v26 = vrot.slane %v4994_v23, 1 }
 0xb34   : > { %11304 = vrot.lane.b32.xlu1 %v11303_v48, %s12193_s14  ;;  %v4995_v17 = vsel %vm437_vm3, %v4971_v9, 0.0  ;;  %v4987_v31 = vsel %vm437_vm3, 0.0, %v4971_v9  ;;  %v11318_v63 = vpack.i.bf16 %v14763_v1, %v14815_v15 }
 0xb35   : > { %v11323_v50 = vpack.i.bf16 %v4987_v31, %v5066_v19  ;;  %v5072_v38 = vsel %vm339_vm1, %v5070_v36, %v5071_v46  ;;  %v5131_v32 = vrot.slane %v4987_v31, 2  ;;  %v5132_v53 = vrot.slane %v4995_v17, 2 }
 0xb36   : > { %v5261_v57 = vpack.c.bf16 %v5072_v38, %v5069_v39  ;;  %v11343_v41 = vpack.i.bf16 %v5072_v38, %v5069_v39  ;;  %v11328_v56 = vpack.i.bf16 %v5072_v38, %v14807_v47  ;;  %v5026_v19 = vrot.slane %v14784_v6, 1 }
 0xb37   : > { %v5133_v21 = vsel %vm339_vm1, %v5131_v32, %v5132_v53  ;;  %11314 = vrot.lane.b32.xlu0 %v11313_v25, %s12193_s14  ;;  %v14842_v35 = vsel %vm472_vm4, %v5028_v4, %v5029_v26  ;;  %v5120_v37 = vrot.slane %v4987_v31, 1  ;;  %v5121_v8 = vrot.slane %v4995_v17, 1 }
 0xb38   : > { %11324 = vrot.lane.b32.xlu1 %v11323_v50, %s12194_s15  ;;  %10393 = vmatprep.mubr.msk.bf16.mxu1 %vm689_vm5, %v5261_v57  ;;  %v5264_v54 = vpack.c.bf16 %v12381_v51, %v5133_v21  ;;  %v14846_v60 = vsel %vm472_vm4, %v5025_v55, %v5026_v19 }
 0xb39   : > { %v11338_v6 = vpack.i.bf16 %v14842_v35, %v14846_v60  ;;  %v14855_v1 = vsel %vm472_vm4, %v5120_v37, %v5121_v8  ;;  %v11348_v5 = vpack.i.bf16 %v14846_v60, %v5133_v21 }
 0xb3a   : > { %10394 = vmatmul.mubr.msk.bf16.gmra.mrb[92].mxu1 %vm689_vm5, %v5264_v54  ;;  %v11353_v7 = vpack.i.bf16 %v14815_v15, %v14855_v1 }
 0xb3b   : > { %11319 = vrot.lane.b32.xlu0 %v11318_v63, %s12194_s15 }
 0xb3c   : > { %11329 = vrot.lane.b32.xlu1 %v11328_v56, %s12193_s14 }
 0xb3f   : > { %11339 = vrot.lane.b32.xlu0 %v11338_v6, %s12192_s9 }
 0xb40   : > { %11334 = vrot.lane.b32.xlu1 %v11333_v10, %s12192_s9 }
 0xb43   : > { %11344 = vrot.lane.b32.xlu0 %v11343_v41, %s12194_s15 }
 0xb44   : > { %5043 = vrot.lane.b32.xlu1 %v14842_v35, %s12193_s14 }
 0xb47   : > { %11349 = vrot.lane.b32.xlu0 %v11348_v5, %s12193_s14 }
 0xb48   : > { %11354 = vrot.lane.b32.xlu1 %v11353_v7, %s12192_s9 }
 0xb4b   : > { %5109 = vrot.lane.b32.xlu0 %v4987_v31, %s12192_s9 }
 0xb8d   : > { %v11255_v22 = vpop.permute.xlu1 %11254 }
 0xb8e   : > { %v11256_v53 = vunpack.i.l.bf16 %v11255_v22 }
 0xb90   : > { %v11260_v42 = vpop.permute.xlu0 %11259  ;;  %v5221_v56 = vsel %vm707_vm7, %v12587_v13, %v11256_v53 }
 0xb91   : > { %v11262_v40 = vunpack.i.h.bf16 %v11260_v42  ;;  %v11261_v52 = vunpack.i.l.bf16 %v11260_v42 }
 0xb93   : > { %v5230_v14 = vsel %vm689_vm5, %v14752_v45, %v11262_v40  ;;  %v5229_v39 = vsel %vm689_vm5, %v14766_v29, %v11261_v52  ;;  %v11257_v45 = vunpack.i.h.bf16 %v11255_v22 }
 0xb94   : > { %v11265_v34 = vpop.permute.xlu0 %11264 }
 0xb95   : > { %v11267_v27 = vunpack.i.h.bf16 %v11265_v34  ;;  %v11266_v48 = vunpack.i.l.bf16 %v11265_v34 }
 0xb96   : > { %v11270_v59 = vpop.permute.xlu1 %11269 }
 0xb97   : > { %v5237_v17 = vsel %vm698_vm6, %v5229_v39, %v11266_v48  ;;  %v5238_v31 = vsel %vm698_vm6, %v5230_v14, %v11267_v27  ;;  %v11271_v21 = vunpack.i.l.bf16 %v11270_v59  ;;  %v11272_v7 = vunpack.i.h.bf16 %v11270_v59 }
 0xb99   : > { %v11285_v9 = vpop.permute.xlu0 %11284 }
 0xb9a   : > { %v11275_v23 = vpop.permute.xlu1 %11274  ;;  %v11287_v36 = vunpack.i.h.bf16 %v11285_v9  ;;  %v11286_v46 = vunpack.i.l.bf16 %v11285_v9 }
 0xb9b   : > { %v11277_v42 = vunpack.i.h.bf16 %v11275_v23  ;;  %v11276_v59 = vunpack.i.l.bf16 %v11275_v23 }
 0xb9c   : > { %v5245_v38 = vsel %vm707_vm7, %v5237_v17, %v11286_v46  ;;  %v5246_v32 = vsel %vm707_vm7, %v5238_v31, %v11287_v36 }
 0xb9d   : > { %v11290_v25 = vpop.permute.xlu0 %11289  ;;  %v5254_v41 = vpack.c.bf16 %v5246_v32, %v5245_v38 }
 0xb9e   : > { %v11280_v50 = vpop.permute.xlu1 %11279  ;;  %v11292_v55 = vunpack.i.h.bf16 %v11290_v25  ;;  %v11291_v19 = vunpack.i.l.bf16 %v11290_v25 }
 0xb9f   : > { %v11281_v57 = vunpack.i.l.bf16 %v11280_v50  ;;  %5454 = vmatprep.mubr.bf16.mxu0 %v5254_v41  ;;  %v11282_v4 = vunpack.i.h.bf16 %v11280_v50 }
 0xba0   : > { %v5208_v22 = vsel %vm689_vm5, %v14682_v62, %v11292_v55  ;;  %v5232_v34 = vsel %vm689_vm5, %v14811_v43, %v11291_v19 }
 0xba1   : > { %v5207_v29 = vsel %vm689_vm5, %v14675_v58, %v11281_v57  ;;  %v11295_v10 = vpop.permute.xlu0 %11294  ;;  %v5231_v58 = vsel %vm689_vm5, %v14755_v49, %v11282_v4 }
 0xba2   : > { %v5214_v26 = vsel %vm698_vm6, %v5207_v29, %v11271_v21  ;;  %v11300_v54 = vpop.permute.xlu1 %11299  ;;  %v11297_v6 = vunpack.i.h.bf16 %v11295_v10  ;;  %v11296_v8 = vunpack.i.l.bf16 %v11295_v10  ;;  %v5239_v39 = vsel %vm698_vm6, %v5231_v58, %v11272_v7 }
 0xba3   : > { %v5222_v63 = vsel %vm707_vm7, %v5214_v26, %v11257_v45  ;;  %v11301_v27 = vunpack.i.l.bf16 %v11300_v54  ;;  %v11302_v26 = vunpack.i.h.bf16 %v11300_v54 }
 0xba4   : > { %v5253_v37 = vpack.c.bf16 %v5222_v63, %v5221_v56  ;;  %v5215_v14 = vsel %vm698_vm6, %v5208_v22, %v11297_v6  ;;  %v5240_v36 = vsel %vm698_vm6, %v5232_v34, %v11296_v8 }
 0xba5   : > { %v11310_v40 = vpop.permute.xlu0 %11309  ;;  %v5223_v38 = vsel %vm707_vm7, %v5215_v14, %v11276_v59 }
 0xba6   : > { %v11305_v5 = vpop.permute.xlu1 %11304  ;;  %5455 = vmatmul.mubr.bf16.vlgmr.msra.gmra.mrb[88].mxu0 %v5253_v37  ;;  %v11312_v48 = vunpack.i.h.bf16 %v11310_v40  ;;  %v11311_v9 = vunpack.i.l.bf16 %v11310_v40 }
 0xba7   : > { %v11306_v52 = vunpack.i.l.bf16 %v11305_v5 }
 0xba8   : > { %v5247_v62 = vsel %vm707_vm7, %v5239_v39, %v11311_v9  ;;  %v5248_v43 = vsel %vm707_vm7, %v5240_v36, %v11312_v48 }
 0xba9   : > { %v5209_v49 = vsel %vm689_vm5, %v14711_v11, %v11306_v52  ;;  %v11315_v31 = vpop.permute.xlu0 %11314  ;;  %v5257_v50 = vpack.c.bf16 %v5248_v43, %v5247_v62  ;;  %v11307_v11 = vunpack.i.h.bf16 %v11305_v5 }
 0xbaa   : > { %v11325_v46 = vpop.permute.xlu1 %11324  ;;  %v5216_v17 = vsel %vm698_vm6, %v5209_v49, %v11301_v27  ;;  %v11317_v25 = vunpack.i.h.bf16 %v11315_v31  ;;  %v11316_v57 = vunpack.i.l.bf16 %v11315_v31 }
 0xbab   : > { %v5224_v23 = vsel %vm707_vm7, %v5216_v17, %v11277_v42  ;;  %5462 = vmatprep.mubr.bf16.mxu0 %v5257_v50  ;;  %v5233_v56 = vsel %vm689_vm5, %v14807_v47, %v11307_v11  ;;  %v11326_v55 = vunpack.i.l.bf16 %v11325_v46  ;;  %v11327_v59 = vunpack.i.h.bf16 %v11325_v46 }
 0xbac   : > { %v5256_v32 = vpack.c.bf16 %v5224_v23, %v5223_v38  ;;  %v5210_v63 = vsel %vm689_vm5, %v14722_v3, %v11317_v25  ;;  %v5234_v10 = vsel %vm689_vm5, %v14846_v60, %v11316_v57  ;;  %v5241_v54 = vsel %vm698_vm6, %v5233_v56, %v11302_v26 }
 0xbad   : > { %v11320_v41 = vpop.permute.xlu0 %11319 }
 0xbae   : > { %v11330_v53 = vpop.permute.xlu1 %11329  ;;  %5463 = vmatmul.mubr.bf16.gmra.mrb[92].mxu0 %v5256_v32  ;;  %v11322_v45 = vunpack.i.h.bf16 %v11320_v41  ;;  %v11321_v29 = vunpack.i.l.bf16 %v11320_v41 }
 0xbaf   : > { %v11331_v21 = vunpack.i.l.bf16 %v11330_v53  ;;  %v11332_v22 = vunpack.i.h.bf16 %v11330_v53 }
 0xbb0   : > { %v5217_v5 = vsel %vm698_vm6, %v5210_v63, %v11322_v45  ;;  %v5242_v47 = vsel %vm698_vm6, %v5234_v10, %v11321_v29  ;;  %v12036_v63 = vld [vmem:[%s16642_s3 + $0x500] sm:$0xff]   ;;  %v12037_v10 = vld [vmem:[%s16642_s3 + $0x508] sm:$0xff]  }
 0xbb1   : > { %v5211_v4 = vsel %vm689_vm5, %v14771_v28, %v11331_v21  ;;  %v11340_v6 = vpop.permute.xlu0 %11339  ;;  %v5235_v9 = vsel %vm689_vm5, %v14842_v35, %v11332_v22  ;;  %10397 = vmatprep.subr.bf16.mxu0 %v12036_v63 }
 0xbb2   : > { %v11335_v19 = vpop.permute.xlu1 %11334  ;;  %v11342_v7 = vunpack.i.h.bf16 %v11340_v6  ;;  %v11341_v58 = vunpack.i.l.bf16 %v11340_v6  ;;  %v5218_v28 = vsel %vm698_vm6, %v5211_v4, %v11326_v55  ;;  %v5243_v38 = vsel %vm698_vm6, %v5235_v9, %v11327_v59  ;;  %10398 = vmatpush3.bf16.msra.mxu0 %v12036_v63  ;;  %v12038_v6 = vld [vmem:[%s16642_s3 + $0x4c0] sm:$0xff]  }
 0xbb3   : > { %v11337_v37 = vunpack.i.h.bf16 %v11335_v19  ;;  %v11336_v8 = vunpack.i.l.bf16 %v11335_v19  ;;  %10399 = vmatprep.subr.bf16.mxu0 %v12037_v10  ;;  %10053 = vmatprep.subr.bf16.mxu1 %v12038_v6  ;;  %v12048_v6 = vld [vmem:[%s16642_s3 + $0x4e8] sm:$0xff]  }
 0xbb4   : > { %v5249_v60 = vsel %vm707_vm7, %v5241_v54, %v11341_v58  ;;  %v5250_v40 = vsel %vm707_vm7, %v5242_v47, %v11342_v7  ;;  %v12041_v7 = vld [vmem:[%s16642_s3 + $0x488] sm:$0xff]   ;;  %v12042_v58 = vld [vmem:[%s16642_s3 + $0x4d0] sm:$0xff]  }
 0xbb5   : > { %v5225_v42 = vsel %vm707_vm7, %v5217_v5, %v11336_v8  ;;  %v5226_v3 = vsel %vm707_vm7, %v5218_v28, %v11337_v37  ;;  %v11345_v27 = vpop.permute.xlu0 %11344  ;;  %v5260_v48 = vpack.c.bf16 %v5250_v40, %v5249_v60  ;;  %v12039_v37 = vld [vmem:[%s16642_s3 + $0x480] sm:$0xff]   ;;  %v12040_v8 = vld [vmem:[%s16642_s3 + $0x4c8] sm:$0xff]  }
 0xbb6   : > { %v5044_v34 = vpop.permute.xlu1 %5043  ;;  %v5259_v52 = vpack.c.bf16 %v5226_v3, %v5225_v42  ;;  %v11347_v49 = vunpack.i.h.bf16 %v11345_v27  ;;  %v11346_v50 = vunpack.i.l.bf16 %v11345_v27  ;;  %10400 = vmatpush3.bf16.msra.mxu0 %v12037_v10  ;;  %10054 = vmatpush3.bf16.msra.mxu1 %v12039_v37  ;;  %v14962_v42 = vld [vmem:[%s16643_s4 + $0x7] ss:$0 sm:$0xff]  ;;  %v12049_v37 = vld [vmem:[%s16642_s3 + $0x4a8] sm:$0xff]  }
 0xbb7   : > { %5470 = vmatprep.mubr.bf16.mxu0 %v5260_v48  ;;  %v5213_v62 = vsel %vm689_vm5, %v14815_v15, %v5044_v34  ;;  %10055 = vmatprep.subr.bf16.mxu1 %v12040_v8  ;;  %v14967_v60 = vld [vmem:[%s16644_s5 + $0x7] ss:$0 sm:$0xff] }
 0xbb8   : > { %5471 = vmatmul.mubr.bf16.gmra.mrb[96].mxu0 %v5259_v52  ;;  %v5220_v53 = vsel %vm698_vm6, %v5213_v62, %v11347_v49 }
 0xbb9   : > { %v11350_v39 = vpop.permute.xlu0 %11349 }
 0xbba   : > { %v11355_v14 = vpop.permute.xlu1 %11354  ;;  %v11352_v43 = vunpack.i.h.bf16 %v11350_v39  ;;  %v11351_v17 = vunpack.i.l.bf16 %v11350_v39  ;;  %10056 = vmatpush3.bf16.msra.mxu1 %v12041_v7 }
 0xbbb   : > { %v11356_v36 = vunpack.i.l.bf16 %v11355_v14  ;;  %v11357_v31 = vunpack.i.h.bf16 %v11355_v14  ;;  %10057 = vmatprep.subr.bf16.mxu1 %v12042_v58  ;;  %v12043_v14 = vld [vmem:[%s16642_s3 + $0x490] sm:$0xff]  }
 0xbbc   : > { %v5212_v23 = vsel %vm689_vm5, %v14781_v33, %v11352_v43  ;;  %v5236_v35 = vsel %vm689_vm5, %v14855_v1, %v11351_v17 }
 0xbbd   : > { %v5251_v46 = vsel %vm707_vm7, %v5243_v38, %v11356_v36  ;;  %v5110_v32 = vpop.permute.xlu0 %5109  ;;  %v5219_v11 = vsel %vm698_vm6, %v5212_v23, %v11346_v50  ;;  %v5244_v15 = vsel %vm698_vm6, %v5236_v35, %v12635_v12  ;;  %v12044_v23 = vld [vmem:[%s16642_s3 + $0x4d8] sm:$0xff]  }
 0xbbe   : > { %v5227_v25 = vsel %vm707_vm7, %v5219_v11, %v11357_v31  ;;  %v5228_v57 = vsel %vm707_vm7, %v5220_v53, %v5110_v32  ;;  %v5252_v33 = vsel %vm707_vm7, %v5244_v15, %v12645_v30  ;;  %10058 = vmatpush3.bf16.msra.mxu1 %v12043_v14 }
 0xbbf   : > { %v5262_v41 = vpack.c.bf16 %v5228_v57, %v5227_v25  ;;  %v5263_v21 = vpack.c.bf16 %v5252_v33, %v5251_v46  ;;  %10059 = vmatprep.subr.bf16.mxu1 %v12044_v23  ;;  %v12047_v25 = vld [vmem:[%s16642_s3 + $0x4a0] sm:$0xff]  }
 0xbc1   : > { %5478 = vmatprep.mubr.bf16.mxu0 %v5263_v21 }
 0xbc2   : > { %5479 = vmatmul.mubr.bf16.gmra.mrb[100].mxu0 %v5262_v41 }
 0xc02   : > { %v10391_v1 = vpop.f32.mrb[88].mxu1 }
 0xc03   : > { %v5521_v45 = vpop.f32.mrb[89].mxu1 }
 0xc04   : > { %v10392_v29 = vpop.f32.mrb[90].mxu1 }
 0xc05   : > { %v5524_v4 = vpop.f32.mrb[91].mxu1 }
 0xc0d   : > { %v14930_v26 = vpop.f32.mrb[92].mxu1 }
 0xc0e   : > { %v14932_v56 = vpop.f32.mrb[93].mxu1 }
 0xc0f   : > { %v14934_v55 = vpop.f32.mrb[94].mxu1 }
 0xc10   : > { %v14936_v19 = vpop.f32.mrb[95].mxu1 }
 0xc79   : > { %v10023_v5 = vpop.f32.mrb[88].mxu0 }
 0xc7a   : > { %v10024_v28 = vpop.f32.mrb[89].mxu0 }
 0xc7b   : > { %v10025_v54 = vadd.f32 %v10024_v28, %v10023_v5  ;;  %v10026_v47 = vpop.f32.mrb[90].mxu0 }
 0xc7c   : > { %v10027_v3 = vpop.f32.mrb[91].mxu0 }
 0xc7d   : > { %v5522_v22 = vadd.f32 %v10025_v54, %v5521_v45  ;;  %v10028_v34 = vadd.f32 %v10027_v3, %v10026_v47 }
 0xc7f   : > { %v5560_v40 = vmul.f32 %v14962_v42, %v5522_v22  ;;  %v5525_v52 = vadd.f32 %v10028_v34, %v5524_v4 }
 0xc81   : > { %v5576_v27 = vadd.f32 %v14967_v60, %v5560_v40  ;;  %v5561_v48 = vmul.f32 %v14962_v42, %v5525_v52  ;;  %v10029_v9 = vpop.f32.mrb[92].mxu0 }
 0xc82   : > { %v10030_v59 = vpop.f32.mrb[93].mxu0 }
 0xc83   : > { %v14976_v49 = vadd.f32 %v5576_v27, %v14316_v44  ;;  %v5577_v39 = vadd.f32 %v14967_v60, %v5561_v48  ;;  %v10031_v36 = vadd.f32 %v10030_v59, %v10029_v9  ;;  %v10032_v62 = vpop.f32.mrb[94].mxu0  ;;  %v12045_v44 = vld [vmem:[%s16642_s3 + $0x498] sm:$0xff]  }
 0xc84   : > { %v10033_v43 = vpop.f32.mrb[95].mxu0  ;;  %10060 = vmatpush3.bf16.msra.mxu1 %v12045_v44 }
 0xc85   : > { %v5600_v17 = vrot.slane %v14976_v49, 7  ;;  %v14981_v31 = vadd.f32 %v5577_v39, %v14321_v18  ;;  %v5530_v50 = vadd.f32 %v10391_v1, %v10031_v36  ;;  %v10034_v38 = vadd.f32 %v10033_v43, %v10032_v62  ;;  %v12046_v18 = vld [vmem:[%s16642_s3 + $0x4e0] sm:$0xff]  }
 0xc86   : > { %10061 = vmatprep.subr.bf16.mxu1 %v12046_v18  ;;  %v12052_v18 = vld [vmem:[%s16642_s3 + $0x4f8] sm:$0xff]  }
 0xc87   : > { %v14990_v35 = vsel %vm437_vm3, %v5600_v17, 0.0  ;;  %v5601_v46 = vrot.slane %v14981_v31, 7  ;;  %v5562_v32 = vmul.f32 %v14962_v42, %v5530_v50  ;;  %v5533_v11 = vadd.f32 %v10392_v29, %v10034_v38 }
 0xc88   : > { %v14998_v53 = vsel %vm437_vm3, 0.0, %v5600_v17  ;;  %v5689_v15 = vrot.slane %v14990_v35, 2  ;;  %10062 = vmatpush3.bf16.msra.mxu1 %v12047_v25  ;;  %v12050_v17 = vld [vmem:[%s16642_s3 + $0x4f0] sm:$0xff]   ;;  %v5647_v25 = vrot.slane %v14990_v35, 1 }
 0xc89   : > { %v15005_v57 = vsel %vm437_vm3, 0.0, %v5601_v46  ;;  %v5625_v33 = vsel %vm437_vm3, %v5601_v46, 0.0  ;;  %v5578_v41 = vadd.f32 %v14967_v60, %v5562_v32  ;;  %v5563_v21 = vmul.f32 %v14962_v42, %v5533_v11  ;;  %10063 = vmatprep.subr.bf16.mxu1 %v12048_v6  ;;  %v12051_v11 = vld [vmem:[%s16642_s3 + $0x4b0] sm:$0xff]  }
 0xc8a   : > { %v5692_v1 = vrot.slane %v5625_v33, 2  ;;  %v11358_v45 = vpack.i.bf16 %v15005_v57, %v14998_v53  ;;  %v5688_v29 = vrot.slane %v14998_v53, 2  ;;  %v5691_v10 = vrot.slane %v15005_v57, 2 }
 0xc8b   : > { %v15014_v4 = vadd.f32 %v5578_v41, %v14354_v0  ;;  %v5579_v63 = vadd.f32 %v14967_v60, %v5563_v21  ;;  %v10035_v7 = vpop.f32.mrb[96].mxu0  ;;  %v5650_v28 = vrot.slane %v5625_v33, 1  ;;  %v5649_v3 = vrot.slane %v15005_v57, 1 }
 0xc8c   : > { %11359 = vrot.lane.b32.xlu0 %v11358_v45, %s12192_s9  ;;  %v5690_v58 = vsel %vm339_vm1, %v5688_v29, %v5689_v15  ;;  %v15031_v5 = vsel %vm339_vm1, %v5691_v10, %v5692_v1  ;;  %v10036_v54 = vpop.f32.mrb[97].mxu0  ;;  %10064 = vmatpush3.bf16.msra.mxu1 %v12049_v37  ;;  %v5646_v1 = vrot.slane %v14998_v53, 1  ;;  %v12053_v45 = vld [vmem:[%s16642_s3 + $0x4b8] sm:$0xff]  }
 0xc8d   : > { %v5602_v8 = vrot.slane %v15014_v4, 7  ;;  %v15027_v0 = vadd.f32 %v5579_v63, %v14368_v2  ;;  %v11363_v47 = vpack.i.bf16 %v15031_v5, %v5690_v58  ;;  %v10037_v40 = vadd.f32 %v10036_v54, %v10035_v7  ;;  %v10038_v52 = vpop.f32.mrb[98].mxu0  ;;  %10065 = vmatprep.subr.bf16.mxu1 %v12050_v17 }
 0xc8e   : > { %v10039_v9 = vpop.f32.mrb[99].mxu0 }
 0xc8f   : > { %v15036_v22 = vsel %vm437_vm3, 0.0, %v5602_v8  ;;  %v5626_v34 = vsel %vm437_vm3, %v5602_v8, 0.0  ;;  %v5603_v2 = vrot.slane %v15027_v0, 7  ;;  %11364 = vrot.lane.b32.xlu1 %v11363_v47, %s12193_s14  ;;  %v5538_v62 = vadd.f32 %v10037_v40, %v14932_v56 }
 0xc90   : > { %v5653_v27 = vrot.slane %v5626_v34, 1  ;;  %v5695_v48 = vrot.slane %v5626_v34, 2  ;;  %v11368_v14 = vpack.i.bf16 %v15036_v22, %v15005_v57  ;;  %v5694_v59 = vrot.slane %v15036_v22, 2  ;;  %10066 = vmatpush3.bf16.msra.mxu1 %v12051_v11 }
 0xc91   : > { %v15045_v39 = vsel %vm437_vm3, 0.0, %v5603_v2  ;;  %v15048_v36 = vsel %vm437_vm3, %v5603_v2, 0.0  ;;  %v10040_v43 = vadd.f32 %v10039_v9, %v10038_v52  ;;  %v5564_v44 = vmul.f32 %v14962_v42, %v5538_v62  ;;  %10067 = vmatprep.subr.bf16.mxu1 %v12052_v18 }
 0xc92   : > { %v5698_v50 = vrot.slane %v15048_v36, 2  ;;  %v11373_v38 = vpack.i.bf16 %v15045_v39, %v5690_v58  ;;  %v15057_v23 = vsel %vm339_vm1, %v5694_v59, %v5695_v48  ;;  %v5652_v56 = vrot.slane %v15036_v22, 1 }
 0xc93   : > { %v5541_v46 = vadd.f32 %v10040_v43, %v14936_v19  ;;  %v5891_v32 = vpack.c.bf16 %v15057_v23, %v15031_v5  ;;  %11369 = vrot.lane.b32.xlu1 %v11368_v14, %s12194_s15  ;;  %v15073_v19 = vsel %vm472_vm4, %v5649_v3, %v5650_v28  ;;  %v5697_v15 = vrot.slane %v15045_v39, 2 }
 0xc94   : > { %11374 = vrot.lane.b32.xlu0 %v11373_v38, %s12194_s15  ;;  %v5580_v33 = vadd.f32 %v14967_v60, %v5564_v44  ;;  %v15081_v21 = vsel %vm472_vm4, %v5652_v56, %v5653_v27  ;;  %v11378_v35 = vpack.i.bf16 %v15045_v39, %v15036_v22  ;;  %10068 = vmatpush3.bf16.msra.mxu1 %v12053_v45  ;;  %v5656_v47 = vrot.slane %v15048_v36, 1 }
 0xc95   : > { %v5565_v41 = vmul.f32 %v14962_v42, %v5541_v46  ;;  %10401 = vmatprep.mubr.msk.bf16.mxu0 %vm689_vm5, %v5891_v32  ;;  %v11388_v29 = vpack.i.bf16 %v15081_v21, %v15073_v19  ;;  %v10041_v6 = vpop.f32.mrb[100].mxu0  ;;  %v15096_v37 = vsel %vm339_vm1, %v5697_v15, %v5698_v50  ;;  %v5655_v59 = vrot.slane %v15045_v39, 1 }
 0xc96   : > { %v15092_v63 = vadd.f32 %v5580_v33, %v14418_v61  ;;  %v10042_v8 = vpop.f32.mrb[101].mxu0  ;;  %v15105_v61 = vsel %vm472_vm4, %v5646_v1, %v5647_v25  ;;  %v11393_v34 = vpack.i.bf16 %v15073_v19, %v15096_v37 }
 0xc97   : > { %v5581_v10 = vadd.f32 %v14967_v60, %v5565_v41  ;;  %11389 = vrot.lane.b32.xlu1 %v11388_v29, %s12192_s9  ;;  %v10043_v28 = vadd.f32 %v10042_v8, %v10041_v6  ;;  %v10044_v54 = vpop.f32.mrb[102].mxu0  ;;  %v11383_v2 = vpack.i.bf16 %v15057_v23, %v15105_v61 }
 0xc98   : > { %11379 = vrot.lane.b32.xlu0 %v11378_v35, %s12192_s9  ;;  %v5604_v7 = vrot.slane %v15092_v63, 7  ;;  %v10045_v3 = vpop.f32.mrb[103].mxu0 }
 0xc99   : > { %v15102_v58 = vadd.f32 %v5581_v10, %v14443_v20  ;;  %v5546_v27 = vadd.f32 %v14930_v26, %v10043_v28  ;;  %v10046_v9 = vadd.f32 %v10045_v3, %v10044_v54 }
 0xc9a   : > { %v15113_v40 = vsel %vm437_vm3, 0.0, %v5604_v7  ;;  %v5628_v20 = vsel %vm437_vm3, %v5604_v7, 0.0 }
 0xc9b   : > { %v5605_v52 = vrot.slane %v15102_v58, 7  ;;  %v5701_v48 = vrot.slane %v5628_v20, 2  ;;  %v5700_v14 = vrot.slane %v15113_v40, 2  ;;  %11394 = vrot.lane.b32.xlu1 %v11393_v34, %s12193_s14  ;;  %v5659_v36 = vrot.slane %v5628_v20, 1 }
 0xc9c   : > { %11384 = vrot.lane.b32.xlu0 %v11383_v2, %s12193_s14  ;;  %v5566_v17 = vmul.f32 %v14962_v42, %v5546_v27  ;;  %v5549_v26 = vadd.f32 %v14934_v55, %v10046_v9  ;;  %v11398_v44 = vpack.i.bf16 %v15031_v5, %v15113_v40  ;;  %v5658_v11 = vrot.slane %v15113_v40, 1 }
 0xc9d   : > { %v15123_v62 = vsel %vm437_vm3, 0.0, %v5605_v52  ;;  %v5629_v43 = vsel %vm437_vm3, %v5605_v52, 0.0  ;;  %v5702_v38 = vsel %vm339_vm1, %v5700_v14, %v5701_v48  ;;  %v15145_v5 = vsel %vm472_vm4, %v5655_v59, %v5656_v47 }
 0xc9e   : > { %v5704_v50 = vrot.slane %v5629_v43, 2  ;;  %v5582_v46 = vadd.f32 %v14967_v60, %v5566_v17  ;;  %v5894_v32 = vpack.c.bf16 %v5702_v38, %v15096_v37  ;;  %v11403_v56 = vpack.i.bf16 %v15123_v62, %v15057_v23 }
 0xc9f   : > { %v5567_v18 = vmul.f32 %v14962_v42, %v5549_v26  ;;  %11399 = vrot.lane.b32.xlu1 %v11398_v44, %s12194_s15  ;;  %v5703_v55 = vrot.slane %v15123_v62, 2  ;;  %v15148_v23 = vsel %vm472_vm4, %v5658_v11, %v5659_v36  ;;  %v5662_v8 = vrot.slane %v5629_v43, 1 }
 0xca0   : > { %v15140_v15 = vadd.f32 %v5582_v46, %v14478_v24  ;;  %10402 = vmatmul.mubr.msk.bf16.vlgmr.msra.gmra.mrb[104].mxu0 %vm689_vm5, %v5894_v32  ;;  %11404 = vrot.lane.b32.xlu0 %v11403_v56, %s12194_s15  ;;  %v11413_v42 = vpack.i.bf16 %v15148_v23, %v15145_v5  ;;  %v11408_v24 = vpack.i.bf16 %v5702_v38, %v15081_v21  ;;  %v5661_v3 = vrot.slane %v15123_v62, 1 }
 0xca1   : > { %v5583_v25 = vadd.f32 %v14967_v60, %v5567_v18  ;;  %v5705_v41 = vsel %vm339_vm1, %v5703_v55, %v5704_v50  ;;  %v11438_v43 = vpack.i.bf16 %v15123_v62, %v15113_v40 }
 0xca2   : > { %v5606_v33 = vrot.slane %v15140_v15, 7  ;;  %v11418_v10 = vpack.i.bf16 %v15145_v5, %v5705_v41  ;;  %v15186_v36 = vsel %vm472_vm4, %v5661_v3, %v5662_v8 }
 0xca3   : > { %v15157_v1 = vadd.f32 %v5583_v25, %v14489_v16  ;;  %11414 = vrot.lane.b32.xlu1 %v11413_v42, %s12192_s9 }
 0xca4   : > { %v15161_v45 = vsel %vm437_vm3, 0.0, %v5606_v33  ;;  %v5630_v29 = vsel %vm437_vm3, %v5606_v33, 0.0  ;;  %11409 = vrot.lane.b32.xlu0 %v11408_v24, %s12193_s14 }
 0xca5   : > { %v5707_v60 = vrot.slane %v5630_v29, 2  ;;  %v5607_v35 = vrot.slane %v15157_v1, 7  ;;  %v5706_v6 = vrot.slane %v15161_v45, 2  ;;  %v5665_v7 = vrot.slane %v5630_v29, 1 }
 0xca6   : > { %v5664_v16 = vrot.slane %v15161_v45, 1  ;;  %v11423_v27 = vpack.i.bf16 %v15096_v37, %v15161_v45 }
 0xca7   : > { %v5631_v28 = vsel %vm437_vm3, %v5607_v35, 0.0  ;;  %11419 = vrot.lane.b32.xlu1 %v11418_v10, %s12193_s14  ;;  %v5623_v54 = vsel %vm437_vm3, 0.0, %v5607_v35  ;;  %v5708_v47 = vsel %vm339_vm1, %v5706_v6, %v5707_v60 }
 0xca8   : > { %v11428_v34 = vpack.i.bf16 %v5623_v54, %v5702_v38  ;;  %v5897_v2 = vpack.c.bf16 %v5708_v47, %v5705_v41  ;;  %v5767_v20 = vrot.slane %v5623_v54, 2  ;;  %v5768_v52 = vrot.slane %v5631_v28, 2 }
 0xca9   : > { %v15180_v9 = vsel %vm472_vm4, %v5664_v16, %v5665_v7  ;;  %v11433_v59 = vpack.i.bf16 %v5708_v47, %v15148_v23  ;;  %v11448_v17 = vpack.i.bf16 %v5708_v47, %v5705_v41  ;;  %v5756_v50 = vrot.slane %v5623_v54, 1 }
 0xcaa   : > { %11429 = vrot.lane.b32.xlu0 %v11428_v34, %s12194_s15  ;;  %10405 = vmatprep.mubr.msk.bf16.mxu0 %vm689_vm5, %v5897_v2  ;;  %v5769_v48 = vsel %vm339_vm1, %v5767_v20, %v5768_v52  ;;  %v11443_v37 = vpack.i.bf16 %v15180_v9, %v15186_v36  ;;  %v5757_v26 = vrot.slane %v5631_v28, 1 }
 0xcab   : > { %v5900_v14 = vpack.c.bf16 %v12381_v51, %v5769_v48  ;;  %11424 = vrot.lane.b32.xlu1 %v11423_v27, %s12194_s15  ;;  %v11453_v38 = vpack.i.bf16 %v15186_v36, %v5769_v48 }
 0xcac   : > { %v15199_v44 = vsel %vm472_vm4, %v5756_v50, %v5757_v26 }
 0xcad   : > { %10406 = vmatmul.mubr.msk.bf16.gmra.mrb[108].mxu0 %vm689_vm5, %v5900_v14  ;;  %v11458_v46 = vpack.i.bf16 %v15161_v45, %v15199_v44 }
 0xcae   : > { %11434 = vrot.lane.b32.xlu0 %v11433_v59, %s12193_s14 }
 0xcaf   : > { %11444 = vrot.lane.b32.xlu1 %v11443_v37, %s12192_s9 }
 0xcb2   : > { %11439 = vrot.lane.b32.xlu0 %v11438_v43, %s12192_s9 }
 0xcb3   : > { %11449 = vrot.lane.b32.xlu1 %v11448_v17, %s12194_s15 }
 0xcb6   : > { %5679 = vrot.lane.b32.xlu0 %v15180_v9, %s12193_s14 }
 0xcb7   : > { %11454 = vrot.lane.b32.xlu1 %v11453_v38, %s12193_s14 }
 0xcba   : > { %11459 = vrot.lane.b32.xlu0 %v11458_v46, %s12192_s9 }
 0xcbb   : > { %5745 = vrot.lane.b32.xlu1 %v5623_v54, %s12192_s9 }
 0xcfe   : > { %v11360_v32 = vpop.permute.xlu0 %11359 }
 0xcff   : > { %v11361_v3 = vunpack.i.l.bf16 %v11360_v32 }
 0xd01   : > { %v11365_v56 = vpop.permute.xlu1 %11364  ;;  %v5857_v48 = vsel %vm707_vm7, %v12587_v13, %v11361_v3 }
 0xd02   : > { %v11367_v55 = vunpack.i.h.bf16 %v11365_v56  ;;  %v11366_v25 = vunpack.i.l.bf16 %v11365_v56 }
 0xd04   : > { %v5866_v29 = vsel %vm689_vm5, %v15073_v19, %v11367_v55  ;;  %v5865_v60 = vsel %vm689_vm5, %v15105_v61, %v11366_v25  ;;  %v11362_v19 = vunpack.i.h.bf16 %v11360_v32 }
 0xd05   : > { %v11370_v11 = vpop.permute.xlu1 %11369 }
 0xd06   : > { %v11375_v18 = vpop.permute.xlu0 %11374  ;;  %v11372_v42 = vunpack.i.h.bf16 %v11370_v11  ;;  %v11371_v33 = vunpack.i.l.bf16 %v11370_v11 }
 0xd07   : > { %v11376_v2 = vunpack.i.l.bf16 %v11375_v18  ;;  %v11377_v46 = vunpack.i.h.bf16 %v11375_v18 }
 0xd08   : > { %v5873_v6 = vsel %vm698_vm6, %v5865_v60, %v11371_v33  ;;  %v5874_v8 = vsel %vm698_vm6, %v5866_v29, %v11372_v42 }
 0xd09   : > { %v11390_v24 = vpop.permute.xlu1 %11389 }
 0xd0a   : > { %v11380_v41 = vpop.permute.xlu0 %11379  ;;  %v11392_v35 = vunpack.i.h.bf16 %v11390_v24  ;;  %v11391_v10 = vunpack.i.l.bf16 %v11390_v24 }
 0xd0c   : > { %v5881_v7 = vsel %vm707_vm7, %v5873_v6, %v11391_v10  ;;  %v5882_v16 = vsel %vm707_vm7, %v5874_v8, %v11392_v35  ;;  %v11382_v35 = vunpack.i.h.bf16 %v11380_v41 }
 0xd0d   : > { %v11395_v28 = vpop.permute.xlu1 %11394  ;;  %v5890_v47 = vpack.c.bf16 %v5882_v16, %v5881_v7 }
 0xd0e   : > { %v11385_v54 = vpop.permute.xlu0 %11384  ;;  %v11396_v14 = vunpack.i.l.bf16 %v11395_v28  ;;  %v11397_v43 = vunpack.i.h.bf16 %v11395_v28 }
 0xd0f   : > { %v11386_v34 = vunpack.i.l.bf16 %v11385_v54  ;;  %6090 = vmatprep.mubr.bf16.mxu1 %v5890_v47  ;;  %v11387_v20 = vunpack.i.h.bf16 %v11385_v54 }
 0xd10   : > { %v5844_v25 = vsel %vm689_vm5, %v15005_v57, %v11397_v43 }
 0xd11   : > { %v5843_v61 = vsel %vm689_vm5, %v14998_v53, %v11386_v34  ;;  %v11400_v27 = vpop.permute.xlu1 %11399  ;;  %v5867_v26 = vsel %vm689_vm5, %v15081_v21, %v11387_v20  ;;  %v5868_v53 = vsel %vm689_vm5, %v15145_v5, %v11396_v14  ;;  %v11381_v5 = vunpack.i.l.bf16 %v11380_v41 }
 0xd12   : > { %v5850_v52 = vsel %vm698_vm6, %v5843_v61, %v11376_v2  ;;  %v11405_v37 = vpop.permute.xlu0 %11404  ;;  %v11401_v17 = vunpack.i.l.bf16 %v11400_v27  ;;  %v11402_v38 = vunpack.i.h.bf16 %v11400_v27  ;;  %v5875_v33 = vsel %vm698_vm6, %v5867_v26, %v11377_v46 }
 0xd13   : > { %v5858_v59 = vsel %vm707_vm7, %v5850_v52, %v11362_v19  ;;  %v11406_v29 = vunpack.i.l.bf16 %v11405_v37  ;;  %v11407_v19 = vunpack.i.h.bf16 %v11405_v37 }
 0xd14   : > { %v5889_v50 = vpack.c.bf16 %v5858_v59, %v5857_v48  ;;  %v5876_v24 = vsel %vm698_vm6, %v5868_v53, %v11401_v17  ;;  %v5851_v60 = vsel %vm698_vm6, %v5844_v25, %v11402_v38 }
 0xd15   : > { %v11415_v32 = vpop.permute.xlu1 %11414  ;;  %v5859_v7 = vsel %vm707_vm7, %v5851_v60, %v11381_v5 }
 0xd16   : > { %6091 = vmatmul.mubr.bf16.vlgmr.msra.gmra.mrb[96].mxu1 %v5889_v50  ;;  %v11417_v56 = vunpack.i.h.bf16 %v11415_v32  ;;  %v11416_v11 = vunpack.i.l.bf16 %v11415_v32  ;;  %v11410_v55 = vpop.permute.xlu0 %11409 }
 0xd17   : > { %v11411_v42 = vunpack.i.l.bf16 %v11410_v55  ;;  %v11412_v28 = vunpack.i.h.bf16 %v11410_v55 }
 0xd18   : > { %v5883_v21 = vsel %vm707_vm7, %v5875_v33, %v11416_v11  ;;  %v5884_v18 = vsel %vm707_vm7, %v5876_v24, %v11417_v56 }
 0xd19   : > { %v5845_v10 = vsel %vm689_vm5, %v15036_v22, %v11411_v42  ;;  %v11420_v6 = vpop.permute.xlu1 %11419  ;;  %v5893_v8 = vpack.c.bf16 %v5884_v18, %v5883_v21  ;;  %v5869_v41 = vsel %vm689_vm5, %v15148_v23, %v11412_v28 }
 0xd1a   : > { %v5852_v57 = vsel %vm698_vm6, %v5845_v10, %v11406_v29  ;;  %v11421_v34 = vunpack.i.l.bf16 %v11420_v6  ;;  %v11422_v20 = vunpack.i.h.bf16 %v11420_v6  ;;  %v5877_v17 = vsel %vm698_vm6, %v5869_v41, %v11407_v19 }
 0xd1b   : > { %6098 = vmatprep.mubr.bf16.mxu1 %v5893_v8  ;;  %v5860_v16 = vsel %vm707_vm7, %v5852_v57, %v11382_v35 }
 0xd1c   : > { %v11430_v54 = vpop.permute.xlu0 %11429  ;;  %v5892_v47 = vpack.c.bf16 %v5860_v16, %v5859_v7  ;;  %v5870_v27 = vsel %vm689_vm5, %v15186_v36, %v11421_v34  ;;  %v5846_v46 = vsel %vm689_vm5, %v15045_v39, %v11422_v20 }
 0xd1d   : > { %v11425_v3 = vpop.permute.xlu1 %11424  ;;  %v11431_v26 = vunpack.i.l.bf16 %v11430_v54  ;;  %v11432_v10 = vunpack.i.h.bf16 %v11430_v54 }
 0xd1e   : > { %6099 = vmatmul.mubr.bf16.gmra.mrb[100].mxu1 %v5892_v47  ;;  %v11426_v2 = vunpack.i.l.bf16 %v11425_v3  ;;  %v11427_v48 = vunpack.i.h.bf16 %v11425_v3 }
 0xd20   : > { %v11435_v22 = vpop.permute.xlu0 %11434  ;;  %v5878_v50 = vsel %vm698_vm6, %v5870_v27, %v11426_v2  ;;  %v5853_v11 = vsel %vm698_vm6, %v5846_v46, %v11427_v48 }
 0xd21   : > { %v11436_v61 = vunpack.i.l.bf16 %v11435_v22  ;;  %v11445_v52 = vpop.permute.xlu1 %11444  ;;  %v11437_v55 = vunpack.i.h.bf16 %v11435_v22 }
 0xd22   : > { %v11447_v14 = vunpack.i.h.bf16 %v11445_v52  ;;  %v11446_v59 = vunpack.i.l.bf16 %v11445_v52 }
 0xd23   : > { %v5847_v43 = vsel %vm689_vm5, %v15113_v40, %v11436_v61  ;;  %v5871_v35 = vsel %vm689_vm5, %v15180_v9, %v11437_v55 }
 0xd24   : > { %v11440_v23 = vpop.permute.xlu0 %11439  ;;  %v5885_v37 = vsel %vm707_vm7, %v5877_v17, %v11446_v59  ;;  %v5886_v38 = vsel %vm707_vm7, %v5878_v50, %v11447_v14  ;;  %v5854_v40 = vsel %vm698_vm6, %v5847_v43, %v11431_v26  ;;  %v5879_v54 = vsel %vm698_vm6, %v5871_v35, %v11432_v10  ;;  %v12054_v59 = vld [vmem:[%s16642_s3 + $0x590] sm:$0xff]   ;;  %v12055_v43 = vld [vmem:[%s16642_s3 + $0x598] sm:$0xff]  }
 0xd25   : > { %v11442_v36 = vunpack.i.h.bf16 %v11440_v23  ;;  %v11441_v32 = vunpack.i.l.bf16 %v11440_v23  ;;  %v11450_v53 = vpop.permute.xlu1 %11449  ;;  %v5896_v56 = vpack.c.bf16 %v5886_v38, %v5885_v37  ;;  %10409 = vmatprep.subr.bf16.mxu0 %v12054_v59  ;;  %v12056_v17 = vld [vmem:[%s16642_s3 + $0x550] sm:$0xff]   ;;  %v12058_v26 = vld [vmem:[%s16642_s3 + $0x558] sm:$0xff]   ;;  %v12060_v37 = vld [vmem:[%s16642_s3 + $0x560] sm:$0xff]  }
 0xd26   : > { %v11452_v33 = vunpack.i.h.bf16 %v11450_v53  ;;  %v11451_v5 = vunpack.i.l.bf16 %v11450_v53  ;;  %10410 = vmatpush3.bf16.msra.mxu0 %v12054_v59  ;;  %v12057_v50 = vld [vmem:[%s16642_s3 + $0x510] sm:$0xff]   ;;  %10099 = vmatprep.subr.bf16.mxu1 %v12056_v17  ;;  %v12059_v23 = vld [vmem:[%s16642_s3 + $0x518] sm:$0xff]   ;;  %v12061_v38 = vld [vmem:[%s16642_s3 + $0x520] sm:$0xff]  }
 0xd27   : > { %6106 = vmatprep.mubr.bf16.mxu1 %v5896_v56  ;;  %v5861_v25 = vsel %vm707_vm7, %v5853_v11, %v11441_v32  ;;  %v5862_v42 = vsel %vm707_vm7, %v5854_v40, %v11442_v36  ;;  %10411 = vmatprep.subr.bf16.mxu0 %v12055_v43  ;;  %v15307_v56 = vld [vmem:[%s16643_s4 + $0x8] ss:$0 sm:$0xff] }
 0xd28   : > { %v5680_v24 = vpop.permute.xlu0 %5679  ;;  %v5895_v29 = vpack.c.bf16 %v5862_v42, %v5861_v25  ;;  %10100 = vmatpush3.bf16.msra.mxu1 %v12057_v50  ;;  %v15312_v25 = vld [vmem:[%s16644_s5 + $0x8] ss:$0 sm:$0xff] }
 0xd29   : > { %v5849_v39 = vsel %vm689_vm5, %v15161_v45, %v5680_v24  ;;  %v11455_v21 = vpop.permute.xlu1 %11454  ;;  %10101 = vmatprep.subr.bf16.mxu1 %v12058_v26 }
 0xd2a   : > { %6107 = vmatmul.mubr.bf16.gmra.mrb[104].mxu1 %v5895_v29  ;;  %v11457_v18 = vunpack.i.h.bf16 %v11455_v21  ;;  %v11456_v60 = vunpack.i.l.bf16 %v11455_v21  ;;  %v5856_v7 = vsel %vm698_vm6, %v5849_v39, %v11452_v33  ;;  %10412 = vmatpush3.bf16.msra.mxu0 %v12055_v43  ;;  %v12062_v21 = vld [vmem:[%s16642_s3 + $0x568] sm:$0xff]  }
 0xd2c   : > { %v5848_v6 = vsel %vm689_vm5, %v15123_v62, %v11457_v18  ;;  %v5872_v8 = vsel %vm689_vm5, %v15199_v44, %v11456_v60  ;;  %v11460_v57 = vpop.permute.xlu0 %11459  ;;  %10102 = vmatpush3.bf16.msra.mxu1 %v12059_v23 }
 0xd2d   : > { %v11462_v16 = vunpack.i.h.bf16 %v11460_v57  ;;  %v11461_v45 = vunpack.i.l.bf16 %v11460_v57  ;;  %v5746_v28 = vpop.permute.xlu1 %5745  ;;  %v5855_v47 = vsel %vm698_vm6, %v5848_v6, %v11451_v5  ;;  %v5880_v3 = vsel %vm698_vm6, %v5872_v8, %v12635_v12  ;;  %10103 = vmatprep.subr.bf16.mxu1 %v12060_v37 }
 0xd2e   : > { %v5864_v9 = vsel %vm707_vm7, %v5856_v7, %v5746_v28  ;;  %v5888_v62 = vsel %vm707_vm7, %v5880_v3, %v12645_v30  ;;  %v12063_v7 = vld [vmem:[%s16642_s3 + $0x528] sm:$0xff]  }
 0xd2f   : > { %v5863_v44 = vsel %vm707_vm7, %v5855_v47, %v11462_v16  ;;  %v5887_v34 = vsel %vm707_vm7, %v5879_v54, %v11461_v45  ;;  %v12064_v16 = vld [vmem:[%s16642_s3 + $0x570] sm:$0xff]  }
 0xd30   : > { %v5898_v2 = vpack.c.bf16 %v5864_v9, %v5863_v44  ;;  %v5899_v41 = vpack.c.bf16 %v5888_v62, %v5887_v34  ;;  %10104 = vmatpush3.bf16.msra.mxu1 %v12061_v38  ;;  %v12067_v38 = vld [vmem:[%s16642_s3 + $0x538] sm:$0xff]  }
 0xd31   : > { %10105 = vmatprep.subr.bf16.mxu1 %v12062_v21 }
 0xd32   : > { %6114 = vmatprep.mubr.bf16.mxu1 %v5899_v41  ;;  %v12065_v41 = vld [vmem:[%s16642_s3 + $0x530] sm:$0xff]  }
 0xd33   : > { %6115 = vmatmul.mubr.bf16.gmra.mrb[108].mxu1 %v5898_v2 }
 0xd34   : > { %10106 = vmatpush3.bf16.msra.mxu1 %v12063_v7 }
 0xd35   : > { %10107 = vmatprep.subr.bf16.mxu1 %v12064_v16 }
 0xd38   : > { %10108 = vmatpush3.bf16.msra.mxu1 %v12065_v41 }
 0xd73   : > { %v10403_v22 = vpop.f32.mrb[104].mxu0 }
 0xd74   : > { %v6157_v19 = vpop.f32.mrb[105].mxu0 }
 0xd75   : > { %v10404_v20 = vpop.f32.mrb[106].mxu0 }
 0xd76   : > { %v6160_v61 = vpop.f32.mrb[107].mxu0 }
 0xd80   : > { %v15272_v52 = vpop.f32.mrb[108].mxu0 }
 0xd81   : > { %v15274_v27 = vpop.f32.mrb[109].mxu0 }
 0xd82   : > { %v15276_v48 = vpop.f32.mrb[110].mxu0 }
 0xd83   : > { %v15278_v14 = vpop.f32.mrb[111].mxu0 }
 0xde9   : > { %v10069_v46 = vpop.f32.mrb[96].mxu1 }
 0xdea   : > { %v10070_v36 = vpop.f32.mrb[97].mxu1 }
 0xdeb   : > { %v10071_v32 = vadd.f32 %v10070_v36, %v10069_v46  ;;  %v10072_v53 = vpop.f32.mrb[98].mxu1 }
 0xdec   : > { %v10073_v11 = vpop.f32.mrb[99].mxu1 }
 0xded   : > { %v6158_v40 = vadd.f32 %v10071_v32, %v6157_v19  ;;  %v10074_v55 = vadd.f32 %v10073_v11, %v10072_v53  ;;  %v12068_v32 = vld [vmem:[%s16642_s3 + $0x580] sm:$0xff]  }
 0xdef   : > { %v6196_v42 = vmul.f32 %v15307_v56, %v6158_v40  ;;  %v6161_v33 = vadd.f32 %v10074_v55, %v6160_v61 }
 0xdf1   : > { %v6212_v24 = vadd.f32 %v15312_v25, %v6196_v42  ;;  %v6197_v29 = vmul.f32 %v15307_v56, %v6161_v33  ;;  %v10075_v39 = vpop.f32.mrb[100].mxu1 }
 0xdf2   : > { %v10076_v35 = vpop.f32.mrb[101].mxu1 }
 0xdf3   : > { %vm6220_vm10 = vcmp.gt.f32.partialorder %v6212_v24, 0.0  ;;  %v6228_v18 = vmul.f32 0.2, %v6212_v24  ;;  %v6213_v60 = vadd.f32 %v15312_v25, %v6197_v29  ;;  %v10077_v5 = vadd.f32 %v10076_v35, %v10075_v39  ;;  %v10078_v10 = vpop.f32.mrb[102].mxu1 }
 0xdf4   : > { %v10079_v57 = vpop.f32.mrb[103].mxu1 }
 0xdf5   : > { %v6236_v6 = vsel %vm6220_vm10, %v6212_v24, %v6228_v18  ;;  %vm6221_vm11 = vcmp.gt.f32.partialorder %v6213_v60, 0.0  ;;  %v6229_v8 = vmul.f32 0.2, %v6213_v60  ;;  %v6166_v28 = vadd.f32 %v10403_v22, %v10077_v5  ;;  %v12066_v22 = vld [vmem:[%s16642_s3 + $0x578] sm:$0xff]  }
 0xdf6   : > { %v6252_v45 = vrot.slane %v6236_v6, 7  ;;  %v10080_v47 = vadd.f32 %v10079_v57, %v10078_v10  ;;  %10109 = vmatprep.subr.bf16.mxu1 %v12066_v22 }
 0xdf7   : > { %v6237_v3 = vsel %vm6221_vm11, %v6213_v60, %v6229_v8  ;;  %v6198_v62 = vmul.f32 %v15307_v56, %v6166_v28  ;;  %10110 = vmatpush3.bf16.msra.mxu1 %v12067_v38  ;;  %v12069_v28 = vld [vmem:[%s16642_s3 + $0x540] sm:$0xff]  }
 0xdf8   : > { %v15328_v9 = vsel %vm437_vm3, %v6252_v45, 0.0  ;;  %v6253_v54 = vrot.slane %v6237_v3, 7  ;;  %v6169_v44 = vadd.f32 %v10404_v20, %v10080_v47  ;;  %v15332_v34 = vsel %vm437_vm3, 0.0, %v6252_v45  ;;  %10111 = vmatprep.subr.bf16.mxu1 %v12068_v32 }
 0xdf9   : > { %v6341_v2 = vrot.slane %v15328_v9, 2  ;;  %v6214_v20 = vadd.f32 %v15312_v25, %v6198_v62  ;;  %v6340_v17 = vrot.slane %v15332_v34, 2  ;;  %v6299_v24 = vrot.slane %v15328_v9, 1 }
 0xdfa   : > { %v15342_v19 = vsel %vm437_vm3, 0.0, %v6253_v54  ;;  %v6277_v61 = vsel %vm437_vm3, %v6253_v54, 0.0  ;;  %v6199_v59 = vmul.f32 %v15307_v56, %v6169_v44  ;;  %v6298_v8 = vrot.slane %v15332_v34, 1 }
 0xdfb   : > { %v11463_v43 = vpack.i.bf16 %v15342_v19, %v15332_v34  ;;  %v6343_v50 = vrot.slane %v15342_v19, 2  ;;  %v6344_v26 = vrot.slane %v6277_v61, 2  ;;  %vm6222_vm12 = vcmp.gt.f32.partialorder %v6214_v20, 0.0  ;;  %10112 = vmatpush3.bf16.msra.mxu1 %v12069_v28 }
 0xdfc   : > { %v6230_v23 = vmul.f32 0.2, %v6214_v20  ;;  %v6215_v37 = vadd.f32 %v15312_v25, %v6199_v59  ;;  %v6342_v46 = vsel %vm339_vm1, %v6340_v17, %v6341_v2  ;;  %v6301_v18 = vrot.slane %v15342_v19, 1 }
 0xdfd   : > { %11464 = vrot.lane.b32.xlu1 %v11463_v43, %s12192_s9  ;;  %v15358_v36 = vsel %vm339_vm1, %v6343_v50, %v6344_v26  ;;  %v10081_v40 = vpop.f32.mrb[104].mxu1  ;;  %v6302_v60 = vrot.slane %v6277_v61, 1  ;;  %v12070_v50 = vld [vmem:[%s16642_s3 + $0x588] sm:$0xff]  }
 0xdfe   : > { %v6238_v53 = vsel %vm6222_vm12, %v6214_v20, %v6230_v23  ;;  %vm6223_vm13 = vcmp.gt.f32.partialorder %v6215_v37, 0.0  ;;  %v6231_v11 = vmul.f32 0.2, %v6215_v37  ;;  %v11468_v55 = vpack.i.bf16 %v15358_v36, %v6342_v46  ;;  %v10082_v33 = vpop.f32.mrb[105].mxu1  ;;  %v12071_v26 = vld [vmem:[%s16642_s3 + $0x548] sm:$0xff]   ;;  %10113 = vmatprep.subr.bf16.mxu1 %v12070_v50 }
 0xdff   : > { %v6254_v42 = vrot.slane %v6238_v53, 7  ;;  %v10083_v39 = vadd.f32 %v10082_v33, %v10081_v40  ;;  %v10084_v21 = vpop.f32.mrb[106].mxu1  ;;  %v15394_v22 = vsel %vm472_vm4, %v6301_v18, %v6302_v60  ;;  %10114 = vmatpush3.bf16.msra.mxu1 %v12071_v26 }
 0xe00   : > { %v6239_v29 = vsel %vm6223_vm13, %v6215_v37, %v6231_v11  ;;  %11469 = vrot.lane.b32.xlu0 %v11468_v55, %s12193_s14  ;;  %v10085_v6 = vpop.f32.mrb[107].mxu1 }
 0xe01   : > { %v15368_v35 = vsel %vm437_vm3, 0.0, %v6254_v42  ;;  %v6278_v5 = vsel %vm437_vm3, %v6254_v42, 0.0  ;;  %v6255_v10 = vrot.slane %v6239_v29, 7  ;;  %v6174_v57 = vadd.f32 %v10083_v39, %v15274_v27 }
 0xe02   : > { %v10086_v7 = vadd.f32 %v10085_v6, %v10084_v21  ;;  %v11473_v16 = vpack.i.bf16 %v15368_v35, %v15342_v19  ;;  %v6346_v45 = vrot.slane %v15368_v35, 2  ;;  %v6347_v9 = vrot.slane %v6278_v5, 2 }
 0xe03   : > { %v15380_v47 = vsel %vm437_vm3, 0.0, %v6255_v10  ;;  %v15383_v3 = vsel %vm437_vm3, %v6255_v10, 0.0  ;;  %v6304_v54 = vrot.slane %v15368_v35, 1  ;;  %v6200_v27 = vmul.f32 %v15307_v56, %v6174_v57 }
 0xe04   : > { %v6177_v62 = vadd.f32 %v10086_v7, %v15278_v14  ;;  %11474 = vrot.lane.b32.xlu0 %v11473_v16, %s12194_s15  ;;  %v11478_v44 = vpack.i.bf16 %v15380_v47, %v6342_v46  ;;  %v6305_v2 = vrot.slane %v6278_v5, 1  ;;  %v15391_v41 = vsel %vm339_vm1, %v6346_v45, %v6347_v9 }
 0xe05   : > { %v6349_v61 = vrot.slane %v15380_v47, 2  ;;  %v6350_v20 = vrot.slane %v15383_v3, 2  ;;  %v6216_v59 = vadd.f32 %v15312_v25, %v6200_v27  ;;  %v6543_v43 = vpack.c.bf16 %v15391_v41, %v15358_v36 }
 0xe06   : > { %v6201_v14 = vmul.f32 %v15307_v56, %v6177_v62  ;;  %11479 = vrot.lane.b32.xlu1 %v11478_v44, %s12194_s15  ;;  %v15404_v17 = vsel %vm472_vm4, %v6304_v54, %v6305_v2  ;;  %v10087_v23 = vpop.f32.mrb[108].mxu1  ;;  %v11483_v38 = vpack.i.bf16 %v15380_v47, %v15368_v35  ;;  %v15424_v39 = vsel %vm472_vm4, %v6298_v8, %v6299_v24 }
 0xe07   : > { %v11493_v37 = vpack.i.bf16 %v15404_v17, %v15394_v22  ;;  %vm6224_vm14 = vcmp.gt.f32.partialorder %v6216_v59, 0.0  ;;  %v6232_v46 = vmul.f32 0.2, %v6216_v59  ;;  %v10088_v53 = vpop.f32.mrb[109].mxu1  ;;  %10413 = vmatprep.mubr.msk.bf16.mxu0 %vm689_vm5, %v6543_v43  ;;  %v15419_v11 = vsel %vm339_vm1, %v6349_v61, %v6350_v20 }
 0xe08   : > { %v6217_v32 = vadd.f32 %v15312_v25, %v6201_v14  ;;  %v10089_v40 = vadd.f32 %v10088_v53, %v10087_v23  ;;  %v10090_v55 = vpop.f32.mrb[110].mxu1  ;;  %v11498_v5 = vpack.i.bf16 %v15394_v22, %v15419_v11  ;;  %v11488_v6 = vpack.i.bf16 %v15391_v41, %v15424_v39 }
 0xe09   : > { %11494 = vrot.lane.b32.xlu0 %v11493_v37, %s12192_s9  ;;  %v6240_v42 = vsel %vm6224_vm14, %v6216_v59, %v6232_v46  ;;  %v10091_v29 = vpop.f32.mrb[111].mxu1  ;;  %v6307_v57 = vrot.slane %v15380_v47, 1  ;;  %v6308_v7 = vrot.slane %v15383_v3, 1 }
 0xe0a   : > { %vm6225_vm15 = vcmp.gt.f32.partialorder %v6217_v32, 0.0  ;;  %v6233_v33 = vmul.f32 0.2, %v6217_v32  ;;  %11484 = vrot.lane.b32.xlu1 %v11483_v38, %s12192_s9  ;;  %v6256_v21 = vrot.slane %v6240_v42, 7  ;;  %v6182_v18 = vadd.f32 %v15272_v52, %v10089_v40 }
 0xe0b   : > { %v10092_v60 = vadd.f32 %v10091_v29, %v10090_v55  ;;  %v15457_v14 = vsel %vm472_vm4, %v6307_v57, %v6308_v7 }
 0xe0c   : > { %v6241_v10 = vsel %vm6225_vm15, %v6217_v32, %v6233_v33  ;;  %v15434_v16 = vsel %vm437_vm3, 0.0, %v6256_v21  ;;  %v6280_v24 = vsel %vm437_vm3, %v6256_v21, 0.0  ;;  %v6202_v52 = vmul.f32 %v15307_v56, %v6182_v18 }
 0xe0d   : > { %v6257_v8 = vrot.slane %v6241_v10, 7  ;;  %11499 = vrot.lane.b32.xlu0 %v11498_v5, %s12193_s14  ;;  %v6353_v45 = vrot.slane %v6280_v24, 2  ;;  %v6185_v28 = vadd.f32 %v15276_v48, %v10092_v60  ;;  %v6352_v9 = vrot.slane %v15434_v16, 2 }
 0xe0e   : > { %11489 = vrot.lane.b32.xlu1 %v11488_v6, %s12193_s14  ;;  %v11503_v3 = vpack.i.bf16 %v15358_v36, %v15434_v16  ;;  %v6218_v62 = vadd.f32 %v15312_v25, %v6202_v52  ;;  %v6310_v44 = vrot.slane %v15434_v16, 1  ;;  %v6311_v20 = vrot.slane %v6280_v24, 1 }
 0xe0f   : > { %v15445_v54 = vsel %vm437_vm3, 0.0, %v6257_v8  ;;  %v6281_v27 = vsel %vm437_vm3, %v6257_v8, 0.0  ;;  %v6203_v2 = vmul.f32 %v15307_v56, %v6185_v28  ;;  %v6354_v48 = vsel %vm339_vm1, %v6352_v9, %v6353_v45 }
 0xe10   : > { %v11508_v61 = vpack.i.bf16 %v15445_v54, %v15391_v41  ;;  %vm6226_vm0 = vcmp.gt.f32.partialorder %v6218_v62, 0.0  ;;  %v6234_v59 = vmul.f32 0.2, %v6218_v62  ;;  %v6546_v36 = vpack.c.bf16 %v6354_v48, %v15419_v11 }
 0xe11   : > { %11504 = vrot.lane.b32.xlu0 %v11503_v3, %s12194_s15  ;;  %v6219_v43 = vadd.f32 %v15312_v25, %v6203_v2  ;;  %v15462_v56 = vsel %vm472_vm4, %v6310_v44, %v6311_v20  ;;  %v6355_v50 = vrot.slane %v15445_v54, 2  ;;  %v6356_v41 = vrot.slane %v6281_v27, 2 }
 0xe12   : > { %11509 = vrot.lane.b32.xlu1 %v11508_v61, %s12194_s15  ;;  %v6242_v26 = vsel %vm6226_vm0, %v6218_v62, %v6234_v59  ;;  %10414 = vmatmul.mubr.msk.bf16.vlgmr.msra.gmra.mrb[112].mxu0 %vm689_vm5, %v6546_v36  ;;  %v11518_v23 = vpack.i.bf16 %v15462_v56, %v15457_v14  ;;  %v11513_v37 = vpack.i.bf16 %v6354_v48, %v15404_v17  ;;  %v6313_v21 = vrot.slane %v15445_v54, 1 }
 0xe13   : > { %v6258_v38 = vrot.slane %v6242_v26, 7  ;;  %vm6227_vm2 = vcmp.gt.f32.partialorder %v6219_v43, 0.0  ;;  %v6235_v46 = vmul.f32 0.2, %v6219_v43  ;;  %v6357_v25 = vsel %vm339_vm1, %v6355_v50, %v6356_v41 }
 0xe14   : > { %v11523_v42 = vpack.i.bf16 %v15457_v14, %v6357_v25  ;;  %v6314_v57 = vrot.slane %v6281_v27, 1  ;;  %v11543_v2 = vpack.i.bf16 %v15445_v54, %v15434_v16 }
 0xe15   : > { %11519 = vrot.lane.b32.xlu0 %v11518_v23, %s12192_s9  ;;  %v15472_v32 = vsel %vm437_vm3, 0.0, %v6258_v38  ;;  %v6282_v53 = vsel %vm437_vm3, %v6258_v38, 0.0  ;;  %v6243_v40 = vsel %vm6227_vm2, %v6219_v43, %v6235_v46 }
 0xe16   : > { %11514 = vrot.lane.b32.xlu1 %v11513_v37, %s12193_s14  ;;  %v6259_v55 = vrot.slane %v6243_v40, 7  ;;  %v6358_v33 = vrot.slane %v15472_v32, 2  ;;  %v6359_v29 = vrot.slane %v6282_v53, 2  ;;  %v6316_v18 = vrot.slane %v15472_v32, 1 }
 0xe17   : > { %v6317_v60 = vrot.slane %v6282_v53, 1  ;;  %v11528_v45 = vpack.i.bf16 %v15419_v11, %v15472_v32  ;;  %v15496_v44 = vsel %vm472_vm4, %v6313_v21, %v6314_v57 }
 0xe18   : > { %v6283_v5 = vsel %vm437_vm3, %v6259_v55, 0.0  ;;  %v6275_v10 = vsel %vm437_vm3, 0.0, %v6259_v55  ;;  %v6360_v6 = vsel %vm339_vm1, %v6358_v33, %v6359_v29 }
 0xe19   : > { %11524 = vrot.lane.b32.xlu0 %v11523_v42, %s12193_s14  ;;  %v11533_v7 = vpack.i.bf16 %v6275_v10, %v6354_v48  ;;  %v6549_v24 = vpack.c.bf16 %v6360_v6, %v6357_v25  ;;  %v6419_v8 = vrot.slane %v6275_v10, 2  ;;  %v6420_v52 = vrot.slane %v6283_v5, 2 }
 0xe1a   : > { %v11553_v28 = vpack.i.bf16 %v6360_v6, %v6357_v25  ;;  %v15490_v3 = vsel %vm472_vm4, %v6316_v18, %v6317_v60  ;;  %v11538_v27 = vpack.i.bf16 %v6360_v6, %v15462_v56  ;;  %v6408_v48 = vrot.slane %v6275_v10, 1 }
 0xe1b   : > { %11534 = vrot.lane.b32.xlu1 %v11533_v7, %s12194_s15  ;;  %10417 = vmatprep.mubr.msk.bf16.mxu0 %vm689_vm5, %v6549_v24  ;;  %v6421_v9 = vsel %vm339_vm1, %v6419_v8, %v6420_v52  ;;  %v11548_v11 = vpack.i.bf16 %v15490_v3, %v15496_v44  ;;  %v6409_v61 = vrot.slane %v6283_v5, 1 }
 0xe1c   : > { %v6552_v62 = vpack.c.bf16 %v12381_v51, %v6421_v9  ;;  %v11558_v20 = vpack.i.bf16 %v15496_v44, %v6421_v9 }
 0xe1d   : > { %11529 = vrot.lane.b32.xlu0 %v11528_v45, %s12194_s15  ;;  %v15509_v59 = vsel %vm472_vm4, %v6408_v48, %v6409_v61 }
 0xe1e   : > { %10418 = vmatmul.mubr.msk.bf16.gmra.mrb[116].mxu0 %vm689_vm5, %v6552_v62  ;;  %v11563_v36 = vpack.i.bf16 %v15472_v32, %v15509_v59 }
 0xe1f   : > { %11539 = vrot.lane.b32.xlu1 %v11538_v27, %s12193_s14 }
 0xe21   : > { %11549 = vrot.lane.b32.xlu0 %v11548_v11, %s12192_s9 }
 0xe23   : > { %11544 = vrot.lane.b32.xlu1 %v11543_v2, %s12192_s9 }
 0xe25   : > { %11554 = vrot.lane.b32.xlu0 %v11553_v28, %s12194_s15 }
 0xe27   : > { %6331 = vrot.lane.b32.xlu1 %v15490_v3, %s12193_s14 }
 0xe29   : > { %11559 = vrot.lane.b32.xlu0 %v11558_v20, %s12193_s14 }
 0xe2b   : > { %11564 = vrot.lane.b32.xlu1 %v11563_v36, %s12192_s9 }
 0xe2d   : > { %6397 = vrot.lane.b32.xlu0 %v6275_v10, %s12192_s9 }
 0xe6f   : > { %v11465_v50 = vpop.permute.xlu1 %11464 }
 0xe70   : > { %v11466_v57 = vunpack.i.l.bf16 %v11465_v50 }
 0xe72   : > { %v11470_v43 = vpop.permute.xlu0 %11469  ;;  %v6509_v62 = vsel %vm707_vm7, %v12587_v13, %v11466_v57 }
 0xe73   : > { %v11472_v26 = vunpack.i.h.bf16 %v11470_v43  ;;  %v11471_v23 = vunpack.i.l.bf16 %v11470_v43 }
 0xe75   : > { %v6518_v53 = vsel %vm689_vm5, %v15394_v22, %v11472_v26  ;;  %v6517_v40 = vsel %vm689_vm5, %v15424_v39, %v11471_v23  ;;  %v11467_v39 = vunpack.i.h.bf16 %v11465_v50 }
 0xe76   : > { %v11475_v41 = vpop.permute.xlu0 %11474 }
 0xe77   : > { %v11477_v38 = vunpack.i.h.bf16 %v11475_v41  ;;  %v11476_v46 = vunpack.i.l.bf16 %v11475_v41 }
 0xe78   : > { %v11480_v37 = vpop.permute.xlu1 %11479 }
 0xe79   : > { %v6525_v29 = vsel %vm698_vm6, %v6517_v40, %v11476_v46  ;;  %v6526_v21 = vsel %vm698_vm6, %v6518_v53, %v11477_v38  ;;  %v11481_v22 = vunpack.i.l.bf16 %v11480_v37  ;;  %v11482_v36 = vunpack.i.h.bf16 %v11480_v37 }
 0xe7b   : > { %v11495_v25 = vpop.permute.xlu0 %11494 }
 0xe7c   : > { %v11497_v55 = vunpack.i.h.bf16 %v11495_v25  ;;  %v11496_v42 = vunpack.i.l.bf16 %v11495_v25  ;;  %v11485_v33 = vpop.permute.xlu1 %11484 }
 0xe7e   : > { %v6533_v18 = vsel %vm707_vm7, %v6525_v29, %v11496_v42  ;;  %v6534_v60 = vsel %vm707_vm7, %v6526_v21, %v11497_v55  ;;  %v11486_v55 = vunpack.i.l.bf16 %v11485_v33 }
 0xe7f   : > { %v11500_v5 = vpop.permute.xlu0 %11499  ;;  %v6542_v10 = vpack.c.bf16 %v6534_v60, %v6533_v18 }
 0xe80   : > { %v11490_v6 = vpop.permute.xlu1 %11489  ;;  %v11501_v45 = vunpack.i.l.bf16 %v11500_v5  ;;  %v11502_v27 = vunpack.i.h.bf16 %v11500_v5 }
 0xe81   : > { %v11491_v7 = vunpack.i.l.bf16 %v11490_v6  ;;  %6742 = vmatprep.mubr.bf16.mxu1 %v6542_v10  ;;  %v11492_v24 = vunpack.i.h.bf16 %v11490_v6 }
 0xe82   : > { %v6496_v23 = vsel %vm689_vm5, %v15342_v19, %v11502_v27 }
 0xe83   : > { %v6495_v8 = vsel %vm689_vm5, %v15332_v34, %v11491_v7  ;;  %v11505_v52 = vpop.permute.xlu0 %11504  ;;  %v6519_v48 = vsel %vm689_vm5, %v15404_v17, %v11492_v24  ;;  %v6520_v34 = vsel %vm689_vm5, %v15457_v14, %v11501_v45  ;;  %v11487_v14 = vunpack.i.h.bf16 %v11485_v33 }
 0xe84   : > { %v6502_v28 = vsel %vm698_vm6, %v6495_v8, %v11481_v22  ;;  %v11510_v9 = vpop.permute.xlu1 %11509  ;;  %v11506_v2 = vunpack.i.l.bf16 %v11505_v52  ;;  %v11507_v20 = vunpack.i.h.bf16 %v11505_v52  ;;  %v6527_v25 = vsel %vm698_vm6, %v6519_v48, %v11482_v36 }
 0xe85   : > { %v6510_v11 = vsel %vm707_vm7, %v6502_v28, %v11467_v39  ;;  %v11511_v53 = vunpack.i.l.bf16 %v11510_v9  ;;  %v11512_v24 = vunpack.i.h.bf16 %v11510_v9 }
 0xe86   : > { %v6541_v61 = vpack.c.bf16 %v6510_v11, %v6509_v62  ;;  %v6528_v38 = vsel %vm698_vm6, %v6520_v34, %v11506_v2  ;;  %v6503_v17 = vsel %vm698_vm6, %v6496_v23, %v11507_v20 }
 0xe87   : > { %v11520_v43 = vpop.permute.xlu0 %11519  ;;  %v6511_v18 = vsel %vm707_vm7, %v6503_v17, %v11486_v55 }
 0xe88   : > { %v11522_v50 = vunpack.i.h.bf16 %v11520_v43  ;;  %v11521_v41 = vunpack.i.l.bf16 %v11520_v43  ;;  %v11515_v26 = vpop.permute.xlu1 %11514  ;;  %6743 = vmatmul.mubr.bf16.vlgmr.msra.gmra.mrb[112].mxu1 %v6541_v61 }
 0xe89   : > { %v11516_v46 = vunpack.i.l.bf16 %v11515_v26  ;;  %v11517_v5 = vunpack.i.h.bf16 %v11515_v26 }
 0xe8a   : > { %v6535_v37 = vsel %vm707_vm7, %v6527_v25, %v11521_v41  ;;  %v6536_v40 = vsel %vm707_vm7, %v6528_v38, %v11522_v50 }
 0xe8b   : > { %v6497_v42 = vsel %vm689_vm5, %v15368_v35, %v11516_v46  ;;  %v11525_v29 = vpop.permute.xlu0 %11524  ;;  %v6545_v21 = vpack.c.bf16 %v6536_v40, %v6535_v37  ;;  %v6521_v33 = vsel %vm689_vm5, %v15462_v56, %v11517_v5 }
 0xe8c   : > { %v6504_v19 = vsel %vm698_vm6, %v6497_v42, %v11511_v53  ;;  %v11526_v7 = vunpack.i.l.bf16 %v11525_v29  ;;  %v11527_v39 = vunpack.i.h.bf16 %v11525_v29  ;;  %v6529_v48 = vsel %vm698_vm6, %v6521_v33, %v11512_v24 }
 0xe8d   : > { %6750 = vmatprep.mubr.bf16.mxu1 %v6545_v21  ;;  %v6512_v60 = vsel %vm707_vm7, %v6504_v19, %v11487_v14  ;;  %v11535_v10 = vpop.permute.xlu1 %11534 }
 0xe8e   : > { %v6544_v6 = vpack.c.bf16 %v6512_v60, %v6511_v18  ;;  %v6522_v45 = vsel %vm689_vm5, %v15496_v44, %v11526_v7  ;;  %v11536_v61 = vunpack.i.l.bf16 %v11535_v10  ;;  %v6498_v36 = vsel %vm689_vm5, %v15380_v47, %v11527_v39 }
 0xe8f   : > { %v11530_v57 = vpop.permute.xlu0 %11529  ;;  %v11537_v42 = vunpack.i.h.bf16 %v11535_v10 }
 0xe90   : > { %6751 = vmatmul.mubr.bf16.gmra.mrb[116].mxu1 %v6544_v6  ;;  %v11531_v22 = vunpack.i.l.bf16 %v11530_v57  ;;  %v11532_v28 = vunpack.i.h.bf16 %v11530_v57 }
 0xe91   : > { %v11540_v35 = vpop.permute.xlu1 %11539 }
 0xe92   : > { %v11541_v8 = vunpack.i.l.bf16 %v11540_v35  ;;  %v6530_v11 = vsel %vm698_vm6, %v6522_v45, %v11531_v22  ;;  %v6505_v41 = vsel %vm698_vm6, %v6498_v36, %v11532_v28 }
 0xe93   : > { %v11550_v52 = vpop.permute.xlu0 %11549 }
 0xe94   : > { %v11552_v62 = vunpack.i.h.bf16 %v11550_v52  ;;  %v11551_v27 = vunpack.i.l.bf16 %v11550_v52  ;;  %v6499_v2 = vsel %vm689_vm5, %v15434_v16, %v11541_v8  ;;  %v11542_v16 = vunpack.i.h.bf16 %v11540_v35 }
 0xe95   : > { %v11545_v56 = vpop.permute.xlu1 %11544  ;;  %v6506_v26 = vsel %vm698_vm6, %v6499_v2, %v11536_v61  ;;  %v12074_v2 = vld [vmem:[%s16642_s3 + $0x5e0] sm:$0xff]   ;;  %v12076_v61 = vld [vmem:[%s16642_s3 + $0x5e8] sm:$0xff]  }
 0xe96   : > { %v6537_v9 = vsel %vm707_vm7, %v6529_v48, %v11551_v27  ;;  %v6538_v20 = vsel %vm707_vm7, %v6530_v11, %v11552_v62  ;;  %v11547_v44 = vunpack.i.h.bf16 %v11545_v56  ;;  %v11546_v43 = vunpack.i.l.bf16 %v11545_v56  ;;  %v12072_v27 = vld [vmem:[%s16642_s3 + $0x620] sm:$0xff]   ;;  %v12073_v11 = vld [vmem:[%s16642_s3 + $0x628] sm:$0xff]   ;;  %10145 = vmatprep.subr.bf16.mxu0 %v12074_v2 }
 0xe97   : > { %v11555_v34 = vpop.permute.xlu0 %11554  ;;  %v6548_v50 = vpack.c.bf16 %v6538_v20, %v6537_v9  ;;  %v6523_v14 = vsel %vm689_vm5, %v15490_v3, %v11542_v16  ;;  %10421 = vmatprep.subr.bf16.mxu1 %v12072_v27  ;;  %v12075_v48 = vld [vmem:[%s16642_s3 + $0x5a0] sm:$0xff]   ;;  %v12077_v56 = vld [vmem:[%s16642_s3 + $0x5a8] sm:$0xff]   ;;  %v12078_v9 = vld [vmem:[%s16642_s3 + $0x5f0] sm:$0xff]  }
 0xe98   : > { %v6513_v23 = vsel %vm707_vm7, %v6505_v41, %v11546_v43  ;;  %v6514_v38 = vsel %vm707_vm7, %v6506_v26, %v11547_v44  ;;  %v11557_v46 = vunpack.i.h.bf16 %v11555_v34  ;;  %v11556_v55 = vunpack.i.l.bf16 %v11555_v34  ;;  %10422 = vmatpush3.bf16.msra.mxu1 %v12072_v27  ;;  %10146 = vmatpush3.bf16.msra.mxu0 %v12075_v48  ;;  %v15614_v34 = vld [vmem:[%s16643_s4 + $0x9] ss:$0 sm:$0xff] }
 0xe99   : > { %6758 = vmatprep.mubr.bf16.mxu1 %v6548_v50  ;;  %v6332_v25 = vpop.permute.xlu1 %6331  ;;  %v6547_v17 = vpack.c.bf16 %v6514_v38, %v6513_v23  ;;  %v6531_v10 = vsel %vm698_vm6, %v6523_v14, %v11537_v42  ;;  %10423 = vmatprep.subr.bf16.mxu1 %v12073_v11  ;;  %v15619_v16 = vld [vmem:[%s16644_s5 + $0x9] ss:$0 sm:$0xff] }
 0xe9a   : > { %v6501_v47 = vsel %vm689_vm5, %v15472_v32, %v6332_v25  ;;  %10147 = vmatprep.subr.bf16.mxu0 %v12076_v61  ;;  %v12084_v2 = vld [vmem:[%s16642_s3 + $0x608] sm:$0xff]  }
 0xe9b   : > { %v11560_v53 = vpop.permute.xlu0 %11559  ;;  %6759 = vmatmul.mubr.bf16.gmra.mrb[120].mxu1 %v6547_v17  ;;  %v6508_v18 = vsel %vm698_vm6, %v6501_v47, %v11557_v46  ;;  %v12079_v47 = vld [vmem:[%s16642_s3 + $0x5b0] sm:$0xff]   ;;  %v12085_v48 = vld [vmem:[%s16642_s3 + $0x5c8] sm:$0xff]  }
 0xe9c   : > { %v11562_v37 = vunpack.i.h.bf16 %v11560_v53  ;;  %v11561_v40 = vunpack.i.l.bf16 %v11560_v53  ;;  %10424 = vmatpush3.bf16.msra.mxu1 %v12073_v11  ;;  %10148 = vmatpush3.bf16.msra.mxu0 %v12077_v56 }
 0xe9d   : > { %v11565_v19 = vpop.permute.xlu1 %11564  ;;  %10149 = vmatprep.subr.bf16.mxu0 %v12078_v9 }
 0xe9e   : > { %v6500_v29 = vsel %vm689_vm5, %v15445_v54, %v11562_v37  ;;  %v6524_v21 = vsel %vm689_vm5, %v15509_v59, %v11561_v40  ;;  %v11567_v60 = vunpack.i.h.bf16 %v11565_v19  ;;  %v11566_v32 = vunpack.i.l.bf16 %v11565_v19 }
 0xe9f   : > { %v6398_v5 = vpop.permute.xlu0 %6397  ;;  %v6507_v6 = vsel %vm698_vm6, %v6500_v29, %v11556_v55  ;;  %v6532_v57 = vsel %vm698_vm6, %v6524_v21, %v12635_v12 }
 0xea0   : > { %v6516_v3 = vsel %vm707_vm7, %v6508_v18, %v6398_v5  ;;  %v6540_v54 = vsel %vm707_vm7, %v6532_v57, %v12645_v30  ;;  %v6515_v59 = vsel %vm707_vm7, %v6507_v6, %v11567_v60  ;;  %v6539_v7 = vsel %vm707_vm7, %v6531_v10, %v11566_v32  ;;  %10150 = vmatpush3.bf16.msra.mxu0 %v12079_v47  ;;  %v12080_v60 = vld [vmem:[%s16642_s3 + $0x5f8] sm:$0xff]  }
 0xea1   : > { %v6550_v22 = vpack.c.bf16 %v6516_v3, %v6515_v59  ;;  %v6551_v33 = vpack.c.bf16 %v6540_v54, %v6539_v7  ;;  %10151 = vmatprep.subr.bf16.mxu0 %v12080_v60 }
 0xea3   : > { %6766 = vmatprep.mubr.bf16.mxu1 %v6551_v33  ;;  %v12083_v33 = vld [vmem:[%s16642_s3 + $0x5c0] sm:$0xff]  }
 0xea4   : > { %6767 = vmatmul.mubr.bf16.gmra.mrb[124].mxu1 %v6550_v22  ;;  %v12082_v22 = vld [vmem:[%s16642_s3 + $0x600] sm:$0xff]  }
 0xee5   : > { %v10415_v35 = vpop.f32.mrb[112].mxu0 }
 0xee6   : > { %v6809_v24 = vpop.f32.mrb[113].mxu0 }
 0xee7   : > { %v10416_v39 = vpop.f32.mrb[114].mxu0 }
 0xee8   : > { %v6812_v8 = vpop.f32.mrb[115].mxu0 }
 0xef1   : > { %v15582_v52 = vpop.f32.mrb[116].mxu0 }
 0xef2   : > { %v15584_v45 = vpop.f32.mrb[117].mxu0 }
 0xef3   : > { %v15586_v28 = vpop.f32.mrb[118].mxu0 }
 0xef4   : > { %v15588_v62 = vpop.f32.mrb[119].mxu0 }
 0xf5b   : > { %v10115_v20 = vpop.f32.mrb[112].mxu1 }
 0xf5c   : > { %v10116_v36 = vpop.f32.mrb[113].mxu1 }
 0xf5d   : > { %v10117_v44 = vadd.f32 %v10116_v36, %v10115_v20  ;;  %v10118_v43 = vpop.f32.mrb[114].mxu1 }
 0xf5e   : > { %v10119_v50 = vpop.f32.mrb[115].mxu1 }
 0xf5f   : > { %v6810_v41 = vadd.f32 %v10117_v44, %v6809_v24  ;;  %v10120_v26 = vadd.f32 %v10119_v50, %v10118_v43 }
 0xf61   : > { %v6848_v23 = vmul.f32 %v15614_v34, %v6810_v41  ;;  %v6813_v38 = vadd.f32 %v10120_v26, %v6812_v8 }
 0xf63   : > { %v6864_v46 = vadd.f32 %v15619_v16, %v6848_v23  ;;  %v6849_v25 = vmul.f32 %v15614_v34, %v6813_v38  ;;  %v10121_v17 = vpop.f32.mrb[116].mxu1 }
 0xf64   : > { %v10122_v53 = vpop.f32.mrb[117].mxu1 }
 0xf65   : > { %v15628_v37 = vadd.f32 %v6864_v46, %v14976_v49  ;;  %v6865_v40 = vadd.f32 %v15619_v16, %v6849_v25  ;;  %v10123_v14 = vadd.f32 %v10122_v53, %v10121_v17  ;;  %v10124_v55 = vpop.f32.mrb[118].mxu1  ;;  %v12081_v49 = vld [vmem:[%s16642_s3 + $0x5b8] sm:$0xff]  }
 0xf66   : > { %v10125_v42 = vpop.f32.mrb[119].mxu1  ;;  %10152 = vmatpush3.bf16.msra.mxu0 %v12081_v49 }
 0xf67   : > { %v6888_v29 = vrot.slane %v15628_v37, 7  ;;  %v15633_v21 = vadd.f32 %v6865_v40, %v14981_v31  ;;  %v6818_v19 = vadd.f32 %v10415_v35, %v10123_v14  ;;  %v10126_v18 = vadd.f32 %v10125_v42, %v10124_v55  ;;  %10153 = vmatprep.subr.bf16.mxu0 %v12082_v22 }
 0xf69   : > { %v15642_v32 = vsel %vm437_vm3, %v6888_v29, 0.0  ;;  %v6889_v5 = vrot.slane %v15633_v21, 7  ;;  %v6850_v6 = vmul.f32 %v15614_v34, %v6818_v19  ;;  %v6821_v57 = vadd.f32 %v10416_v39, %v10126_v18 }
 0xf6a   : > { %v15647_v31 = vsel %vm437_vm3, 0.0, %v6888_v29  ;;  %v6977_v3 = vrot.slane %v15642_v32, 2  ;;  %10154 = vmatpush3.bf16.msra.mxu0 %v12083_v33  ;;  %v12086_v29 = vld [vmem:[%s16642_s3 + $0x610] sm:$0xff]  }
 0xf6b   : > { %v15651_v10 = vsel %vm437_vm3, 0.0, %v6889_v5  ;;  %v6913_v54 = vsel %vm437_vm3, %v6889_v5, 0.0  ;;  %v6866_v59 = vadd.f32 %v15619_v16, %v6850_v6  ;;  %v6851_v7 = vmul.f32 %v15614_v34, %v6821_v57  ;;  %10155 = vmatprep.subr.bf16.mxu0 %v12084_v2 }
 0xf6c   : > { %v6980_v35 = vrot.slane %v6913_v54, 2  ;;  %v11568_v24 = vpack.i.bf16 %v15651_v10, %v15647_v31  ;;  %v6976_v39 = vrot.slane %v15647_v31, 2  ;;  %v6979_v11 = vrot.slane %v15651_v10, 2 }
 0xf6d   : > { %v15666_v8 = vadd.f32 %v6866_v59, %v15014_v4  ;;  %v6867_v27 = vadd.f32 %v15619_v16, %v6851_v7  ;;  %v6938_v36 = vrot.slane %v6913_v54, 1  ;;  %v6937_v50 = vrot.slane %v15651_v10, 1 }
 0xf6e   : > { %11569 = vrot.lane.b32.xlu0 %v11568_v24, %s12192_s9  ;;  %v10127_v56 = vpop.f32.mrb[120].mxu1  ;;  %v6978_v9 = vsel %vm339_vm1, %v6976_v39, %v6977_v3  ;;  %v15683_v20 = vsel %vm339_vm1, %v6979_v11, %v6980_v35  ;;  %10156 = vmatpush3.bf16.msra.mxu0 %v12085_v48  ;;  %v6934_v3 = vrot.slane %v15647_v31, 1  ;;  %v6935_v54 = vrot.slane %v15642_v32, 1  ;;  %v12088_v32 = vld [vmem:[%s16642_s3 + $0x618] sm:$0xff]  }
 0xf6f   : > { %v6890_v61 = vrot.slane %v15666_v8, 7  ;;  %v15679_v4 = vadd.f32 %v6867_v27, %v15027_v0  ;;  %v10128_v44 = vpop.f32.mrb[121].mxu1  ;;  %v11573_v43 = vpack.i.bf16 %v15683_v20, %v6978_v9  ;;  %10157 = vmatprep.subr.bf16.mxu0 %v12086_v29  ;;  %v15728_v22 = vsel %vm472_vm4, %v6937_v50, %v6938_v36  ;;  %v12089_v27 = vld [vmem:[%s16642_s3 + $0x5d8] sm:$0xff]  }
 0xf70   : > { %v10129_v23 = vadd.f32 %v10128_v44, %v10127_v56  ;;  %v10130_v38 = vpop.f32.mrb[122].mxu1 }
 0xf71   : > { %v15688_v41 = vsel %vm437_vm3, 0.0, %v6890_v61  ;;  %v6914_v26 = vsel %vm437_vm3, %v6890_v61, 0.0  ;;  %v6891_v0 = vrot.slane %v15679_v4, 7  ;;  %v10131_v17 = vpop.f32.mrb[123].mxu1  ;;  %11574 = vrot.lane.b32.xlu1 %v11573_v43, %s12193_s14  ;;  %v15757_v43 = vsel %vm472_vm4, %v6934_v3, %v6935_v54 }
 0xf72   : > { %v6941_v46 = vrot.slane %v6914_v26, 1  ;;  %v6983_v25 = vrot.slane %v6914_v26, 2  ;;  %v11578_v47 = vpack.i.bf16 %v15688_v41, %v15651_v10  ;;  %v6982_v53 = vrot.slane %v15688_v41, 2 }
 0xf73   : > { %v15697_v40 = vsel %vm437_vm3, 0.0, %v6891_v0  ;;  %v15700_v14 = vsel %vm437_vm3, %v6891_v0, 0.0  ;;  %v6826_v55 = vadd.f32 %v10129_v23, %v15584_v45  ;;  %v10132_v42 = vadd.f32 %v10131_v17, %v10130_v38 }
 0xf74   : > { %v6986_v19 = vrot.slane %v15700_v14, 2  ;;  %v11583_v18 = vpack.i.bf16 %v15697_v40, %v6978_v9  ;;  %v15709_v60 = vsel %vm339_vm1, %v6982_v53, %v6983_v25  ;;  %v6940_v45 = vrot.slane %v15688_v41, 1 }
 0xf75   : > { %v6852_v49 = vmul.f32 %v15614_v34, %v6826_v55  ;;  %v6829_v5 = vadd.f32 %v10132_v42, %v15588_v62  ;;  %v7179_v6 = vpack.c.bf16 %v15709_v60, %v15683_v20  ;;  %11579 = vrot.lane.b32.xlu1 %v11578_v47, %s12194_s15  ;;  %v6985_v57 = vrot.slane %v15697_v40, 2  ;;  %v12087_v62 = vld [vmem:[%s16642_s3 + $0x5d0] sm:$0xff]  }
 0xf76   : > { %11584 = vrot.lane.b32.xlu0 %v11583_v18, %s12194_s15  ;;  %v15731_v33 = vsel %vm472_vm4, %v6940_v45, %v6941_v46  ;;  %v11588_v39 = vpack.i.bf16 %v15697_v40, %v15688_v41  ;;  %10158 = vmatpush3.bf16.msra.mxu0 %v12087_v62  ;;  %v11593_v23 = vpack.i.bf16 %v15709_v60, %v15757_v43  ;;  %v6944_v38 = vrot.slane %v15700_v14, 1 }
 0xf77   : > { %v6868_v59 = vadd.f32 %v15619_v16, %v6852_v49  ;;  %v6853_v7 = vmul.f32 %v15614_v34, %v6829_v5  ;;  %10425 = vmatprep.mubr.msk.bf16.mxu1 %vm689_vm5, %v7179_v6  ;;  %v10133_v35 = vpop.f32.mrb[124].mxu1  ;;  %v11598_v24 = vpack.i.bf16 %v15731_v33, %v15728_v22  ;;  %v15748_v61 = vsel %vm339_vm1, %v6985_v57, %v6986_v19 }
 0xf78   : > { %v10134_v48 = vpop.f32.mrb[125].mxu1  ;;  %10159 = vmatprep.subr.bf16.mxu0 %v12088_v32  ;;  %v11603_v0 = vpack.i.bf16 %v15728_v22, %v15748_v61  ;;  %v6943_v53 = vrot.slane %v15697_v40, 1 }
 0xf79   : > { %v15744_v11 = vadd.f32 %v6868_v59, %v15092_v63  ;;  %v6869_v2 = vadd.f32 %v15619_v16, %v6853_v7  ;;  %v10135_v56 = vadd.f32 %v10134_v48, %v10133_v35  ;;  %v10136_v9 = vpop.f32.mrb[126].mxu1  ;;  %11599 = vrot.lane.b32.xlu1 %v11598_v24, %s12192_s9 }
 0xf7a   : > { %11589 = vrot.lane.b32.xlu0 %v11588_v39, %s12192_s9  ;;  %v10137_v63 = vpop.f32.mrb[127].mxu1  ;;  %10160 = vmatpush3.bf16.msra.mxu0 %v12089_v27 }
 0xf7b   : > { %v6892_v36 = vrot.slane %v15744_v11, 7  ;;  %v15754_v44 = vadd.f32 %v6869_v2, %v15102_v58  ;;  %v6834_v50 = vadd.f32 %v15582_v52, %v10135_v56  ;;  %v10138_v26 = vadd.f32 %v10137_v63, %v10136_v9 }
 0xf7d   : > { %v15766_v46 = vsel %vm437_vm3, 0.0, %v6892_v36  ;;  %v6916_v58 = vsel %vm437_vm3, %v6892_v36, 0.0  ;;  %v6893_v25 = vrot.slane %v15754_v44, 7  ;;  %v6854_v52 = vmul.f32 %v15614_v34, %v6834_v50  ;;  %11604 = vrot.lane.b32.xlu1 %v11603_v0, %s12193_s14 }
 0xf7e   : > { %v6989_v17 = vrot.slane %v6916_v58, 2  ;;  %v6837_v47 = vadd.f32 %v15586_v28, %v10138_v26  ;;  %11594 = vrot.lane.b32.xlu0 %v11593_v23, %s12193_s14  ;;  %v6947_v55 = vrot.slane %v6916_v58, 1  ;;  %v6988_v29 = vrot.slane %v15766_v46, 2 }
 0xf7f   : > { %v15776_v14 = vsel %vm437_vm3, 0.0, %v6893_v25  ;;  %v6917_v42 = vsel %vm437_vm3, %v6893_v25, 0.0  ;;  %v6870_v18 = vadd.f32 %v15619_v16, %v6854_v52  ;;  %v11608_v28 = vpack.i.bf16 %v15683_v20, %v15766_v46 }
 0xf80   : > { %v6992_v19 = vrot.slane %v6917_v42, 2  ;;  %v6855_v49 = vmul.f32 %v15614_v34, %v6837_v47  ;;  %v6990_v5 = vsel %vm339_vm1, %v6988_v29, %v6989_v17  ;;  %v11613_v6 = vpack.i.bf16 %v15776_v14, %v15709_v60 }
 0xf81   : > { %v6946_v45 = vrot.slane %v15766_v46, 1  ;;  %v6991_v57 = vrot.slane %v15776_v14, 2  ;;  %v15790_v3 = vadd.f32 %v6870_v18, %v15140_v15  ;;  %v7182_v62 = vpack.c.bf16 %v6990_v5, %v15748_v61  ;;  %11609 = vrot.lane.b32.xlu1 %v11608_v28, %s12194_s15 }
 0xf82   : > { %v6871_v54 = vadd.f32 %v15619_v16, %v6855_v49  ;;  %11614 = vrot.lane.b32.xlu0 %v11613_v6, %s12194_s15  ;;  %v15797_v34 = vsel %vm472_vm4, %v6943_v53, %v6944_v38  ;;  %v11618_v7 = vpack.i.bf16 %v6990_v5, %v15731_v33  ;;  %v6950_v23 = vrot.slane %v6917_v42, 1 }
 0xf83   : > { %v15800_v20 = vsel %vm472_vm4, %v6946_v45, %v6947_v55  ;;  %v6894_v60 = vrot.slane %v15790_v3, 7  ;;  %10426 = vmatmul.mubr.msk.bf16.vlgmr.msra.gmra.mrb[128].mxu1 %vm689_vm5, %v7182_v62  ;;  %v6993_v16 = vsel %vm339_vm1, %v6991_v57, %v6992_v19  ;;  %v6949_v58 = vrot.slane %v15776_v14, 1 }
 0xf84   : > { %v15804_v59 = vadd.f32 %v6871_v54, %v15157_v1  ;;  %v11623_v15 = vpack.i.bf16 %v15800_v20, %v15797_v34  ;;  %v11628_v39 = vpack.i.bf16 %v15797_v34, %v6993_v16 }
 0xf85   : > { %v15812_v32 = vsel %vm437_vm3, 0.0, %v6894_v60  ;;  %v6918_v35 = vsel %vm437_vm3, %v6894_v60, 0.0  ;;  %v15840_v53 = vsel %vm472_vm4, %v6949_v58, %v6950_v23 }
 0xf86   : > { %v6895_v24 = vrot.slane %v15804_v59, 7  ;;  %11624 = vrot.lane.b32.xlu1 %v11623_v15, %s12192_s9  ;;  %v6995_v1 = vrot.slane %v6918_v35, 2  ;;  %11619 = vrot.lane.b32.xlu0 %v11618_v7, %s12193_s14  ;;  %v6994_v27 = vrot.slane %v15812_v32, 2  ;;  %v6953_v2 = vrot.slane %v6918_v35, 1 }
 0xf87   : > { %v6952_v9 = vrot.slane %v15812_v32, 1  ;;  %v11633_v17 = vpack.i.bf16 %v15748_v61, %v15812_v32  ;;  %v11648_v61 = vpack.i.bf16 %v15776_v14, %v15766_v46 }
 0xf88   : > { %v6919_v48 = vsel %vm437_vm3, %v6895_v24, 0.0  ;;  %v6911_v56 = vsel %vm437_vm3, 0.0, %v6895_v24  ;;  %v6996_v63 = vsel %vm339_vm1, %v6994_v27, %v6995_v1 }
 0xf89   : > { %v11638_v36 = vpack.i.bf16 %v6911_v56, %v6990_v5  ;;  %v7055_v50 = vrot.slane %v6911_v56, 2  ;;  %v7056_v26 = vrot.slane %v6919_v48, 2  ;;  %v7185_v0 = vpack.c.bf16 %v6996_v63, %v6993_v16 }
 0xf8a   : > { %11629 = vrot.lane.b32.xlu1 %v11628_v39, %s12193_s14  ;;  %v11643_v52 = vpack.i.bf16 %v6996_v63, %v15800_v20  ;;  %v15834_v47 = vsel %vm472_vm4, %v6952_v9, %v6953_v2  ;;  %v7044_v42 = vrot.slane %v6911_v56, 1  ;;  %v7045_v29 = vrot.slane %v6919_v48, 1 }
 0xf8b   : > { %11639 = vrot.lane.b32.xlu0 %v11638_v36, %s12194_s15  ;;  %v7057_v38 = vsel %vm339_vm1, %v7055_v50, %v7056_v26  ;;  %10429 = vmatprep.mubr.msk.bf16.mxu1 %vm689_vm5, %v7185_v0  ;;  %v11653_v55 = vpack.i.bf16 %v15834_v47, %v15840_v53  ;;  %v11658_v19 = vpack.i.bf16 %v6996_v63, %v6993_v16 }
 0xf8c   : > { %v7188_v25 = vpack.c.bf16 %v12381_v51, %v7057_v38  ;;  %v15850_v18 = vsel %vm472_vm4, %v7044_v42, %v7045_v29  ;;  %v11663_v49 = vpack.i.bf16 %v15840_v53, %v7057_v38 }
 0xf8d   : > { %v11668_v28 = vpack.i.bf16 %v15812_v32, %v15850_v18 }
 0xf8e   : > { %10430 = vmatmul.mubr.msk.bf16.gmra.mrb[132].mxu1 %vm689_vm5, %v7188_v25  ;;  %11634 = vrot.lane.b32.xlu1 %v11633_v17, %s12194_s15 }
 0xf8f   : > { %11644 = vrot.lane.b32.xlu0 %v11643_v52, %s12193_s14 }
 0xf92   : > { %11654 = vrot.lane.b32.xlu1 %v11653_v55, %s12192_s9 }
 0xf93   : > { %11649 = vrot.lane.b32.xlu0 %v11648_v61, %s12192_s9 }
 0xf96   : > { %11659 = vrot.lane.b32.xlu1 %v11658_v19, %s12194_s15 }
 0xf97   : > { %6967 = vrot.lane.b32.xlu0 %v15834_v47, %s12193_s14 }
 0xf9a   : > { %11664 = vrot.lane.b32.xlu1 %v11663_v49, %s12193_s14 }
 0xf9b   : > { %11669 = vrot.lane.b32.xlu0 %v11668_v28, %s12192_s9 }
 0xf9e   : > { %7033 = vrot.lane.b32.xlu1 %v6911_v56, %s12192_s9 }
 0xfe0   : > { %v11570_v5 = vpop.permute.xlu0 %11569 }
 0xfe1   : > { %v11571_v50 = vunpack.i.l.bf16 %v11570_v5 }
 0xfe3   : > { %v11575_v6 = vpop.permute.xlu1 %11574  ;;  %v7145_v25 = vsel %vm707_vm7, %v12587_v13, %v11571_v50 }
 0xfe4   : > { %v11577_v54 = vunpack.i.h.bf16 %v11575_v6  ;;  %v11576_v62 = vunpack.i.l.bf16 %v11575_v6 }
 0xfe6   : > { %v7154_v35 = vsel %vm689_vm5, %v15728_v22, %v11577_v54  ;;  %v7153_v24 = vsel %vm689_vm5, %v15757_v43, %v11576_v62  ;;  %v11572_v22 = vunpack.i.h.bf16 %v11570_v5 }
 0xfe7   : > { %v11580_v45 = vpop.permute.xlu1 %11579 }
 0xfe8   : > { %v11585_v57 = vpop.permute.xlu0 %11584  ;;  %v11582_v60 = vunpack.i.h.bf16 %v11580_v45  ;;  %v11581_v15 = vunpack.i.l.bf16 %v11580_v45 }
 0xfe9   : > { %v11586_v0 = vunpack.i.l.bf16 %v11585_v57  ;;  %v11587_v28 = vunpack.i.h.bf16 %v11585_v57 }
 0xfea   : > { %v7161_v27 = vsel %vm698_vm6, %v7153_v24, %v11581_v15  ;;  %v7162_v2 = vsel %vm698_vm6, %v7154_v35, %v11582_v60 }
 0xfeb   : > { %v11600_v16 = vpop.permute.xlu1 %11599 }
 0xfec   : > { %v11590_v7 = vpop.permute.xlu0 %11589  ;;  %v11602_v1 = vunpack.i.h.bf16 %v11600_v16  ;;  %v11601_v39 = vunpack.i.l.bf16 %v11600_v16 }
 0xfee   : > { %v7169_v48 = vsel %vm707_vm7, %v7161_v27, %v11601_v39  ;;  %v7170_v56 = vsel %vm707_vm7, %v7162_v2, %v11602_v1  ;;  %v11592_v1 = vunpack.i.h.bf16 %v11590_v7 }
 0xfef   : > { %v11605_v9 = vpop.permute.xlu1 %11604  ;;  %v7178_v63 = vpack.c.bf16 %v7170_v56, %v7169_v48 }
 0xff0   : > { %v11595_v36 = vpop.permute.xlu0 %11594  ;;  %v11606_v17 = vunpack.i.l.bf16 %v11605_v9  ;;  %v11607_v61 = vunpack.i.h.bf16 %v11605_v9 }
 0xff1   : > { %v11596_v26 = vunpack.i.l.bf16 %v11595_v36  ;;  %7378 = vmatprep.mubr.bf16.mxu0 %v7178_v63  ;;  %v11597_v23 = vunpack.i.h.bf16 %v11595_v36 }
 0xff2   : > { %v7132_v62 = vsel %vm689_vm5, %v15651_v10, %v11607_v61 }
 0xff3   : > { %v7131_v43 = vsel %vm689_vm5, %v15647_v31, %v11596_v26  ;;  %v11610_v58 = vpop.permute.xlu1 %11609  ;;  %v7155_v19 = vsel %vm689_vm5, %v15731_v33, %v11597_v23  ;;  %v7156_v31 = vsel %vm689_vm5, %v15797_v34, %v11606_v17  ;;  %v11591_v34 = vunpack.i.l.bf16 %v11590_v7 }
 0xff4   : > { %v7138_v38 = vsel %vm698_vm6, %v7131_v43, %v11586_v0  ;;  %v11615_v55 = vpop.permute.xlu0 %11614  ;;  %v11611_v29 = vunpack.i.l.bf16 %v11610_v58  ;;  %v11612_v49 = vunpack.i.h.bf16 %v11610_v58  ;;  %v7163_v16 = vsel %vm698_vm6, %v7155_v19, %v11587_v28 }
 0xff5   : > { %v7146_v52 = vsel %vm707_vm7, %v7138_v38, %v11572_v22  ;;  %v11616_v35 = vunpack.i.l.bf16 %v11615_v55 }
 0xff6   : > { %v7177_v42 = vpack.c.bf16 %v7146_v52, %v7145_v25  ;;  %v7164_v60 = vsel %vm698_vm6, %v7156_v31, %v11611_v29  ;;  %v7139_v33 = vsel %vm698_vm6, %v7132_v62, %v11612_v49 }
 0xff7   : > { %v7147_v9 = vsel %vm707_vm7, %v7139_v33, %v11591_v34 }
 0xff8   : > { %v11625_v5 = vpop.permute.xlu1 %11624  ;;  %7379 = vmatmul.mubr.bf16.vlgmr.msra.gmra.mrb[120].mxu0 %v7177_v42  ;;  %v11620_v54 = vpop.permute.xlu0 %11619 }
 0xff9   : > { %v11627_v6 = vunpack.i.h.bf16 %v11625_v5  ;;  %v11626_v45 = vunpack.i.l.bf16 %v11625_v5  ;;  %v11621_v15 = vunpack.i.l.bf16 %v11620_v54  ;;  %v11622_v10 = vunpack.i.h.bf16 %v11620_v54 }
 0xffb   : > { %v7171_v57 = vsel %vm707_vm7, %v7163_v16, %v11626_v45  ;;  %v7172_v24 = vsel %vm707_vm7, %v7164_v60, %v11627_v6  ;;  %v7133_v39 = vsel %vm689_vm5, %v15688_v41, %v11621_v15  ;;  %v7157_v26 = vsel %vm689_vm5, %v15800_v20, %v11622_v10 }
 0xffc   : > { %v11630_v27 = vpop.permute.xlu1 %11629  ;;  %v7181_v2 = vpack.c.bf16 %v7172_v24, %v7171_v57  ;;  %v7140_v56 = vsel %vm698_vm6, %v7133_v39, %v11616_v35  ;;  %v11617_v41 = vunpack.i.h.bf16 %v11615_v55 }
 0xffd   : > { %v11640_v48 = vpop.permute.xlu0 %11639  ;;  %v7148_v36 = vsel %vm707_vm7, %v7140_v56, %v11592_v1  ;;  %v11631_v7 = vunpack.i.l.bf16 %v11630_v27  ;;  %v11632_v22 = vunpack.i.h.bf16 %v11630_v27 }
 0xffe   : > { %7386 = vmatprep.mubr.bf16.mxu0 %v7181_v2  ;;  %v7180_v63 = vpack.c.bf16 %v7148_v36, %v7147_v9  ;;  %v7165_v17 = vsel %vm698_vm6, %v7157_v26, %v11617_v41  ;;  %v11641_v61 = vunpack.i.l.bf16 %v11640_v48  ;;  %v11642_v57 = vunpack.i.h.bf16 %v11640_v48 }
 0xfff   : > { %v7158_v52 = vsel %vm689_vm5, %v15840_v53, %v11631_v7  ;;  %v7134_v55 = vsel %vm689_vm5, %v15697_v40, %v11632_v22 }
0x1000   : > { %v11635_v50 = vpop.permute.xlu1 %11634  ;;  %7387 = vmatmul.mubr.bf16.gmra.mrb[124].mxu0 %v7180_v63 }
0x1001   : > { %v11645_v0 = vpop.permute.xlu0 %11644  ;;  %v11636_v23 = vunpack.i.l.bf16 %v11635_v50  ;;  %v11637_v38 = vunpack.i.h.bf16 %v11635_v50 }
0x1002   : > { %v11646_v43 = vunpack.i.l.bf16 %v11645_v0  ;;  %v11647_v53 = vunpack.i.h.bf16 %v11645_v0 }
0x1003   : > { %v7166_v19 = vsel %vm698_vm6, %v7158_v52, %v11636_v23  ;;  %v7141_v5 = vsel %vm698_vm6, %v7134_v55, %v11637_v38  ;;  %v12090_v52 = vld [vmem:[%s16642_s3 + $0x6b0] sm:$0xff]   ;;  %v12095_v55 = vld [vmem:[%s16642_s3 + $0x638] sm:$0xff]  }
0x1004   : > { %v7135_v58 = vsel %vm689_vm5, %v15766_v46, %v11646_v43  ;;  %v11655_v25 = vpop.permute.xlu1 %11654  ;;  %v7159_v16 = vsel %vm689_vm5, %v15834_v47, %v11647_v53  ;;  %10433 = vmatprep.subr.bf16.mxu1 %v12090_v52 }
0x1005   : > { %v11657_v42 = vunpack.i.h.bf16 %v11655_v25  ;;  %v11656_v20 = vunpack.i.l.bf16 %v11655_v25  ;;  %v11650_v29 = vpop.permute.xlu0 %11649  ;;  %v7142_v6 = vsel %vm698_vm6, %v7135_v58, %v11641_v61  ;;  %v7167_v47 = vsel %vm698_vm6, %v7159_v16, %v11642_v57  ;;  %10434 = vmatpush3.bf16.msra.mxu1 %v12090_v52  ;;  %v12091_v61 = vld [vmem:[%s16642_s3 + $0x6b8] sm:$0xff]  }
0x1006   : > { %v11652_v49 = vunpack.i.h.bf16 %v11650_v29  ;;  %v11651_v28 = vunpack.i.l.bf16 %v11650_v29  ;;  %10435 = vmatprep.subr.bf16.mxu1 %v12091_v61  ;;  %v12094_v29 = vld [vmem:[%s16642_s3 + $0x678] sm:$0xff]  }
0x1007   : > { %v7173_v46 = vsel %vm707_vm7, %v7165_v17, %v11656_v20  ;;  %v7174_v31 = vsel %vm707_vm7, %v7166_v19, %v11657_v42  ;;  %v12092_v42 = vld [vmem:[%s16642_s3 + $0x670] sm:$0xff]   ;;  %v12096_v19 = vld [vmem:[%s16642_s3 + $0x680] sm:$0xff]   ;;  %v12102_v52 = vld [vmem:[%s16642_s3 + $0x698] sm:$0xff]  }
0x1008   : > { %v11660_v45 = vpop.permute.xlu1 %11659  ;;  %v7184_v54 = vpack.c.bf16 %v7174_v31, %v7173_v46  ;;  %v7149_v62 = vsel %vm707_vm7, %v7141_v5, %v11651_v28  ;;  %v7150_v60 = vsel %vm707_vm7, %v7142_v6, %v11652_v49  ;;  %v12093_v20 = vld [vmem:[%s16642_s3 + $0x630] sm:$0xff]   ;;  %10191 = vmatprep.subr.bf16.mxu0 %v12092_v42  ;;  %v12097_v49 = vld [vmem:[%s16642_s3 + $0x640] sm:$0xff]   ;;  %v15959_v6 = vld [vmem:[%s16643_s4 + $0xa] ss:$0 sm:$0xff] }
0x1009   : > { %v6968_v40 = vpop.permute.xlu0 %6967  ;;  %v7183_v15 = vpack.c.bf16 %v7150_v60, %v7149_v62  ;;  %v11662_v33 = vunpack.i.h.bf16 %v11660_v45  ;;  %v11661_v27 = vunpack.i.l.bf16 %v11660_v45  ;;  %10436 = vmatpush3.bf16.msra.mxu1 %v12091_v61  ;;  %10192 = vmatpush3.bf16.msra.mxu0 %v12093_v20  ;;  %v15964_v62 = vld [vmem:[%s16644_s5 + $0xa] ss:$0 sm:$0xff] }
0x100a   : > { %7394 = vmatprep.mubr.bf16.mxu0 %v7184_v54  ;;  %v7137_v24 = vsel %vm689_vm5, %v15812_v32, %v6968_v40  ;;  %10193 = vmatprep.subr.bf16.mxu0 %v12094_v29 }
0x100b   : > { %7395 = vmatmul.mubr.bf16.gmra.mrb[128].mxu0 %v7183_v15  ;;  %v7144_v63 = vsel %vm698_vm6, %v7137_v24, %v11662_v33 }
0x100c   : > { %v11665_v35 = vpop.permute.xlu1 %11664 }
0x100d   : > { %v11667_v1 = vunpack.i.h.bf16 %v11665_v35  ;;  %v11666_v34 = vunpack.i.l.bf16 %v11665_v35  ;;  %v11670_v39 = vpop.permute.xlu0 %11669  ;;  %10194 = vmatpush3.bf16.msra.mxu0 %v12095_v55  ;;  %v12098_v35 = vld [vmem:[%s16642_s3 + $0x688] sm:$0xff]  }
0x100e   : > { %v11672_v2 = vunpack.i.h.bf16 %v11670_v39  ;;  %v11671_v10 = vunpack.i.l.bf16 %v11670_v39  ;;  %10195 = vmatprep.subr.bf16.mxu0 %v12096_v19 }
0x100f   : > { %v7136_v56 = vsel %vm689_vm5, %v15776_v14, %v11667_v1  ;;  %v7160_v9 = vsel %vm689_vm5, %v15850_v18, %v11666_v34 }
0x1010   : > { %v7034_v36 = vpop.permute.xlu1 %7033  ;;  %v7143_v48 = vsel %vm698_vm6, %v7136_v56, %v11661_v27  ;;  %v7168_v32 = vsel %vm698_vm6, %v7160_v9, %v12635_v12  ;;  %v7175_v50 = vsel %vm707_vm7, %v7167_v47, %v11671_v10 }
0x1011   : > { %v7151_v26 = vsel %vm707_vm7, %v7143_v48, %v11672_v2  ;;  %v7152_v7 = vsel %vm707_vm7, %v7144_v63, %v7034_v36  ;;  %v7176_v14 = vsel %vm707_vm7, %v7168_v32, %v12645_v30  ;;  %10196 = vmatpush3.bf16.msra.mxu0 %v12097_v49  ;;  %v12099_v36 = vld [vmem:[%s16642_s3 + $0x648] sm:$0xff]   ;;  %v12100_v48 = vld [vmem:[%s16642_s3 + $0x690] sm:$0xff]  }
0x1012   : > { %v7186_v18 = vpack.c.bf16 %v7152_v7, %v7151_v26  ;;  %v7187_v0 = vpack.c.bf16 %v7176_v14, %v7175_v50  ;;  %10197 = vmatprep.subr.bf16.mxu0 %v12098_v35 }
0x1014   : > { %7402 = vmatprep.mubr.bf16.mxu0 %v7187_v0 }
0x1015   : > { %7403 = vmatmul.mubr.bf16.gmra.mrb[132].mxu0 %v7186_v18 }
0x1016   : > { %10198 = vmatpush3.bf16.msra.mxu0 %v12099_v36 }
0x1017   : > { %10199 = vmatprep.subr.bf16.mxu0 %v12100_v48 }
0x1056   : > { %v10427_v41 = vpop.f32.mrb[128].mxu1 }
0x1057   : > { %v7445_v22 = vpop.f32.mrb[129].mxu1 }
0x1058   : > { %v10428_v23 = vpop.f32.mrb[130].mxu1 }
0x1059   : > { %v7448_v43 = vpop.f32.mrb[131].mxu1 }
0x1061   : > { %v15924_v38 = vpop.f32.mrb[132].mxu1 }
0x1062   : > { %v15926_v58 = vpop.f32.mrb[133].mxu1 }
0x1063   : > { %v15928_v25 = vpop.f32.mrb[134].mxu1 }
0x1064   : > { %v15930_v17 = vpop.f32.mrb[135].mxu1 }
0x10cb   : > { %v10161_v28 = vpop.f32.mrb[120].mxu0 }
0x10cc   : > { %v10162_v5 = vpop.f32.mrb[121].mxu0 }
0x10cd   : > { %v10163_v46 = vadd.f32 %v10162_v5, %v10161_v28  ;;  %v10164_v31 = vpop.f32.mrb[122].mxu0 }
0x10ce   : > { %v10165_v53 = vpop.f32.mrb[123].mxu0 }
0x10cf   : > { %v7446_v45 = vadd.f32 %v10163_v46, %v7445_v22  ;;  %v10166_v54 = vadd.f32 %v10165_v53, %v10164_v31 }
0x10d1   : > { %v7484_v60 = vmul.f32 %v15959_v6, %v7446_v45  ;;  %v7449_v40 = vadd.f32 %v10166_v54, %v7448_v43 }
0x10d3   : > { %v7500_v15 = vadd.f32 %v15964_v62, %v7484_v60  ;;  %v7485_v16 = vmul.f32 %v15959_v6, %v7449_v40  ;;  %v10167_v33 = vpop.f32.mrb[124].mxu0  ;;  %v12103_v60 = vld [vmem:[%s16642_s3 + $0x658] sm:$0xff]   ;;  %v12104_v40 = vld [vmem:[%s16642_s3 + $0x6a0] sm:$0xff]  }
0x10d4   : > { %v10168_v1 = vpop.f32.mrb[125].mxu0 }
0x10d5   : > { %vm7508_vm8 = vcmp.gt.f32.partialorder %v7500_v15, 0.0  ;;  %v7516_v57 = vmul.f32 0.2, %v7500_v15  ;;  %v7501_v24 = vadd.f32 %v15964_v62, %v7485_v16  ;;  %v10169_v34 = vadd.f32 %v10168_v1, %v10167_v33  ;;  %v10170_v39 = vpop.f32.mrb[126].mxu0 }
0x10d6   : > { %v10171_v10 = vpop.f32.mrb[127].mxu0 }
0x10d7   : > { %v7524_v27 = vsel %vm7508_vm8, %v7500_v15, %v7516_v57  ;;  %vm7509_vm9 = vcmp.gt.f32.partialorder %v7501_v24, 0.0  ;;  %v7517_v2 = vmul.f32 0.2, %v7501_v24  ;;  %v7454_v9 = vadd.f32 %v10427_v41, %v10169_v34 }
0x10d8   : > { %v7540_v56 = vrot.slane %v7524_v27, 7  ;;  %v10172_v47 = vadd.f32 %v10171_v10, %v10170_v39 }
0x10d9   : > { %v7525_v63 = vsel %vm7509_vm9, %v7501_v24, %v7517_v2  ;;  %v7486_v26 = vmul.f32 %v15959_v6, %v7454_v9 }
0x10da   : > { %v15980_v32 = vsel %vm437_vm3, %v7540_v56, 0.0  ;;  %v7541_v50 = vrot.slane %v7525_v63, 7  ;;  %v7457_v7 = vadd.f32 %v10428_v23, %v10172_v47  ;;  %v15984_v14 = vsel %vm437_vm3, 0.0, %v7540_v56  ;;  %v12101_v23 = vld [vmem:[%s16642_s3 + $0x650] sm:$0xff]  }
0x10db   : > { %v7629_v18 = vrot.slane %v15980_v32, 2  ;;  %v7502_v22 = vadd.f32 %v15964_v62, %v7486_v26  ;;  %v7628_v42 = vrot.slane %v15984_v14, 2  ;;  %10200 = vmatpush3.bf16.msra.mxu0 %v12101_v23  ;;  %v7587_v35 = vrot.slane %v15980_v32, 1 }
0x10dc   : > { %v15988_v0 = vsel %vm437_vm3, 0.0, %v7541_v50  ;;  %v15991_v41 = vsel %vm437_vm3, %v7541_v50, 0.0  ;;  %v7487_v43 = vmul.f32 %v15959_v6, %v7457_v7  ;;  %10201 = vmatprep.subr.bf16.mxu0 %v12102_v52  ;;  %v7586_v23 = vrot.slane %v15984_v14, 1 }
0x10dd   : > { %v11673_v61 = vpack.i.bf16 %v15988_v0, %v15984_v14  ;;  %v7631_v20 = vrot.slane %v15988_v0, 2  ;;  %v7632_v29 = vrot.slane %v15991_v41, 2  ;;  %vm7510_vm10 = vcmp.gt.f32.partialorder %v7502_v22, 0.0 }
0x10de   : > { %v7518_v55 = vmul.f32 0.2, %v7502_v22  ;;  %v7503_v19 = vadd.f32 %v15964_v62, %v7487_v43  ;;  %v10173_v49 = vpop.f32.mrb[128].mxu0  ;;  %v7630_v5 = vsel %vm339_vm1, %v7628_v42, %v7629_v18  ;;  %v7589_v34 = vrot.slane %v15988_v0, 1  ;;  %v12105_v18 = vld [vmem:[%s16642_s3 + $0x660] sm:$0xff]  }
0x10df   : > { %v10174_v28 = vpop.f32.mrb[129].mxu0  ;;  %11674 = vrot.lane.b32.xlu1 %v11673_v61, %s12192_s9  ;;  %v16010_v46 = vsel %vm339_vm1, %v7631_v20, %v7632_v29  ;;  %10202 = vmatpush3.bf16.msra.mxu0 %v12103_v60  ;;  %v7590_v10 = vrot.slane %v15991_v41, 1  ;;  %v12106_v29 = vld [vmem:[%s16642_s3 + $0x6a8] sm:$0xff]  }
0x10e0   : > { %v7526_v31 = vsel %vm7510_vm10, %v7502_v22, %v7518_v55  ;;  %vm7511_vm11 = vcmp.gt.f32.partialorder %v7503_v19, 0.0  ;;  %v7519_v53 = vmul.f32 0.2, %v7503_v19  ;;  %v10175_v45 = vadd.f32 %v10174_v28, %v10173_v49  ;;  %v10176_v54 = vpop.f32.mrb[130].mxu0  ;;  %10203 = vmatprep.subr.bf16.mxu0 %v12104_v40 }
0x10e1   : > { %v7542_v15 = vrot.slane %v7526_v31, 7  ;;  %v10177_v16 = vpop.f32.mrb[131].mxu0  ;;  %v11678_v33 = vpack.i.bf16 %v16010_v46, %v7630_v5 }
0x10e2   : > { %v7527_v57 = vsel %vm7511_vm11, %v7503_v19, %v7519_v53  ;;  %v7462_v24 = vadd.f32 %v10175_v45, %v15926_v58  ;;  %v10178_v1 = vadd.f32 %v10177_v16, %v10176_v54  ;;  %v16061_v19 = vsel %vm472_vm4, %v7589_v34, %v7590_v10  ;;  %v12107_v54 = vld [vmem:[%s16642_s3 + $0x668] sm:$0xff]  }
0x10e3   : > { %v16023_v39 = vsel %vm437_vm3, 0.0, %v7542_v15  ;;  %v7566_v27 = vsel %vm437_vm3, %v7542_v15, 0.0  ;;  %v7543_v2 = vrot.slane %v7527_v57, 7  ;;  %11679 = vrot.lane.b32.xlu0 %v11678_v33, %s12193_s14  ;;  %10204 = vmatpush3.bf16.msra.mxu0 %v12105_v18  ;;  %v16078_v33 = vsel %vm472_vm4, %v7586_v23, %v7587_v35 }
0x10e4   : > { %v7488_v56 = vmul.f32 %v15959_v6, %v7462_v24  ;;  %v7465_v9 = vadd.f32 %v10178_v1, %v15930_v17  ;;  %v11683_v58 = vpack.i.bf16 %v16023_v39, %v15988_v0  ;;  %v7634_v47 = vrot.slane %v16023_v39, 2  ;;  %10205 = vmatprep.subr.bf16.mxu0 %v12106_v29 }
0x10e5   : > { %v16034_v36 = vsel %vm437_vm3, 0.0, %v7543_v2  ;;  %v16037_v48 = vsel %vm437_vm3, %v7543_v2, 0.0  ;;  %v7635_v63 = vrot.slane %v7566_v27, 2  ;;  %v7592_v32 = vrot.slane %v16023_v39, 1 }
0x10e6   : > { %v7504_v50 = vadd.f32 %v15964_v62, %v7488_v56  ;;  %v7489_v26 = vmul.f32 %v15959_v6, %v7465_v9  ;;  %v11688_v17 = vpack.i.bf16 %v16034_v36, %v7630_v5  ;;  %v7593_v7 = vrot.slane %v7566_v27, 1 }
0x10e7   : > { %11684 = vrot.lane.b32.xlu0 %v11683_v58, %s12194_s15  ;;  %v16048_v41 = vsel %vm339_vm1, %v7634_v47, %v7635_v63  ;;  %v7637_v22 = vrot.slane %v16034_v36, 2  ;;  %v7638_v43 = vrot.slane %v16037_v48, 2  ;;  %v11693_v28 = vpack.i.bf16 %v16034_v36, %v16023_v39  ;;  %10206 = vmatpush3.bf16.msra.mxu0 %v12107_v54 }
0x10e8   : > { %vm7512_vm12 = vcmp.gt.f32.partialorder %v7504_v50, 0.0  ;;  %v7520_v52 = vmul.f32 0.2, %v7504_v50  ;;  %v7505_v61 = vadd.f32 %v15964_v62, %v7489_v26  ;;  %v10179_v42 = vpop.f32.mrb[132].mxu0  ;;  %11689 = vrot.lane.b32.xlu1 %v11688_v17, %s12194_s15  ;;  %v7831_v20 = vpack.c.bf16 %v16048_v41, %v16010_v46 }
0x10e9   : > { %v10180_v55 = vpop.f32.mrb[133].mxu0  ;;  %v16064_v49 = vsel %vm472_vm4, %v7592_v32, %v7593_v7  ;;  %v16075_v16 = vsel %vm339_vm1, %v7637_v22, %v7638_v43  ;;  %v11698_v10 = vpack.i.bf16 %v16048_v41, %v16078_v33  ;;  %v7595_v7 = vrot.slane %v16034_v36, 1 }
0x10ea   : > { %v7528_v5 = vsel %vm7512_vm12, %v7504_v50, %v7520_v52  ;;  %vm7513_vm13 = vcmp.gt.f32.partialorder %v7505_v61, 0.0  ;;  %v7521_v31 = vmul.f32 0.2, %v7505_v61  ;;  %v10181_v53 = vadd.f32 %v10180_v55, %v10179_v42  ;;  %10437 = vmatprep.mubr.msk.bf16.mxu1 %vm689_vm5, %v7831_v20  ;;  %v10182_v45 = vpop.f32.mrb[134].mxu0 }
0x10eb   : > { %v7544_v60 = vrot.slane %v7528_v5, 7  ;;  %v10183_v40 = vpop.f32.mrb[135].mxu0  ;;  %v11703_v15 = vpack.i.bf16 %v16064_v49, %v16061_v19  ;;  %v11708_v63 = vpack.i.bf16 %v16061_v19, %v16075_v16  ;;  %v7596_v18 = vrot.slane %v16037_v48, 1 }
0x10ec   : > { %v7529_v57 = vsel %vm7513_vm13, %v7505_v61, %v7521_v31  ;;  %v7470_v24 = vadd.f32 %v15924_v38, %v10181_v53  ;;  %v10184_v1 = vadd.f32 %v10183_v40, %v10182_v45  ;;  %11694 = vrot.lane.b32.xlu1 %v11693_v28, %s12192_s9 }
0x10ed   : > { %v16083_v34 = vsel %vm437_vm3, 0.0, %v7544_v60  ;;  %v7568_v27 = vsel %vm437_vm3, %v7544_v60, 0.0  ;;  %v7545_v2 = vrot.slane %v7529_v57, 7  ;;  %11704 = vrot.lane.b32.xlu0 %v11703_v15, %s12192_s9  ;;  %v16123_v55 = vsel %vm472_vm4, %v7595_v7, %v7596_v18 }
0x10ee   : > { %v7641_v35 = vrot.slane %v7568_v27, 2  ;;  %v7490_v56 = vmul.f32 %v15959_v6, %v7470_v24  ;;  %v7473_v38 = vadd.f32 %v15928_v25, %v10184_v1  ;;  %v7640_v9 = vrot.slane %v16083_v34, 2 }
0x10ef   : > { %v16093_v58 = vsel %vm437_vm3, 0.0, %v7545_v2  ;;  %v16096_v47 = vsel %vm437_vm3, %v7545_v2, 0.0  ;;  %v7598_v25 = vrot.slane %v16083_v34, 1  ;;  %v7599_v22 = vrot.slane %v7568_v27, 1 }
0x10f0   : > { %v7506_v32 = vadd.f32 %v15964_v62, %v7490_v56  ;;  %v7491_v50 = vmul.f32 %v15959_v6, %v7473_v38  ;;  %v7642_v26 = vsel %vm339_vm1, %v7640_v9, %v7641_v35  ;;  %11699 = vrot.lane.b32.xlu1 %v11698_v10, %s12193_s14  ;;  %v11718_v6 = vpack.i.bf16 %v16093_v58, %v16048_v41 }
0x10f1   : > { %v7834_v17 = vpack.c.bf16 %v7642_v26, %v16075_v16  ;;  %11709 = vrot.lane.b32.xlu0 %v11708_v63, %s12193_s14  ;;  %v11713_v52 = vpack.i.bf16 %v16010_v46, %v16083_v34  ;;  %v7643_v61 = vrot.slane %v16093_v58, 2  ;;  %v7644_v42 = vrot.slane %v16096_v47, 2 }
0x10f2   : > { %vm7514_vm14 = vcmp.gt.f32.partialorder %v7506_v32, 0.0  ;;  %v7522_v43 = vmul.f32 0.2, %v7506_v32  ;;  %v7507_v23 = vadd.f32 %v15964_v62, %v7491_v50  ;;  %v16119_v29 = vsel %vm472_vm4, %v7598_v25, %v7599_v22 }
0x10f3   : > { %10438 = vmatmul.mubr.msk.bf16.vlgmr.msra.gmra.mrb[136].mxu1 %vm689_vm5, %v7834_v17  ;;  %v11723_v46 = vpack.i.bf16 %v7642_v26, %v16064_v49  ;;  %v11728_v53 = vpack.i.bf16 %v16119_v29, %v16123_v55  ;;  %v7645_v45 = vsel %vm339_vm1, %v7643_v61, %v7644_v42  ;;  %v7601_v50 = vrot.slane %v16093_v58, 1 }
0x10f4   : > { %v7530_v20 = vsel %vm7514_vm14, %v7506_v32, %v7522_v43  ;;  %vm7515_vm15 = vcmp.gt.f32.partialorder %v7507_v23, 0.0  ;;  %v7523_v48 = vmul.f32 0.2, %v7507_v23  ;;  %11719 = vrot.lane.b32.xlu1 %v11718_v6, %s12194_s15  ;;  %v11733_v2 = vpack.i.bf16 %v16123_v55, %v7645_v45 }
0x10f5   : > { %v7546_v62 = vrot.slane %v7530_v20, 7  ;;  %11714 = vrot.lane.b32.xlu0 %v11713_v52, %s12194_s15  ;;  %v11753_v18 = vpack.i.bf16 %v16093_v58, %v16083_v34 }
0x10f6   : > { %v7531_v41 = vsel %vm7515_vm15, %v7507_v23, %v7523_v48 }
0x10f7   : > { %v16127_v28 = vsel %vm437_vm3, 0.0, %v7546_v62  ;;  %v7570_v5 = vsel %vm437_vm3, %v7546_v62, 0.0  ;;  %v7547_v31 = vrot.slane %v7531_v41, 7 }
0x10f8   : > { %11724 = vrot.lane.b32.xlu1 %v11723_v46, %s12193_s14  ;;  %v7646_v54 = vrot.slane %v16127_v28, 2  ;;  %v7647_v60 = vrot.slane %v7570_v5, 2  ;;  %v7604_v38 = vrot.slane %v16127_v28, 1  ;;  %v7605_v9 = vrot.slane %v7570_v5, 1 }
0x10f9   : > { %v7571_v40 = vsel %vm437_vm3, %v7547_v31, 0.0  ;;  %11729 = vrot.lane.b32.xlu0 %v11728_v53, %s12192_s9  ;;  %v7563_v15 = vsel %vm437_vm3, 0.0, %v7547_v31  ;;  %v11738_v25 = vpack.i.bf16 %v16075_v16, %v16127_v28 }
0x10fa   : > { %v11743_v57 = vpack.i.bf16 %v7563_v15, %v7642_v26  ;;  %v7648_v24 = vsel %vm339_vm1, %v7646_v54, %v7647_v60  ;;  %v7707_v1 = vrot.slane %v7563_v15, 2  ;;  %v7708_v27 = vrot.slane %v7571_v40, 2 }
0x10fb   : > { %v7837_v10 = vpack.c.bf16 %v7648_v24, %v7645_v45  ;;  %v11763_v35 = vpack.i.bf16 %v7648_v24, %v7645_v45  ;;  %v11748_v32 = vpack.i.bf16 %v7648_v24, %v16119_v29  ;;  %v7602_v26 = vrot.slane %v16096_v47, 1 }
0x10fc   : > { %11744 = vrot.lane.b32.xlu1 %v11743_v57, %s12194_s15  ;;  %v7709_v56 = vsel %vm339_vm1, %v7707_v1, %v7708_v27  ;;  %v16154_v17 = vsel %vm472_vm4, %v7604_v38, %v7605_v9  ;;  %v7696_v22 = vrot.slane %v7563_v15, 1  ;;  %v7697_v43 = vrot.slane %v7571_v40, 1 }
0x10fd   : > { %11734 = vrot.lane.b32.xlu0 %v11733_v2, %s12193_s14  ;;  %10441 = vmatprep.mubr.msk.bf16.mxu1 %vm689_vm5, %v7837_v10  ;;  %v7840_v63 = vpack.c.bf16 %v12381_v51, %v7709_v56  ;;  %v16158_v7 = vsel %vm472_vm4, %v7601_v50, %v7602_v26 }
0x10fe   : > { %v11758_v47 = vpack.i.bf16 %v16154_v17, %v16158_v7  ;;  %v16167_v16 = vsel %vm472_vm4, %v7696_v22, %v7697_v43  ;;  %v11768_v6 = vpack.i.bf16 %v16158_v7, %v7709_v56 }
0x10ff   : > { %10442 = vmatmul.mubr.msk.bf16.gmra.mrb[140].mxu1 %vm689_vm5, %v7840_v63  ;;  %v11773_v23 = vpack.i.bf16 %v16127_v28, %v16167_v16 }
0x1100   : > { %11749 = vrot.lane.b32.xlu1 %v11748_v32, %s12193_s14 }
0x1101   : > { %11739 = vrot.lane.b32.xlu0 %v11738_v25, %s12194_s15 }
0x1104   : > { %11754 = vrot.lane.b32.xlu1 %v11753_v18, %s12192_s9 }
0x1105   : > { %11759 = vrot.lane.b32.xlu0 %v11758_v47, %s12192_s9 }
0x1108   : > { %7619 = vrot.lane.b32.xlu1 %v16154_v17, %s12193_s14 }
0x1109   : > { %11764 = vrot.lane.b32.xlu0 %v11763_v35, %s12194_s15 }
0x110c   : > { %11774 = vrot.lane.b32.xlu1 %v11773_v23, %s12192_s9 }
0x110d   : > { %11769 = vrot.lane.b32.xlu0 %v11768_v6, %s12193_s14 }
0x1111   : > { %7685 = vrot.lane.b32.xlu0 %v7563_v15, %s12192_s9 }
0x1151   : > { %v11675_v61 = vpop.permute.xlu1 %11674 }
0x1152   : > { %v11676_v27 = vunpack.i.l.bf16 %v11675_v61 }
0x1154   : > { %v7797_v32 = vsel %vm707_vm7, %v12587_v13, %v11676_v27 }
0x1155   : > { %v11680_v52 = vpop.permute.xlu0 %11679 }
0x1156   : > { %v11682_v48 = vunpack.i.h.bf16 %v11680_v52  ;;  %v11681_v62 = vunpack.i.l.bf16 %v11680_v52 }
0x1158   : > { %v7806_v53 = vsel %vm689_vm5, %v16061_v19, %v11682_v48  ;;  %v7805_v45 = vsel %vm689_vm5, %v16078_v33, %v11681_v62  ;;  %v11677_v19 = vunpack.i.h.bf16 %v11675_v61 }
0x1159   : > { %v11685_v42 = vpop.permute.xlu0 %11684 }
0x115a   : > { %v11690_v20 = vpop.permute.xlu1 %11689  ;;  %v11687_v41 = vunpack.i.h.bf16 %v11685_v42  ;;  %v11686_v46 = vunpack.i.l.bf16 %v11685_v42 }
0x115b   : > { %v11691_v56 = vunpack.i.l.bf16 %v11690_v20  ;;  %v11692_v23 = vunpack.i.h.bf16 %v11690_v20 }
0x115c   : > { %v7813_v40 = vsel %vm698_vm6, %v7805_v45, %v11686_v46  ;;  %v7814_v15 = vsel %vm698_vm6, %v7806_v53, %v11687_v41 }
0x115e   : > { %v11695_v5 = vpop.permute.xlu1 %11694 }
0x115f   : > { %v11705_v31 = vpop.permute.xlu0 %11704  ;;  %v11697_v52 = vunpack.i.h.bf16 %v11695_v5  ;;  %v11696_v20 = vunpack.i.l.bf16 %v11695_v5 }
0x1160   : > { %v11707_v54 = vunpack.i.h.bf16 %v11705_v31  ;;  %v11706_v60 = vunpack.i.l.bf16 %v11705_v31 }
0x1162   : > { %v11700_v57 = vpop.permute.xlu1 %11699  ;;  %v7821_v24 = vsel %vm707_vm7, %v7813_v40, %v11706_v60  ;;  %v7822_v1 = vsel %vm707_vm7, %v7814_v15, %v11707_v54 }
0x1163   : > { %v11710_v2 = vpop.permute.xlu0 %11709  ;;  %v11701_v10 = vunpack.i.l.bf16 %v11700_v57  ;;  %v7830_v35 = vpack.c.bf16 %v7822_v1, %v7821_v24  ;;  %v11702_v38 = vunpack.i.h.bf16 %v11700_v57 }
0x1164   : > { %v11712_v50 = vunpack.i.h.bf16 %v11710_v2  ;;  %v11711_v26 = vunpack.i.l.bf16 %v11710_v2 }
0x1165   : > { %v7783_v33 = vsel %vm689_vm5, %v15984_v14, %v11701_v10  ;;  %8030 = vmatprep.mubr.bf16.mxu0 %v7830_v35  ;;  %v7807_v14 = vsel %vm689_vm5, %v16064_v49, %v11702_v38 }
0x1166   : > { %v7790_v9 = vsel %vm698_vm6, %v7783_v33, %v11691_v56  ;;  %v11720_v63 = vpop.permute.xlu1 %11719  ;;  %v7784_v61 = vsel %vm689_vm5, %v15988_v0, %v11712_v50  ;;  %v7808_v42 = vsel %vm689_vm5, %v16123_v55, %v11711_v26  ;;  %v7815_v54 = vsel %vm698_vm6, %v7807_v14, %v11692_v23 }
0x1167   : > { %v7798_v25 = vsel %vm707_vm7, %v7790_v9, %v11677_v19  ;;  %v11715_v18 = vpop.permute.xlu0 %11714  ;;  %v11721_v46 = vunpack.i.l.bf16 %v11720_v63  ;;  %v11722_v9 = vunpack.i.h.bf16 %v11720_v63 }
0x1168   : > { %v7829_v47 = vpack.c.bf16 %v7798_v25, %v7797_v32  ;;  %v11717_v22 = vunpack.i.h.bf16 %v11715_v18  ;;  %v11716_v43 = vunpack.i.l.bf16 %v11715_v18 }
0x116a   : > { %v11725_v6 = vpop.permute.xlu1 %11724  ;;  %8031 = vmatmul.mubr.bf16.vlgmr.msra.gmra.mrb[136].mxu0 %v7829_v47  ;;  %v7791_v41 = vsel %vm698_vm6, %v7784_v61, %v11717_v22  ;;  %v7816_v45 = vsel %vm698_vm6, %v7808_v42, %v11716_v43 }
0x116b   : > { %v11730_v48 = vpop.permute.xlu0 %11729  ;;  %v11726_v62 = vunpack.i.l.bf16 %v11725_v6  ;;  %v7799_v24 = vsel %vm707_vm7, %v7791_v41, %v11696_v20  ;;  %v11727_v27 = vunpack.i.h.bf16 %v11725_v6 }
0x116c   : > { %v11732_v31 = vunpack.i.h.bf16 %v11730_v48  ;;  %v11731_v53 = vunpack.i.l.bf16 %v11730_v48 }
0x116d   : > { %v7785_v49 = vsel %vm689_vm5, %v16023_v39, %v11726_v62  ;;  %v7809_v32 = vsel %vm689_vm5, %v16119_v29, %v11727_v27 }
0x116e   : > { %v11745_v60 = vpop.permute.xlu1 %11744  ;;  %v7823_v0 = vsel %vm707_vm7, %v7815_v54, %v11731_v53  ;;  %v7824_v55 = vsel %vm707_vm7, %v7816_v45, %v11732_v31  ;;  %v7792_v40 = vsel %vm698_vm6, %v7785_v49, %v11721_v46  ;;  %v7817_v29 = vsel %vm698_vm6, %v7809_v32, %v11722_v9 }
0x116f   : > { %v11735_v15 = vpop.permute.xlu0 %11734  ;;  %v7833_v57 = vpack.c.bf16 %v7824_v55, %v7823_v0  ;;  %v7800_v5 = vsel %vm707_vm7, %v7792_v40, %v11697_v52  ;;  %v11746_v50 = vunpack.i.l.bf16 %v11745_v60  ;;  %v11747_v20 = vunpack.i.h.bf16 %v11745_v60 }
0x1170   : > { %v7832_v1 = vpack.c.bf16 %v7800_v5, %v7799_v24  ;;  %v11737_v39 = vunpack.i.h.bf16 %v11735_v15  ;;  %v11736_v10 = vunpack.i.l.bf16 %v11735_v15 }
0x1171   : > { %8038 = vmatprep.mubr.bf16.mxu0 %v7833_v57 }
0x1172   : > { %v11750_v2 = vpop.permute.xlu1 %11749  ;;  %8039 = vmatmul.mubr.bf16.gmra.mrb[140].mxu0 %v7832_v1  ;;  %v7786_v25 = vsel %vm689_vm5, %v16034_v36, %v11737_v39  ;;  %v7810_v18 = vsel %vm689_vm5, %v16158_v7, %v11736_v10 }
0x1173   : > { %v11740_v35 = vpop.permute.xlu0 %11739  ;;  %v11751_v56 = vunpack.i.l.bf16 %v11750_v2  ;;  %v11752_v61 = vunpack.i.h.bf16 %v11750_v2 }
0x1174   : > { %v11742_v19 = vunpack.i.h.bf16 %v11740_v35  ;;  %v11741_v33 = vunpack.i.l.bf16 %v11740_v35 }
0x1175   : > { %v7787_v38 = vsel %vm689_vm5, %v16083_v34, %v11751_v56  ;;  %v7811_v31 = vsel %vm689_vm5, %v16154_v17, %v11752_v61 }
0x1176   : > { %v11755_v26 = vpop.permute.xlu1 %11754  ;;  %v7793_v23 = vsel %vm698_vm6, %v7786_v25, %v11742_v19  ;;  %v7794_v34 = vsel %vm698_vm6, %v7787_v38, %v11746_v50  ;;  %v7818_v63 = vsel %vm698_vm6, %v7810_v18, %v11741_v33  ;;  %v7819_v24 = vsel %vm698_vm6, %v7811_v31, %v11747_v20  ;;  %v12108_v25 = vld [vmem:[%s16642_s3 + $0x740] sm:$0xff]   ;;  %v12109_v18 = vld [vmem:[%s16642_s3 + $0x748] sm:$0xff]  }
0x1177   : > { %v11760_v47 = vpop.permute.xlu0 %11759  ;;  %v11757_v22 = vunpack.i.h.bf16 %v11755_v26  ;;  %v11756_v43 = vunpack.i.l.bf16 %v11755_v26  ;;  %10445 = vmatprep.subr.bf16.mxu0 %v12108_v25 }
0x1178   : > { %v11762_v14 = vunpack.i.h.bf16 %v11760_v47  ;;  %v11761_v6 = vunpack.i.l.bf16 %v11760_v47  ;;  %10446 = vmatpush3.bf16.msra.mxu0 %v12108_v25  ;;  %v12110_v47 = vld [vmem:[%s16642_s3 + $0x700] sm:$0xff]  }
0x1179   : > { %v7801_v52 = vsel %vm707_vm7, %v7793_v23, %v11756_v43  ;;  %v7802_v36 = vsel %vm707_vm7, %v7794_v34, %v11757_v22  ;;  %10447 = vmatprep.subr.bf16.mxu0 %v12109_v18  ;;  %v12111_v22 = vld [vmem:[%s16642_s3 + $0x6c0] sm:$0xff]   ;;  %v12112_v43 = vld [vmem:[%s16642_s3 + $0x708] sm:$0xff]   ;;  %10237 = vmatprep.subr.bf16.mxu1 %v12110_v47 }
0x117a   : > { %v7620_v42 = vpop.permute.xlu1 %7619  ;;  %v7825_v7 = vsel %vm707_vm7, %v7817_v29, %v11761_v6  ;;  %v7826_v48 = vsel %vm707_vm7, %v7818_v63, %v11762_v14  ;;  %v7835_v62 = vpack.c.bf16 %v7802_v36, %v7801_v52  ;;  %10238 = vmatpush3.bf16.msra.mxu1 %v12111_v22  ;;  %v12113_v23 = vld [vmem:[%s16642_s3 + $0x6c8] sm:$0xff]   ;;  %v12114_v14 = vld [vmem:[%s16642_s3 + $0x710] sm:$0xff]  }
0x117b   : > { %v11765_v41 = vpop.permute.xlu0 %11764  ;;  %v7836_v46 = vpack.c.bf16 %v7826_v48, %v7825_v7  ;;  %v7789_v0 = vsel %vm689_vm5, %v16127_v28, %v7620_v42  ;;  %10239 = vmatprep.subr.bf16.mxu1 %v12112_v43  ;;  %v16274_v52 = vld [vmem:[%s16643_s4 + $0xb] ss:$0 sm:$0xff] }
0x117c   : > { %v11767_v45 = vunpack.i.h.bf16 %v11765_v41  ;;  %v11766_v57 = vunpack.i.l.bf16 %v11765_v41  ;;  %10448 = vmatpush3.bf16.msra.mxu0 %v12109_v18  ;;  %v16279_v7 = vld [vmem:[%s16644_s5 + $0xb] ss:$0 sm:$0xff] }
0x117d   : > { %8046 = vmatprep.mubr.bf16.mxu0 %v7836_v46  ;;  %v12120_v18 = vld [vmem:[%s16642_s3 + $0x728] sm:$0xff]  }
0x117e   : > { %8047 = vmatmul.mubr.bf16.gmra.mrb[144].mxu0 %v7835_v62  ;;  %v11775_v53 = vpop.permute.xlu1 %11774  ;;  %v7796_v2 = vsel %vm698_vm6, %v7789_v0, %v11767_v45  ;;  %10240 = vmatpush3.bf16.msra.mxu1 %v12113_v23 }
0x117f   : > { %v11770_v49 = vpop.permute.xlu0 %11769  ;;  %v11776_v54 = vunpack.i.l.bf16 %v11775_v53  ;;  %v11777_v15 = vunpack.i.h.bf16 %v11775_v53  ;;  %10241 = vmatprep.subr.bf16.mxu1 %v12114_v14  ;;  %v12115_v53 = vld [vmem:[%s16642_s3 + $0x6d0] sm:$0xff]  }
0x1180   : > { %v11772_v55 = vunpack.i.h.bf16 %v11770_v49  ;;  %v11771_v40 = vunpack.i.l.bf16 %v11770_v49 }
0x1181   : > { %v7827_v60 = vsel %vm707_vm7, %v7819_v24, %v11776_v54 }
0x1182   : > { %v7788_v5 = vsel %vm689_vm5, %v16093_v58, %v11772_v55  ;;  %v7812_v17 = vsel %vm689_vm5, %v16167_v16, %v11771_v40  ;;  %10242 = vmatpush3.bf16.msra.mxu1 %v12115_v53 }
0x1183   : > { %v7686_v1 = vpop.permute.xlu0 %7685  ;;  %v7795_v27 = vsel %vm698_vm6, %v7788_v5, %v11766_v57  ;;  %v7820_v28 = vsel %vm698_vm6, %v7812_v17, %v12635_v12  ;;  %v12116_v5 = vld [vmem:[%s16642_s3 + $0x718] sm:$0xff]  }
0x1184   : > { %v7803_v39 = vsel %vm707_vm7, %v7795_v27, %v11777_v15  ;;  %v7804_v10 = vsel %vm707_vm7, %v7796_v2, %v7686_v1  ;;  %v7828_v58 = vsel %vm707_vm7, %v7820_v28, %v12645_v30  ;;  %v12117_v17 = vld [vmem:[%s16642_s3 + $0x6d8] sm:$0xff]   ;;  %10243 = vmatprep.subr.bf16.mxu1 %v12116_v5 }
0x1185   : > { %v7838_v35 = vpack.c.bf16 %v7804_v10, %v7803_v39  ;;  %v7839_v56 = vpack.c.bf16 %v7828_v58, %v7827_v60 }
0x1186   : > { %10244 = vmatpush3.bf16.msra.mxu1 %v12117_v17 }
0x1187   : > { %8054 = vmatprep.mubr.bf16.mxu0 %v7839_v56  ;;  %v12119_v56 = vld [vmem:[%s16642_s3 + $0x6e0] sm:$0xff]  }
0x1188   : > { %8055 = vmatmul.mubr.bf16.gmra.mrb[148].mxu0 %v7838_v35  ;;  %v12118_v35 = vld [vmem:[%s16642_s3 + $0x720] sm:$0xff]  }
0x1189   : > { %10245 = vmatprep.subr.bf16.mxu1 %v12118_v35  ;;  %v12124_v35 = vld [vmem:[%s16642_s3 + $0x738] sm:$0xff]  }
0x118a   : > { %10246 = vmatpush3.bf16.msra.mxu1 %v12119_v56  ;;  %v12125_v56 = vld [vmem:[%s16642_s3 + $0x6f8] sm:$0xff]  }
0x118b   : > { %10247 = vmatprep.subr.bf16.mxu1 %v12120_v18 }
0x11c6   : > { %v10439_v16 = vpop.f32.mrb[136].mxu1 }
0x11c7   : > { %v8097_v19 = vpop.f32.mrb[137].mxu1 }
0x11c8   : > { %v10440_v33 = vpop.f32.mrb[138].mxu1 }
0x11c9   : > { %v8100_v38 = vpop.f32.mrb[139].mxu1 }
0x11d2   : > { %v16242_v9 = vpop.f32.mrb[140].mxu1 }
0x11d3   : > { %v16244_v32 = vpop.f32.mrb[141].mxu1 }
0x11d4   : > { %v16246_v50 = vpop.f32.mrb[142].mxu1 }
0x11d5   : > { %v16248_v26 = vpop.f32.mrb[143].mxu1 }
0x123d   : > { %v10207_v6 = vpop.f32.mrb[136].mxu0 }
0x123e   : > { %v10208_v34 = vpop.f32.mrb[137].mxu0 }
0x123f   : > { %v10209_v63 = vadd.f32 %v10208_v34, %v10207_v6  ;;  %v10210_v29 = vpop.f32.mrb[138].mxu0 }
0x1240   : > { %v10211_v36 = vpop.f32.mrb[139].mxu0 }
0x1241   : > { %v8098_v61 = vadd.f32 %v10209_v63, %v8097_v19  ;;  %v10212_v42 = vadd.f32 %v10211_v36, %v10210_v29 }
0x1243   : > { %v8136_v48 = vmul.f32 %v16274_v52, %v8098_v61  ;;  %v8101_v62 = vadd.f32 %v10212_v42, %v8100_v38 }
0x1245   : > { %v8152_v41 = vadd.f32 %v16279_v7, %v8136_v48  ;;  %v8137_v46 = vmul.f32 %v16274_v52, %v8101_v62  ;;  %v10213_v31 = vpop.f32.mrb[140].mxu0 }
0x1246   : > { %v10214_v20 = vpop.f32.mrb[141].mxu0 }
0x1247   : > { %v8160_v45 = vadd.f32 %v8152_v41, %v15628_v37  ;;  %v8153_v49 = vadd.f32 %v16279_v7, %v8137_v46  ;;  %v10215_v54 = vadd.f32 %v10214_v20, %v10213_v31  ;;  %v10216_v0 = vpop.f32.mrb[142].mxu0 }
0x1248   : > { %v10217_v55 = vpop.f32.mrb[143].mxu0 }
0x1249   : > { %v8176_v40 = vrot.slane %v8160_v45, 7  ;;  %v8161_v15 = vadd.f32 %v8153_v49, %v15633_v21  ;;  %v8106_v57 = vadd.f32 %v10439_v16, %v10215_v54  ;;  %v10218_v24 = vadd.f32 %v10217_v55, %v10216_v0  ;;  %v12122_v0 = vld [vmem:[%s16642_s3 + $0x730] sm:$0xff]  }
0x124b   : > { %v16297_v37 = vsel %vm437_vm3, 0.0, %v8176_v40  ;;  %v16300_v60 = vsel %vm437_vm3, %v8176_v40, 0.0  ;;  %v8177_v1 = vrot.slane %v8161_v15, 7  ;;  %v8138_v27 = vmul.f32 %v16274_v52, %v8106_v57 }
0x124c   : > { %v8265_v21 = vrot.slane %v16300_v60, 2  ;;  %v8109_v2 = vadd.f32 %v10440_v33, %v10218_v24  ;;  %v8264_v58 = vrot.slane %v16297_v37, 2  ;;  %v8223_v15 = vrot.slane %v16300_v60, 1  ;;  %v12123_v60 = vld [vmem:[%s16642_s3 + $0x6f0] sm:$0xff]  }
0x124d   : > { %v16305_v28 = vsel %vm437_vm3, 0.0, %v8177_v1  ;;  %v8201_v39 = vsel %vm437_vm3, %v8177_v1, 0.0  ;;  %v8154_v10 = vadd.f32 %v16279_v7, %v8138_v27  ;;  %v8222_v24 = vrot.slane %v16297_v37, 1 }
0x124e   : > { %v8268_v16 = vrot.slane %v8201_v39, 2  ;;  %v8139_v19 = vmul.f32 %v16274_v52, %v8109_v2  ;;  %v11778_v33 = vpack.i.bf16 %v16305_v28, %v16297_v37  ;;  %v8267_v25 = vrot.slane %v16305_v28, 2 }
0x124f   : > { %v8162_v38 = vadd.f32 %v8154_v10, %v15666_v8  ;;  %v8266_v23 = vsel %vm339_vm1, %v8264_v58, %v8265_v21  ;;  %v12121_v8 = vld [vmem:[%s16642_s3 + $0x6e8] sm:$0xff]   ;;  %v8226_v6 = vrot.slane %v8201_v39, 1  ;;  %v8225_v62 = vrot.slane %v16305_v28, 1 }
0x1250   : > { %v8155_v47 = vadd.f32 %v16279_v7, %v8139_v19  ;;  %11779 = vrot.lane.b32.xlu0 %v11778_v33, %s12192_s9  ;;  %v16328_v14 = vsel %vm339_vm1, %v8267_v25, %v8268_v16  ;;  %10248 = vmatpush3.bf16.msra.mxu1 %v12121_v8 }
0x1251   : > { %v8178_v22 = vrot.slane %v8162_v38, 7  ;;  %v10219_v43 = vpop.f32.mrb[144].mxu0  ;;  %v11783_v29 = vpack.i.bf16 %v16328_v14, %v8266_v23  ;;  %10249 = vmatprep.subr.bf16.mxu1 %v12122_v0  ;;  %v16376_v39 = vsel %vm472_vm4, %v8225_v62, %v8226_v6 }
0x1252   : > { %v8163_v34 = vadd.f32 %v8155_v47, %v15679_v4  ;;  %v10220_v63 = vpop.f32.mrb[145].mxu0 }
0x1253   : > { %v16336_v36 = vsel %vm437_vm3, 0.0, %v8178_v22  ;;  %v8202_v61 = vsel %vm437_vm3, %v8178_v22, 0.0  ;;  %v10221_v42 = vadd.f32 %v10220_v63, %v10219_v43  ;;  %v10222_v48 = vpop.f32.mrb[146].mxu0  ;;  %11784 = vrot.lane.b32.xlu1 %v11783_v29, %s12193_s14 }
0x1254   : > { %v8229_v41 = vrot.slane %v8202_v61, 1  ;;  %v8271_v46 = vrot.slane %v8202_v61, 2  ;;  %v8179_v31 = vrot.slane %v8163_v34, 7  ;;  %v10223_v53 = vpop.f32.mrb[147].mxu0  ;;  %v11788_v4 = vpack.i.bf16 %v16336_v36, %v16305_v28  ;;  %10250 = vmatpush3.bf16.msra.mxu1 %v12123_v60 }
0x1255   : > { %v8114_v20 = vadd.f32 %v10221_v42, %v16244_v32  ;;  %v10224_v45 = vadd.f32 %v10223_v53, %v10222_v48  ;;  %v8270_v49 = vrot.slane %v16336_v36, 2  ;;  %v8228_v54 = vrot.slane %v16336_v36, 1  ;;  %10251 = vmatprep.subr.bf16.mxu1 %v12124_v35 }
0x1256   : > { %v16350_v55 = vsel %vm437_vm3, 0.0, %v8179_v31  ;;  %v16353_v40 = vsel %vm437_vm3, %v8179_v31, 0.0 }
0x1257   : > { %v8140_v57 = vmul.f32 %v16274_v52, %v8114_v20  ;;  %v8117_v32 = vadd.f32 %v10224_v45, %v16248_v26  ;;  %v8274_v5 = vrot.slane %v16353_v40, 2  ;;  %11789 = vrot.lane.b32.xlu1 %v11788_v4, %s12194_s15  ;;  %v11793_v17 = vpack.i.bf16 %v16350_v55, %v8266_v23 }
0x1258   : > { %v16363_v1 = vsel %vm339_vm1, %v8270_v49, %v8271_v46  ;;  %v16366_v27 = vsel %vm472_vm4, %v8228_v54, %v8229_v41  ;;  %v8273_v58 = vrot.slane %v16350_v55, 2  ;;  %v11798_v25 = vpack.i.bf16 %v16350_v55, %v16336_v36  ;;  %10252 = vmatpush3.bf16.msra.mxu1 %v12125_v56 }
0x1259   : > { %v8156_v26 = vadd.f32 %v16279_v7, %v8140_v57  ;;  %v8141_v21 = vmul.f32 %v16274_v52, %v8117_v32  ;;  %v8467_v2 = vpack.c.bf16 %v16363_v1, %v16328_v14  ;;  %11794 = vrot.lane.b32.xlu0 %v11793_v17, %s12194_s15  ;;  %v11808_v10 = vpack.i.bf16 %v16366_v27, %v16376_v39 }
0x125a   : > { %v16395_v18 = vsel %vm339_vm1, %v8273_v58, %v8274_v5  ;;  %v16399_v23 = vsel %vm472_vm4, %v8222_v24, %v8223_v15  ;;  %v8232_v8 = vrot.slane %v16353_v40, 1  ;;  %v8231_v46 = vrot.slane %v16350_v55, 1 }
0x125b   : > { %v8164_v16 = vadd.f32 %v8156_v26, %v15744_v11  ;;  %v8157_v19 = vadd.f32 %v16279_v7, %v8141_v21  ;;  %v10225_v33 = vpop.f32.mrb[148].mxu0  ;;  %10449 = vmatprep.mubr.msk.bf16.mxu0 %vm689_vm5, %v8467_v2  ;;  %11809 = vrot.lane.b32.xlu1 %v11808_v10, %s12192_s9  ;;  %v11813_v34 = vpack.i.bf16 %v16376_v39, %v16395_v18 }
0x125c   : > { %v10226_v38 = vpop.f32.mrb[149].mxu0  ;;  %v11803_v63 = vpack.i.bf16 %v16363_v1, %v16399_v23 }
0x125d   : > { %v8180_v47 = vrot.slane %v8164_v16, 7  ;;  %v8165_v22 = vadd.f32 %v8157_v19, %v15754_v44  ;;  %v10227_v43 = vadd.f32 %v10226_v38, %v10225_v33  ;;  %v10228_v11 = vpop.f32.mrb[150].mxu0  ;;  %11799 = vrot.lane.b32.xlu0 %v11798_v25, %s12192_s9 }
0x125e   : > { %v10229_v6 = vpop.f32.mrb[151].mxu0 }
0x125f   : > { %v16408_v29 = vsel %vm437_vm3, 0.0, %v8180_v47  ;;  %v8204_v44 = vsel %vm437_vm3, %v8180_v47, 0.0  ;;  %v8181_v61 = vrot.slane %v8165_v22, 7  ;;  %v8122_v42 = vadd.f32 %v16242_v9, %v10227_v43  ;;  %11814 = vrot.lane.b32.xlu1 %v11813_v34, %s12193_s14 }
0x1260   : > { %v8276_v48 = vrot.slane %v16408_v29, 2  ;;  %v8277_v62 = vrot.slane %v8204_v44, 2  ;;  %v10230_v41 = vadd.f32 %v10229_v6, %v10228_v11  ;;  %v8235_v31 = vrot.slane %v8204_v44, 1 }
0x1261   : > { %v16416_v53 = vsel %vm437_vm3, 0.0, %v8181_v61  ;;  %v8205_v4 = vsel %vm437_vm3, %v8181_v61, 0.0  ;;  %v8142_v20 = vmul.f32 %v16274_v52, %v8122_v42  ;;  %11804 = vrot.lane.b32.xlu0 %v11803_v63, %s12193_s14  ;;  %v11818_v49 = vpack.i.bf16 %v16328_v14, %v16408_v29 }
0x1262   : > { %v8125_v45 = vadd.f32 %v16246_v50, %v10230_v41  ;;  %v8278_v9 = vsel %vm339_vm1, %v8276_v48, %v8277_v62  ;;  %v8280_v54 = vrot.slane %v8205_v4, 2  ;;  %v8234_v15 = vrot.slane %v16408_v29, 1 }
0x1263   : > { %v8158_v0 = vadd.f32 %v16279_v7, %v8142_v20  ;;  %v8470_v40 = vpack.c.bf16 %v8278_v9, %v16395_v18  ;;  %11819 = vrot.lane.b32.xlu1 %v11818_v49, %s12194_s15  ;;  %v11823_v50 = vpack.i.bf16 %v16416_v53, %v16363_v1  ;;  %v8279_v32 = vrot.slane %v16416_v53, 2 }
0x1264   : > { %v8143_v57 = vmul.f32 %v16274_v52, %v8125_v45  ;;  %v16436_v14 = vsel %vm472_vm4, %v8231_v46, %v8232_v8  ;;  %v16439_v5 = vsel %vm472_vm4, %v8234_v15, %v8235_v31  ;;  %v11828_v26 = vpack.i.bf16 %v8278_v9, %v16366_v27 }
0x1265   : > { %v8166_v24 = vadd.f32 %v8158_v0, %v15790_v3  ;;  %10450 = vmatmul.mubr.msk.bf16.vlgmr.msra.gmra.mrb[152].mxu0 %vm689_vm5, %v8470_v40  ;;  %11824 = vrot.lane.b32.xlu0 %v11823_v50, %s12194_s15  ;;  %v11833_v52 = vpack.i.bf16 %v16439_v5, %v16436_v14  ;;  %v8281_v60 = vsel %vm339_vm1, %v8279_v32, %v8280_v54  ;;  %v8238_v16 = vrot.slane %v8205_v4, 1 }
0x1266   : > { %v8159_v17 = vadd.f32 %v16279_v7, %v8143_v57  ;;  %v11838_v58 = vpack.i.bf16 %v16436_v14, %v8281_v60  ;;  %v8237_v43 = vrot.slane %v16416_v53, 1  ;;  %v11858_v48 = vpack.i.bf16 %v16416_v53, %v16408_v29 }
0x1267   : > { %v8182_v1 = vrot.slane %v8166_v24, 7  ;;  %11834 = vrot.lane.b32.xlu1 %v11833_v52, %s12192_s9 }
0x1268   : > { %v8167_v3 = vadd.f32 %v8159_v17, %v15804_v59  ;;  %v16474_v42 = vsel %vm472_vm4, %v8237_v43, %v8238_v16 }
0x1269   : > { %v16450_v21 = vsel %vm437_vm3, 0.0, %v8182_v1  ;;  %v8206_v2 = vsel %vm437_vm3, %v8182_v1, 0.0  ;;  %11829 = vrot.lane.b32.xlu0 %v11828_v26, %s12193_s14 }
0x126a   : > { %v8283_v7 = vrot.slane %v8206_v2, 2  ;;  %v8183_v10 = vrot.slane %v8167_v3, 7  ;;  %v8282_v35 = vrot.slane %v16450_v21, 2  ;;  %v8241_v56 = vrot.slane %v8206_v2, 1 }
0x126b   : > { %v8240_v59 = vrot.slane %v16450_v21, 1  ;;  %11839 = vrot.lane.b32.xlu1 %v11838_v58, %s12193_s14  ;;  %v11843_v8 = vpack.i.bf16 %v16395_v18, %v16450_v21 }
0x126c   : > { %v8199_v19 = vsel %vm437_vm3, 0.0, %v8183_v10  ;;  %v8207_v33 = vsel %vm437_vm3, %v8183_v10, 0.0  ;;  %v8284_v38 = vsel %vm339_vm1, %v8282_v35, %v8283_v7 }
0x126d   : > { %v8344_v25 = vrot.slane %v8207_v33, 2  ;;  %v11848_v47 = vpack.i.bf16 %v8199_v19, %v8278_v9  ;;  %v8473_v22 = vpack.c.bf16 %v8284_v38, %v8281_v60  ;;  %v8343_v11 = vrot.slane %v8199_v19, 2 }
0x126e   : > { %v11868_v6 = vpack.i.bf16 %v8284_v38, %v8281_v60  ;;  %v16467_v34 = vsel %vm472_vm4, %v8240_v59, %v8241_v56  ;;  %v11853_v61 = vpack.i.bf16 %v8284_v38, %v16439_v5  ;;  %v8333_v62 = vrot.slane %v8207_v33, 1 }
0x126f   : > { %11849 = vrot.lane.b32.xlu0 %v11848_v47, %s12194_s15  ;;  %10453 = vmatprep.mubr.msk.bf16.mxu0 %vm689_vm5, %v8473_v22  ;;  %v8345_v63 = vsel %vm339_vm1, %v8343_v11, %v8344_v25  ;;  %v11863_v18 = vpack.i.bf16 %v16467_v34, %v16474_v42  ;;  %v8332_v41 = vrot.slane %v8199_v19, 1 }
0x1270   : > { %11844 = vrot.lane.b32.xlu1 %v11843_v8, %s12194_s15  ;;  %v8476_v44 = vpack.c.bf16 %v12381_v51, %v8345_v63  ;;  %v11873_v51 = vpack.i.bf16 %v16474_v42, %v8345_v63 }
0x1271   : > { %v16487_v46 = vsel %vm472_vm4, %v8332_v41, %v8333_v62 }
0x1272   : > { %10454 = vmatmul.mubr.msk.bf16.gmra.mrb[156].mxu0 %vm689_vm5, %v8476_v44  ;;  %v11878_v31 = vpack.i.bf16 %v16450_v21, %v16487_v46 }
0x1273   : > { %11854 = vrot.lane.b32.xlu0 %v11853_v61, %s12193_s14 }
0x1274   : > { %11864 = vrot.lane.b32.xlu1 %v11863_v18, %s12192_s9 }
0x1277   : > { %11859 = vrot.lane.b32.xlu0 %v11858_v48, %s12192_s9 }
0x1278   : > { %11869 = vrot.lane.b32.xlu1 %v11868_v6, %s12194_s15 }
0x127b   : > { %8255 = vrot.lane.b32.xlu0 %v16467_v34, %s12193_s14 }
0x127c   : > { %11874 = vrot.lane.b32.xlu1 %v11873_v51, %s12193_s14  ;;  %s12132_s14 = scalar_lea.vmem %s12131_s19, 2048 }
0x127f   : > { %11879 = vrot.lane.b32.xlu0 %v11878_v31, %s12192_s9 }
0x1280   : > { %8321 = vrot.lane.b32.xlu1 %v8199_v19, %s12192_s9  ;;  %s242_s9 = sand.u32 1, %s12180_s22  }
0x1281   : > { %s8884_s20 = sshll.u32 %s242_s9, 6  ;;  %s16598_s25 = scalar_lea.sflag [#allocation3], %s242_s9 }
0x1282   : > { %s16569_s29 = scalar_lea.vmem [#allocation2], %s8884_s20 }
0x1283   : > { %s8818_s11 = sshll.u32 %s16569_s29, 4  ;;  %s16590_s11 = int_to_ptr.vmem [resolvable:$true] %s8818_s11 }
0x1284   : > { %s12126_s17 = scalar_lea.vmem %s16590_s11, 1024  ;;  %p12133_p0 = scmp.lt.s32.totalorder %s16590_s11, %s12131_s19 }
0x1285   : > { %p12127_p11 = scmp.ne.s32.totalorder %s16590_s11, %s12126_s17  ;;  %p12134_p1 = scmp.lt.s32.totalorder %s12132_s14, %s12126_s17 }
0x1287   : > { %p12128_p12 = pnand %p12127_p11, %p12271_p5  ;;  %p12135_p2 = por %p12134_p1, %p12133_p0 }
0x1289   : > { %p12129_p13 = pneg %p12128_p12 }
0x128b   : > { %p12136_p3 = pnand %p12135_p2, %p12129_p13 }
0x12c2   : > { %v11780_v20 = vpop.permute.xlu0 %11779 }
0x12c3   : > { %v11781_v10 = vunpack.i.l.bf16 %v11780_v20  ;;  %v11782_v56 = vunpack.i.h.bf16 %v11780_v20 }
0x12c5   : > { %v11785_v4 = vpop.permute.xlu1 %11784  ;;  %v8433_v25 = vsel %vm707_vm7, %v12587_v13, %v11781_v10 }
0x12c6   : > { %v11787_v9 = vunpack.i.h.bf16 %v11785_v4  ;;  %v11786_v49 = vunpack.i.l.bf16 %v11785_v4 }
0x12c8   : > { %v8442_v57 = vsel %vm689_vm5, %v16376_v39, %v11787_v9  ;;  %v8441_v50 = vsel %vm689_vm5, %v16399_v23, %v11786_v49 }
0x12c9   : > { %v11790_v45 = vpop.permute.xlu1 %11789 }
0x12ca   : > { %v11792_v54 = vunpack.i.h.bf16 %v11790_v45  ;;  %v11791_v0 = vunpack.i.l.bf16 %v11790_v45 }
0x12cb   : > { %v11795_v40 = vpop.permute.xlu0 %11794 }
0x12cc   : > { %v8449_v17 = vsel %vm698_vm6, %v8441_v50, %v11791_v0  ;;  %v8450_v52 = vsel %vm698_vm6, %v8442_v57, %v11792_v54  ;;  %v11796_v35 = vunpack.i.l.bf16 %v11795_v40  ;;  %v11797_v11 = vunpack.i.h.bf16 %v11795_v40 }
0x12cd   : > { %v11810_v15 = vpop.permute.xlu1 %11809 }
0x12ce   : > { %v11812_v32 = vunpack.i.h.bf16 %v11810_v15  ;;  %v11811_v24 = vunpack.i.l.bf16 %v11810_v15 }
0x12cf   : > { %v11800_v1 = vpop.permute.xlu0 %11799 }
0x12d0   : > { %v8457_v60 = vsel %vm707_vm7, %v8449_v17, %v11811_v24  ;;  %v8458_v3 = vsel %vm707_vm7, %v8450_v52, %v11812_v32  ;;  %v11802_v45 = vunpack.i.h.bf16 %v11800_v1  ;;  %v11801_v9 = vunpack.i.l.bf16 %v11800_v1 }
0x12d1   : > { %v11815_v26 = vpop.permute.xlu1 %11814  ;;  %v8466_v2 = vpack.c.bf16 %v8458_v3, %v8457_v60 }
0x12d2   : > { %v11816_v59 = vunpack.i.l.bf16 %v11815_v26  ;;  %v11817_v47 = vunpack.i.h.bf16 %v11815_v26 }
0x12d3   : > { %v11805_v7 = vpop.permute.xlu0 %11804  ;;  %8666 = vmatprep.mubr.bf16.mxu1 %v8466_v2 }
0x12d4   : > { %v11807_v39 = vunpack.i.h.bf16 %v11805_v7  ;;  %v11806_v58 = vunpack.i.l.bf16 %v11805_v7 }
0x12d5   : > { %v11820_v23 = vpop.permute.xlu1 %11819 }
0x12d6   : > { %v8419_v16 = vsel %vm689_vm5, %v16297_v37, %v11806_v58  ;;  %v11821_v33 = vunpack.i.l.bf16 %v11820_v23  ;;  %v8443_v22 = vsel %vm689_vm5, %v16366_v27, %v11807_v39  ;;  %v11822_v6 = vunpack.i.h.bf16 %v11820_v23 }
0x12d7   : > { %v8426_v19 = vsel %vm698_vm6, %v8419_v16, %v11796_v35  ;;  %v11825_v38 = vpop.permute.xlu0 %11824  ;;  %v8444_v37 = vsel %vm689_vm5, %v16436_v14, %v11816_v59  ;;  %v8451_v13 = vsel %vm698_vm6, %v8443_v22, %v11797_v11  ;;  %v8420_v27 = vsel %vm689_vm5, %v16305_v28, %v11817_v47 }
0x12d8   : > { %v8434_v43 = vsel %vm707_vm7, %v8426_v19, %v11782_v56  ;;  %v8452_v18 = vsel %vm698_vm6, %v8444_v37, %v11821_v33  ;;  %v8427_v31 = vsel %vm698_vm6, %v8420_v27, %v11822_v6  ;;  %v11826_v4 = vunpack.i.l.bf16 %v11825_v38 }
0x12d9   : > { %v8465_v8 = vpack.c.bf16 %v8434_v43, %v8433_v25  ;;  %v11835_v63 = vpop.permute.xlu1 %11834  ;;  %v8435_v40 = vsel %vm707_vm7, %v8427_v31, %v11801_v9  ;;  %v11827_v1 = vunpack.i.h.bf16 %v11825_v38 }
0x12da   : > { %v11837_v44 = vunpack.i.h.bf16 %v11835_v63  ;;  %v11836_v61 = vunpack.i.l.bf16 %v11835_v63 }
0x12db   : > { %v11830_v48 = vpop.permute.xlu0 %11829  ;;  %8667 = vmatmul.mubr.bf16.vlgmr.msra.gmra.mrb[144].mxu1 %v8465_v8 }
0x12dc   : > { %v11831_v62 = vunpack.i.l.bf16 %v11830_v48  ;;  %v8459_v41 = vsel %vm707_vm7, %v8451_v13, %v11836_v61  ;;  %v8460_v51 = vsel %vm707_vm7, %v8452_v18, %v11837_v44  ;;  %v11832_v0 = vunpack.i.h.bf16 %v11830_v48 }
0x12dd   : > { %v11840_v14 = vpop.permute.xlu1 %11839  ;;  %v8469_v20 = vpack.c.bf16 %v8460_v51, %v8459_v41 }
0x12de   : > { %v8421_v49 = vsel %vm689_vm5, %v16336_v36, %v11831_v62  ;;  %v11841_v32 = vunpack.i.l.bf16 %v11840_v14  ;;  %v8445_v17 = vsel %vm689_vm5, %v16439_v5, %v11832_v0  ;;  %v11842_v36 = vunpack.i.h.bf16 %v11840_v14 }
0x12df   : > { %8674 = vmatprep.mubr.bf16.mxu1 %v8469_v20  ;;  %v8428_v54 = vsel %vm698_vm6, %v8421_v49, %v11826_v4  ;;  %v8453_v35 = vsel %vm698_vm6, %v8445_v17, %v11827_v1 }
0x12e0   : > { %v8436_v15 = vsel %vm707_vm7, %v8428_v54, %v11802_v45  ;;  %v8446_v26 = vsel %vm689_vm5, %v16474_v42, %v11841_v32  ;;  %v8422_v16 = vsel %vm689_vm5, %v16350_v55, %v11842_v36 }
0x12e1   : > { %v11850_v28 = vpop.permute.xlu0 %11849  ;;  %v8468_v50 = vpack.c.bf16 %v8436_v15, %v8435_v40 }
0x12e2   : > { %v11845_v57 = vpop.permute.xlu1 %11844  ;;  %v11851_v23 = vunpack.i.l.bf16 %v11850_v28  ;;  %v11852_v48 = vunpack.i.h.bf16 %v11850_v28 }
0x12e3   : > { %v11846_v24 = vunpack.i.l.bf16 %v11845_v57  ;;  %8675 = vmatmul.mubr.bf16.gmra.mrb[148].mxu1 %v8468_v50  ;;  %v11847_v2 = vunpack.i.h.bf16 %v11845_v57 }
0x12e5   : > { %v11855_v52 = vpop.permute.xlu0 %11854  ;;  %v8454_v39 = vsel %vm698_vm6, %v8446_v26, %v11846_v24  ;;  %v8429_v25 = vsel %vm698_vm6, %v8422_v16, %v11847_v2 }
0x12e6   : > { %v11856_v60 = vunpack.i.l.bf16 %v11855_v52  ;;  %v11865_v3 = vpop.permute.xlu1 %11864 }
0x12e7   : > { %v11867_v7 = vunpack.i.h.bf16 %v11865_v3  ;;  %v11866_v10 = vunpack.i.l.bf16 %v11865_v3  ;;  %v9668_v3 = vld [vmem:[%s16644_s5 + $0xc] ss:$0 sm:$0xff] }
0x12e8   : > { %v8423_v58 = vsel %vm689_vm5, %v16408_v29, %v11856_v60  ;;  %v11857_v29 = vunpack.i.h.bf16 %v11855_v52  ;;  %v9666_v52 = vld [vmem:[%s16643_s4 + $0xc] ss:$0 sm:$0xff] }
0x12e9   : > { %v11860_v5 = vpop.permute.xlu0 %11859  ;;  %v8461_v56 = vsel %vm707_vm7, %v8453_v35, %v11866_v10  ;;  %v8462_v59 = vsel %vm707_vm7, %v8454_v39, %v11867_v7  ;;  %v8430_v47 = vsel %vm698_vm6, %v8423_v58, %v11851_v23 }
0x12ea   : > { %v11862_v42 = vunpack.i.h.bf16 %v11860_v5  ;;  %v11861_v19 = vunpack.i.l.bf16 %v11860_v5  ;;  %v11870_v33 = vpop.permute.xlu1 %11869  ;;  %v8472_v38 = vpack.c.bf16 %v8462_v59, %v8461_v56  ;;  %v8447_v61 = vsel %vm689_vm5, %v16467_v34, %v11857_v29 }
0x12eb   : > { %v11872_v11 = vunpack.i.h.bf16 %v11870_v33  ;;  %v11871_v18 = vunpack.i.l.bf16 %v11870_v33  ;;  %v8455_v20 = vsel %vm698_vm6, %v8447_v61, %v11852_v48 }
0x12ec   : > { %8682 = vmatprep.mubr.bf16.mxu1 %v8472_v38  ;;  %v8437_v22 = vsel %vm707_vm7, %v8429_v25, %v11861_v19  ;;  %v8438_v43 = vsel %vm707_vm7, %v8430_v47, %v11862_v42 }
0x12ed   : > { %v8256_v8 = vpop.permute.xlu0 %8255  ;;  %v8471_v6 = vpack.c.bf16 %v8438_v43, %v8437_v22 }
0x12ee   : > { %v8425_v55 = vsel %vm689_vm5, %v16450_v21, %v8256_v8  ;;  %v11875_v63 = vpop.permute.xlu1 %11874 }
0x12ef   : > { %8683 = vmatmul.mubr.bf16.gmra.mrb[152].mxu1 %v8471_v6  ;;  %v11877_v37 = vunpack.i.h.bf16 %v11875_v63  ;;  %v11876_v44 = vunpack.i.l.bf16 %v11875_v63  ;;  %v8432_v41 = vsel %vm698_vm6, %v8425_v55, %v11872_v11 }
0x12f1   : > { %v8424_v13 = vsel %vm689_vm5, %v16416_v53, %v11877_v37  ;;  %v8448_v27 = vsel %vm689_vm5, %v16487_v46, %v11876_v44  ;;  %v11880_v62 = vpop.permute.xlu0 %11879 }
0x12f2   : > { %v11882_v51 = vunpack.i.h.bf16 %v11880_v62  ;;  %v11881_v21 = vunpack.i.l.bf16 %v11880_v62  ;;  %v8322_v31 = vpop.permute.xlu1 %8321  ;;  %v8431_v4 = vsel %vm698_vm6, %v8424_v13, %v11871_v18  ;;  %v8456_v14 = vsel %vm698_vm6, %v8448_v27, %v12635_v12 }
0x12f3   : > { %v8440_v34 = vsel %vm707_vm7, %v8432_v41, %v8322_v31  ;;  %v8464_v53 = vsel %vm707_vm7, %v8456_v14, %v12645_v30 }
0x12f4   : > { %v8439_v46 = vsel %vm707_vm7, %v8431_v4, %v11882_v51  ;;  %v8463_v45 = vsel %vm707_vm7, %v8455_v20, %v11881_v21 }
0x12f5   : > { %v8474_v9 = vpack.c.bf16 %v8440_v34, %v8439_v46  ;;  %v8475_v49 = vpack.c.bf16 %v8464_v53, %v8463_v45 }
0x12f7   : > { %8690 = vmatprep.mubr.bf16.mxu1 %v8475_v49 }
0x12f8   : > { %8691 = vmatmul.mubr.bf16.gmra.mrb[156].mxu1 %v8474_v9 }
0x1338   : > { %v10451_v54 = vpop.f32.mrb[152].mxu0 }
0x1339   : > { %v8733_v0 = vpop.f32.mrb[153].mxu0 }
0x133a   : > { %v10452_v12 = vpop.f32.mrb[154].mxu0 }
0x133b   : > { %v8736_v28 = vpop.f32.mrb[155].mxu0 }
0x1345   : > { %v10455_v40 = vpop.f32.mrb[156].mxu0 }
0x1346   : > { %v8749_v15 = vpop.f32.mrb[157].mxu0 }
0x1347   : > { %v10456_v57 = vpop.f32.mrb[158].mxu0 }
0x1348   : > { %v8752_v50 = vpop.f32.mrb[159].mxu0 }
0x13ae   : > { %v10253_v32 = vpop.f32.mrb[144].mxu1 }
0x13af   : > { %v10254_v30 = vpop.f32.mrb[145].mxu1 }
0x13b0   : > { %v10255_v24 = vadd.f32 %v10254_v30, %v10253_v32  ;;  %v10256_v17 = vpop.f32.mrb[146].mxu1 }
0x13b1   : > { %v10257_v1 = vpop.f32.mrb[147].mxu1 }
0x13b2   : > { %v8734_v36 = vadd.f32 %v10255_v24, %v8733_v0  ;;  %v10258_v60 = vadd.f32 %v10257_v1, %v10256_v17 }
0x13b4   : > { %v8772_v26 = vmul.f32 %v9666_v52, %v8734_v36  ;;  %v8737_v2 = vadd.f32 %v10258_v60, %v8736_v28 }
0x13b6   : > { %v8788_v7 = vadd.f32 %v9668_v3, %v8772_v26  ;;  %v8773_v10 = vmul.f32 %v9666_v52, %v8737_v2  ;;  %v10259_v39 = vpop.f32.mrb[148].mxu1 }
0x13b7   : > { %v10260_v58 = vpop.f32.mrb[149].mxu1 }
0x13b8   : > { %8796 = vst.msk [vmem:[%s16569_s29] sm:$0xff] %vm689_vm5, %v8788_v7  ;;  %v8789_v35 = vadd.f32 %v9668_v3, %v8773_v10  ;;  %v10261_v23 = vadd.f32 %v10260_v58, %v10259_v39  ;;  %v10262_v5 = vpop.f32.mrb[150].mxu1 }
0x13b9   : > { %v10263_v56 = vpop.f32.mrb[151].mxu1 }
0x13ba   : > { %8797 = vst.msk [vmem:[%s16569_s29 + $0x8] sm:$0xff] %vm689_vm5, %v8789_v35  ;;  %v8742_v59 = vadd.f32 %v10451_v54, %v10261_v23  ;;  %v10264_v16 = vadd.f32 %v10263_v56, %v10262_v5 }
0x13bc   : > { %v8774_v42 = vmul.f32 %v9666_v52, %v8742_v59  ;;  %v8745_v19 = vadd.f32 %v10452_v12, %v10264_v16 }
0x13be   : > { %v8790_v33 = vadd.f32 %v9668_v3, %v8774_v42  ;;  %v8775_v38 = vmul.f32 %v9666_v52, %v8745_v19 }
0x13c0   : > { %8798 = vst.msk [vmem:[%s16569_s29 + $0x10] sm:$0xff] %vm689_vm5, %v8790_v33  ;;  %v8791_v25 = vadd.f32 %v9668_v3, %v8775_v38 }
0x13c2   : > { %v10265_v47 = vpop.f32.mrb[152].mxu1  ;;  %8799 = vst.msk [vmem:[%s16569_s29 + $0x18] sm:$0xff] %vm689_vm5, %v8791_v25 }
0x13c3   : > { %v10266_v29 = vpop.f32.mrb[153].mxu1 }
0x13c4   : > { %v10267_v22 = vadd.f32 %v10266_v29, %v10265_v47  ;;  %v10268_v43 = vpop.f32.mrb[154].mxu1 }
0x13c5   : > { %v10269_v11 = vpop.f32.mrb[155].mxu1 }
0x13c6   : > { %v8750_v8 = vadd.f32 %v10267_v22, %v8749_v15  ;;  %v10270_v6 = vadd.f32 %v10269_v11, %v10268_v43 }
0x13c8   : > { %v8776_v55 = vmul.f32 %v9666_v52, %v8750_v8  ;;  %v8753_v63 = vadd.f32 %v10270_v6, %v8752_v50 }
0x13ca   : > { %v8792_v37 = vadd.f32 %v9668_v3, %v8776_v55  ;;  %v8777_v44 = vmul.f32 %v9666_v52, %v8753_v63 }
0x13cb   : > { %v10271_v61 = vpop.f32.mrb[156].mxu1 }
0x13cc   : > { %8800 = vst.msk [vmem:[%s16569_s29 + $0x20] sm:$0xff] %vm689_vm5, %v8792_v37  ;;  %v8793_v18 = vadd.f32 %v9668_v3, %v8777_v44  ;;  %v10272_v48 = vpop.f32.mrb[157].mxu1 }
0x13cd   : > { %v10273_v13 = vadd.f32 %v10272_v48, %v10271_v61  ;;  %v10274_v27 = vpop.f32.mrb[158].mxu1 }
0x13ce   : > { %8801 = vst.msk [vmem:[%s16569_s29 + $0x28] sm:$0xff] %vm689_vm5, %v8793_v18  ;;  %v10275_v62 = vpop.f32.mrb[159].mxu1 }
0x13cf   : > { %v8758_v41 = vadd.f32 %v10455_v40, %v10273_v13  ;;  %v10276_v51 = vadd.f32 %v10275_v62, %v10274_v27 }
0x13d1   : > { %v8778_v21 = vmul.f32 %v9666_v52, %v8758_v41  ;;  %v8761_v31 = vadd.f32 %v10456_v57, %v10276_v51 }
0x13d3   : > { %v8794_v4 = vadd.f32 %v9668_v3, %v8778_v21  ;;  %v8779_v14 = vmul.f32 %v9666_v52, %v8761_v31 }
0x13d5   : > { %8802 = vst.msk [vmem:[%s16569_s29 + $0x30] sm:$0xff] %vm689_vm5, %v8794_v4  ;;  %v8795_v34 = vadd.f32 %v9668_v3, %v8779_v14 }
0x13d7   : > { %8803 = vst.msk [vmem:[%s16569_s29 + $0x38] sm:$0xff] %vm689_vm5, %v8795_v34 }
0x13d8   : > { %12139 = shalt.err (!%p12136_p3)
}
0x13d9   : > { %s12140_s9 = scalar_lea.hbm %s16588_s16, 1024  ;;  %s12144_s26 = scalar_lea.hbm %s16645_s6, 2048 }
0x13da   : > { %p12141_p4 = scmp.ne.s32.totalorder %s16588_s16, %s12140_s9  ;;  %p12145_p9 = scmp.lt.u32.totalorder %s16588_s16, %s16645_s6 }
0x13db   : > { %p12146_p10 = scmp.lt.u32.totalorder %s12144_s26, %s12140_s9  ;;  %p12148_p12 = scmp.lt.u32.totalorder %s12140_s9, %s16588_s16 }
0x13dc   : > { %p12142_p7 = pnand %p12141_p4, %p12271_p5 }
0x13dd   : > { %p12147_p11 = por %p12146_p10, %p12145_p9 }
0x13de   : > { %p12143_p8 = pneg %p12142_p7 }
0x13df   : > { %p12149_p13 = por %p12148_p12, %p12147_p11 }
0x13e1   : > { %p12150_p0 = pnand %p12149_p13, %p12143_p8 }
0x13e3   : > { %12153 = shalt.err (!%p12150_p0)
}
0x13e4   : > { %s12196_s10 = smov 128   ;;  %s12197_s12 = smov 8  }
0x13e5   : > { %10457 = dma.vmem_to_hbm [thread:$0]  (%p12271_p5), %s16590_s11, 1024, %s16588_s16, %s16598_s25, %s12196_s10, %s12196_s10, %s12197_s12  }
0x13e6 PF: > { %p10463_p1 = scmp.ge.s32.totalorder %s12188_s24, 2  ;;  %s8833_s13 = sand.u32 1, %s12176_s21  }
0x13e7   : > { %s8834_s17 = scalar_lea.sflag [#allocation3], %s8833_s13 }
0x13e8   : > { %p10460_p2 = pnand %p10463_p1, %p12275_p6 }
0x13ea   : > { %12171 = dma.done.wait (!%p10460_p2), %s8834_s17, 1024  }
0x13eb   : > { %12173 = vsyncadd (!%p10460_p2), %s8834_s17, 4294966272  ;;  %p16_p3 = scmp.ge.s32.totalorder %s12258_s27, 4   ;;  %s16648_s21 = smov %s12180_s22 }
0x13ec   : > { %s16649_s22 = smov %s12184_s23  ;;  %s16650_s23 = smov %s12269_s30 }
0x13ed   : > { %s16651_s24 = smov %s12258_s27  ;;  %18 = sbr.rel (!%p16_p3) target bundleno = 3 (0x3), region = 115 }
0x13f4   :  { %8839 = vsyncpa [#allocation3], 1 }
0x13f5   :  { %8841 = vsyncpa [#allocation3 + $0x1], 1 }

</bundles_post_ra>
